<compile_context>
chip_gen: v7x
topology: tpu7x:2x2x1
jax: 0.10.0
libtpu: 0.0.40
codegen_flags: <defaults>
</compile_context>

<pallas_src>
import jax
import jax.numpy as jnp
from jax.experimental import pallas as pl
from jax.experimental.pallas import tpu as pltpu  # noqa: F401 (kept for TPU-specific tuning hooks)

# ---------------- config (small synthetic DINO ViT-small analogue) ----------------
IMG = 32
PATCH = 16
CHANS = 3
NPATCH = (IMG // PATCH) ** 2          # 4 patches
NTOK = NPATCH + 1                     # 5 tokens (CLS + patches)
EMBED = 32
HEADS = 4
HEAD_DIM = EMBED // HEADS             # 8
HIDDEN = 4 * EMBED                    # 128 (mlp_ratio = 4)
DEPTH = 12
LN_EPS = 1e-6
SCALE = HEAD_DIM ** -0.5
PATCH_DIM = CHANS * PATCH * PATCH     # 768
LANES = 128                           # vector-slab lane width (3*EMBED=96, HIDDEN=128 fit)

IMAGENET_MEAN = jnp.array([0.485, 0.456, 0.406], dtype=jnp.float32)
IMAGENET_STD = jnp.array([0.229, 0.224, 0.225], dtype=jnp.float32)


def _layernorm(v, g, b):
    mu = jnp.mean(v, axis=-1, keepdims=True)
    var = jnp.mean((v - mu) ** 2, axis=-1, keepdims=True)
    return (v - mu) * jax.lax.rsqrt(var + LN_EPS) * g + b


# ---------------- fused transformer kernel (single invocation, depth unrolled) ----------------
def dino_fused_kernel(x0_ref, norm_ref, vecs_ref, wa_ref, fc1w_ref, fc2w_ref,
                      cls_out_ref, attn_out_ref):
    x = x0_ref[...]                                   # (NTOK, EMBED) token state
    cls_rows = []
    last_p = None

    for d in range(DEPTH):
        # per-block packed params (static index -> cheap VMEM reads)
        vec = vecs_ref[d]                             # (8, 128) lane-dense vector slab
        ln1_g = vec[0:1, 0:EMBED]
        ln1_b = vec[1:2, 0:EMBED]
        qkv_b = vec[2:3, 0:3 * EMBED]
        proj_b = vec[3:4, 0:EMBED]
        ln2_g = vec[4:5, 0:EMBED]
        ln2_b = vec[5:6, 0:EMBED]
        fc1_b = vec[6:7, 0:HIDDEN]
        fc2_b = vec[7:8, 0:EMBED]

        wa = wa_ref[d]                                # (EMBED, 128): [:, :96]=qkv_w, [:, 96:]=proj_w
        qkv_w = wa[:, 0:3 * EMBED]
        proj_w = wa[:, 3 * EMBED:4 * EMBED]

        # ---- attention branch (pre-LN), fused lane-dense QKV matmul ----
        xn = _layernorm(x, ln1_g, ln1_b)
        qkv = jnp.dot(xn, qkv_w, preferred_element_type=jnp.float32) + qkv_b   # (NTOK, 96)

        o_heads = []
        p_heads = []
        for h in range(HEADS):
            lo = h * HEAD_DIM
            qh = qkv[:, lo:lo + HEAD_DIM]                         # (NTOK, HEAD_DIM)
            kh = qkv[:, EMBED + lo:EMBED + lo + HEAD_DIM]
            vh = qkv[:, 2 * EMBED + lo:2 * EMBED + lo + HEAD_DIM]
            # scores: contract head_dim on both (no explicit transpose)
            s = jax.lax.dot_general(qh, kh, (((1,), (1,)), ((), ())),
                                    preferred_element_type=jnp.float32) * SCALE  # (NTOK, NTOK)
            s = s - jnp.max(s, axis=-1, keepdims=True)
            e = jnp.exp(s)
            ph = e / jnp.sum(e, axis=-1, keepdims=True)           # softmax over keys
            p_heads.append(ph)
            o_heads.append(jnp.dot(ph, vh, preferred_element_type=jnp.float32))  # (NTOK, HEAD_DIM)

        o = jnp.concatenate(o_heads, axis=-1)                     # (NTOK, EMBED) heads on lanes
        x = x + jnp.dot(o, proj_w, preferred_element_type=jnp.float32) + proj_b

        # ---- MLP branch (pre-LN), exact (erf) GELU ----
        xn2 = _layernorm(x, ln2_g, ln2_b)
        h1 = jnp.dot(xn2, fc1w_ref[d], preferred_element_type=jnp.float32) + fc1_b
        h1 = 0.5 * h1 * (1.0 + jax.lax.erf(h1 * 0.7071067811865476))
        x = x + jnp.dot(h1, fc2w_ref[d], preferred_element_type=jnp.float32) + fc2_b

        cls_rows.append(x[0:1, :])
        if d == DEPTH - 1:
            last_p = p_heads

    # get_intermediate_layers applies the *final* norm to every block output; take CLS rows.
    cls_all = jnp.concatenate(cls_rows, axis=0)                   # (DEPTH, EMBED)
    cls_out_ref[...] = _layernorm(cls_all, norm_ref[0:1, :], norm_ref[1:2, :])

    # last block's self-attention map (get_last_selfattention)
    for h in range(HEADS):
        attn_out_ref[h] = last_p[h]


def dino_pallas(x0, pk):
    cls_all, attn = pl.pallas_call(
        dino_fused_kernel,
        out_shape=(
            jax.ShapeDtypeStruct((DEPTH, EMBED), jnp.float32),
            jax.ShapeDtypeStruct((HEADS, NTOK, NTOK), jnp.float32),
        ),
    )(x0, pk['norm'], pk['vecs'], pk['wa'], pk['fc1_w'], pk['fc2_w'])
    return cls_all, attn


# ---------------- deterministic synthetic parameters ----------------
def init_params(key):
    # Weights stored pre-transposed to (in, out) (i.e. PyTorch W.T) so kernels do x @ W.
    keys = jax.random.split(key, 4 + DEPTH)
    params = {
        'patch_w': jax.random.normal(keys[0], (PATCH_DIM, EMBED), jnp.float32) * 0.02,
        'patch_b': jnp.zeros((1, EMBED), jnp.float32),
        'cls': jax.random.normal(keys[1], (1, EMBED), jnp.float32) * 0.02,
        'pos': jax.random.normal(keys[2], (NTOK, EMBED), jnp.float32) * 0.02,
        'norm_g': jnp.ones((1, EMBED), jnp.float32),
        'norm_b': jnp.zeros((1, EMBED), jnp.float32),
    }
    blocks = []
    for i in range(DEPTH):
        bk = jax.random.split(keys[4 + i], 4)
        blocks.append(dict(
            ln1_g=jnp.ones((1, EMBED), jnp.float32),
            ln1_b=jnp.zeros((1, EMBED), jnp.float32),
            qkv_w=jax.random.normal(bk[0], (EMBED, 3 * EMBED), jnp.float32) * 0.02,
            qkv_b=jnp.zeros((1, 3 * EMBED), jnp.float32),
            proj_w=jax.random.normal(bk[1], (EMBED, EMBED), jnp.float32) * 0.02,
            proj_b=jnp.zeros((1, EMBED), jnp.float32),
            ln2_g=jnp.ones((1, EMBED), jnp.float32),
            ln2_b=jnp.zeros((1, EMBED), jnp.float32),
            fc1_w=jax.random.normal(bk[2], (EMBED, HIDDEN), jnp.float32) * 0.02,
            fc1_b=jnp.zeros((1, HIDDEN), jnp.float32),
            fc2_w=jax.random.normal(bk[3], (HIDDEN, EMBED), jnp.float32) * 0.02,
            fc2_b=jnp.zeros((1, EMBED), jnp.float32),
        ))
    params['blocks'] = blocks
    return params


def pack_params(params):
    """Pack per-block weights into lane-dense DEPTH-stacked slabs (done once, outside
    the kernel): one (DEPTH, 8, 128) slab for all LN params + biases, one (DEPTH, 32, 128)
    slab for qkv_w||proj_w, plus stacked fc1_w / fc2_w."""
    blocks = params['blocks']

    def pad_lanes(v):
        v = jnp.asarray(v, jnp.float32).reshape(1, -1)
        return jnp.pad(v, ((0, 0), (0, LANES - v.shape[1])))

    wa, vecs, fc1, fc2 = [], [], [], []
    for b in blocks:
        wa.append(jnp.concatenate([b['qkv_w'], b['proj_w']], axis=1))     # (EMBED, 128)
        vecs.append(jnp.concatenate([
            pad_lanes(b['ln1_g']), pad_lanes(b['ln1_b']),
            pad_lanes(b['qkv_b']), pad_lanes(b['proj_b']),
            pad_lanes(b['ln2_g']), pad_lanes(b['ln2_b']),
            pad_lanes(b['fc1_b']), pad_lanes(b['fc2_b']),
        ], axis=0))                                                        # (8, 128)
        fc1.append(b['fc1_w'])
        fc2.append(b['fc2_w'])

    return {
        'patch_w': params['patch_w'], 'patch_b': params['patch_b'],
        'cls': params['cls'], 'pos': params['pos'],
        'norm': jnp.concatenate([params['norm_g'], params['norm_b']], axis=0),  # (2, EMBED)
        'wa': jnp.stack(wa, axis=0),          # (DEPTH, EMBED, 128)
        'vecs': jnp.stack(vecs, axis=0),      # (DEPTH, 8, 128)
        'fc1_w': jnp.stack(fc1, axis=0),      # (DEPTH, EMBED, HIDDEN)
        'fc2_w': jnp.stack(fc2, axis=0),      # (DEPTH, HIDDEN, EMBED)
    }


# ---------------- full forward (mirrors DINO.forward) ----------------
@jax.jit
def dino_forward(image_hwc, packed):
    # transform: ToTensor (HWC [0,1] -> CHW) + Normalize(mean, std), unsqueeze(0)
    x = jnp.transpose(image_hwc, (2, 0, 1))
    x = (x - IMAGENET_MEAN[:, None, None]) / IMAGENET_STD[:, None, None]
    x = x[None]                                               # (1, 3, H, W), NCHW

    # patchify (Conv2d k=P, s=P == patchify + matmul) -- patch embed hoisted out of kernel
    B, C, H, W = x.shape
    gh, gw = H // PATCH, W // PATCH
    patches = x.reshape(B, C, gh, PATCH, gw, PATCH)
    patches = jnp.transpose(patches, (0, 2, 4, 1, 3, 5)).reshape(
        B * gh * gw, C * PATCH * PATCH)
    pe = jnp.dot(patches, packed['patch_w']) + packed['patch_b']          # (NPATCH, EMBED)
    x0 = jnp.concatenate([packed['cls'], pe], axis=0) + packed['pos']     # (NTOK, EMBED)

    cls_all, attn = dino_pallas(x0, packed)                   # (DEPTH, E), (H, N, N)

    outs = tuple(cls_all[i:i + 1] for i in range(DEPTH))      # 12 x (1, EMBED)
    attentions = attn[None]                                   # (1, HEADS, NTOK, NTOK)
    # TODO(synk): the trailing discarded `self.model(x)` classifier call (num_classes=0,
    # output unused) is intentionally skipped.
    return outs + (attentions,)


if __name__ == "__main__":
    key = jax.random.PRNGKey(0)
    pkey, ikey = jax.random.split(key)
    params = init_params(pkey)
    packed = pack_params(params)
    # synthetic "PIL image": HWC float in [0,1] (what ToTensor would produce, pre-CHW)
    image = jax.random.uniform(ikey, (IMG, IMG, CHANS), jnp.float32)

    outs = dino_forward(image, packed)
    outs = jax.block_until_ready(outs)

    assert len(outs) == 13
    for i in range(12):
        assert outs[i].shape == (1, EMBED) and outs[i].dtype == jnp.float32
    assert outs[-1].shape == (1, HEADS, NTOK, NTOK)
    print("KERNEL_OK")
</pallas_src>

<mosaic_0001>
module attributes {stable_mosaic.version = 11 : i64} {
  func.func @dino_fused_kernel(%arg0: memref<5x32xf32, #tpu.memory_space<vmem>>, %arg1: memref<2x32xf32, #tpu.memory_space<vmem>>, %arg2: memref<12x8x128xf32, #tpu.memory_space<vmem>>, %arg3: memref<12x32x128xf32, #tpu.memory_space<vmem>>, %arg4: memref<12x32x128xf32, #tpu.memory_space<vmem>>, %arg5: memref<12x128x32xf32, #tpu.memory_space<vmem>>, %arg6: memref<12x32xf32, #tpu.memory_space<vmem>>, %arg7: memref<4x5x5xf32, #tpu.memory_space<vmem>>) attributes {dimension_semantics = [], scalar_prefetch = 0 : i64, scratch_operands = 0 : i64, tpu.core_type = #tpu.core_type<tc>} {
    %c0 = arith.constant 0 : index
    %c0_0 = arith.constant 0 : index
    %0 = vector.load %arg0[%c0, %c0_0] : memref<5x32xf32, #tpu.memory_space<vmem>>, vector<5x32xf32>
    %c0_1 = arith.constant 0 : index
    %c0_2 = arith.constant 0 : index
    %c0_3 = arith.constant 0 : index
    %1 = vector.load %arg2[%c0_1, %c0_2, %c0_3] : memref<12x8x128xf32, #tpu.memory_space<vmem>>, vector<1x8x128xf32>
    %2 = vector.shape_cast %1 : vector<1x8x128xf32> to vector<8x128xf32>
    %3 = vector.extract_strided_slice %2 {offsets = [0, 0], sizes = [1, 32], strides = [1, 1]} : vector<8x128xf32> to vector<1x32xf32>
    %4 = vector.extract_strided_slice %2 {offsets = [1, 0], sizes = [1, 32], strides = [1, 1]} : vector<8x128xf32> to vector<1x32xf32>
    %5 = vector.extract_strided_slice %2 {offsets = [2, 0], sizes = [1, 96], strides = [1, 1]} : vector<8x128xf32> to vector<1x96xf32>
    %6 = vector.extract_strided_slice %2 {offsets = [3, 0], sizes = [1, 32], strides = [1, 1]} : vector<8x128xf32> to vector<1x32xf32>
    %7 = vector.extract_strided_slice %2 {offsets = [4, 0], sizes = [1, 32], strides = [1, 1]} : vector<8x128xf32> to vector<1x32xf32>
    %8 = vector.extract_strided_slice %2 {offsets = [5, 0], sizes = [1, 32], strides = [1, 1]} : vector<8x128xf32> to vector<1x32xf32>
    %9 = vector.extract_strided_slice %2 {offsets = [6, 0], sizes = [1, 128], strides = [1, 1]} : vector<8x128xf32> to vector<1x128xf32>
    %10 = vector.extract_strided_slice %2 {offsets = [7, 0], sizes = [1, 32], strides = [1, 1]} : vector<8x128xf32> to vector<1x32xf32>
    %c0_4 = arith.constant 0 : index
    %c0_5 = arith.constant 0 : index
    %c0_6 = arith.constant 0 : index
    %11 = vector.load %arg3[%c0_4, %c0_5, %c0_6] : memref<12x32x128xf32, #tpu.memory_space<vmem>>, vector<1x32x128xf32>
    %12 = vector.shape_cast %11 : vector<1x32x128xf32> to vector<32x128xf32>
    %13 = vector.extract_strided_slice %12 {offsets = [0, 0], sizes = [32, 96], strides = [1, 1]} : vector<32x128xf32> to vector<32x96xf32>
    %14 = vector.extract_strided_slice %12 {offsets = [0, 96], sizes = [32, 32], strides = [1, 1]} : vector<32x128xf32> to vector<32x32xf32>
    %cst = arith.constant dense<0.000000e+00> : vector<5xf32>
    %15 = vector.multi_reduction <add>, %0, %cst [1] : vector<5x32xf32> to vector<5xf32>
    %16 = vector.shape_cast %15 : vector<5xf32> to vector<5x1xf32>
    %cst_7 = arith.constant 3.200000e+01 : f32
    %17 = vector.broadcast %cst_7 : f32 to vector<5x1xf32>
    %18 = arith.divf %16, %17 : vector<5x1xf32>
    %19 = vector.broadcast %18 : vector<5x1xf32> to vector<5x32xf32>
    %20 = arith.subf %0, %19 : vector<5x32xf32>
    %21 = arith.mulf %20, %20 : vector<5x32xf32>
    %cst_8 = arith.constant dense<0.000000e+00> : vector<5xf32>
    %22 = vector.multi_reduction <add>, %21, %cst_8 [1] : vector<5x32xf32> to vector<5xf32>
    %23 = vector.shape_cast %22 : vector<5xf32> to vector<5x1xf32>
    %cst_9 = arith.constant 3.200000e+01 : f32
    %24 = vector.broadcast %cst_9 : f32 to vector<5x1xf32>
    %25 = arith.divf %23, %24 : vector<5x1xf32>
    %26 = vector.broadcast %18 : vector<5x1xf32> to vector<5x32xf32>
    %27 = arith.subf %0, %26 : vector<5x32xf32>
    %cst_10 = arith.constant 9.99999997E-7 : f32
    %28 = vector.broadcast %cst_10 : f32 to vector<5x1xf32>
    %29 = arith.addf %25, %28 : vector<5x1xf32>
    %30 = math.rsqrt %29 : vector<5x1xf32>
    %31 = vector.broadcast %30 : vector<5x1xf32> to vector<5x32xf32>
    %32 = arith.mulf %27, %31 : vector<5x32xf32>
    %33 = vector.broadcast %3 : vector<1x32xf32> to vector<5x32xf32>
    %34 = arith.mulf %32, %33 : vector<5x32xf32>
    %35 = vector.broadcast %4 : vector<1x32xf32> to vector<5x32xf32>
    %36 = arith.addf %34, %35 : vector<5x32xf32>
    %cst_11 = arith.constant dense<0.000000e+00> : vector<5x96xf32>
    %37 = tpu.matmul %36, %13, %cst_11 {dimension_numbers = #tpu.dot_dimension_numbers<[1], [0], [0], [1], [0, 0, 1, 1], [], []>} : vector<5x32xf32>, vector<32x96xf32>, vector<5x96xf32> -> vector<5x96xf32>
    %38 = vector.broadcast %5 : vector<1x96xf32> to vector<5x96xf32>
    %39 = arith.addf %37, %38 : vector<5x96xf32>
    %40 = vector.extract_strided_slice %39 {offsets = [0, 0], sizes = [5, 8], strides = [1, 1]} : vector<5x96xf32> to vector<5x8xf32>
    %41 = vector.extract_strided_slice %39 {offsets = [0, 32], sizes = [5, 8], strides = [1, 1]} : vector<5x96xf32> to vector<5x8xf32>
    %42 = vector.extract_strided_slice %39 {offsets = [0, 64], sizes = [5, 8], strides = [1, 1]} : vector<5x96xf32> to vector<5x8xf32>
    %cst_12 = arith.constant dense<0.000000e+00> : vector<5x5xf32>
    %43 = tpu.matmul %40, %41, %cst_12 {dimension_numbers = #tpu.dot_dimension_numbers<[1], [1], [0], [0], [0, 0, 1, 0], [], []>} : vector<5x8xf32>, vector<5x8xf32>, vector<5x5xf32> -> vector<5x5xf32>
    %cst_13 = arith.constant 0.353553385 : f32
    %44 = vector.broadcast %cst_13 : f32 to vector<5x5xf32>
    %45 = arith.mulf %43, %44 : vector<5x5xf32>
    %cst_14 = arith.constant dense<0xFF800000> : vector<5xf32>
    %46 = vector.multi_reduction <maximumf>, %45, %cst_14 [1] : vector<5x5xf32> to vector<5xf32>
    %47 = vector.shape_cast %46 : vector<5xf32> to vector<5x1xf32>
    %48 = vector.broadcast %47 : vector<5x1xf32> to vector<5x5xf32>
    %49 = arith.subf %45, %48 : vector<5x5xf32>
    %50 = math.exp %49 : vector<5x5xf32>
    %cst_15 = arith.constant dense<0.000000e+00> : vector<5xf32>
    %51 = vector.multi_reduction <add>, %50, %cst_15 [1] : vector<5x5xf32> to vector<5xf32>
    %52 = vector.shape_cast %51 : vector<5xf32> to vector<5x1xf32>
    %53 = vector.broadcast %52 : vector<5x1xf32> to vector<5x5xf32>
    %54 = arith.divf %50, %53 : vector<5x5xf32>
    %cst_16 = arith.constant dense<0.000000e+00> : vector<5x8xf32>
    %55 = tpu.matmul %54, %42, %cst_16 {dimension_numbers = #tpu.dot_dimension_numbers<[1], [0], [0], [1], [0, 0, 1, 1], [], []>} : vector<5x5xf32>, vector<5x8xf32>, vector<5x8xf32> -> vector<5x8xf32>
    %56 = vector.extract_strided_slice %39 {offsets = [0, 8], sizes = [5, 8], strides = [1, 1]} : vector<5x96xf32> to vector<5x8xf32>
    %57 = vector.extract_strided_slice %39 {offsets = [0, 40], sizes = [5, 8], strides = [1, 1]} : vector<5x96xf32> to vector<5x8xf32>
    %58 = vector.extract_strided_slice %39 {offsets = [0, 72], sizes = [5, 8], strides = [1, 1]} : vector<5x96xf32> to vector<5x8xf32>
    %cst_17 = arith.constant dense<0.000000e+00> : vector<5x5xf32>
    %59 = tpu.matmul %56, %57, %cst_17 {dimension_numbers = #tpu.dot_dimension_numbers<[1], [1], [0], [0], [0, 0, 1, 0], [], []>} : vector<5x8xf32>, vector<5x8xf32>, vector<5x5xf32> -> vector<5x5xf32>
    %cst_18 = arith.constant 0.353553385 : f32
    %60 = vector.broadcast %cst_18 : f32 to vector<5x5xf32>
    %61 = arith.mulf %59, %60 : vector<5x5xf32>
    %cst_19 = arith.constant dense<0xFF800000> : vector<5xf32>
    %62 = vector.multi_reduction <maximumf>, %61, %cst_19 [1] : vector<5x5xf32> to vector<5xf32>
    %63 = vector.shape_cast %62 : vector<5xf32> to vector<5x1xf32>
    %64 = vector.broadcast %63 : vector<5x1xf32> to vector<5x5xf32>
    %65 = arith.subf %61, %64 : vector<5x5xf32>
    %66 = math.exp %65 : vector<5x5xf32>
    %cst_20 = arith.constant dense<0.000000e+00> : vector<5xf32>
    %67 = vector.multi_reduction <add>, %66, %cst_20 [1] : vector<5x5xf32> to vector<5xf32>
    %68 = vector.shape_cast %67 : vector<5xf32> to vector<5x1xf32>
    %69 = vector.broadcast %68 : vector<5x1xf32> to vector<5x5xf32>
    %70 = arith.divf %66, %69 : vector<5x5xf32>
    %cst_21 = arith.constant dense<0.000000e+00> : vector<5x8xf32>
    %71 = tpu.matmul %70, %58, %cst_21 {dimension_numbers = #tpu.dot_dimension_numbers<[1], [0], [0], [1], [0, 0, 1, 1], [], []>} : vector<5x5xf32>, vector<5x8xf32>, vector<5x8xf32> -> vector<5x8xf32>
    %72 = vector.extract_strided_slice %39 {offsets = [0, 16], sizes = [5, 8], strides = [1, 1]} : vector<5x96xf32> to vector<5x8xf32>
    %73 = vector.extract_strided_slice %39 {offsets = [0, 48], sizes = [5, 8], strides = [1, 1]} : vector<5x96xf32> to vector<5x8xf32>
    %74 = vector.extract_strided_slice %39 {offsets = [0, 80], sizes = [5, 8], strides = [1, 1]} : vector<5x96xf32> to vector<5x8xf32>
    %cst_22 = arith.constant dense<0.000000e+00> : vector<5x5xf32>
    %75 = tpu.matmul %72, %73, %cst_22 {dimension_numbers = #tpu.dot_dimension_numbers<[1], [1], [0], [0], [0, 0, 1, 0], [], []>} : vector<5x8xf32>, vector<5x8xf32>, vector<5x5xf32> -> vector<5x5xf32>
    %cst_23 = arith.constant 0.353553385 : f32
    %76 = vector.broadcast %cst_23 : f32 to vector<5x5xf32>
    %77 = arith.mulf %75, %76 : vector<5x5xf32>
    %cst_24 = arith.constant dense<0xFF800000> : vector<5xf32>
    %78 = vector.multi_reduction <maximumf>, %77, %cst_24 [1] : vector<5x5xf32> to vector<5xf32>
    %79 = vector.shape_cast %78 : vector<5xf32> to vector<5x1xf32>
    %80 = vector.broadcast %79 : vector<5x1xf32> to vector<5x5xf32>
    %81 = arith.subf %77, %80 : vector<5x5xf32>
    %82 = math.exp %81 : vector<5x5xf32>
    %cst_25 = arith.constant dense<0.000000e+00> : vector<5xf32>
    %83 = vector.multi_reduction <add>, %82, %cst_25 [1] : vector<5x5xf32> to vector<5xf32>
    %84 = vector.shape_cast %83 : vector<5xf32> to vector<5x1xf32>
    %85 = vector.broadcast %84 : vector<5x1xf32> to vector<5x5xf32>
    %86 = arith.divf %82, %85 : vector<5x5xf32>
    %cst_26 = arith.constant dense<0.000000e+00> : vector<5x8xf32>
    %87 = tpu.matmul %86, %74, %cst_26 {dimension_numbers = #tpu.dot_dimension_numbers<[1], [0], [0], [1], [0, 0, 1, 1], [], []>} : vector<5x5xf32>, vector<5x8xf32>, vector<5x8xf32> -> vector<5x8xf32>
    %88 = vector.extract_strided_slice %39 {offsets = [0, 24], sizes = [5, 8], strides = [1, 1]} : vector<5x96xf32> to vector<5x8xf32>
    %89 = vector.extract_strided_slice %39 {offsets = [0, 56], sizes = [5, 8], strides = [1, 1]} : vector<5x96xf32> to vector<5x8xf32>
    %90 = vector.extract_strided_slice %39 {offsets = [0, 88], sizes = [5, 8], strides = [1, 1]} : vector<5x96xf32> to vector<5x8xf32>
    %cst_27 = arith.constant dense<0.000000e+00> : vector<5x5xf32>
    %91 = tpu.matmul %88, %89, %cst_27 {dimension_numbers = #tpu.dot_dimension_numbers<[1], [1], [0], [0], [0, 0, 1, 0], [], []>} : vector<5x8xf32>, vector<5x8xf32>, vector<5x5xf32> -> vector<5x5xf32>
    %cst_28 = arith.constant 0.353553385 : f32
    %92 = vector.broadcast %cst_28 : f32 to vector<5x5xf32>
    %93 = arith.mulf %91, %92 : vector<5x5xf32>
    %cst_29 = arith.constant dense<0xFF800000> : vector<5xf32>
    %94 = vector.multi_reduction <maximumf>, %93, %cst_29 [1] : vector<5x5xf32> to vector<5xf32>
    %95 = vector.shape_cast %94 : vector<5xf32> to vector<5x1xf32>
    %96 = vector.broadcast %95 : vector<5x1xf32> to vector<5x5xf32>
    %97 = arith.subf %93, %96 : vector<5x5xf32>
    %98 = math.exp %97 : vector<5x5xf32>
    %cst_30 = arith.constant dense<0.000000e+00> : vector<5xf32>
    %99 = vector.multi_reduction <add>, %98, %cst_30 [1] : vector<5x5xf32> to vector<5xf32>
    %100 = vector.shape_cast %99 : vector<5xf32> to vector<5x1xf32>
    %101 = vector.broadcast %100 : vector<5x1xf32> to vector<5x5xf32>
    %102 = arith.divf %98, %101 : vector<5x5xf32>
    %cst_31 = arith.constant dense<0.000000e+00> : vector<5x8xf32>
    %103 = tpu.matmul %102, %90, %cst_31 {dimension_numbers = #tpu.dot_dimension_numbers<[1], [0], [0], [1], [0, 0, 1, 1], [], []>} : vector<5x5xf32>, vector<5x8xf32>, vector<5x8xf32> -> vector<5x8xf32>
    %104 = tpu.concatenate %55, %71, %87, %103 in 1 : vector<5x8xf32>, vector<5x8xf32>, vector<5x8xf32>, vector<5x8xf32> -> vector<5x32xf32>
    %cst_32 = arith.constant dense<0.000000e+00> : vector<5x32xf32>
    %105 = tpu.matmul %104, %14, %cst_32 {dimension_numbers = #tpu.dot_dimension_numbers<[1], [0], [0], [1], [0, 0, 1, 1], [], []>} : vector<5x32xf32>, vector<32x32xf32>, vector<5x32xf32> -> vector<5x32xf32>
    %106 = arith.addf %0, %105 : vector<5x32xf32>
    %107 = vector.broadcast %6 : vector<1x32xf32> to vector<5x32xf32>
    %108 = arith.addf %106, %107 : vector<5x32xf32>
    %cst_33 = arith.constant dense<0.000000e+00> : vector<5xf32>
    %109 = vector.multi_reduction <add>, %108, %cst_33 [1] : vector<5x32xf32> to vector<5xf32>
    %110 = vector.shape_cast %109 : vector<5xf32> to vector<5x1xf32>
    %cst_34 = arith.constant 3.200000e+01 : f32
    %111 = vector.broadcast %cst_34 : f32 to vector<5x1xf32>
    %112 = arith.divf %110, %111 : vector<5x1xf32>
    %113 = vector.broadcast %112 : vector<5x1xf32> to vector<5x32xf32>
    %114 = arith.subf %108, %113 : vector<5x32xf32>
    %115 = arith.mulf %114, %114 : vector<5x32xf32>
    %cst_35 = arith.constant dense<0.000000e+00> : vector<5xf32>
    %116 = vector.multi_reduction <add>, %115, %cst_35 [1] : vector<5x32xf32> to vector<5xf32>
    %117 = vector.shape_cast %116 : vector<5xf32> to vector<5x1xf32>
    %cst_36 = arith.constant 3.200000e+01 : f32
    %118 = vector.broadcast %cst_36 : f32 to vector<5x1xf32>
    %119 = arith.divf %117, %118 : vector<5x1xf32>
    %120 = vector.broadcast %112 : vector<5x1xf32> to vector<5x32xf32>
    %121 = arith.subf %108, %120 : vector<5x32xf32>
    %cst_37 = arith.constant 9.99999997E-7 : f32
    %122 = vector.broadcast %cst_37 : f32 to vector<5x1xf32>
    %123 = arith.addf %119, %122 : vector<5x1xf32>
    %124 = math.rsqrt %123 : vector<5x1xf32>
    %125 = vector.broadcast %124 : vector<5x1xf32> to vector<5x32xf32>
    %126 = arith.mulf %121, %125 : vector<5x32xf32>
    %127 = vector.broadcast %7 : vector<1x32xf32> to vector<5x32xf32>
    %128 = arith.mulf %126, %127 : vector<5x32xf32>
    %129 = vector.broadcast %8 : vector<1x32xf32> to vector<5x32xf32>
    %130 = arith.addf %128, %129 : vector<5x32xf32>
    %c0_38 = arith.constant 0 : index
    %c0_39 = arith.constant 0 : index
    %c0_40 = arith.constant 0 : index
    %131 = vector.load %arg4[%c0_38, %c0_39, %c0_40] : memref<12x32x128xf32, #tpu.memory_space<vmem>>, vector<1x32x128xf32>
    %132 = vector.shape_cast %131 : vector<1x32x128xf32> to vector<32x128xf32>
    %cst_41 = arith.constant dense<0.000000e+00> : vector<5x128xf32>
    %133 = tpu.matmul %130, %132, %cst_41 {dimension_numbers = #tpu.dot_dimension_numbers<[1], [0], [0], [1], [0, 0, 1, 1], [], []>} : vector<5x32xf32>, vector<32x128xf32>, vector<5x128xf32> -> vector<5x128xf32>
    %134 = vector.broadcast %9 : vector<1x128xf32> to vector<5x128xf32>
    %135 = arith.addf %133, %134 : vector<5x128xf32>
    %cst_42 = arith.constant 5.000000e-01 : f32
    %136 = vector.broadcast %cst_42 : f32 to vector<5x128xf32>
    %137 = arith.mulf %136, %135 : vector<5x128xf32>
    %cst_43 = arith.constant 0.707106769 : f32
    %138 = vector.broadcast %cst_43 : f32 to vector<5x128xf32>
    %139 = arith.mulf %135, %138 : vector<5x128xf32>
    %140 = math.erf %139 : vector<5x128xf32>
    %cst_44 = arith.constant 1.000000e+00 : f32
    %141 = vector.broadcast %cst_44 : f32 to vector<5x128xf32>
    %142 = arith.addf %141, %140 : vector<5x128xf32>
    %143 = arith.mulf %137, %142 : vector<5x128xf32>
    %c0_45 = arith.constant 0 : index
    %c0_46 = arith.constant 0 : index
    %c0_47 = arith.constant 0 : index
    %144 = vector.load %arg5[%c0_45, %c0_46, %c0_47] : memref<12x128x32xf32, #tpu.memory_space<vmem>>, vector<1x128x32xf32>
    %145 = vector.shape_cast %144 : vector<1x128x32xf32> to vector<128x32xf32>
    %cst_48 = arith.constant dense<0.000000e+00> : vector<5x32xf32>
    %146 = tpu.matmul %143, %145, %cst_48 {dimension_numbers = #tpu.dot_dimension_numbers<[1], [0], [0], [1], [0, 0, 1, 1], [], []>} : vector<5x128xf32>, vector<128x32xf32>, vector<5x32xf32> -> vector<5x32xf32>
    %147 = arith.addf %108, %146 : vector<5x32xf32>
    %148 = vector.broadcast %10 : vector<1x32xf32> to vector<5x32xf32>
    %149 = arith.addf %147, %148 : vector<5x32xf32>
    %150 = vector.extract_strided_slice %149 {offsets = [0, 0], sizes = [1, 32], strides = [1, 1]} : vector<5x32xf32> to vector<1x32xf32>
    %c1 = arith.constant 1 : index
    %c0_49 = arith.constant 0 : index
    %c0_50 = arith.constant 0 : index
    %151 = vector.load %arg2[%c1, %c0_49, %c0_50] : memref<12x8x128xf32, #tpu.memory_space<vmem>>, vector<1x8x128xf32>
    %152 = vector.shape_cast %151 : vector<1x8x128xf32> to vector<8x128xf32>
    %153 = vector.extract_strided_slice %152 {offsets = [0, 0], sizes = [1, 32], strides = [1, 1]} : vector<8x128xf32> to vector<1x32xf32>
    %154 = vector.extract_strided_slice %152 {offsets = [1, 0], sizes = [1, 32], strides = [1, 1]} : vector<8x128xf32> to vector<1x32xf32>
    %155 = vector.extract_strided_slice %152 {offsets = [2, 0], sizes = [1, 96], strides = [1, 1]} : vector<8x128xf32> to vector<1x96xf32>
    %156 = vector.extract_strided_slice %152 {offsets = [3, 0], sizes = [1, 32], strides = [1, 1]} : vector<8x128xf32> to vector<1x32xf32>
    %157 = vector.extract_strided_slice %152 {offsets = [4, 0], sizes = [1, 32], strides = [1, 1]} : vector<8x128xf32> to vector<1x32xf32>
    %158 = vector.extract_strided_slice %152 {offsets = [5, 0], sizes = [1, 32], strides = [1, 1]} : vector<8x128xf32> to vector<1x32xf32>
    %159 = vector.extract_strided_slice %152 {offsets = [6, 0], sizes = [1, 128], strides = [1, 1]} : vector<8x128xf32> to vector<1x128xf32>
    %160 = vector.extract_strided_slice %152 {offsets = [7, 0], sizes = [1, 32], strides = [1, 1]} : vector<8x128xf32> to vector<1x32xf32>
    %c1_51 = arith.constant 1 : index
    %c0_52 = arith.constant 0 : index
    %c0_53 = arith.constant 0 : index
    %161 = vector.load %arg3[%c1_51, %c0_52, %c0_53] : memref<12x32x128xf32, #tpu.memory_space<vmem>>, vector<1x32x128xf32>
    %162 = vector.shape_cast %161 : vector<1x32x128xf32> to vector<32x128xf32>
    %163 = vector.extract_strided_slice %162 {offsets = [0, 0], sizes = [32, 96], strides = [1, 1]} : vector<32x128xf32> to vector<32x96xf32>
    %164 = vector.extract_strided_slice %162 {offsets = [0, 96], sizes = [32, 32], strides = [1, 1]} : vector<32x128xf32> to vector<32x32xf32>
    %cst_54 = arith.constant dense<0.000000e+00> : vector<5xf32>
    %165 = vector.multi_reduction <add>, %149, %cst_54 [1] : vector<5x32xf32> to vector<5xf32>
    %166 = vector.shape_cast %165 : vector<5xf32> to vector<5x1xf32>
    %cst_55 = arith.constant 3.200000e+01 : f32
    %167 = vector.broadcast %cst_55 : f32 to vector<5x1xf32>
    %168 = arith.divf %166, %167 : vector<5x1xf32>
    %169 = vector.broadcast %168 : vector<5x1xf32> to vector<5x32xf32>
    %170 = arith.subf %149, %169 : vector<5x32xf32>
    %171 = arith.mulf %170, %170 : vector<5x32xf32>
    %cst_56 = arith.constant dense<0.000000e+00> : vector<5xf32>
    %172 = vector.multi_reduction <add>, %171, %cst_56 [1] : vector<5x32xf32> to vector<5xf32>
    %173 = vector.shape_cast %172 : vector<5xf32> to vector<5x1xf32>
    %cst_57 = arith.constant 3.200000e+01 : f32
    %174 = vector.broadcast %cst_57 : f32 to vector<5x1xf32>
    %175 = arith.divf %173, %174 : vector<5x1xf32>
    %176 = vector.broadcast %168 : vector<5x1xf32> to vector<5x32xf32>
    %177 = arith.subf %149, %176 : vector<5x32xf32>
    %cst_58 = arith.constant 9.99999997E-7 : f32
    %178 = vector.broadcast %cst_58 : f32 to vector<5x1xf32>
    %179 = arith.addf %175, %178 : vector<5x1xf32>
    %180 = math.rsqrt %179 : vector<5x1xf32>
    %181 = vector.broadcast %180 : vector<5x1xf32> to vector<5x32xf32>
    %182 = arith.mulf %177, %181 : vector<5x32xf32>
    %183 = vector.broadcast %153 : vector<1x32xf32> to vector<5x32xf32>
    %184 = arith.mulf %182, %183 : vector<5x32xf32>
    %185 = vector.broadcast %154 : vector<1x32xf32> to vector<5x32xf32>
    %186 = arith.addf %184, %185 : vector<5x32xf32>
    %cst_59 = arith.constant dense<0.000000e+00> : vector<5x96xf32>
    %187 = tpu.matmul %186, %163, %cst_59 {dimension_numbers = #tpu.dot_dimension_numbers<[1], [0], [0], [1], [0, 0, 1, 1], [], []>} : vector<5x32xf32>, vector<32x96xf32>, vector<5x96xf32> -> vector<5x96xf32>
    %188 = vector.broadcast %155 : vector<1x96xf32> to vector<5x96xf32>
    %189 = arith.addf %187, %188 : vector<5x96xf32>
    %190 = vector.extract_strided_slice %189 {offsets = [0, 0], sizes = [5, 8], strides = [1, 1]} : vector<5x96xf32> to vector<5x8xf32>
    %191 = vector.extract_strided_slice %189 {offsets = [0, 32], sizes = [5, 8], strides = [1, 1]} : vector<5x96xf32> to vector<5x8xf32>
    %192 = vector.extract_strided_slice %189 {offsets = [0, 64], sizes = [5, 8], strides = [1, 1]} : vector<5x96xf32> to vector<5x8xf32>
    %cst_60 = arith.constant dense<0.000000e+00> : vector<5x5xf32>
    %193 = tpu.matmul %190, %191, %cst_60 {dimension_numbers = #tpu.dot_dimension_numbers<[1], [1], [0], [0], [0, 0, 1, 0], [], []>} : vector<5x8xf32>, vector<5x8xf32>, vector<5x5xf32> -> vector<5x5xf32>
    %cst_61 = arith.constant 0.353553385 : f32
    %194 = vector.broadcast %cst_61 : f32 to vector<5x5xf32>
    %195 = arith.mulf %193, %194 : vector<5x5xf32>
    %cst_62 = arith.constant dense<0xFF800000> : vector<5xf32>
    %196 = vector.multi_reduction <maximumf>, %195, %cst_62 [1] : vector<5x5xf32> to vector<5xf32>
    %197 = vector.shape_cast %196 : vector<5xf32> to vector<5x1xf32>
    %198 = vector.broadcast %197 : vector<5x1xf32> to vector<5x5xf32>
    %199 = arith.subf %195, %198 : vector<5x5xf32>
    %200 = math.exp %199 : vector<5x5xf32>
    %cst_63 = arith.constant dense<0.000000e+00> : vector<5xf32>
    %201 = vector.multi_reduction <add>, %200, %cst_63 [1] : vector<5x5xf32> to vector<5xf32>
    %202 = vector.shape_cast %201 : vector<5xf32> to vector<5x1xf32>
    %203 = vector.broadcast %202 : vector<5x1xf32> to vector<5x5xf32>
    %204 = arith.divf %200, %203 : vector<5x5xf32>
    %cst_64 = arith.constant dense<0.000000e+00> : vector<5x8xf32>
    %205 = tpu.matmul %204, %192, %cst_64 {dimension_numbers = #tpu.dot_dimension_numbers<[1], [0], [0], [1], [0, 0, 1, 1], [], []>} : vector<5x5xf32>, vector<5x8xf32>, vector<5x8xf32> -> vector<5x8xf32>
    %206 = vector.extract_strided_slice %189 {offsets = [0, 8], sizes = [5, 8], strides = [1, 1]} : vector<5x96xf32> to vector<5x8xf32>
    %207 = vector.extract_strided_slice %189 {offsets = [0, 40], sizes = [5, 8], strides = [1, 1]} : vector<5x96xf32> to vector<5x8xf32>
    %208 = vector.extract_strided_slice %189 {offsets = [0, 72], sizes = [5, 8], strides = [1, 1]} : vector<5x96xf32> to vector<5x8xf32>
    %cst_65 = arith.constant dense<0.000000e+00> : vector<5x5xf32>
    %209 = tpu.matmul %206, %207, %cst_65 {dimension_numbers = #tpu.dot_dimension_numbers<[1], [1], [0], [0], [0, 0, 1, 0], [], []>} : vector<5x8xf32>, vector<5x8xf32>, vector<5x5xf32> -> vector<5x5xf32>
    %cst_66 = arith.constant 0.353553385 : f32
    %210 = vector.broadcast %cst_66 : f32 to vector<5x5xf32>
    %211 = arith.mulf %209, %210 : vector<5x5xf32>
    %cst_67 = arith.constant dense<0xFF800000> : vector<5xf32>
    %212 = vector.multi_reduction <maximumf>, %211, %cst_67 [1] : vector<5x5xf32> to vector<5xf32>
    %213 = vector.shape_cast %212 : vector<5xf32> to vector<5x1xf32>
    %214 = vector.broadcast %213 : vector<5x1xf32> to vector<5x5xf32>
    %215 = arith.subf %211, %214 : vector<5x5xf32>
    %216 = math.exp %215 : vector<5x5xf32>
    %cst_68 = arith.constant dense<0.000000e+00> : vector<5xf32>
    %217 = vector.multi_reduction <add>, %216, %cst_68 [1] : vector<5x5xf32> to vector<5xf32>
    %218 = vector.shape_cast %217 : vector<5xf32> to vector<5x1xf32>
    %219 = vector.broadcast %218 : vector<5x1xf32> to vector<5x5xf32>
    %220 = arith.divf %216, %219 : vector<5x5xf32>
    %cst_69 = arith.constant dense<0.000000e+00> : vector<5x8xf32>
    %221 = tpu.matmul %220, %208, %cst_69 {dimension_numbers = #tpu.dot_dimension_numbers<[1], [0], [0], [1], [0, 0, 1, 1], [], []>} : vector<5x5xf32>, vector<5x8xf32>, vector<5x8xf32> -> vector<5x8xf32>
    %222 = vector.extract_strided_slice %189 {offsets = [0, 16], sizes = [5, 8], strides = [1, 1]} : vector<5x96xf32> to vector<5x8xf32>
    %223 = vector.extract_strided_slice %189 {offsets = [0, 48], sizes = [5, 8], strides = [1, 1]} : vector<5x96xf32> to vector<5x8xf32>
    %224 = vector.extract_strided_slice %189 {offsets = [0, 80], sizes = [5, 8], strides = [1, 1]} : vector<5x96xf32> to vector<5x8xf32>
    %cst_70 = arith.constant dense<0.000000e+00> : vector<5x5xf32>
    %225 = tpu.matmul %222, %223, %cst_70 {dimension_numbers = #tpu.dot_dimension_numbers<[1], [1], [0], [0], [0, 0, 1, 0], [], []>} : vector<5x8xf32>, vector<5x8xf32>, vector<5x5xf32> -> vector<5x5xf32>
    %cst_71 = arith.constant 0.353553385 : f32
    %226 = vector.broadcast %cst_71 : f32 to vector<5x5xf32>
    %227 = arith.mulf %225, %226 : vector<5x5xf32>
    %cst_72 = arith.constant dense<0xFF800000> : vector<5xf32>
    %228 = vector.multi_reduction <maximumf>, %227, %cst_72 [1] : vector<5x5xf32> to vector<5xf32>
    %229 = vector.shape_cast %228 : vector<5xf32> to vector<5x1xf32>
    %230 = vector.broadcast %229 : vector<5x1xf32> to vector<5x5xf32>
    %231 = arith.subf %227, %230 : vector<5x5xf32>
    %232 = math.exp %231 : vector<5x5xf32>
    %cst_73 = arith.constant dense<0.000000e+00> : vector<5xf32>
    %233 = vector.multi_reduction <add>, %232, %cst_73 [1] : vector<5x5xf32> to vector<5xf32>
    %234 = vector.shape_cast %233 : vector<5xf32> to vector<5x1xf32>
    %235 = vector.broadcast %234 : vector<5x1xf32> to vector<5x5xf32>
    %236 = arith.divf %232, %235 : vector<5x5xf32>
    %cst_74 = arith.constant dense<0.000000e+00> : vector<5x8xf32>
    %237 = tpu.matmul %236, %224, %cst_74 {dimension_numbers = #tpu.dot_dimension_numbers<[1], [0], [0], [1], [0, 0, 1, 1], [], []>} : vector<5x5xf32>, vector<5x8xf32>, vector<5x8xf32> -> vector<5x8xf32>
    %238 = vector.extract_strided_slice %189 {offsets = [0, 24], sizes = [5, 8], strides = [1, 1]} : vector<5x96xf32> to vector<5x8xf32>
    %239 = vector.extract_strided_slice %189 {offsets = [0, 56], sizes = [5, 8], strides = [1, 1]} : vector<5x96xf32> to vector<5x8xf32>
    %240 = vector.extract_strided_slice %189 {offsets = [0, 88], sizes = [5, 8], strides = [1, 1]} : vector<5x96xf32> to vector<5x8xf32>
    %cst_75 = arith.constant dense<0.000000e+00> : vector<5x5xf32>
    %241 = tpu.matmul %238, %239, %cst_75 {dimension_numbers = #tpu.dot_dimension_numbers<[1], [1], [0], [0], [0, 0, 1, 0], [], []>} : vector<5x8xf32>, vector<5x8xf32>, vector<5x5xf32> -> vector<5x5xf32>
    %cst_76 = arith.constant 0.353553385 : f32
    %242 = vector.broadcast %cst_76 : f32 to vector<5x5xf32>
    %243 = arith.mulf %241, %242 : vector<5x5xf32>
    %cst_77 = arith.constant dense<0xFF800000> : vector<5xf32>
    %244 = vector.multi_reduction <maximumf>, %243, %cst_77 [1] : vector<5x5xf32> to vector<5xf32>
    %245 = vector.shape_cast %244 : vector<5xf32> to vector<5x1xf32>
    %246 = vector.broadcast %245 : vector<5x1xf32> to vector<5x5xf32>
    %247 = arith.subf %243, %246 : vector<5x5xf32>
    %248 = math.exp %247 : vector<5x5xf32>
    %cst_78 = arith.constant dense<0.000000e+00> : vector<5xf32>
    %249 = vector.multi_reduction <add>, %248, %cst_78 [1] : vector<5x5xf32> to vector<5xf32>
    %250 = vector.shape_cast %249 : vector<5xf32> to vector<5x1xf32>
    %251 = vector.broadcast %250 : vector<5x1xf32> to vector<5x5xf32>
    %252 = arith.divf %248, %251 : vector<5x5xf32>
    %cst_79 = arith.constant dense<0.000000e+00> : vector<5x8xf32>
    %253 = tpu.matmul %252, %240, %cst_79 {dimension_numbers = #tpu.dot_dimension_numbers<[1], [0], [0], [1], [0, 0, 1, 1], [], []>} : vector<5x5xf32>, vector<5x8xf32>, vector<5x8xf32> -> vector<5x8xf32>
    %254 = tpu.concatenate %205, %221, %237, %253 in 1 : vector<5x8xf32>, vector<5x8xf32>, vector<5x8xf32>, vector<5x8xf32> -> vector<5x32xf32>
    %cst_80 = arith.constant dense<0.000000e+00> : vector<5x32xf32>
    %255 = tpu.matmul %254, %164, %cst_80 {dimension_numbers = #tpu.dot_dimension_numbers<[1], [0], [0], [1], [0, 0, 1, 1], [], []>} : vector<5x32xf32>, vector<32x32xf32>, vector<5x32xf32> -> vector<5x32xf32>
    %256 = arith.addf %149, %255 : vector<5x32xf32>
    %257 = vector.broadcast %156 : vector<1x32xf32> to vector<5x32xf32>
    %258 = arith.addf %256, %257 : vector<5x32xf32>
    %cst_81 = arith.constant dense<0.000000e+00> : vector<5xf32>
    %259 = vector.multi_reduction <add>, %258, %cst_81 [1] : vector<5x32xf32> to vector<5xf32>
    %260 = vector.shape_cast %259 : vector<5xf32> to vector<5x1xf32>
    %cst_82 = arith.constant 3.200000e+01 : f32
    %261 = vector.broadcast %cst_82 : f32 to vector<5x1xf32>
    %262 = arith.divf %260, %261 : vector<5x1xf32>
    %263 = vector.broadcast %262 : vector<5x1xf32> to vector<5x32xf32>
    %264 = arith.subf %258, %263 : vector<5x32xf32>
    %265 = arith.mulf %264, %264 : vector<5x32xf32>
    %cst_83 = arith.constant dense<0.000000e+00> : vector<5xf32>
    %266 = vector.multi_reduction <add>, %265, %cst_83 [1] : vector<5x32xf32> to vector<5xf32>
    %267 = vector.shape_cast %266 : vector<5xf32> to vector<5x1xf32>
    %cst_84 = arith.constant 3.200000e+01 : f32
    %268 = vector.broadcast %cst_84 : f32 to vector<5x1xf32>
    %269 = arith.divf %267, %268 : vector<5x1xf32>
    %270 = vector.broadcast %262 : vector<5x1xf32> to vector<5x32xf32>
    %271 = arith.subf %258, %270 : vector<5x32xf32>
    %cst_85 = arith.constant 9.99999997E-7 : f32
    %272 = vector.broadcast %cst_85 : f32 to vector<5x1xf32>
    %273 = arith.addf %269, %272 : vector<5x1xf32>
    %274 = math.rsqrt %273 : vector<5x1xf32>
    %275 = vector.broadcast %274 : vector<5x1xf32> to vector<5x32xf32>
    %276 = arith.mulf %271, %275 : vector<5x32xf32>
    %277 = vector.broadcast %157 : vector<1x32xf32> to vector<5x32xf32>
    %278 = arith.mulf %276, %277 : vector<5x32xf32>
    %279 = vector.broadcast %158 : vector<1x32xf32> to vector<5x32xf32>
    %280 = arith.addf %278, %279 : vector<5x32xf32>
    %c1_86 = arith.constant 1 : index
    %c0_87 = arith.constant 0 : index
    %c0_88 = arith.constant 0 : index
    %281 = vector.load %arg4[%c1_86, %c0_87, %c0_88] : memref<12x32x128xf32, #tpu.memory_space<vmem>>, vector<1x32x128xf32>
    %282 = vector.shape_cast %281 : vector<1x32x128xf32> to vector<32x128xf32>
    %cst_89 = arith.constant dense<0.000000e+00> : vector<5x128xf32>
    %283 = tpu.matmul %280, %282, %cst_89 {dimension_numbers = #tpu.dot_dimension_numbers<[1], [0], [0], [1], [0, 0, 1, 1], [], []>} : vector<5x32xf32>, vector<32x128xf32>, vector<5x128xf32> -> vector<5x128xf32>
    %284 = vector.broadcast %159 : vector<1x128xf32> to vector<5x128xf32>
    %285 = arith.addf %283, %284 : vector<5x128xf32>
    %cst_90 = arith.constant 5.000000e-01 : f32
    %286 = vector.broadcast %cst_90 : f32 to vector<5x128xf32>
    %287 = arith.mulf %286, %285 : vector<5x128xf32>
    %cst_91 = arith.constant 0.707106769 : f32
    %288 = vector.broadcast %cst_91 : f32 to vector<5x128xf32>
    %289 = arith.mulf %285, %288 : vector<5x128xf32>
    %290 = math.erf %289 : vector<5x128xf32>
    %cst_92 = arith.constant 1.000000e+00 : f32
    %291 = vector.broadcast %cst_92 : f32 to vector<5x128xf32>
    %292 = arith.addf %291, %290 : vector<5x128xf32>
    %293 = arith.mulf %287, %292 : vector<5x128xf32>
    %c1_93 = arith.constant 1 : index
    %c0_94 = arith.constant 0 : index
    %c0_95 = arith.constant 0 : index
    %294 = vector.load %arg5[%c1_93, %c0_94, %c0_95] : memref<12x128x32xf32, #tpu.memory_space<vmem>>, vector<1x128x32xf32>
    %295 = vector.shape_cast %294 : vector<1x128x32xf32> to vector<128x32xf32>
    %cst_96 = arith.constant dense<0.000000e+00> : vector<5x32xf32>
    %296 = tpu.matmul %293, %295, %cst_96 {dimension_numbers = #tpu.dot_dimension_numbers<[1], [0], [0], [1], [0, 0, 1, 1], [], []>} : vector<5x128xf32>, vector<128x32xf32>, vector<5x32xf32> -> vector<5x32xf32>
    %297 = arith.addf %258, %296 : vector<5x32xf32>
    %298 = vector.broadcast %160 : vector<1x32xf32> to vector<5x32xf32>
    %299 = arith.addf %297, %298 : vector<5x32xf32>
    %300 = vector.extract_strided_slice %299 {offsets = [0, 0], sizes = [1, 32], strides = [1, 1]} : vector<5x32xf32> to vector<1x32xf32>
    %c2 = arith.constant 2 : index
    %c0_97 = arith.constant 0 : index
    %c0_98 = arith.constant 0 : index
    %301 = vector.load %arg2[%c2, %c0_97, %c0_98] : memref<12x8x128xf32, #tpu.memory_space<vmem>>, vector<1x8x128xf32>
    %302 = vector.shape_cast %301 : vector<1x8x128xf32> to vector<8x128xf32>
    %303 = vector.extract_strided_slice %302 {offsets = [0, 0], sizes = [1, 32], strides = [1, 1]} : vector<8x128xf32> to vector<1x32xf32>
    %304 = vector.extract_strided_slice %302 {offsets = [1, 0], sizes = [1, 32], strides = [1, 1]} : vector<8x128xf32> to vector<1x32xf32>
    %305 = vector.extract_strided_slice %302 {offsets = [2, 0], sizes = [1, 96], strides = [1, 1]} : vector<8x128xf32> to vector<1x96xf32>
    %306 = vector.extract_strided_slice %302 {offsets = [3, 0], sizes = [1, 32], strides = [1, 1]} : vector<8x128xf32> to vector<1x32xf32>
    %307 = vector.extract_strided_slice %302 {offsets = [4, 0], sizes = [1, 32], strides = [1, 1]} : vector<8x128xf32> to vector<1x32xf32>
    %308 = vector.extract_strided_slice %302 {offsets = [5, 0], sizes = [1, 32], strides = [1, 1]} : vector<8x128xf32> to vector<1x32xf32>
    %309 = vector.extract_strided_slice %302 {offsets = [6, 0], sizes = [1, 128], strides = [1, 1]} : vector<8x128xf32> to vector<1x128xf32>
    %310 = vector.extract_strided_slice %302 {offsets = [7, 0], sizes = [1, 32], strides = [1, 1]} : vector<8x128xf32> to vector<1x32xf32>
    %c2_99 = arith.constant 2 : index
    %c0_100 = arith.constant 0 : index
    %c0_101 = arith.constant 0 : index
    %311 = vector.load %arg3[%c2_99, %c0_100, %c0_101] : memref<12x32x128xf32, #tpu.memory_space<vmem>>, vector<1x32x128xf32>
    %312 = vector.shape_cast %311 : vector<1x32x128xf32> to vector<32x128xf32>
    %313 = vector.extract_strided_slice %312 {offsets = [0, 0], sizes = [32, 96], strides = [1, 1]} : vector<32x128xf32> to vector<32x96xf32>
    %314 = vector.extract_strided_slice %312 {offsets = [0, 96], sizes = [32, 32], strides = [1, 1]} : vector<32x128xf32> to vector<32x32xf32>
    %cst_102 = arith.constant dense<0.000000e+00> : vector<5xf32>
    %315 = vector.multi_reduction <add>, %299, %cst_102 [1] : vector<5x32xf32> to vector<5xf32>
    %316 = vector.shape_cast %315 : vector<5xf32> to vector<5x1xf32>
    %cst_103 = arith.constant 3.200000e+01 : f32
    %317 = vector.broadcast %cst_103 : f32 to vector<5x1xf32>
    %318 = arith.divf %316, %317 : vector<5x1xf32>
    %319 = vector.broadcast %318 : vector<5x1xf32> to vector<5x32xf32>
    %320 = arith.subf %299, %319 : vector<5x32xf32>
    %321 = arith.mulf %320, %320 : vector<5x32xf32>
    %cst_104 = arith.constant dense<0.000000e+00> : vector<5xf32>
    %322 = vector.multi_reduction <add>, %321, %cst_104 [1] : vector<5x32xf32> to vector<5xf32>
    %323 = vector.shape_cast %322 : vector<5xf32> to vector<5x1xf32>
    %cst_105 = arith.constant 3.200000e+01 : f32
    %324 = vector.broadcast %cst_105 : f32 to vector<5x1xf32>
    %325 = arith.divf %323, %324 : vector<5x1xf32>
    %326 = vector.broadcast %318 : vector<5x1xf32> to vector<5x32xf32>
    %327 = arith.subf %299, %326 : vector<5x32xf32>
    %cst_106 = arith.constant 9.99999997E-7 : f32
    %328 = vector.broadcast %cst_106 : f32 to vector<5x1xf32>
    %329 = arith.addf %325, %328 : vector<5x1xf32>
    %330 = math.rsqrt %329 : vector<5x1xf32>
    %331 = vector.broadcast %330 : vector<5x1xf32> to vector<5x32xf32>
    %332 = arith.mulf %327, %331 : vector<5x32xf32>
    %333 = vector.broadcast %303 : vector<1x32xf32> to vector<5x32xf32>
    %334 = arith.mulf %332, %333 : vector<5x32xf32>
    %335 = vector.broadcast %304 : vector<1x32xf32> to vector<5x32xf32>
    %336 = arith.addf %334, %335 : vector<5x32xf32>
    %cst_107 = arith.constant dense<0.000000e+00> : vector<5x96xf32>
    %337 = tpu.matmul %336, %313, %cst_107 {dimension_numbers = #tpu.dot_dimension_numbers<[1], [0], [0], [1], [0, 0, 1, 1], [], []>} : vector<5x32xf32>, vector<32x96xf32>, vector<5x96xf32> -> vector<5x96xf32>
    %338 = vector.broadcast %305 : vector<1x96xf32> to vector<5x96xf32>
    %339 = arith.addf %337, %338 : vector<5x96xf32>
    %340 = vector.extract_strided_slice %339 {offsets = [0, 0], sizes = [5, 8], strides = [1, 1]} : vector<5x96xf32> to vector<5x8xf32>
    %341 = vector.extract_strided_slice %339 {offsets = [0, 32], sizes = [5, 8], strides = [1, 1]} : vector<5x96xf32> to vector<5x8xf32>
    %342 = vector.extract_strided_slice %339 {offsets = [0, 64], sizes = [5, 8], strides = [1, 1]} : vector<5x96xf32> to vector<5x8xf32>
    %cst_108 = arith.constant dense<0.000000e+00> : vector<5x5xf32>
    %343 = tpu.matmul %340, %341, %cst_108 {dimension_numbers = #tpu.dot_dimension_numbers<[1], [1], [0], [0], [0, 0, 1, 0], [], []>} : vector<5x8xf32>, vector<5x8xf32>, vector<5x5xf32> -> vector<5x5xf32>
    %cst_109 = arith.constant 0.353553385 : f32
    %344 = vector.broadcast %cst_109 : f32 to vector<5x5xf32>
    %345 = arith.mulf %343, %344 : vector<5x5xf32>
    %cst_110 = arith.constant dense<0xFF800000> : vector<5xf32>
    %346 = vector.multi_reduction <maximumf>, %345, %cst_110 [1] : vector<5x5xf32> to vector<5xf32>
    %347 = vector.shape_cast %346 : vector<5xf32> to vector<5x1xf32>
    %348 = vector.broadcast %347 : vector<5x1xf32> to vector<5x5xf32>
    %349 = arith.subf %345, %348 : vector<5x5xf32>
    %350 = math.exp %349 : vector<5x5xf32>
    %cst_111 = arith.constant dense<0.000000e+00> : vector<5xf32>
    %351 = vector.multi_reduction <add>, %350, %cst_111 [1] : vector<5x5xf32> to vector<5xf32>
    %352 = vector.shape_cast %351 : vector<5xf32> to vector<5x1xf32>
    %353 = vector.broadcast %352 : vector<5x1xf32> to vector<5x5xf32>
    %354 = arith.divf %350, %353 : vector<5x5xf32>
    %cst_112 = arith.constant dense<0.000000e+00> : vector<5x8xf32>
    %355 = tpu.matmul %354, %342, %cst_112 {dimension_numbers = #tpu.dot_dimension_numbers<[1], [0], [0], [1], [0, 0, 1, 1], [], []>} : vector<5x5xf32>, vector<5x8xf32>, vector<5x8xf32> -> vector<5x8xf32>
    %356 = vector.extract_strided_slice %339 {offsets = [0, 8], sizes = [5, 8], strides = [1, 1]} : vector<5x96xf32> to vector<5x8xf32>
    %357 = vector.extract_strided_slice %339 {offsets = [0, 40], sizes = [5, 8], strides = [1, 1]} : vector<5x96xf32> to vector<5x8xf32>
    %358 = vector.extract_strided_slice %339 {offsets = [0, 72], sizes = [5, 8], strides = [1, 1]} : vector<5x96xf32> to vector<5x8xf32>
    %cst_113 = arith.constant dense<0.000000e+00> : vector<5x5xf32>
    %359 = tpu.matmul %356, %357, %cst_113 {dimension_numbers = #tpu.dot_dimension_numbers<[1], [1], [0], [0], [0, 0, 1, 0], [], []>} : vector<5x8xf32>, vector<5x8xf32>, vector<5x5xf32> -> vector<5x5xf32>
    %cst_114 = arith.constant 0.353553385 : f32
    %360 = vector.broadcast %cst_114 : f32 to vector<5x5xf32>
    %361 = arith.mulf %359, %360 : vector<5x5xf32>
    %cst_115 = arith.constant dense<0xFF800000> : vector<5xf32>
    %362 = vector.multi_reduction <maximumf>, %361, %cst_115 [1] : vector<5x5xf32> to vector<5xf32>
    %363 = vector.shape_cast %362 : vector<5xf32> to vector<5x1xf32>
    %364 = vector.broadcast %363 : vector<5x1xf32> to vector<5x5xf32>
    %365 = arith.subf %361, %364 : vector<5x5xf32>
    %366 = math.exp %365 : vector<5x5xf32>
    %cst_116 = arith.constant dense<0.000000e+00> : vector<5xf32>
    %367 = vector.multi_reduction <add>, %366, %cst_116 [1] : vector<5x5xf32> to vector<5xf32>
    %368 = vector.shape_cast %367 : vector<5xf32> to vector<5x1xf32>
    %369 = vector.broadcast %368 : vector<5x1xf32> to vector<5x5xf32>
    %370 = arith.divf %366, %369 : vector<5x5xf32>
    %cst_117 = arith.constant dense<0.000000e+00> : vector<5x8xf32>
    %371 = tpu.matmul %370, %358, %cst_117 {dimension_numbers = #tpu.dot_dimension_numbers<[1], [0], [0], [1], [0, 0, 1, 1], [], []>} : vector<5x5xf32>, vector<5x8xf32>, vector<5x8xf32> -> vector<5x8xf32>
    %372 = vector.extract_strided_slice %339 {offsets = [0, 16], sizes = [5, 8], strides = [1, 1]} : vector<5x96xf32> to vector<5x8xf32>
    %373 = vector.extract_strided_slice %339 {offsets = [0, 48], sizes = [5, 8], strides = [1, 1]} : vector<5x96xf32> to vector<5x8xf32>
    %374 = vector.extract_strided_slice %339 {offsets = [0, 80], sizes = [5, 8], strides = [1, 1]} : vector<5x96xf32> to vector<5x8xf32>
    %cst_118 = arith.constant dense<0.000000e+00> : vector<5x5xf32>
    %375 = tpu.matmul %372, %373, %cst_118 {dimension_numbers = #tpu.dot_dimension_numbers<[1], [1], [0], [0], [0, 0, 1, 0], [], []>} : vector<5x8xf32>, vector<5x8xf32>, vector<5x5xf32> -> vector<5x5xf32>
    %cst_119 = arith.constant 0.353553385 : f32
    %376 = vector.broadcast %cst_119 : f32 to vector<5x5xf32>
    %377 = arith.mulf %375, %376 : vector<5x5xf32>
    %cst_120 = arith.constant dense<0xFF800000> : vector<5xf32>
    %378 = vector.multi_reduction <maximumf>, %377, %cst_120 [1] : vector<5x5xf32> to vector<5xf32>
    %379 = vector.shape_cast %378 : vector<5xf32> to vector<5x1xf32>
    %380 = vector.broadcast %379 : vector<5x1xf32> to vector<5x5xf32>
    %381 = arith.subf %377, %380 : vector<5x5xf32>
    %382 = math.exp %381 : vector<5x5xf32>
    %cst_121 = arith.constant dense<0.000000e+00> : vector<5xf32>
    %383 = vector.multi_reduction <add>, %382, %cst_121 [1] : vector<5x5xf32> to vector<5xf32>
    %384 = vector.shape_cast %383 : vector<5xf32> to vector<5x1xf32>
    %385 = vector.broadcast %384 : vector<5x1xf32> to vector<5x5xf32>
    %386 = arith.divf %382, %385 : vector<5x5xf32>
    %cst_122 = arith.constant dense<0.000000e+00> : vector<5x8xf32>
    %387 = tpu.matmul %386, %374, %cst_122 {dimension_numbers = #tpu.dot_dimension_numbers<[1], [0], [0], [1], [0, 0, 1, 1], [], []>} : vector<5x5xf32>, vector<5x8xf32>, vector<5x8xf32> -> vector<5x8xf32>
    %388 = vector.extract_strided_slice %339 {offsets = [0, 24], sizes = [5, 8], strides = [1, 1]} : vector<5x96xf32> to vector<5x8xf32>
    %389 = vector.extract_strided_slice %339 {offsets = [0, 56], sizes = [5, 8], strides = [1, 1]} : vector<5x96xf32> to vector<5x8xf32>
    %390 = vector.extract_strided_slice %339 {offsets = [0, 88], sizes = [5, 8], strides = [1, 1]} : vector<5x96xf32> to vector<5x8xf32>
    %cst_123 = arith.constant dense<0.000000e+00> : vector<5x5xf32>
    %391 = tpu.matmul %388, %389, %cst_123 {dimension_numbers = #tpu.dot_dimension_numbers<[1], [1], [0], [0], [0, 0, 1, 0], [], []>} : vector<5x8xf32>, vector<5x8xf32>, vector<5x5xf32> -> vector<5x5xf32>
    %cst_124 = arith.constant 0.353553385 : f32
    %392 = vector.broadcast %cst_124 : f32 to vector<5x5xf32>
    %393 = arith.mulf %391, %392 : vector<5x5xf32>
    %cst_125 = arith.constant dense<0xFF800000> : vector<5xf32>
    %394 = vector.multi_reduction <maximumf>, %393, %cst_125 [1] : vector<5x5xf32> to vector<5xf32>
    %395 = vector.shape_cast %394 : vector<5xf32> to vector<5x1xf32>
    %396 = vector.broadcast %395 : vector<5x1xf32> to vector<5x5xf32>
    %397 = arith.subf %393, %396 : vector<5x5xf32>
    %398 = math.exp %397 : vector<5x5xf32>
    %cst_126 = arith.constant dense<0.000000e+00> : vector<5xf32>
    %399 = vector.multi_reduction <add>, %398, %cst_126 [1] : vector<5x5xf32> to vector<5xf32>
    %400 = vector.shape_cast %399 : vector<5xf32> to vector<5x1xf32>
    %401 = vector.broadcast %400 : vector<5x1xf32> to vector<5x5xf32>
    %402 = arith.divf %398, %401 : vector<5x5xf32>
    %cst_127 = arith.constant dense<0.000000e+00> : vector<5x8xf32>
    %403 = tpu.matmul %402, %390, %cst_127 {dimension_numbers = #tpu.dot_dimension_numbers<[1], [0], [0], [1], [0, 0, 1, 1], [], []>} : vector<5x5xf32>, vector<5x8xf32>, vector<5x8xf32> -> vector<5x8xf32>
    %404 = tpu.concatenate %355, %371, %387, %403 in 1 : vector<5x8xf32>, vector<5x8xf32>, vector<5x8xf32>, vector<5x8xf32> -> vector<5x32xf32>
    %cst_128 = arith.constant dense<0.000000e+00> : vector<5x32xf32>
    %405 = tpu.matmul %404, %314, %cst_128 {dimension_numbers = #tpu.dot_dimension_numbers<[1], [0], [0], [1], [0, 0, 1, 1], [], []>} : vector<5x32xf32>, vector<32x32xf32>, vector<5x32xf32> -> vector<5x32xf32>
    %406 = arith.addf %299, %405 : vector<5x32xf32>
    %407 = vector.broadcast %306 : vector<1x32xf32> to vector<5x32xf32>
    %408 = arith.addf %406, %407 : vector<5x32xf32>
    %cst_129 = arith.constant dense<0.000000e+00> : vector<5xf32>
    %409 = vector.multi_reduction <add>, %408, %cst_129 [1] : vector<5x32xf32> to vector<5xf32>
    %410 = vector.shape_cast %409 : vector<5xf32> to vector<5x1xf32>
    %cst_130 = arith.constant 3.200000e+01 : f32
    %411 = vector.broadcast %cst_130 : f32 to vector<5x1xf32>
    %412 = arith.divf %410, %411 : vector<5x1xf32>
    %413 = vector.broadcast %412 : vector<5x1xf32> to vector<5x32xf32>
    %414 = arith.subf %408, %413 : vector<5x32xf32>
    %415 = arith.mulf %414, %414 : vector<5x32xf32>
    %cst_131 = arith.constant dense<0.000000e+00> : vector<5xf32>
    %416 = vector.multi_reduction <add>, %415, %cst_131 [1] : vector<5x32xf32> to vector<5xf32>
    %417 = vector.shape_cast %416 : vector<5xf32> to vector<5x1xf32>
    %cst_132 = arith.constant 3.200000e+01 : f32
    %418 = vector.broadcast %cst_132 : f32 to vector<5x1xf32>
    %419 = arith.divf %417, %418 : vector<5x1xf32>
    %420 = vector.broadcast %412 : vector<5x1xf32> to vector<5x32xf32>
    %421 = arith.subf %408, %420 : vector<5x32xf32>
    %cst_133 = arith.constant 9.99999997E-7 : f32
    %422 = vector.broadcast %cst_133 : f32 to vector<5x1xf32>
    %423 = arith.addf %419, %422 : vector<5x1xf32>
    %424 = math.rsqrt %423 : vector<5x1xf32>
    %425 = vector.broadcast %424 : vector<5x1xf32> to vector<5x32xf32>
    %426 = arith.mulf %421, %425 : vector<5x32xf32>
    %427 = vector.broadcast %307 : vector<1x32xf32> to vector<5x32xf32>
    %428 = arith.mulf %426, %427 : vector<5x32xf32>
    %429 = vector.broadcast %308 : vector<1x32xf32> to vector<5x32xf32>
    %430 = arith.addf %428, %429 : vector<5x32xf32>
    %c2_134 = arith.constant 2 : index
    %c0_135 = arith.constant 0 : index
    %c0_136 = arith.constant 0 : index
    %431 = vector.load %arg4[%c2_134, %c0_135, %c0_136] : memref<12x32x128xf32, #tpu.memory_space<vmem>>, vector<1x32x128xf32>
    %432 = vector.shape_cast %431 : vector<1x32x128xf32> to vector<32x128xf32>
    %cst_137 = arith.constant dense<0.000000e+00> : vector<5x128xf32>
    %433 = tpu.matmul %430, %432, %cst_137 {dimension_numbers = #tpu.dot_dimension_numbers<[1], [0], [0], [1], [0, 0, 1, 1], [], []>} : vector<5x32xf32>, vector<32x128xf32>, vector<5x128xf32> -> vector<5x128xf32>
    %434 = vector.broadcast %309 : vector<1x128xf32> to vector<5x128xf32>
    %435 = arith.addf %433, %434 : vector<5x128xf32>
    %cst_138 = arith.constant 5.000000e-01 : f32
    %436 = vector.broadcast %cst_138 : f32 to vector<5x128xf32>
    %437 = arith.mulf %436, %435 : vector<5x128xf32>
    %cst_139 = arith.constant 0.707106769 : f32
    %438 = vector.broadcast %cst_139 : f32 to vector<5x128xf32>
    %439 = arith.mulf %435, %438 : vector<5x128xf32>
    %440 = math.erf %439 : vector<5x128xf32>
    %cst_140 = arith.constant 1.000000e+00 : f32
    %441 = vector.broadcast %cst_140 : f32 to vector<5x128xf32>
    %442 = arith.addf %441, %440 : vector<5x128xf32>
    %443 = arith.mulf %437, %442 : vector<5x128xf32>
    %c2_141 = arith.constant 2 : index
    %c0_142 = arith.constant 0 : index
    %c0_143 = arith.constant 0 : index
    %444 = vector.load %arg5[%c2_141, %c0_142, %c0_143] : memref<12x128x32xf32, #tpu.memory_space<vmem>>, vector<1x128x32xf32>
    %445 = vector.shape_cast %444 : vector<1x128x32xf32> to vector<128x32xf32>
    %cst_144 = arith.constant dense<0.000000e+00> : vector<5x32xf32>
    %446 = tpu.matmul %443, %445, %cst_144 {dimension_numbers = #tpu.dot_dimension_numbers<[1], [0], [0], [1], [0, 0, 1, 1], [], []>} : vector<5x128xf32>, vector<128x32xf32>, vector<5x32xf32> -> vector<5x32xf32>
    %447 = arith.addf %408, %446 : vector<5x32xf32>
    %448 = vector.broadcast %310 : vector<1x32xf32> to vector<5x32xf32>
    %449 = arith.addf %447, %448 : vector<5x32xf32>
    %450 = vector.extract_strided_slice %449 {offsets = [0, 0], sizes = [1, 32], strides = [1, 1]} : vector<5x32xf32> to vector<1x32xf32>
    %c3 = arith.constant 3 : index
    %c0_145 = arith.constant 0 : index
    %c0_146 = arith.constant 0 : index
    %451 = vector.load %arg2[%c3, %c0_145, %c0_146] : memref<12x8x128xf32, #tpu.memory_space<vmem>>, vector<1x8x128xf32>
    %452 = vector.shape_cast %451 : vector<1x8x128xf32> to vector<8x128xf32>
    %453 = vector.extract_strided_slice %452 {offsets = [0, 0], sizes = [1, 32], strides = [1, 1]} : vector<8x128xf32> to vector<1x32xf32>
    %454 = vector.extract_strided_slice %452 {offsets = [1, 0], sizes = [1, 32], strides = [1, 1]} : vector<8x128xf32> to vector<1x32xf32>
    %455 = vector.extract_strided_slice %452 {offsets = [2, 0], sizes = [1, 96], strides = [1, 1]} : vector<8x128xf32> to vector<1x96xf32>
    %456 = vector.extract_strided_slice %452 {offsets = [3, 0], sizes = [1, 32], strides = [1, 1]} : vector<8x128xf32> to vector<1x32xf32>
    %457 = vector.extract_strided_slice %452 {offsets = [4, 0], sizes = [1, 32], strides = [1, 1]} : vector<8x128xf32> to vector<1x32xf32>
    %458 = vector.extract_strided_slice %452 {offsets = [5, 0], sizes = [1, 32], strides = [1, 1]} : vector<8x128xf32> to vector<1x32xf32>
    %459 = vector.extract_strided_slice %452 {offsets = [6, 0], sizes = [1, 128], strides = [1, 1]} : vector<8x128xf32> to vector<1x128xf32>
    %460 = vector.extract_strided_slice %452 {offsets = [7, 0], sizes = [1, 32], strides = [1, 1]} : vector<8x128xf32> to vector<1x32xf32>
    %c3_147 = arith.constant 3 : index
    %c0_148 = arith.constant 0 : index
    %c0_149 = arith.constant 0 : index
    %461 = vector.load %arg3[%c3_147, %c0_148, %c0_149] : memref<12x32x128xf32, #tpu.memory_space<vmem>>, vector<1x32x128xf32>
    %462 = vector.shape_cast %461 : vector<1x32x128xf32> to vector<32x128xf32>
    %463 = vector.extract_strided_slice %462 {offsets = [0, 0], sizes = [32, 96], strides = [1, 1]} : vector<32x128xf32> to vector<32x96xf32>
    %464 = vector.extract_strided_slice %462 {offsets = [0, 96], sizes = [32, 32], strides = [1, 1]} : vector<32x128xf32> to vector<32x32xf32>
    %cst_150 = arith.constant dense<0.000000e+00> : vector<5xf32>
    %465 = vector.multi_reduction <add>, %449, %cst_150 [1] : vector<5x32xf32> to vector<5xf32>
    %466 = vector.shape_cast %465 : vector<5xf32> to vector<5x1xf32>
    %cst_151 = arith.constant 3.200000e+01 : f32
    %467 = vector.broadcast %cst_151 : f32 to vector<5x1xf32>
    %468 = arith.divf %466, %467 : vector<5x1xf32>
    %469 = vector.broadcast %468 : vector<5x1xf32> to vector<5x32xf32>
    %470 = arith.subf %449, %469 : vector<5x32xf32>
    %471 = arith.mulf %470, %470 : vector<5x32xf32>
    %cst_152 = arith.constant dense<0.000000e+00> : vector<5xf32>
    %472 = vector.multi_reduction <add>, %471, %cst_152 [1] : vector<5x32xf32> to vector<5xf32>
    %473 = vector.shape_cast %472 : vector<5xf32> to vector<5x1xf32>
    %cst_153 = arith.constant 3.200000e+01 : f32
    %474 = vector.broadcast %cst_153 : f32 to vector<5x1xf32>
    %475 = arith.divf %473, %474 : vector<5x1xf32>
    %476 = vector.broadcast %468 : vector<5x1xf32> to vector<5x32xf32>
    %477 = arith.subf %449, %476 : vector<5x32xf32>
    %cst_154 = arith.constant 9.99999997E-7 : f32
    %478 = vector.broadcast %cst_154 : f32 to vector<5x1xf32>
    %479 = arith.addf %475, %478 : vector<5x1xf32>
    %480 = math.rsqrt %479 : vector<5x1xf32>
    %481 = vector.broadcast %480 : vector<5x1xf32> to vector<5x32xf32>
    %482 = arith.mulf %477, %481 : vector<5x32xf32>
    %483 = vector.broadcast %453 : vector<1x32xf32> to vector<5x32xf32>
    %484 = arith.mulf %482, %483 : vector<5x32xf32>
    %485 = vector.broadcast %454 : vector<1x32xf32> to vector<5x32xf32>
    %486 = arith.addf %484, %485 : vector<5x32xf32>
    %cst_155 = arith.constant dense<0.000000e+00> : vector<5x96xf32>
    %487 = tpu.matmul %486, %463, %cst_155 {dimension_numbers = #tpu.dot_dimension_numbers<[1], [0], [0], [1], [0, 0, 1, 1], [], []>} : vector<5x32xf32>, vector<32x96xf32>, vector<5x96xf32> -> vector<5x96xf32>
    %488 = vector.broadcast %455 : vector<1x96xf32> to vector<5x96xf32>
    %489 = arith.addf %487, %488 : vector<5x96xf32>
    %490 = vector.extract_strided_slice %489 {offsets = [0, 0], sizes = [5, 8], strides = [1, 1]} : vector<5x96xf32> to vector<5x8xf32>
    %491 = vector.extract_strided_slice %489 {offsets = [0, 32], sizes = [5, 8], strides = [1, 1]} : vector<5x96xf32> to vector<5x8xf32>
    %492 = vector.extract_strided_slice %489 {offsets = [0, 64], sizes = [5, 8], strides = [1, 1]} : vector<5x96xf32> to vector<5x8xf32>
    %cst_156 = arith.constant dense<0.000000e+00> : vector<5x5xf32>
    %493 = tpu.matmul %490, %491, %cst_156 {dimension_numbers = #tpu.dot_dimension_numbers<[1], [1], [0], [0], [0, 0, 1, 0], [], []>} : vector<5x8xf32>, vector<5x8xf32>, vector<5x5xf32> -> vector<5x5xf32>
    %cst_157 = arith.constant 0.353553385 : f32
    %494 = vector.broadcast %cst_157 : f32 to vector<5x5xf32>
    %495 = arith.mulf %493, %494 : vector<5x5xf32>
    %cst_158 = arith.constant dense<0xFF800000> : vector<5xf32>
    %496 = vector.multi_reduction <maximumf>, %495, %cst_158 [1] : vector<5x5xf32> to vector<5xf32>
    %497 = vector.shape_cast %496 : vector<5xf32> to vector<5x1xf32>
    %498 = vector.broadcast %497 : vector<5x1xf32> to vector<5x5xf32>
    %499 = arith.subf %495, %498 : vector<5x5xf32>
    %500 = math.exp %499 : vector<5x5xf32>
    %cst_159 = arith.constant dense<0.000000e+00> : vector<5xf32>
    %501 = vector.multi_reduction <add>, %500, %cst_159 [1] : vector<5x5xf32> to vector<5xf32>
    %502 = vector.shape_cast %501 : vector<5xf32> to vector<5x1xf32>
    %503 = vector.broadcast %502 : vector<5x1xf32> to vector<5x5xf32>
    %504 = arith.divf %500, %503 : vector<5x5xf32>
    %cst_160 = arith.constant dense<0.000000e+00> : vector<5x8xf32>
    %505 = tpu.matmul %504, %492, %cst_160 {dimension_numbers = #tpu.dot_dimension_numbers<[1], [0], [0], [1], [0, 0, 1, 1], [], []>} : vector<5x5xf32>, vector<5x8xf32>, vector<5x8xf32> -> vector<5x8xf32>
    %506 = vector.extract_strided_slice %489 {offsets = [0, 8], sizes = [5, 8], strides = [1, 1]} : vector<5x96xf32> to vector<5x8xf32>
    %507 = vector.extract_strided_slice %489 {offsets = [0, 40], sizes = [5, 8], strides = [1, 1]} : vector<5x96xf32> to vector<5x8xf32>
    %508 = vector.extract_strided_slice %489 {offsets = [0, 72], sizes = [5, 8], strides = [1, 1]} : vector<5x96xf32> to vector<5x8xf32>
    %cst_161 = arith.constant dense<0.000000e+00> : vector<5x5xf32>
    %509 = tpu.matmul %506, %507, %cst_161 {dimension_numbers = #tpu.dot_dimension_numbers<[1], [1], [0], [0], [0, 0, 1, 0], [], []>} : vector<5x8xf32>, vector<5x8xf32>, vector<5x5xf32> -> vector<5x5xf32>
    %cst_162 = arith.constant 0.353553385 : f32
    %510 = vector.broadcast %cst_162 : f32 to vector<5x5xf32>
    %511 = arith.mulf %509, %510 : vector<5x5xf32>
    %cst_163 = arith.constant dense<0xFF800000> : vector<5xf32>
    %512 = vector.multi_reduction <maximumf>, %511, %cst_163 [1] : vector<5x5xf32> to vector<5xf32>
    %513 = vector.shape_cast %512 : vector<5xf32> to vector<5x1xf32>
    %514 = vector.broadcast %513 : vector<5x1xf32> to vector<5x5xf32>
    %515 = arith.subf %511, %514 : vector<5x5xf32>
    %516 = math.exp %515 : vector<5x5xf32>
    %cst_164 = arith.constant dense<0.000000e+00> : vector<5xf32>
    %517 = vector.multi_reduction <add>, %516, %cst_164 [1] : vector<5x5xf32> to vector<5xf32>
    %518 = vector.shape_cast %517 : vector<5xf32> to vector<5x1xf32>
    %519 = vector.broadcast %518 : vector<5x1xf32> to vector<5x5xf32>
    %520 = arith.divf %516, %519 : vector<5x5xf32>
    %cst_165 = arith.constant dense<0.000000e+00> : vector<5x8xf32>
    %521 = tpu.matmul %520, %508, %cst_165 {dimension_numbers = #tpu.dot_dimension_numbers<[1], [0], [0], [1], [0, 0, 1, 1], [], []>} : vector<5x5xf32>, vector<5x8xf32>, vector<5x8xf32> -> vector<5x8xf32>
    %522 = vector.extract_strided_slice %489 {offsets = [0, 16], sizes = [5, 8], strides = [1, 1]} : vector<5x96xf32> to vector<5x8xf32>
    %523 = vector.extract_strided_slice %489 {offsets = [0, 48], sizes = [5, 8], strides = [1, 1]} : vector<5x96xf32> to vector<5x8xf32>
    %524 = vector.extract_strided_slice %489 {offsets = [0, 80], sizes = [5, 8], strides = [1, 1]} : vector<5x96xf32> to vector<5x8xf32>
    %cst_166 = arith.constant dense<0.000000e+00> : vector<5x5xf32>
    %525 = tpu.matmul %522, %523, %cst_166 {dimension_numbers = #tpu.dot_dimension_numbers<[1], [1], [0], [0], [0, 0, 1, 0], [], []>} : vector<5x8xf32>, vector<5x8xf32>, vector<5x5xf32> -> vector<5x5xf32>
    %cst_167 = arith.constant 0.353553385 : f32
    %526 = vector.broadcast %cst_167 : f32 to vector<5x5xf32>
    %527 = arith.mulf %525, %526 : vector<5x5xf32>
    %cst_168 = arith.constant dense<0xFF800000> : vector<5xf32>
    %528 = vector.multi_reduction <maximumf>, %527, %cst_168 [1] : vector<5x5xf32> to vector<5xf32>
    %529 = vector.shape_cast %528 : vector<5xf32> to vector<5x1xf32>
    %530 = vector.broadcast %529 : vector<5x1xf32> to vector<5x5xf32>
    %531 = arith.subf %527, %530 : vector<5x5xf32>
    %532 = math.exp %531 : vector<5x5xf32>
    %cst_169 = arith.constant dense<0.000000e+00> : vector<5xf32>
    %533 = vector.multi_reduction <add>, %532, %cst_169 [1] : vector<5x5xf32> to vector<5xf32>
    %534 = vector.shape_cast %533 : vector<5xf32> to vector<5x1xf32>
    %535 = vector.broadcast %534 : vector<5x1xf32> to vector<5x5xf32>
    %536 = arith.divf %532, %535 : vector<5x5xf32>
    %cst_170 = arith.constant dense<0.000000e+00> : vector<5x8xf32>
    %537 = tpu.matmul %536, %524, %cst_170 {dimension_numbers = #tpu.dot_dimension_numbers<[1], [0], [0], [1], [0, 0, 1, 1], [], []>} : vector<5x5xf32>, vector<5x8xf32>, vector<5x8xf32> -> vector<5x8xf32>
    %538 = vector.extract_strided_slice %489 {offsets = [0, 24], sizes = [5, 8], strides = [1, 1]} : vector<5x96xf32> to vector<5x8xf32>
    %539 = vector.extract_strided_slice %489 {offsets = [0, 56], sizes = [5, 8], strides = [1, 1]} : vector<5x96xf32> to vector<5x8xf32>
    %540 = vector.extract_strided_slice %489 {offsets = [0, 88], sizes = [5, 8], strides = [1, 1]} : vector<5x96xf32> to vector<5x8xf32>
    %cst_171 = arith.constant dense<0.000000e+00> : vector<5x5xf32>
    %541 = tpu.matmul %538, %539, %cst_171 {dimension_numbers = #tpu.dot_dimension_numbers<[1], [1], [0], [0], [0, 0, 1, 0], [], []>} : vector<5x8xf32>, vector<5x8xf32>, vector<5x5xf32> -> vector<5x5xf32>
    %cst_172 = arith.constant 0.353553385 : f32
    %542 = vector.broadcast %cst_172 : f32 to vector<5x5xf32>
    %543 = arith.mulf %541, %542 : vector<5x5xf32>
    %cst_173 = arith.constant dense<0xFF800000> : vector<5xf32>
    %544 = vector.multi_reduction <maximumf>, %543, %cst_173 [1] : vector<5x5xf32> to vector<5xf32>
    %545 = vector.shape_cast %544 : vector<5xf32> to vector<5x1xf32>
    %546 = vector.broadcast %545 : vector<5x1xf32> to vector<5x5xf32>
    %547 = arith.subf %543, %546 : vector<5x5xf32>
    %548 = math.exp %547 : vector<5x5xf32>
    %cst_174 = arith.constant dense<0.000000e+00> : vector<5xf32>
    %549 = vector.multi_reduction <add>, %548, %cst_174 [1] : vector<5x5xf32> to vector<5xf32>
    %550 = vector.shape_cast %549 : vector<5xf32> to vector<5x1xf32>
    %551 = vector.broadcast %550 : vector<5x1xf32> to vector<5x5xf32>
    %552 = arith.divf %548, %551 : vector<5x5xf32>
    %cst_175 = arith.constant dense<0.000000e+00> : vector<5x8xf32>
    %553 = tpu.matmul %552, %540, %cst_175 {dimension_numbers = #tpu.dot_dimension_numbers<[1], [0], [0], [1], [0, 0, 1, 1], [], []>} : vector<5x5xf32>, vector<5x8xf32>, vector<5x8xf32> -> vector<5x8xf32>
    %554 = tpu.concatenate %505, %521, %537, %553 in 1 : vector<5x8xf32>, vector<5x8xf32>, vector<5x8xf32>, vector<5x8xf32> -> vector<5x32xf32>
    %cst_176 = arith.constant dense<0.000000e+00> : vector<5x32xf32>
    %555 = tpu.matmul %554, %464, %cst_176 {dimension_numbers = #tpu.dot_dimension_numbers<[1], [0], [0], [1], [0, 0, 1, 1], [], []>} : vector<5x32xf32>, vector<32x32xf32>, vector<5x32xf32> -> vector<5x32xf32>
    %556 = arith.addf %449, %555 : vector<5x32xf32>
    %557 = vector.broadcast %456 : vector<1x32xf32> to vector<5x32xf32>
    %558 = arith.addf %556, %557 : vector<5x32xf32>
    %cst_177 = arith.constant dense<0.000000e+00> : vector<5xf32>
    %559 = vector.multi_reduction <add>, %558, %cst_177 [1] : vector<5x32xf32> to vector<5xf32>
    %560 = vector.shape_cast %559 : vector<5xf32> to vector<5x1xf32>
    %cst_178 = arith.constant 3.200000e+01 : f32
    %561 = vector.broadcast %cst_178 : f32 to vector<5x1xf32>
    %562 = arith.divf %560, %561 : vector<5x1xf32>
    %563 = vector.broadcast %562 : vector<5x1xf32> to vector<5x32xf32>
    %564 = arith.subf %558, %563 : vector<5x32xf32>
    %565 = arith.mulf %564, %564 : vector<5x32xf32>
    %cst_179 = arith.constant dense<0.000000e+00> : vector<5xf32>
    %566 = vector.multi_reduction <add>, %565, %cst_179 [1] : vector<5x32xf32> to vector<5xf32>
    %567 = vector.shape_cast %566 : vector<5xf32> to vector<5x1xf32>
    %cst_180 = arith.constant 3.200000e+01 : f32
    %568 = vector.broadcast %cst_180 : f32 to vector<5x1xf32>
    %569 = arith.divf %567, %568 : vector<5x1xf32>
    %570 = vector.broadcast %562 : vector<5x1xf32> to vector<5x32xf32>
    %571 = arith.subf %558, %570 : vector<5x32xf32>
    %cst_181 = arith.constant 9.99999997E-7 : f32
    %572 = vector.broadcast %cst_181 : f32 to vector<5x1xf32>
    %573 = arith.addf %569, %572 : vector<5x1xf32>
    %574 = math.rsqrt %573 : vector<5x1xf32>
    %575 = vector.broadcast %574 : vector<5x1xf32> to vector<5x32xf32>
    %576 = arith.mulf %571, %575 : vector<5x32xf32>
    %577 = vector.broadcast %457 : vector<1x32xf32> to vector<5x32xf32>
    %578 = arith.mulf %576, %577 : vector<5x32xf32>
    %579 = vector.broadcast %458 : vector<1x32xf32> to vector<5x32xf32>
    %580 = arith.addf %578, %579 : vector<5x32xf32>
    %c3_182 = arith.constant 3 : index
    %c0_183 = arith.constant 0 : index
    %c0_184 = arith.constant 0 : index
    %581 = vector.load %arg4[%c3_182, %c0_183, %c0_184] : memref<12x32x128xf32, #tpu.memory_space<vmem>>, vector<1x32x128xf32>
    %582 = vector.shape_cast %581 : vector<1x32x128xf32> to vector<32x128xf32>
    %cst_185 = arith.constant dense<0.000000e+00> : vector<5x128xf32>
    %583 = tpu.matmul %580, %582, %cst_185 {dimension_numbers = #tpu.dot_dimension_numbers<[1], [0], [0], [1], [0, 0, 1, 1], [], []>} : vector<5x32xf32>, vector<32x128xf32>, vector<5x128xf32> -> vector<5x128xf32>
    %584 = vector.broadcast %459 : vector<1x128xf32> to vector<5x128xf32>
    %585 = arith.addf %583, %584 : vector<5x128xf32>
    %cst_186 = arith.constant 5.000000e-01 : f32
    %586 = vector.broadcast %cst_186 : f32 to vector<5x128xf32>
    %587 = arith.mulf %586, %585 : vector<5x128xf32>
    %cst_187 = arith.constant 0.707106769 : f32
    %588 = vector.broadcast %cst_187 : f32 to vector<5x128xf32>
    %589 = arith.mulf %585, %588 : vector<5x128xf32>
    %590 = math.erf %589 : vector<5x128xf32>
    %cst_188 = arith.constant 1.000000e+00 : f32
    %591 = vector.broadcast %cst_188 : f32 to vector<5x128xf32>
    %592 = arith.addf %591, %590 : vector<5x128xf32>
    %593 = arith.mulf %587, %592 : vector<5x128xf32>
    %c3_189 = arith.constant 3 : index
    %c0_190 = arith.constant 0 : index
    %c0_191 = arith.constant 0 : index
    %594 = vector.load %arg5[%c3_189, %c0_190, %c0_191] : memref<12x128x32xf32, #tpu.memory_space<vmem>>, vector<1x128x32xf32>
    %595 = vector.shape_cast %594 : vector<1x128x32xf32> to vector<128x32xf32>
    %cst_192 = arith.constant dense<0.000000e+00> : vector<5x32xf32>
    %596 = tpu.matmul %593, %595, %cst_192 {dimension_numbers = #tpu.dot_dimension_numbers<[1], [0], [0], [1], [0, 0, 1, 1], [], []>} : vector<5x128xf32>, vector<128x32xf32>, vector<5x32xf32> -> vector<5x32xf32>
    %597 = arith.addf %558, %596 : vector<5x32xf32>
    %598 = vector.broadcast %460 : vector<1x32xf32> to vector<5x32xf32>
    %599 = arith.addf %597, %598 : vector<5x32xf32>
    %600 = vector.extract_strided_slice %599 {offsets = [0, 0], sizes = [1, 32], strides = [1, 1]} : vector<5x32xf32> to vector<1x32xf32>
    %c4 = arith.constant 4 : index
    %c0_193 = arith.constant 0 : index
    %c0_194 = arith.constant 0 : index
    %601 = vector.load %arg2[%c4, %c0_193, %c0_194] : memref<12x8x128xf32, #tpu.memory_space<vmem>>, vector<1x8x128xf32>
    %602 = vector.shape_cast %601 : vector<1x8x128xf32> to vector<8x128xf32>
    %603 = vector.extract_strided_slice %602 {offsets = [0, 0], sizes = [1, 32], strides = [1, 1]} : vector<8x128xf32> to vector<1x32xf32>
    %604 = vector.extract_strided_slice %602 {offsets = [1, 0], sizes = [1, 32], strides = [1, 1]} : vector<8x128xf32> to vector<1x32xf32>
    %605 = vector.extract_strided_slice %602 {offsets = [2, 0], sizes = [1, 96], strides = [1, 1]} : vector<8x128xf32> to vector<1x96xf32>
    %606 = vector.extract_strided_slice %602 {offsets = [3, 0], sizes = [1, 32], strides = [1, 1]} : vector<8x128xf32> to vector<1x32xf32>
    %607 = vector.extract_strided_slice %602 {offsets = [4, 0], sizes = [1, 32], strides = [1, 1]} : vector<8x128xf32> to vector<1x32xf32>
    %608 = vector.extract_strided_slice %602 {offsets = [5, 0], sizes = [1, 32], strides = [1, 1]} : vector<8x128xf32> to vector<1x32xf32>
    %609 = vector.extract_strided_slice %602 {offsets = [6, 0], sizes = [1, 128], strides = [1, 1]} : vector<8x128xf32> to vector<1x128xf32>
    %610 = vector.extract_strided_slice %602 {offsets = [7, 0], sizes = [1, 32], strides = [1, 1]} : vector<8x128xf32> to vector<1x32xf32>
    %c4_195 = arith.constant 4 : index
    %c0_196 = arith.constant 0 : index
    %c0_197 = arith.constant 0 : index
    %611 = vector.load %arg3[%c4_195, %c0_196, %c0_197] : memref<12x32x128xf32, #tpu.memory_space<vmem>>, vector<1x32x128xf32>
    %612 = vector.shape_cast %611 : vector<1x32x128xf32> to vector<32x128xf32>
    %613 = vector.extract_strided_slice %612 {offsets = [0, 0], sizes = [32, 96], strides = [1, 1]} : vector<32x128xf32> to vector<32x96xf32>
    %614 = vector.extract_strided_slice %612 {offsets = [0, 96], sizes = [32, 32], strides = [1, 1]} : vector<32x128xf32> to vector<32x32xf32>
    %cst_198 = arith.constant dense<0.000000e+00> : vector<5xf32>
    %615 = vector.multi_reduction <add>, %599, %cst_198 [1] : vector<5x32xf32> to vector<5xf32>
    %616 = vector.shape_cast %615 : vector<5xf32> to vector<5x1xf32>
    %cst_199 = arith.constant 3.200000e+01 : f32
    %617 = vector.broadcast %cst_199 : f32 to vector<5x1xf32>
    %618 = arith.divf %616, %617 : vector<5x1xf32>
    %619 = vector.broadcast %618 : vector<5x1xf32> to vector<5x32xf32>
    %620 = arith.subf %599, %619 : vector<5x32xf32>
    %621 = arith.mulf %620, %620 : vector<5x32xf32>
    %cst_200 = arith.constant dense<0.000000e+00> : vector<5xf32>
    %622 = vector.multi_reduction <add>, %621, %cst_200 [1] : vector<5x32xf32> to vector<5xf32>
    %623 = vector.shape_cast %622 : vector<5xf32> to vector<5x1xf32>
    %cst_201 = arith.constant 3.200000e+01 : f32
    %624 = vector.broadcast %cst_201 : f32 to vector<5x1xf32>
    %625 = arith.divf %623, %624 : vector<5x1xf32>
    %626 = vector.broadcast %618 : vector<5x1xf32> to vector<5x32xf32>
    %627 = arith.subf %599, %626 : vector<5x32xf32>
    %cst_202 = arith.constant 9.99999997E-7 : f32
    %628 = vector.broadcast %cst_202 : f32 to vector<5x1xf32>
    %629 = arith.addf %625, %628 : vector<5x1xf32>
    %630 = math.rsqrt %629 : vector<5x1xf32>
    %631 = vector.broadcast %630 : vector<5x1xf32> to vector<5x32xf32>
    %632 = arith.mulf %627, %631 : vector<5x32xf32>
    %633 = vector.broadcast %603 : vector<1x32xf32> to vector<5x32xf32>
    %634 = arith.mulf %632, %633 : vector<5x32xf32>
    %635 = vector.broadcast %604 : vector<1x32xf32> to vector<5x32xf32>
    %636 = arith.addf %634, %635 : vector<5x32xf32>
    %cst_203 = arith.constant dense<0.000000e+00> : vector<5x96xf32>
    %637 = tpu.matmul %636, %613, %cst_203 {dimension_numbers = #tpu.dot_dimension_numbers<[1], [0], [0], [1], [0, 0, 1, 1], [], []>} : vector<5x32xf32>, vector<32x96xf32>, vector<5x96xf32> -> vector<5x96xf32>
    %638 = vector.broadcast %605 : vector<1x96xf32> to vector<5x96xf32>
    %639 = arith.addf %637, %638 : vector<5x96xf32>
    %640 = vector.extract_strided_slice %639 {offsets = [0, 0], sizes = [5, 8], strides = [1, 1]} : vector<5x96xf32> to vector<5x8xf32>
    %641 = vector.extract_strided_slice %639 {offsets = [0, 32], sizes = [5, 8], strides = [1, 1]} : vector<5x96xf32> to vector<5x8xf32>
    %642 = vector.extract_strided_slice %639 {offsets = [0, 64], sizes = [5, 8], strides = [1, 1]} : vector<5x96xf32> to vector<5x8xf32>
    %cst_204 = arith.constant dense<0.000000e+00> : vector<5x5xf32>
    %643 = tpu.matmul %640, %641, %cst_204 {dimension_numbers = #tpu.dot_dimension_numbers<[1], [1], [0], [0], [0, 0, 1, 0], [], []>} : vector<5x8xf32>, vector<5x8xf32>, vector<5x5xf32> -> vector<5x5xf32>
    %cst_205 = arith.constant 0.353553385 : f32
    %644 = vector.broadcast %cst_205 : f32 to vector<5x5xf32>
    %645 = arith.mulf %643, %644 : vector<5x5xf32>
    %cst_206 = arith.constant dense<0xFF800000> : vector<5xf32>
    %646 = vector.multi_reduction <maximumf>, %645, %cst_206 [1] : vector<5x5xf32> to vector<5xf32>
    %647 = vector.shape_cast %646 : vector<5xf32> to vector<5x1xf32>
    %648 = vector.broadcast %647 : vector<5x1xf32> to vector<5x5xf32>
    %649 = arith.subf %645, %648 : vector<5x5xf32>
    %650 = math.exp %649 : vector<5x5xf32>
    %cst_207 = arith.constant dense<0.000000e+00> : vector<5xf32>
    %651 = vector.multi_reduction <add>, %650, %cst_207 [1] : vector<5x5xf32> to vector<5xf32>
    %652 = vector.shape_cast %651 : vector<5xf32> to vector<5x1xf32>
    %653 = vector.broadcast %652 : vector<5x1xf32> to vector<5x5xf32>
    %654 = arith.divf %650, %653 : vector<5x5xf32>
    %cst_208 = arith.constant dense<0.000000e+00> : vector<5x8xf32>
    %655 = tpu.matmul %654, %642, %cst_208 {dimension_numbers = #tpu.dot_dimension_numbers<[1], [0], [0], [1], [0, 0, 1, 1], [], []>} : vector<5x5xf32>, vector<5x8xf32>, vector<5x8xf32> -> vector<5x8xf32>
    %656 = vector.extract_strided_slice %639 {offsets = [0, 8], sizes = [5, 8], strides = [1, 1]} : vector<5x96xf32> to vector<5x8xf32>
    %657 = vector.extract_strided_slice %639 {offsets = [0, 40], sizes = [5, 8], strides = [1, 1]} : vector<5x96xf32> to vector<5x8xf32>
    %658 = vector.extract_strided_slice %639 {offsets = [0, 72], sizes = [5, 8], strides = [1, 1]} : vector<5x96xf32> to vector<5x8xf32>
    %cst_209 = arith.constant dense<0.000000e+00> : vector<5x5xf32>
    %659 = tpu.matmul %656, %657, %cst_209 {dimension_numbers = #tpu.dot_dimension_numbers<[1], [1], [0], [0], [0, 0, 1, 0], [], []>} : vector<5x8xf32>, vector<5x8xf32>, vector<5x5xf32> -> vector<5x5xf32>
    %cst_210 = arith.constant 0.353553385 : f32
    %660 = vector.broadcast %cst_210 : f32 to vector<5x5xf32>
    %661 = arith.mulf %659, %660 : vector<5x5xf32>
    %cst_211 = arith.constant dense<0xFF800000> : vector<5xf32>
    %662 = vector.multi_reduction <maximumf>, %661, %cst_211 [1] : vector<5x5xf32> to vector<5xf32>
    %663 = vector.shape_cast %662 : vector<5xf32> to vector<5x1xf32>
    %664 = vector.broadcast %663 : vector<5x1xf32> to vector<5x5xf32>
    %665 = arith.subf %661, %664 : vector<5x5xf32>
    %666 = math.exp %665 : vector<5x5xf32>
    %cst_212 = arith.constant dense<0.000000e+00> : vector<5xf32>
    %667 = vector.multi_reduction <add>, %666, %cst_212 [1] : vector<5x5xf32> to vector<5xf32>
    %668 = vector.shape_cast %667 : vector<5xf32> to vector<5x1xf32>
    %669 = vector.broadcast %668 : vector<5x1xf32> to vector<5x5xf32>
    %670 = arith.divf %666, %669 : vector<5x5xf32>
    %cst_213 = arith.constant dense<0.000000e+00> : vector<5x8xf32>
    %671 = tpu.matmul %670, %658, %cst_213 {dimension_numbers = #tpu.dot_dimension_numbers<[1], [0], [0], [1], [0, 0, 1, 1], [], []>} : vector<5x5xf32>, vector<5x8xf32>, vector<5x8xf32> -> vector<5x8xf32>
    %672 = vector.extract_strided_slice %639 {offsets = [0, 16], sizes = [5, 8], strides = [1, 1]} : vector<5x96xf32> to vector<5x8xf32>
    %673 = vector.extract_strided_slice %639 {offsets = [0, 48], sizes = [5, 8], strides = [1, 1]} : vector<5x96xf32> to vector<5x8xf32>
    %674 = vector.extract_strided_slice %639 {offsets = [0, 80], sizes = [5, 8], strides = [1, 1]} : vector<5x96xf32> to vector<5x8xf32>
    %cst_214 = arith.constant dense<0.000000e+00> : vector<5x5xf32>
    %675 = tpu.matmul %672, %673, %cst_214 {dimension_numbers = #tpu.dot_dimension_numbers<[1], [1], [0], [0], [0, 0, 1, 0], [], []>} : vector<5x8xf32>, vector<5x8xf32>, vector<5x5xf32> -> vector<5x5xf32>
    %cst_215 = arith.constant 0.353553385 : f32
    %676 = vector.broadcast %cst_215 : f32 to vector<5x5xf32>
    %677 = arith.mulf %675, %676 : vector<5x5xf32>
    %cst_216 = arith.constant dense<0xFF800000> : vector<5xf32>
    %678 = vector.multi_reduction <maximumf>, %677, %cst_216 [1] : vector<5x5xf32> to vector<5xf32>
    %679 = vector.shape_cast %678 : vector<5xf32> to vector<5x1xf32>
    %680 = vector.broadcast %679 : vector<5x1xf32> to vector<5x5xf32>
    %681 = arith.subf %677, %680 : vector<5x5xf32>
    %682 = math.exp %681 : vector<5x5xf32>
    %cst_217 = arith.constant dense<0.000000e+00> : vector<5xf32>
    %683 = vector.multi_reduction <add>, %682, %cst_217 [1] : vector<5x5xf32> to vector<5xf32>
    %684 = vector.shape_cast %683 : vector<5xf32> to vector<5x1xf32>
    %685 = vector.broadcast %684 : vector<5x1xf32> to vector<5x5xf32>
    %686 = arith.divf %682, %685 : vector<5x5xf32>
    %cst_218 = arith.constant dense<0.000000e+00> : vector<5x8xf32>
    %687 = tpu.matmul %686, %674, %cst_218 {dimension_numbers = #tpu.dot_dimension_numbers<[1], [0], [0], [1], [0, 0, 1, 1], [], []>} : vector<5x5xf32>, vector<5x8xf32>, vector<5x8xf32> -> vector<5x8xf32>
    %688 = vector.extract_strided_slice %639 {offsets = [0, 24], sizes = [5, 8], strides = [1, 1]} : vector<5x96xf32> to vector<5x8xf32>
    %689 = vector.extract_strided_slice %639 {offsets = [0, 56], sizes = [5, 8], strides = [1, 1]} : vector<5x96xf32> to vector<5x8xf32>
    %690 = vector.extract_strided_slice %639 {offsets = [0, 88], sizes = [5, 8], strides = [1, 1]} : vector<5x96xf32> to vector<5x8xf32>
    %cst_219 = arith.constant dense<0.000000e+00> : vector<5x5xf32>
    %691 = tpu.matmul %688, %689, %cst_219 {dimension_numbers = #tpu.dot_dimension_numbers<[1], [1], [0], [0], [0, 0, 1, 0], [], []>} : vector<5x8xf32>, vector<5x8xf32>, vector<5x5xf32> -> vector<5x5xf32>
    %cst_220 = arith.constant 0.353553385 : f32
    %692 = vector.broadcast %cst_220 : f32 to vector<5x5xf32>
    %693 = arith.mulf %691, %692 : vector<5x5xf32>
    %cst_221 = arith.constant dense<0xFF800000> : vector<5xf32>
    %694 = vector.multi_reduction <maximumf>, %693, %cst_221 [1] : vector<5x5xf32> to vector<5xf32>
    %695 = vector.shape_cast %694 : vector<5xf32> to vector<5x1xf32>
    %696 = vector.broadcast %695 : vector<5x1xf32> to vector<5x5xf32>
    %697 = arith.subf %693, %696 : vector<5x5xf32>
    %698 = math.exp %697 : vector<5x5xf32>
    %cst_222 = arith.constant dense<0.000000e+00> : vector<5xf32>
    %699 = vector.multi_reduction <add>, %698, %cst_222 [1] : vector<5x5xf32> to vector<5xf32>
    %700 = vector.shape_cast %699 : vector<5xf32> to vector<5x1xf32>
    %701 = vector.broadcast %700 : vector<5x1xf32> to vector<5x5xf32>
    %702 = arith.divf %698, %701 : vector<5x5xf32>
    %cst_223 = arith.constant dense<0.000000e+00> : vector<5x8xf32>
    %703 = tpu.matmul %702, %690, %cst_223 {dimension_numbers = #tpu.dot_dimension_numbers<[1], [0], [0], [1], [0, 0, 1, 1], [], []>} : vector<5x5xf32>, vector<5x8xf32>, vector<5x8xf32> -> vector<5x8xf32>
    %704 = tpu.concatenate %655, %671, %687, %703 in 1 : vector<5x8xf32>, vector<5x8xf32>, vector<5x8xf32>, vector<5x8xf32> -> vector<5x32xf32>
    %cst_224 = arith.constant dense<0.000000e+00> : vector<5x32xf32>
    %705 = tpu.matmul %704, %614, %cst_224 {dimension_numbers = #tpu.dot_dimension_numbers<[1], [0], [0], [1], [0, 0, 1, 1], [], []>} : vector<5x32xf32>, vector<32x32xf32>, vector<5x32xf32> -> vector<5x32xf32>
    %706 = arith.addf %599, %705 : vector<5x32xf32>
    %707 = vector.broadcast %606 : vector<1x32xf32> to vector<5x32xf32>
    %708 = arith.addf %706, %707 : vector<5x32xf32>
    %cst_225 = arith.constant dense<0.000000e+00> : vector<5xf32>
    %709 = vector.multi_reduction <add>, %708, %cst_225 [1] : vector<5x32xf32> to vector<5xf32>
    %710 = vector.shape_cast %709 : vector<5xf32> to vector<5x1xf32>
    %cst_226 = arith.constant 3.200000e+01 : f32
    %711 = vector.broadcast %cst_226 : f32 to vector<5x1xf32>
    %712 = arith.divf %710, %711 : vector<5x1xf32>
    %713 = vector.broadcast %712 : vector<5x1xf32> to vector<5x32xf32>
    %714 = arith.subf %708, %713 : vector<5x32xf32>
    %715 = arith.mulf %714, %714 : vector<5x32xf32>
    %cst_227 = arith.constant dense<0.000000e+00> : vector<5xf32>
    %716 = vector.multi_reduction <add>, %715, %cst_227 [1] : vector<5x32xf32> to vector<5xf32>
    %717 = vector.shape_cast %716 : vector<5xf32> to vector<5x1xf32>
    %cst_228 = arith.constant 3.200000e+01 : f32
    %718 = vector.broadcast %cst_228 : f32 to vector<5x1xf32>
    %719 = arith.divf %717, %718 : vector<5x1xf32>
    %720 = vector.broadcast %712 : vector<5x1xf32> to vector<5x32xf32>
    %721 = arith.subf %708, %720 : vector<5x32xf32>
    %cst_229 = arith.constant 9.99999997E-7 : f32
    %722 = vector.broadcast %cst_229 : f32 to vector<5x1xf32>
    %723 = arith.addf %719, %722 : vector<5x1xf32>
    %724 = math.rsqrt %723 : vector<5x1xf32>
    %725 = vector.broadcast %724 : vector<5x1xf32> to vector<5x32xf32>
    %726 = arith.mulf %721, %725 : vector<5x32xf32>
    %727 = vector.broadcast %607 : vector<1x32xf32> to vector<5x32xf32>
    %728 = arith.mulf %726, %727 : vector<5x32xf32>
    %729 = vector.broadcast %608 : vector<1x32xf32> to vector<5x32xf32>
    %730 = arith.addf %728, %729 : vector<5x32xf32>
    %c4_230 = arith.constant 4 : index
    %c0_231 = arith.constant 0 : index
    %c0_232 = arith.constant 0 : index
    %731 = vector.load %arg4[%c4_230, %c0_231, %c0_232] : memref<12x32x128xf32, #tpu.memory_space<vmem>>, vector<1x32x128xf32>
    %732 = vector.shape_cast %731 : vector<1x32x128xf32> to vector<32x128xf32>
    %cst_233 = arith.constant dense<0.000000e+00> : vector<5x128xf32>
    %733 = tpu.matmul %730, %732, %cst_233 {dimension_numbers = #tpu.dot_dimension_numbers<[1], [0], [0], [1], [0, 0, 1, 1], [], []>} : vector<5x32xf32>, vector<32x128xf32>, vector<5x128xf32> -> vector<5x128xf32>
    %734 = vector.broadcast %609 : vector<1x128xf32> to vector<5x128xf32>
    %735 = arith.addf %733, %734 : vector<5x128xf32>
    %cst_234 = arith.constant 5.000000e-01 : f32
    %736 = vector.broadcast %cst_234 : f32 to vector<5x128xf32>
    %737 = arith.mulf %736, %735 : vector<5x128xf32>
    %cst_235 = arith.constant 0.707106769 : f32
    %738 = vector.broadcast %cst_235 : f32 to vector<5x128xf32>
    %739 = arith.mulf %735, %738 : vector<5x128xf32>
    %740 = math.erf %739 : vector<5x128xf32>
    %cst_236 = arith.constant 1.000000e+00 : f32
    %741 = vector.broadcast %cst_236 : f32 to vector<5x128xf32>
    %742 = arith.addf %741, %740 : vector<5x128xf32>
    %743 = arith.mulf %737, %742 : vector<5x128xf32>
    %c4_237 = arith.constant 4 : index
    %c0_238 = arith.constant 0 : index
    %c0_239 = arith.constant 0 : index
    %744 = vector.load %arg5[%c4_237, %c0_238, %c0_239] : memref<12x128x32xf32, #tpu.memory_space<vmem>>, vector<1x128x32xf32>
    %745 = vector.shape_cast %744 : vector<1x128x32xf32> to vector<128x32xf32>
    %cst_240 = arith.constant dense<0.000000e+00> : vector<5x32xf32>
    %746 = tpu.matmul %743, %745, %cst_240 {dimension_numbers = #tpu.dot_dimension_numbers<[1], [0], [0], [1], [0, 0, 1, 1], [], []>} : vector<5x128xf32>, vector<128x32xf32>, vector<5x32xf32> -> vector<5x32xf32>
    %747 = arith.addf %708, %746 : vector<5x32xf32>
    %748 = vector.broadcast %610 : vector<1x32xf32> to vector<5x32xf32>
    %749 = arith.addf %747, %748 : vector<5x32xf32>
    %750 = vector.extract_strided_slice %749 {offsets = [0, 0], sizes = [1, 32], strides = [1, 1]} : vector<5x32xf32> to vector<1x32xf32>
    %c5 = arith.constant 5 : index
    %c0_241 = arith.constant 0 : index
    %c0_242 = arith.constant 0 : index
    %751 = vector.load %arg2[%c5, %c0_241, %c0_242] : memref<12x8x128xf32, #tpu.memory_space<vmem>>, vector<1x8x128xf32>
    %752 = vector.shape_cast %751 : vector<1x8x128xf32> to vector<8x128xf32>
    %753 = vector.extract_strided_slice %752 {offsets = [0, 0], sizes = [1, 32], strides = [1, 1]} : vector<8x128xf32> to vector<1x32xf32>
    %754 = vector.extract_strided_slice %752 {offsets = [1, 0], sizes = [1, 32], strides = [1, 1]} : vector<8x128xf32> to vector<1x32xf32>
    %755 = vector.extract_strided_slice %752 {offsets = [2, 0], sizes = [1, 96], strides = [1, 1]} : vector<8x128xf32> to vector<1x96xf32>
    %756 = vector.extract_strided_slice %752 {offsets = [3, 0], sizes = [1, 32], strides = [1, 1]} : vector<8x128xf32> to vector<1x32xf32>
    %757 = vector.extract_strided_slice %752 {offsets = [4, 0], sizes = [1, 32], strides = [1, 1]} : vector<8x128xf32> to vector<1x32xf32>
    %758 = vector.extract_strided_slice %752 {offsets = [5, 0], sizes = [1, 32], strides = [1, 1]} : vector<8x128xf32> to vector<1x32xf32>
    %759 = vector.extract_strided_slice %752 {offsets = [6, 0], sizes = [1, 128], strides = [1, 1]} : vector<8x128xf32> to vector<1x128xf32>
    %760 = vector.extract_strided_slice %752 {offsets = [7, 0], sizes = [1, 32], strides = [1, 1]} : vector<8x128xf32> to vector<1x32xf32>
    %c5_243 = arith.constant 5 : index
    %c0_244 = arith.constant 0 : index
    %c0_245 = arith.constant 0 : index
    %761 = vector.load %arg3[%c5_243, %c0_244, %c0_245] : memref<12x32x128xf32, #tpu.memory_space<vmem>>, vector<1x32x128xf32>
    %762 = vector.shape_cast %761 : vector<1x32x128xf32> to vector<32x128xf32>
    %763 = vector.extract_strided_slice %762 {offsets = [0, 0], sizes = [32, 96], strides = [1, 1]} : vector<32x128xf32> to vector<32x96xf32>
    %764 = vector.extract_strided_slice %762 {offsets = [0, 96], sizes = [32, 32], strides = [1, 1]} : vector<32x128xf32> to vector<32x32xf32>
    %cst_246 = arith.constant dense<0.000000e+00> : vector<5xf32>
    %765 = vector.multi_reduction <add>, %749, %cst_246 [1] : vector<5x32xf32> to vector<5xf32>
    %766 = vector.shape_cast %765 : vector<5xf32> to vector<5x1xf32>
    %cst_247 = arith.constant 3.200000e+01 : f32
    %767 = vector.broadcast %cst_247 : f32 to vector<5x1xf32>
    %768 = arith.divf %766, %767 : vector<5x1xf32>
    %769 = vector.broadcast %768 : vector<5x1xf32> to vector<5x32xf32>
    %770 = arith.subf %749, %769 : vector<5x32xf32>
    %771 = arith.mulf %770, %770 : vector<5x32xf32>
    %cst_248 = arith.constant dense<0.000000e+00> : vector<5xf32>
    %772 = vector.multi_reduction <add>, %771, %cst_248 [1] : vector<5x32xf32> to vector<5xf32>
    %773 = vector.shape_cast %772 : vector<5xf32> to vector<5x1xf32>
    %cst_249 = arith.constant 3.200000e+01 : f32
    %774 = vector.broadcast %cst_249 : f32 to vector<5x1xf32>
    %775 = arith.divf %773, %774 : vector<5x1xf32>
    %776 = vector.broadcast %768 : vector<5x1xf32> to vector<5x32xf32>
    %777 = arith.subf %749, %776 : vector<5x32xf32>
    %cst_250 = arith.constant 9.99999997E-7 : f32
    %778 = vector.broadcast %cst_250 : f32 to vector<5x1xf32>
    %779 = arith.addf %775, %778 : vector<5x1xf32>
    %780 = math.rsqrt %779 : vector<5x1xf32>
    %781 = vector.broadcast %780 : vector<5x1xf32> to vector<5x32xf32>
    %782 = arith.mulf %777, %781 : vector<5x32xf32>
    %783 = vector.broadcast %753 : vector<1x32xf32> to vector<5x32xf32>
    %784 = arith.mulf %782, %783 : vector<5x32xf32>
    %785 = vector.broadcast %754 : vector<1x32xf32> to vector<5x32xf32>
    %786 = arith.addf %784, %785 : vector<5x32xf32>
    %cst_251 = arith.constant dense<0.000000e+00> : vector<5x96xf32>
    %787 = tpu.matmul %786, %763, %cst_251 {dimension_numbers = #tpu.dot_dimension_numbers<[1], [0], [0], [1], [0, 0, 1, 1], [], []>} : vector<5x32xf32>, vector<32x96xf32>, vector<5x96xf32> -> vector<5x96xf32>
    %788 = vector.broadcast %755 : vector<1x96xf32> to vector<5x96xf32>
    %789 = arith.addf %787, %788 : vector<5x96xf32>
    %790 = vector.extract_strided_slice %789 {offsets = [0, 0], sizes = [5, 8], strides = [1, 1]} : vector<5x96xf32> to vector<5x8xf32>
    %791 = vector.extract_strided_slice %789 {offsets = [0, 32], sizes = [5, 8], strides = [1, 1]} : vector<5x96xf32> to vector<5x8xf32>
    %792 = vector.extract_strided_slice %789 {offsets = [0, 64], sizes = [5, 8], strides = [1, 1]} : vector<5x96xf32> to vector<5x8xf32>
    %cst_252 = arith.constant dense<0.000000e+00> : vector<5x5xf32>
    %793 = tpu.matmul %790, %791, %cst_252 {dimension_numbers = #tpu.dot_dimension_numbers<[1], [1], [0], [0], [0, 0, 1, 0], [], []>} : vector<5x8xf32>, vector<5x8xf32>, vector<5x5xf32> -> vector<5x5xf32>
    %cst_253 = arith.constant 0.353553385 : f32
    %794 = vector.broadcast %cst_253 : f32 to vector<5x5xf32>
    %795 = arith.mulf %793, %794 : vector<5x5xf32>
    %cst_254 = arith.constant dense<0xFF800000> : vector<5xf32>
    %796 = vector.multi_reduction <maximumf>, %795, %cst_254 [1] : vector<5x5xf32> to vector<5xf32>
    %797 = vector.shape_cast %796 : vector<5xf32> to vector<5x1xf32>
    %798 = vector.broadcast %797 : vector<5x1xf32> to vector<5x5xf32>
    %799 = arith.subf %795, %798 : vector<5x5xf32>
    %800 = math.exp %799 : vector<5x5xf32>
    %cst_255 = arith.constant dense<0.000000e+00> : vector<5xf32>
    %801 = vector.multi_reduction <add>, %800, %cst_255 [1] : vector<5x5xf32> to vector<5xf32>
    %802 = vector.shape_cast %801 : vector<5xf32> to vector<5x1xf32>
    %803 = vector.broadcast %802 : vector<5x1xf32> to vector<5x5xf32>
    %804 = arith.divf %800, %803 : vector<5x5xf32>
    %cst_256 = arith.constant dense<0.000000e+00> : vector<5x8xf32>
    %805 = tpu.matmul %804, %792, %cst_256 {dimension_numbers = #tpu.dot_dimension_numbers<[1], [0], [0], [1], [0, 0, 1, 1], [], []>} : vector<5x5xf32>, vector<5x8xf32>, vector<5x8xf32> -> vector<5x8xf32>
    %806 = vector.extract_strided_slice %789 {offsets = [0, 8], sizes = [5, 8], strides = [1, 1]} : vector<5x96xf32> to vector<5x8xf32>
    %807 = vector.extract_strided_slice %789 {offsets = [0, 40], sizes = [5, 8], strides = [1, 1]} : vector<5x96xf32> to vector<5x8xf32>
    %808 = vector.extract_strided_slice %789 {offsets = [0, 72], sizes = [5, 8], strides = [1, 1]} : vector<5x96xf32> to vector<5x8xf32>
    %cst_257 = arith.constant dense<0.000000e+00> : vector<5x5xf32>
    %809 = tpu.matmul %806, %807, %cst_257 {dimension_numbers = #tpu.dot_dimension_numbers<[1], [1], [0], [0], [0, 0, 1, 0], [], []>} : vector<5x8xf32>, vector<5x8xf32>, vector<5x5xf32> -> vector<5x5xf32>
    %cst_258 = arith.constant 0.353553385 : f32
    %810 = vector.broadcast %cst_258 : f32 to vector<5x5xf32>
    %811 = arith.mulf %809, %810 : vector<5x5xf32>
    %cst_259 = arith.constant dense<0xFF800000> : vector<5xf32>
    %812 = vector.multi_reduction <maximumf>, %811, %cst_259 [1] : vector<5x5xf32> to vector<5xf32>
    %813 = vector.shape_cast %812 : vector<5xf32> to vector<5x1xf32>
    %814 = vector.broadcast %813 : vector<5x1xf32> to vector<5x5xf32>
    %815 = arith.subf %811, %814 : vector<5x5xf32>
    %816 = math.exp %815 : vector<5x5xf32>
    %cst_260 = arith.constant dense<0.000000e+00> : vector<5xf32>
    %817 = vector.multi_reduction <add>, %816, %cst_260 [1] : vector<5x5xf32> to vector<5xf32>
    %818 = vector.shape_cast %817 : vector<5xf32> to vector<5x1xf32>
    %819 = vector.broadcast %818 : vector<5x1xf32> to vector<5x5xf32>
    %820 = arith.divf %816, %819 : vector<5x5xf32>
    %cst_261 = arith.constant dense<0.000000e+00> : vector<5x8xf32>
    %821 = tpu.matmul %820, %808, %cst_261 {dimension_numbers = #tpu.dot_dimension_numbers<[1], [0], [0], [1], [0, 0, 1, 1], [], []>} : vector<5x5xf32>, vector<5x8xf32>, vector<5x8xf32> -> vector<5x8xf32>
    %822 = vector.extract_strided_slice %789 {offsets = [0, 16], sizes = [5, 8], strides = [1, 1]} : vector<5x96xf32> to vector<5x8xf32>
    %823 = vector.extract_strided_slice %789 {offsets = [0, 48], sizes = [5, 8], strides = [1, 1]} : vector<5x96xf32> to vector<5x8xf32>
    %824 = vector.extract_strided_slice %789 {offsets = [0, 80], sizes = [5, 8], strides = [1, 1]} : vector<5x96xf32> to vector<5x8xf32>
    %cst_262 = arith.constant dense<0.000000e+00> : vector<5x5xf32>
    %825 = tpu.matmul %822, %823, %cst_262 {dimension_numbers = #tpu.dot_dimension_numbers<[1], [1], [0], [0], [0, 0, 1, 0], [], []>} : vector<5x8xf32>, vector<5x8xf32>, vector<5x5xf32> -> vector<5x5xf32>
    %cst_263 = arith.constant 0.353553385 : f32
    %826 = vector.broadcast %cst_263 : f32 to vector<5x5xf32>
    %827 = arith.mulf %825, %826 : vector<5x5xf32>
    %cst_264 = arith.constant dense<0xFF800000> : vector<5xf32>
    %828 = vector.multi_reduction <maximumf>, %827, %cst_264 [1] : vector<5x5xf32> to vector<5xf32>
    %829 = vector.shape_cast %828 : vector<5xf32> to vector<5x1xf32>
    %830 = vector.broadcast %829 : vector<5x1xf32> to vector<5x5xf32>
    %831 = arith.subf %827, %830 : vector<5x5xf32>
    %832 = math.exp %831 : vector<5x5xf32>
    %cst_265 = arith.constant dense<0.000000e+00> : vector<5xf32>
    %833 = vector.multi_reduction <add>, %832, %cst_265 [1] : vector<5x5xf32> to vector<5xf32>
    %834 = vector.shape_cast %833 : vector<5xf32> to vector<5x1xf32>
    %835 = vector.broadcast %834 : vector<5x1xf32> to vector<5x5xf32>
    %836 = arith.divf %832, %835 : vector<5x5xf32>
    %cst_266 = arith.constant dense<0.000000e+00> : vector<5x8xf32>
    %837 = tpu.matmul %836, %824, %cst_266 {dimension_numbers = #tpu.dot_dimension_numbers<[1], [0], [0], [1], [0, 0, 1, 1], [], []>} : vector<5x5xf32>, vector<5x8xf32>, vector<5x8xf32> -> vector<5x8xf32>
    %838 = vector.extract_strided_slice %789 {offsets = [0, 24], sizes = [5, 8], strides = [1, 1]} : vector<5x96xf32> to vector<5x8xf32>
    %839 = vector.extract_strided_slice %789 {offsets = [0, 56], sizes = [5, 8], strides = [1, 1]} : vector<5x96xf32> to vector<5x8xf32>
    %840 = vector.extract_strided_slice %789 {offsets = [0, 88], sizes = [5, 8], strides = [1, 1]} : vector<5x96xf32> to vector<5x8xf32>
    %cst_267 = arith.constant dense<0.000000e+00> : vector<5x5xf32>
    %841 = tpu.matmul %838, %839, %cst_267 {dimension_numbers = #tpu.dot_dimension_numbers<[1], [1], [0], [0], [0, 0, 1, 0], [], []>} : vector<5x8xf32>, vector<5x8xf32>, vector<5x5xf32> -> vector<5x5xf32>
    %cst_268 = arith.constant 0.353553385 : f32
    %842 = vector.broadcast %cst_268 : f32 to vector<5x5xf32>
    %843 = arith.mulf %841, %842 : vector<5x5xf32>
    %cst_269 = arith.constant dense<0xFF800000> : vector<5xf32>
    %844 = vector.multi_reduction <maximumf>, %843, %cst_269 [1] : vector<5x5xf32> to vector<5xf32>
    %845 = vector.shape_cast %844 : vector<5xf32> to vector<5x1xf32>
    %846 = vector.broadcast %845 : vector<5x1xf32> to vector<5x5xf32>
    %847 = arith.subf %843, %846 : vector<5x5xf32>
    %848 = math.exp %847 : vector<5x5xf32>
    %cst_270 = arith.constant dense<0.000000e+00> : vector<5xf32>
    %849 = vector.multi_reduction <add>, %848, %cst_270 [1] : vector<5x5xf32> to vector<5xf32>
    %850 = vector.shape_cast %849 : vector<5xf32> to vector<5x1xf32>
    %851 = vector.broadcast %850 : vector<5x1xf32> to vector<5x5xf32>
    %852 = arith.divf %848, %851 : vector<5x5xf32>
    %cst_271 = arith.constant dense<0.000000e+00> : vector<5x8xf32>
    %853 = tpu.matmul %852, %840, %cst_271 {dimension_numbers = #tpu.dot_dimension_numbers<[1], [0], [0], [1], [0, 0, 1, 1], [], []>} : vector<5x5xf32>, vector<5x8xf32>, vector<5x8xf32> -> vector<5x8xf32>
    %854 = tpu.concatenate %805, %821, %837, %853 in 1 : vector<5x8xf32>, vector<5x8xf32>, vector<5x8xf32>, vector<5x8xf32> -> vector<5x32xf32>
    %cst_272 = arith.constant dense<0.000000e+00> : vector<5x32xf32>
    %855 = tpu.matmul %854, %764, %cst_272 {dimension_numbers = #tpu.dot_dimension_numbers<[1], [0], [0], [1], [0, 0, 1, 1], [], []>} : vector<5x32xf32>, vector<32x32xf32>, vector<5x32xf32> -> vector<5x32xf32>
    %856 = arith.addf %749, %855 : vector<5x32xf32>
    %857 = vector.broadcast %756 : vector<1x32xf32> to vector<5x32xf32>
    %858 = arith.addf %856, %857 : vector<5x32xf32>
    %cst_273 = arith.constant dense<0.000000e+00> : vector<5xf32>
    %859 = vector.multi_reduction <add>, %858, %cst_273 [1] : vector<5x32xf32> to vector<5xf32>
    %860 = vector.shape_cast %859 : vector<5xf32> to vector<5x1xf32>
    %cst_274 = arith.constant 3.200000e+01 : f32
    %861 = vector.broadcast %cst_274 : f32 to vector<5x1xf32>
    %862 = arith.divf %860, %861 : vector<5x1xf32>
    %863 = vector.broadcast %862 : vector<5x1xf32> to vector<5x32xf32>
    %864 = arith.subf %858, %863 : vector<5x32xf32>
    %865 = arith.mulf %864, %864 : vector<5x32xf32>
    %cst_275 = arith.constant dense<0.000000e+00> : vector<5xf32>
    %866 = vector.multi_reduction <add>, %865, %cst_275 [1] : vector<5x32xf32> to vector<5xf32>
    %867 = vector.shape_cast %866 : vector<5xf32> to vector<5x1xf32>
    %cst_276 = arith.constant 3.200000e+01 : f32
    %868 = vector.broadcast %cst_276 : f32 to vector<5x1xf32>
    %869 = arith.divf %867, %868 : vector<5x1xf32>
    %870 = vector.broadcast %862 : vector<5x1xf32> to vector<5x32xf32>
    %871 = arith.subf %858, %870 : vector<5x32xf32>
    %cst_277 = arith.constant 9.99999997E-7 : f32
    %872 = vector.broadcast %cst_277 : f32 to vector<5x1xf32>
    %873 = arith.addf %869, %872 : vector<5x1xf32>
    %874 = math.rsqrt %873 : vector<5x1xf32>
    %875 = vector.broadcast %874 : vector<5x1xf32> to vector<5x32xf32>
    %876 = arith.mulf %871, %875 : vector<5x32xf32>
    %877 = vector.broadcast %757 : vector<1x32xf32> to vector<5x32xf32>
    %878 = arith.mulf %876, %877 : vector<5x32xf32>
    %879 = vector.broadcast %758 : vector<1x32xf32> to vector<5x32xf32>
    %880 = arith.addf %878, %879 : vector<5x32xf32>
    %c5_278 = arith.constant 5 : index
    %c0_279 = arith.constant 0 : index
    %c0_280 = arith.constant 0 : index
    %881 = vector.load %arg4[%c5_278, %c0_279, %c0_280] : memref<12x32x128xf32, #tpu.memory_space<vmem>>, vector<1x32x128xf32>
    %882 = vector.shape_cast %881 : vector<1x32x128xf32> to vector<32x128xf32>
    %cst_281 = arith.constant dense<0.000000e+00> : vector<5x128xf32>
    %883 = tpu.matmul %880, %882, %cst_281 {dimension_numbers = #tpu.dot_dimension_numbers<[1], [0], [0], [1], [0, 0, 1, 1], [], []>} : vector<5x32xf32>, vector<32x128xf32>, vector<5x128xf32> -> vector<5x128xf32>
    %884 = vector.broadcast %759 : vector<1x128xf32> to vector<5x128xf32>
    %885 = arith.addf %883, %884 : vector<5x128xf32>
    %cst_282 = arith.constant 5.000000e-01 : f32
    %886 = vector.broadcast %cst_282 : f32 to vector<5x128xf32>
    %887 = arith.mulf %886, %885 : vector<5x128xf32>
    %cst_283 = arith.constant 0.707106769 : f32
    %888 = vector.broadcast %cst_283 : f32 to vector<5x128xf32>
    %889 = arith.mulf %885, %888 : vector<5x128xf32>
    %890 = math.erf %889 : vector<5x128xf32>
    %cst_284 = arith.constant 1.000000e+00 : f32
    %891 = vector.broadcast %cst_284 : f32 to vector<5x128xf32>
    %892 = arith.addf %891, %890 : vector<5x128xf32>
    %893 = arith.mulf %887, %892 : vector<5x128xf32>
    %c5_285 = arith.constant 5 : index
    %c0_286 = arith.constant 0 : index
    %c0_287 = arith.constant 0 : index
    %894 = vector.load %arg5[%c5_285, %c0_286, %c0_287] : memref<12x128x32xf32, #tpu.memory_space<vmem>>, vector<1x128x32xf32>
    %895 = vector.shape_cast %894 : vector<1x128x32xf32> to vector<128x32xf32>
    %cst_288 = arith.constant dense<0.000000e+00> : vector<5x32xf32>
    %896 = tpu.matmul %893, %895, %cst_288 {dimension_numbers = #tpu.dot_dimension_numbers<[1], [0], [0], [1], [0, 0, 1, 1], [], []>} : vector<5x128xf32>, vector<128x32xf32>, vector<5x32xf32> -> vector<5x32xf32>
    %897 = arith.addf %858, %896 : vector<5x32xf32>
    %898 = vector.broadcast %760 : vector<1x32xf32> to vector<5x32xf32>
    %899 = arith.addf %897, %898 : vector<5x32xf32>
    %900 = vector.extract_strided_slice %899 {offsets = [0, 0], sizes = [1, 32], strides = [1, 1]} : vector<5x32xf32> to vector<1x32xf32>
    %c6 = arith.constant 6 : index
    %c0_289 = arith.constant 0 : index
    %c0_290 = arith.constant 0 : index
    %901 = vector.load %arg2[%c6, %c0_289, %c0_290] : memref<12x8x128xf32, #tpu.memory_space<vmem>>, vector<1x8x128xf32>
    %902 = vector.shape_cast %901 : vector<1x8x128xf32> to vector<8x128xf32>
    %903 = vector.extract_strided_slice %902 {offsets = [0, 0], sizes = [1, 32], strides = [1, 1]} : vector<8x128xf32> to vector<1x32xf32>
    %904 = vector.extract_strided_slice %902 {offsets = [1, 0], sizes = [1, 32], strides = [1, 1]} : vector<8x128xf32> to vector<1x32xf32>
    %905 = vector.extract_strided_slice %902 {offsets = [2, 0], sizes = [1, 96], strides = [1, 1]} : vector<8x128xf32> to vector<1x96xf32>
    %906 = vector.extract_strided_slice %902 {offsets = [3, 0], sizes = [1, 32], strides = [1, 1]} : vector<8x128xf32> to vector<1x32xf32>
    %907 = vector.extract_strided_slice %902 {offsets = [4, 0], sizes = [1, 32], strides = [1, 1]} : vector<8x128xf32> to vector<1x32xf32>
    %908 = vector.extract_strided_slice %902 {offsets = [5, 0], sizes = [1, 32], strides = [1, 1]} : vector<8x128xf32> to vector<1x32xf32>
    %909 = vector.extract_strided_slice %902 {offsets = [6, 0], sizes = [1, 128], strides = [1, 1]} : vector<8x128xf32> to vector<1x128xf32>
    %910 = vector.extract_strided_slice %902 {offsets = [7, 0], sizes = [1, 32], strides = [1, 1]} : vector<8x128xf32> to vector<1x32xf32>
    %c6_291 = arith.constant 6 : index
    %c0_292 = arith.constant 0 : index
    %c0_293 = arith.constant 0 : index
    %911 = vector.load %arg3[%c6_291, %c0_292, %c0_293] : memref<12x32x128xf32, #tpu.memory_space<vmem>>, vector<1x32x128xf32>
    %912 = vector.shape_cast %911 : vector<1x32x128xf32> to vector<32x128xf32>
    %913 = vector.extract_strided_slice %912 {offsets = [0, 0], sizes = [32, 96], strides = [1, 1]} : vector<32x128xf32> to vector<32x96xf32>
    %914 = vector.extract_strided_slice %912 {offsets = [0, 96], sizes = [32, 32], strides = [1, 1]} : vector<32x128xf32> to vector<32x32xf32>
    %cst_294 = arith.constant dense<0.000000e+00> : vector<5xf32>
    %915 = vector.multi_reduction <add>, %899, %cst_294 [1] : vector<5x32xf32> to vector<5xf32>
    %916 = vector.shape_cast %915 : vector<5xf32> to vector<5x1xf32>
    %cst_295 = arith.constant 3.200000e+01 : f32
    %917 = vector.broadcast %cst_295 : f32 to vector<5x1xf32>
    %918 = arith.divf %916, %917 : vector<5x1xf32>
    %919 = vector.broadcast %918 : vector<5x1xf32> to vector<5x32xf32>
    %920 = arith.subf %899, %919 : vector<5x32xf32>
    %921 = arith.mulf %920, %920 : vector<5x32xf32>
    %cst_296 = arith.constant dense<0.000000e+00> : vector<5xf32>
    %922 = vector.multi_reduction <add>, %921, %cst_296 [1] : vector<5x32xf32> to vector<5xf32>
    %923 = vector.shape_cast %922 : vector<5xf32> to vector<5x1xf32>
    %cst_297 = arith.constant 3.200000e+01 : f32
    %924 = vector.broadcast %cst_297 : f32 to vector<5x1xf32>
    %925 = arith.divf %923, %924 : vector<5x1xf32>
    %926 = vector.broadcast %918 : vector<5x1xf32> to vector<5x32xf32>
    %927 = arith.subf %899, %926 : vector<5x32xf32>
    %cst_298 = arith.constant 9.99999997E-7 : f32
    %928 = vector.broadcast %cst_298 : f32 to vector<5x1xf32>
    %929 = arith.addf %925, %928 : vector<5x1xf32>
    %930 = math.rsqrt %929 : vector<5x1xf32>
    %931 = vector.broadcast %930 : vector<5x1xf32> to vector<5x32xf32>
    %932 = arith.mulf %927, %931 : vector<5x32xf32>
    %933 = vector.broadcast %903 : vector<1x32xf32> to vector<5x32xf32>
    %934 = arith.mulf %932, %933 : vector<5x32xf32>
    %935 = vector.broadcast %904 : vector<1x32xf32> to vector<5x32xf32>
    %936 = arith.addf %934, %935 : vector<5x32xf32>
    %cst_299 = arith.constant dense<0.000000e+00> : vector<5x96xf32>
    %937 = tpu.matmul %936, %913, %cst_299 {dimension_numbers = #tpu.dot_dimension_numbers<[1], [0], [0], [1], [0, 0, 1, 1], [], []>} : vector<5x32xf32>, vector<32x96xf32>, vector<5x96xf32> -> vector<5x96xf32>
    %938 = vector.broadcast %905 : vector<1x96xf32> to vector<5x96xf32>
    %939 = arith.addf %937, %938 : vector<5x96xf32>
    %940 = vector.extract_strided_slice %939 {offsets = [0, 0], sizes = [5, 8], strides = [1, 1]} : vector<5x96xf32> to vector<5x8xf32>
    %941 = vector.extract_strided_slice %939 {offsets = [0, 32], sizes = [5, 8], strides = [1, 1]} : vector<5x96xf32> to vector<5x8xf32>
    %942 = vector.extract_strided_slice %939 {offsets = [0, 64], sizes = [5, 8], strides = [1, 1]} : vector<5x96xf32> to vector<5x8xf32>
    %cst_300 = arith.constant dense<0.000000e+00> : vector<5x5xf32>
    %943 = tpu.matmul %940, %941, %cst_300 {dimension_numbers = #tpu.dot_dimension_numbers<[1], [1], [0], [0], [0, 0, 1, 0], [], []>} : vector<5x8xf32>, vector<5x8xf32>, vector<5x5xf32> -> vector<5x5xf32>
    %cst_301 = arith.constant 0.353553385 : f32
    %944 = vector.broadcast %cst_301 : f32 to vector<5x5xf32>
    %945 = arith.mulf %943, %944 : vector<5x5xf32>
    %cst_302 = arith.constant dense<0xFF800000> : vector<5xf32>
    %946 = vector.multi_reduction <maximumf>, %945, %cst_302 [1] : vector<5x5xf32> to vector<5xf32>
    %947 = vector.shape_cast %946 : vector<5xf32> to vector<5x1xf32>
    %948 = vector.broadcast %947 : vector<5x1xf32> to vector<5x5xf32>
    %949 = arith.subf %945, %948 : vector<5x5xf32>
    %950 = math.exp %949 : vector<5x5xf32>
    %cst_303 = arith.constant dense<0.000000e+00> : vector<5xf32>
    %951 = vector.multi_reduction <add>, %950, %cst_303 [1] : vector<5x5xf32> to vector<5xf32>
    %952 = vector.shape_cast %951 : vector<5xf32> to vector<5x1xf32>
    %953 = vector.broadcast %952 : vector<5x1xf32> to vector<5x5xf32>
    %954 = arith.divf %950, %953 : vector<5x5xf32>
    %cst_304 = arith.constant dense<0.000000e+00> : vector<5x8xf32>
    %955 = tpu.matmul %954, %942, %cst_304 {dimension_numbers = #tpu.dot_dimension_numbers<[1], [0], [0], [1], [0, 0, 1, 1], [], []>} : vector<5x5xf32>, vector<5x8xf32>, vector<5x8xf32> -> vector<5x8xf32>
    %956 = vector.extract_strided_slice %939 {offsets = [0, 8], sizes = [5, 8], strides = [1, 1]} : vector<5x96xf32> to vector<5x8xf32>
    %957 = vector.extract_strided_slice %939 {offsets = [0, 40], sizes = [5, 8], strides = [1, 1]} : vector<5x96xf32> to vector<5x8xf32>
    %958 = vector.extract_strided_slice %939 {offsets = [0, 72], sizes = [5, 8], strides = [1, 1]} : vector<5x96xf32> to vector<5x8xf32>
    %cst_305 = arith.constant dense<0.000000e+00> : vector<5x5xf32>
    %959 = tpu.matmul %956, %957, %cst_305 {dimension_numbers = #tpu.dot_dimension_numbers<[1], [1], [0], [0], [0, 0, 1, 0], [], []>} : vector<5x8xf32>, vector<5x8xf32>, vector<5x5xf32> -> vector<5x5xf32>
    %cst_306 = arith.constant 0.353553385 : f32
    %960 = vector.broadcast %cst_306 : f32 to vector<5x5xf32>
    %961 = arith.mulf %959, %960 : vector<5x5xf32>
    %cst_307 = arith.constant dense<0xFF800000> : vector<5xf32>
    %962 = vector.multi_reduction <maximumf>, %961, %cst_307 [1] : vector<5x5xf32> to vector<5xf32>
    %963 = vector.shape_cast %962 : vector<5xf32> to vector<5x1xf32>
    %964 = vector.broadcast %963 : vector<5x1xf32> to vector<5x5xf32>
    %965 = arith.subf %961, %964 : vector<5x5xf32>
    %966 = math.exp %965 : vector<5x5xf32>
    %cst_308 = arith.constant dense<0.000000e+00> : vector<5xf32>
    %967 = vector.multi_reduction <add>, %966, %cst_308 [1] : vector<5x5xf32> to vector<5xf32>
    %968 = vector.shape_cast %967 : vector<5xf32> to vector<5x1xf32>
    %969 = vector.broadcast %968 : vector<5x1xf32> to vector<5x5xf32>
    %970 = arith.divf %966, %969 : vector<5x5xf32>
    %cst_309 = arith.constant dense<0.000000e+00> : vector<5x8xf32>
    %971 = tpu.matmul %970, %958, %cst_309 {dimension_numbers = #tpu.dot_dimension_numbers<[1], [0], [0], [1], [0, 0, 1, 1], [], []>} : vector<5x5xf32>, vector<5x8xf32>, vector<5x8xf32> -> vector<5x8xf32>
    %972 = vector.extract_strided_slice %939 {offsets = [0, 16], sizes = [5, 8], strides = [1, 1]} : vector<5x96xf32> to vector<5x8xf32>
    %973 = vector.extract_strided_slice %939 {offsets = [0, 48], sizes = [5, 8], strides = [1, 1]} : vector<5x96xf32> to vector<5x8xf32>
    %974 = vector.extract_strided_slice %939 {offsets = [0, 80], sizes = [5, 8], strides = [1, 1]} : vector<5x96xf32> to vector<5x8xf32>
    %cst_310 = arith.constant dense<0.000000e+00> : vector<5x5xf32>
    %975 = tpu.matmul %972, %973, %cst_310 {dimension_numbers = #tpu.dot_dimension_numbers<[1], [1], [0], [0], [0, 0, 1, 0], [], []>} : vector<5x8xf32>, vector<5x8xf32>, vector<5x5xf32> -> vector<5x5xf32>
    %cst_311 = arith.constant 0.353553385 : f32
    %976 = vector.broadcast %cst_311 : f32 to vector<5x5xf32>
    %977 = arith.mulf %975, %976 : vector<5x5xf32>
    %cst_312 = arith.constant dense<0xFF800000> : vector<5xf32>
    %978 = vector.multi_reduction <maximumf>, %977, %cst_312 [1] : vector<5x5xf32> to vector<5xf32>
    %979 = vector.shape_cast %978 : vector<5xf32> to vector<5x1xf32>
    %980 = vector.broadcast %979 : vector<5x1xf32> to vector<5x5xf32>
    %981 = arith.subf %977, %980 : vector<5x5xf32>
    %982 = math.exp %981 : vector<5x5xf32>
    %cst_313 = arith.constant dense<0.000000e+00> : vector<5xf32>
    %983 = vector.multi_reduction <add>, %982, %cst_313 [1] : vector<5x5xf32> to vector<5xf32>
    %984 = vector.shape_cast %983 : vector<5xf32> to vector<5x1xf32>
    %985 = vector.broadcast %984 : vector<5x1xf32> to vector<5x5xf32>
    %986 = arith.divf %982, %985 : vector<5x5xf32>
    %cst_314 = arith.constant dense<0.000000e+00> : vector<5x8xf32>
    %987 = tpu.matmul %986, %974, %cst_314 {dimension_numbers = #tpu.dot_dimension_numbers<[1], [0], [0], [1], [0, 0, 1, 1], [], []>} : vector<5x5xf32>, vector<5x8xf32>, vector<5x8xf32> -> vector<5x8xf32>
    %988 = vector.extract_strided_slice %939 {offsets = [0, 24], sizes = [5, 8], strides = [1, 1]} : vector<5x96xf32> to vector<5x8xf32>
    %989 = vector.extract_strided_slice %939 {offsets = [0, 56], sizes = [5, 8], strides = [1, 1]} : vector<5x96xf32> to vector<5x8xf32>
    %990 = vector.extract_strided_slice %939 {offsets = [0, 88], sizes = [5, 8], strides = [1, 1]} : vector<5x96xf32> to vector<5x8xf32>
    %cst_315 = arith.constant dense<0.000000e+00> : vector<5x5xf32>
    %991 = tpu.matmul %988, %989, %cst_315 {dimension_numbers = #tpu.dot_dimension_numbers<[1], [1], [0], [0], [0, 0, 1, 0], [], []>} : vector<5x8xf32>, vector<5x8xf32>, vector<5x5xf32> -> vector<5x5xf32>
    %cst_316 = arith.constant 0.353553385 : f32
    %992 = vector.broadcast %cst_316 : f32 to vector<5x5xf32>
    %993 = arith.mulf %991, %992 : vector<5x5xf32>
    %cst_317 = arith.constant dense<0xFF800000> : vector<5xf32>
    %994 = vector.multi_reduction <maximumf>, %993, %cst_317 [1] : vector<5x5xf32> to vector<5xf32>
    %995 = vector.shape_cast %994 : vector<5xf32> to vector<5x1xf32>
    %996 = vector.broadcast %995 : vector<5x1xf32> to vector<5x5xf32>
    %997 = arith.subf %993, %996 : vector<5x5xf32>
    %998 = math.exp %997 : vector<5x5xf32>
    %cst_318 = arith.constant dense<0.000000e+00> : vector<5xf32>
    %999 = vector.multi_reduction <add>, %998, %cst_318 [1] : vector<5x5xf32> to vector<5xf32>
    %1000 = vector.shape_cast %999 : vector<5xf32> to vector<5x1xf32>
    %1001 = vector.broadcast %1000 : vector<5x1xf32> to vector<5x5xf32>
    %1002 = arith.divf %998, %1001 : vector<5x5xf32>
    %cst_319 = arith.constant dense<0.000000e+00> : vector<5x8xf32>
    %1003 = tpu.matmul %1002, %990, %cst_319 {dimension_numbers = #tpu.dot_dimension_numbers<[1], [0], [0], [1], [0, 0, 1, 1], [], []>} : vector<5x5xf32>, vector<5x8xf32>, vector<5x8xf32> -> vector<5x8xf32>
    %1004 = tpu.concatenate %955, %971, %987, %1003 in 1 : vector<5x8xf32>, vector<5x8xf32>, vector<5x8xf32>, vector<5x8xf32> -> vector<5x32xf32>
    %cst_320 = arith.constant dense<0.000000e+00> : vector<5x32xf32>
    %1005 = tpu.matmul %1004, %914, %cst_320 {dimension_numbers = #tpu.dot_dimension_numbers<[1], [0], [0], [1], [0, 0, 1, 1], [], []>} : vector<5x32xf32>, vector<32x32xf32>, vector<5x32xf32> -> vector<5x32xf32>
    %1006 = arith.addf %899, %1005 : vector<5x32xf32>
    %1007 = vector.broadcast %906 : vector<1x32xf32> to vector<5x32xf32>
    %1008 = arith.addf %1006, %1007 : vector<5x32xf32>
    %cst_321 = arith.constant dense<0.000000e+00> : vector<5xf32>
    %1009 = vector.multi_reduction <add>, %1008, %cst_321 [1] : vector<5x32xf32> to vector<5xf32>
    %1010 = vector.shape_cast %1009 : vector<5xf32> to vector<5x1xf32>
    %cst_322 = arith.constant 3.200000e+01 : f32
    %1011 = vector.broadcast %cst_322 : f32 to vector<5x1xf32>
    %1012 = arith.divf %1010, %1011 : vector<5x1xf32>
    %1013 = vector.broadcast %1012 : vector<5x1xf32> to vector<5x32xf32>
    %1014 = arith.subf %1008, %1013 : vector<5x32xf32>
    %1015 = arith.mulf %1014, %1014 : vector<5x32xf32>
    %cst_323 = arith.constant dense<0.000000e+00> : vector<5xf32>
    %1016 = vector.multi_reduction <add>, %1015, %cst_323 [1] : vector<5x32xf32> to vector<5xf32>
    %1017 = vector.shape_cast %1016 : vector<5xf32> to vector<5x1xf32>
    %cst_324 = arith.constant 3.200000e+01 : f32
    %1018 = vector.broadcast %cst_324 : f32 to vector<5x1xf32>
    %1019 = arith.divf %1017, %1018 : vector<5x1xf32>
    %1020 = vector.broadcast %1012 : vector<5x1xf32> to vector<5x32xf32>
    %1021 = arith.subf %1008, %1020 : vector<5x32xf32>
    %cst_325 = arith.constant 9.99999997E-7 : f32
    %1022 = vector.broadcast %cst_325 : f32 to vector<5x1xf32>
    %1023 = arith.addf %1019, %1022 : vector<5x1xf32>
    %1024 = math.rsqrt %1023 : vector<5x1xf32>
    %1025 = vector.broadcast %1024 : vector<5x1xf32> to vector<5x32xf32>
    %1026 = arith.mulf %1021, %1025 : vector<5x32xf32>
    %1027 = vector.broadcast %907 : vector<1x32xf32> to vector<5x32xf32>
    %1028 = arith.mulf %1026, %1027 : vector<5x32xf32>
    %1029 = vector.broadcast %908 : vector<1x32xf32> to vector<5x32xf32>
    %1030 = arith.addf %1028, %1029 : vector<5x32xf32>
    %c6_326 = arith.constant 6 : index
    %c0_327 = arith.constant 0 : index
    %c0_328 = arith.constant 0 : index
    %1031 = vector.load %arg4[%c6_326, %c0_327, %c0_328] : memref<12x32x128xf32, #tpu.memory_space<vmem>>, vector<1x32x128xf32>
    %1032 = vector.shape_cast %1031 : vector<1x32x128xf32> to vector<32x128xf32>
    %cst_329 = arith.constant dense<0.000000e+00> : vector<5x128xf32>
    %1033 = tpu.matmul %1030, %1032, %cst_329 {dimension_numbers = #tpu.dot_dimension_numbers<[1], [0], [0], [1], [0, 0, 1, 1], [], []>} : vector<5x32xf32>, vector<32x128xf32>, vector<5x128xf32> -> vector<5x128xf32>
    %1034 = vector.broadcast %909 : vector<1x128xf32> to vector<5x128xf32>
    %1035 = arith.addf %1033, %1034 : vector<5x128xf32>
    %cst_330 = arith.constant 5.000000e-01 : f32
    %1036 = vector.broadcast %cst_330 : f32 to vector<5x128xf32>
    %1037 = arith.mulf %1036, %1035 : vector<5x128xf32>
    %cst_331 = arith.constant 0.707106769 : f32
    %1038 = vector.broadcast %cst_331 : f32 to vector<5x128xf32>
    %1039 = arith.mulf %1035, %1038 : vector<5x128xf32>
    %1040 = math.erf %1039 : vector<5x128xf32>
    %cst_332 = arith.constant 1.000000e+00 : f32
    %1041 = vector.broadcast %cst_332 : f32 to vector<5x128xf32>
    %1042 = arith.addf %1041, %1040 : vector<5x128xf32>
    %1043 = arith.mulf %1037, %1042 : vector<5x128xf32>
    %c6_333 = arith.constant 6 : index
    %c0_334 = arith.constant 0 : index
    %c0_335 = arith.constant 0 : index
    %1044 = vector.load %arg5[%c6_333, %c0_334, %c0_335] : memref<12x128x32xf32, #tpu.memory_space<vmem>>, vector<1x128x32xf32>
    %1045 = vector.shape_cast %1044 : vector<1x128x32xf32> to vector<128x32xf32>
    %cst_336 = arith.constant dense<0.000000e+00> : vector<5x32xf32>
    %1046 = tpu.matmul %1043, %1045, %cst_336 {dimension_numbers = #tpu.dot_dimension_numbers<[1], [0], [0], [1], [0, 0, 1, 1], [], []>} : vector<5x128xf32>, vector<128x32xf32>, vector<5x32xf32> -> vector<5x32xf32>
    %1047 = arith.addf %1008, %1046 : vector<5x32xf32>
    %1048 = vector.broadcast %910 : vector<1x32xf32> to vector<5x32xf32>
    %1049 = arith.addf %1047, %1048 : vector<5x32xf32>
    %1050 = vector.extract_strided_slice %1049 {offsets = [0, 0], sizes = [1, 32], strides = [1, 1]} : vector<5x32xf32> to vector<1x32xf32>
    %c7 = arith.constant 7 : index
    %c0_337 = arith.constant 0 : index
    %c0_338 = arith.constant 0 : index
    %1051 = vector.load %arg2[%c7, %c0_337, %c0_338] : memref<12x8x128xf32, #tpu.memory_space<vmem>>, vector<1x8x128xf32>
    %1052 = vector.shape_cast %1051 : vector<1x8x128xf32> to vector<8x128xf32>
    %1053 = vector.extract_strided_slice %1052 {offsets = [0, 0], sizes = [1, 32], strides = [1, 1]} : vector<8x128xf32> to vector<1x32xf32>
    %1054 = vector.extract_strided_slice %1052 {offsets = [1, 0], sizes = [1, 32], strides = [1, 1]} : vector<8x128xf32> to vector<1x32xf32>
    %1055 = vector.extract_strided_slice %1052 {offsets = [2, 0], sizes = [1, 96], strides = [1, 1]} : vector<8x128xf32> to vector<1x96xf32>
    %1056 = vector.extract_strided_slice %1052 {offsets = [3, 0], sizes = [1, 32], strides = [1, 1]} : vector<8x128xf32> to vector<1x32xf32>
    %1057 = vector.extract_strided_slice %1052 {offsets = [4, 0], sizes = [1, 32], strides = [1, 1]} : vector<8x128xf32> to vector<1x32xf32>
    %1058 = vector.extract_strided_slice %1052 {offsets = [5, 0], sizes = [1, 32], strides = [1, 1]} : vector<8x128xf32> to vector<1x32xf32>
    %1059 = vector.extract_strided_slice %1052 {offsets = [6, 0], sizes = [1, 128], strides = [1, 1]} : vector<8x128xf32> to vector<1x128xf32>
    %1060 = vector.extract_strided_slice %1052 {offsets = [7, 0], sizes = [1, 32], strides = [1, 1]} : vector<8x128xf32> to vector<1x32xf32>
    %c7_339 = arith.constant 7 : index
    %c0_340 = arith.constant 0 : index
    %c0_341 = arith.constant 0 : index
    %1061 = vector.load %arg3[%c7_339, %c0_340, %c0_341] : memref<12x32x128xf32, #tpu.memory_space<vmem>>, vector<1x32x128xf32>
    %1062 = vector.shape_cast %1061 : vector<1x32x128xf32> to vector<32x128xf32>
    %1063 = vector.extract_strided_slice %1062 {offsets = [0, 0], sizes = [32, 96], strides = [1, 1]} : vector<32x128xf32> to vector<32x96xf32>
    %1064 = vector.extract_strided_slice %1062 {offsets = [0, 96], sizes = [32, 32], strides = [1, 1]} : vector<32x128xf32> to vector<32x32xf32>
    %cst_342 = arith.constant dense<0.000000e+00> : vector<5xf32>
    %1065 = vector.multi_reduction <add>, %1049, %cst_342 [1] : vector<5x32xf32> to vector<5xf32>
    %1066 = vector.shape_cast %1065 : vector<5xf32> to vector<5x1xf32>
    %cst_343 = arith.constant 3.200000e+01 : f32
    %1067 = vector.broadcast %cst_343 : f32 to vector<5x1xf32>
    %1068 = arith.divf %1066, %1067 : vector<5x1xf32>
    %1069 = vector.broadcast %1068 : vector<5x1xf32> to vector<5x32xf32>
    %1070 = arith.subf %1049, %1069 : vector<5x32xf32>
    %1071 = arith.mulf %1070, %1070 : vector<5x32xf32>
    %cst_344 = arith.constant dense<0.000000e+00> : vector<5xf32>
    %1072 = vector.multi_reduction <add>, %1071, %cst_344 [1] : vector<5x32xf32> to vector<5xf32>
    %1073 = vector.shape_cast %1072 : vector<5xf32> to vector<5x1xf32>
    %cst_345 = arith.constant 3.200000e+01 : f32
    %1074 = vector.broadcast %cst_345 : f32 to vector<5x1xf32>
    %1075 = arith.divf %1073, %1074 : vector<5x1xf32>
    %1076 = vector.broadcast %1068 : vector<5x1xf32> to vector<5x32xf32>
    %1077 = arith.subf %1049, %1076 : vector<5x32xf32>
    %cst_346 = arith.constant 9.99999997E-7 : f32
    %1078 = vector.broadcast %cst_346 : f32 to vector<5x1xf32>
    %1079 = arith.addf %1075, %1078 : vector<5x1xf32>
    %1080 = math.rsqrt %1079 : vector<5x1xf32>
    %1081 = vector.broadcast %1080 : vector<5x1xf32> to vector<5x32xf32>
    %1082 = arith.mulf %1077, %1081 : vector<5x32xf32>
    %1083 = vector.broadcast %1053 : vector<1x32xf32> to vector<5x32xf32>
    %1084 = arith.mulf %1082, %1083 : vector<5x32xf32>
    %1085 = vector.broadcast %1054 : vector<1x32xf32> to vector<5x32xf32>
    %1086 = arith.addf %1084, %1085 : vector<5x32xf32>
    %cst_347 = arith.constant dense<0.000000e+00> : vector<5x96xf32>
    %1087 = tpu.matmul %1086, %1063, %cst_347 {dimension_numbers = #tpu.dot_dimension_numbers<[1], [0], [0], [1], [0, 0, 1, 1], [], []>} : vector<5x32xf32>, vector<32x96xf32>, vector<5x96xf32> -> vector<5x96xf32>
    %1088 = vector.broadcast %1055 : vector<1x96xf32> to vector<5x96xf32>
    %1089 = arith.addf %1087, %1088 : vector<5x96xf32>
    %1090 = vector.extract_strided_slice %1089 {offsets = [0, 0], sizes = [5, 8], strides = [1, 1]} : vector<5x96xf32> to vector<5x8xf32>
    %1091 = vector.extract_strided_slice %1089 {offsets = [0, 32], sizes = [5, 8], strides = [1, 1]} : vector<5x96xf32> to vector<5x8xf32>
    %1092 = vector.extract_strided_slice %1089 {offsets = [0, 64], sizes = [5, 8], strides = [1, 1]} : vector<5x96xf32> to vector<5x8xf32>
    %cst_348 = arith.constant dense<0.000000e+00> : vector<5x5xf32>
    %1093 = tpu.matmul %1090, %1091, %cst_348 {dimension_numbers = #tpu.dot_dimension_numbers<[1], [1], [0], [0], [0, 0, 1, 0], [], []>} : vector<5x8xf32>, vector<5x8xf32>, vector<5x5xf32> -> vector<5x5xf32>
    %cst_349 = arith.constant 0.353553385 : f32
    %1094 = vector.broadcast %cst_349 : f32 to vector<5x5xf32>
    %1095 = arith.mulf %1093, %1094 : vector<5x5xf32>
    %cst_350 = arith.constant dense<0xFF800000> : vector<5xf32>
    %1096 = vector.multi_reduction <maximumf>, %1095, %cst_350 [1] : vector<5x5xf32> to vector<5xf32>
    %1097 = vector.shape_cast %1096 : vector<5xf32> to vector<5x1xf32>
    %1098 = vector.broadcast %1097 : vector<5x1xf32> to vector<5x5xf32>
    %1099 = arith.subf %1095, %1098 : vector<5x5xf32>
    %1100 = math.exp %1099 : vector<5x5xf32>
    %cst_351 = arith.constant dense<0.000000e+00> : vector<5xf32>
    %1101 = vector.multi_reduction <add>, %1100, %cst_351 [1] : vector<5x5xf32> to vector<5xf32>
    %1102 = vector.shape_cast %1101 : vector<5xf32> to vector<5x1xf32>
    %1103 = vector.broadcast %1102 : vector<5x1xf32> to vector<5x5xf32>
    %1104 = arith.divf %1100, %1103 : vector<5x5xf32>
    %cst_352 = arith.constant dense<0.000000e+00> : vector<5x8xf32>
    %1105 = tpu.matmul %1104, %1092, %cst_352 {dimension_numbers = #tpu.dot_dimension_numbers<[1], [0], [0], [1], [0, 0, 1, 1], [], []>} : vector<5x5xf32>, vector<5x8xf32>, vector<5x8xf32> -> vector<5x8xf32>
    %1106 = vector.extract_strided_slice %1089 {offsets = [0, 8], sizes = [5, 8], strides = [1, 1]} : vector<5x96xf32> to vector<5x8xf32>
    %1107 = vector.extract_strided_slice %1089 {offsets = [0, 40], sizes = [5, 8], strides = [1, 1]} : vector<5x96xf32> to vector<5x8xf32>
    %1108 = vector.extract_strided_slice %1089 {offsets = [0, 72], sizes = [5, 8], strides = [1, 1]} : vector<5x96xf32> to vector<5x8xf32>
    %cst_353 = arith.constant dense<0.000000e+00> : vector<5x5xf32>
    %1109 = tpu.matmul %1106, %1107, %cst_353 {dimension_numbers = #tpu.dot_dimension_numbers<[1], [1], [0], [0], [0, 0, 1, 0], [], []>} : vector<5x8xf32>, vector<5x8xf32>, vector<5x5xf32> -> vector<5x5xf32>
    %cst_354 = arith.constant 0.353553385 : f32
    %1110 = vector.broadcast %cst_354 : f32 to vector<5x5xf32>
    %1111 = arith.mulf %1109, %1110 : vector<5x5xf32>
    %cst_355 = arith.constant dense<0xFF800000> : vector<5xf32>
    %1112 = vector.multi_reduction <maximumf>, %1111, %cst_355 [1] : vector<5x5xf32> to vector<5xf32>
    %1113 = vector.shape_cast %1112 : vector<5xf32> to vector<5x1xf32>
    %1114 = vector.broadcast %1113 : vector<5x1xf32> to vector<5x5xf32>
    %1115 = arith.subf %1111, %1114 : vector<5x5xf32>
    %1116 = math.exp %1115 : vector<5x5xf32>
    %cst_356 = arith.constant dense<0.000000e+00> : vector<5xf32>
    %1117 = vector.multi_reduction <add>, %1116, %cst_356 [1] : vector<5x5xf32> to vector<5xf32>
    %1118 = vector.shape_cast %1117 : vector<5xf32> to vector<5x1xf32>
    %1119 = vector.broadcast %1118 : vector<5x1xf32> to vector<5x5xf32>
    %1120 = arith.divf %1116, %1119 : vector<5x5xf32>
    %cst_357 = arith.constant dense<0.000000e+00> : vector<5x8xf32>
    %1121 = tpu.matmul %1120, %1108, %cst_357 {dimension_numbers = #tpu.dot_dimension_numbers<[1], [0], [0], [1], [0, 0, 1, 1], [], []>} : vector<5x5xf32>, vector<5x8xf32>, vector<5x8xf32> -> vector<5x8xf32>
    %1122 = vector.extract_strided_slice %1089 {offsets = [0, 16], sizes = [5, 8], strides = [1, 1]} : vector<5x96xf32> to vector<5x8xf32>
    %1123 = vector.extract_strided_slice %1089 {offsets = [0, 48], sizes = [5, 8], strides = [1, 1]} : vector<5x96xf32> to vector<5x8xf32>
    %1124 = vector.extract_strided_slice %1089 {offsets = [0, 80], sizes = [5, 8], strides = [1, 1]} : vector<5x96xf32> to vector<5x8xf32>
    %cst_358 = arith.constant dense<0.000000e+00> : vector<5x5xf32>
    %1125 = tpu.matmul %1122, %1123, %cst_358 {dimension_numbers = #tpu.dot_dimension_numbers<[1], [1], [0], [0], [0, 0, 1, 0], [], []>} : vector<5x8xf32>, vector<5x8xf32>, vector<5x5xf32> -> vector<5x5xf32>
    %cst_359 = arith.constant 0.353553385 : f32
    %1126 = vector.broadcast %cst_359 : f32 to vector<5x5xf32>
    %1127 = arith.mulf %1125, %1126 : vector<5x5xf32>
    %cst_360 = arith.constant dense<0xFF800000> : vector<5xf32>
    %1128 = vector.multi_reduction <maximumf>, %1127, %cst_360 [1] : vector<5x5xf32> to vector<5xf32>
    %1129 = vector.shape_cast %1128 : vector<5xf32> to vector<5x1xf32>
    %1130 = vector.broadcast %1129 : vector<5x1xf32> to vector<5x5xf32>
    %1131 = arith.subf %1127, %1130 : vector<5x5xf32>
    %1132 = math.exp %1131 : vector<5x5xf32>
    %cst_361 = arith.constant dense<0.000000e+00> : vector<5xf32>
    %1133 = vector.multi_reduction <add>, %1132, %cst_361 [1] : vector<5x5xf32> to vector<5xf32>
    %1134 = vector.shape_cast %1133 : vector<5xf32> to vector<5x1xf32>
    %1135 = vector.broadcast %1134 : vector<5x1xf32> to vector<5x5xf32>
    %1136 = arith.divf %1132, %1135 : vector<5x5xf32>
    %cst_362 = arith.constant dense<0.000000e+00> : vector<5x8xf32>
    %1137 = tpu.matmul %1136, %1124, %cst_362 {dimension_numbers = #tpu.dot_dimension_numbers<[1], [0], [0], [1], [0, 0, 1, 1], [], []>} : vector<5x5xf32>, vector<5x8xf32>, vector<5x8xf32> -> vector<5x8xf32>
    %1138 = vector.extract_strided_slice %1089 {offsets = [0, 24], sizes = [5, 8], strides = [1, 1]} : vector<5x96xf32> to vector<5x8xf32>
    %1139 = vector.extract_strided_slice %1089 {offsets = [0, 56], sizes = [5, 8], strides = [1, 1]} : vector<5x96xf32> to vector<5x8xf32>
    %1140 = vector.extract_strided_slice %1089 {offsets = [0, 88], sizes = [5, 8], strides = [1, 1]} : vector<5x96xf32> to vector<5x8xf32>
    %cst_363 = arith.constant dense<0.000000e+00> : vector<5x5xf32>
    %1141 = tpu.matmul %1138, %1139, %cst_363 {dimension_numbers = #tpu.dot_dimension_numbers<[1], [1], [0], [0], [0, 0, 1, 0], [], []>} : vector<5x8xf32>, vector<5x8xf32>, vector<5x5xf32> -> vector<5x5xf32>
    %cst_364 = arith.constant 0.353553385 : f32
    %1142 = vector.broadcast %cst_364 : f32 to vector<5x5xf32>
    %1143 = arith.mulf %1141, %1142 : vector<5x5xf32>
    %cst_365 = arith.constant dense<0xFF800000> : vector<5xf32>
    %1144 = vector.multi_reduction <maximumf>, %1143, %cst_365 [1] : vector<5x5xf32> to vector<5xf32>
    %1145 = vector.shape_cast %1144 : vector<5xf32> to vector<5x1xf32>
    %1146 = vector.broadcast %1145 : vector<5x1xf32> to vector<5x5xf32>
    %1147 = arith.subf %1143, %1146 : vector<5x5xf32>
    %1148 = math.exp %1147 : vector<5x5xf32>
    %cst_366 = arith.constant dense<0.000000e+00> : vector<5xf32>
    %1149 = vector.multi_reduction <add>, %1148, %cst_366 [1] : vector<5x5xf32> to vector<5xf32>
    %1150 = vector.shape_cast %1149 : vector<5xf32> to vector<5x1xf32>
    %1151 = vector.broadcast %1150 : vector<5x1xf32> to vector<5x5xf32>
    %1152 = arith.divf %1148, %1151 : vector<5x5xf32>
    %cst_367 = arith.constant dense<0.000000e+00> : vector<5x8xf32>
    %1153 = tpu.matmul %1152, %1140, %cst_367 {dimension_numbers = #tpu.dot_dimension_numbers<[1], [0], [0], [1], [0, 0, 1, 1], [], []>} : vector<5x5xf32>, vector<5x8xf32>, vector<5x8xf32> -> vector<5x8xf32>
    %1154 = tpu.concatenate %1105, %1121, %1137, %1153 in 1 : vector<5x8xf32>, vector<5x8xf32>, vector<5x8xf32>, vector<5x8xf32> -> vector<5x32xf32>
    %cst_368 = arith.constant dense<0.000000e+00> : vector<5x32xf32>
    %1155 = tpu.matmul %1154, %1064, %cst_368 {dimension_numbers = #tpu.dot_dimension_numbers<[1], [0], [0], [1], [0, 0, 1, 1], [], []>} : vector<5x32xf32>, vector<32x32xf32>, vector<5x32xf32> -> vector<5x32xf32>
    %1156 = arith.addf %1049, %1155 : vector<5x32xf32>
    %1157 = vector.broadcast %1056 : vector<1x32xf32> to vector<5x32xf32>
    %1158 = arith.addf %1156, %1157 : vector<5x32xf32>
    %cst_369 = arith.constant dense<0.000000e+00> : vector<5xf32>
    %1159 = vector.multi_reduction <add>, %1158, %cst_369 [1] : vector<5x32xf32> to vector<5xf32>
    %1160 = vector.shape_cast %1159 : vector<5xf32> to vector<5x1xf32>
    %cst_370 = arith.constant 3.200000e+01 : f32
    %1161 = vector.broadcast %cst_370 : f32 to vector<5x1xf32>
    %1162 = arith.divf %1160, %1161 : vector<5x1xf32>
    %1163 = vector.broadcast %1162 : vector<5x1xf32> to vector<5x32xf32>
    %1164 = arith.subf %1158, %1163 : vector<5x32xf32>
    %1165 = arith.mulf %1164, %1164 : vector<5x32xf32>
    %cst_371 = arith.constant dense<0.000000e+00> : vector<5xf32>
    %1166 = vector.multi_reduction <add>, %1165, %cst_371 [1] : vector<5x32xf32> to vector<5xf32>
    %1167 = vector.shape_cast %1166 : vector<5xf32> to vector<5x1xf32>
    %cst_372 = arith.constant 3.200000e+01 : f32
    %1168 = vector.broadcast %cst_372 : f32 to vector<5x1xf32>
    %1169 = arith.divf %1167, %1168 : vector<5x1xf32>
    %1170 = vector.broadcast %1162 : vector<5x1xf32> to vector<5x32xf32>
    %1171 = arith.subf %1158, %1170 : vector<5x32xf32>
    %cst_373 = arith.constant 9.99999997E-7 : f32
    %1172 = vector.broadcast %cst_373 : f32 to vector<5x1xf32>
    %1173 = arith.addf %1169, %1172 : vector<5x1xf32>
    %1174 = math.rsqrt %1173 : vector<5x1xf32>
    %1175 = vector.broadcast %1174 : vector<5x1xf32> to vector<5x32xf32>
    %1176 = arith.mulf %1171, %1175 : vector<5x32xf32>
    %1177 = vector.broadcast %1057 : vector<1x32xf32> to vector<5x32xf32>
    %1178 = arith.mulf %1176, %1177 : vector<5x32xf32>
    %1179 = vector.broadcast %1058 : vector<1x32xf32> to vector<5x32xf32>
    %1180 = arith.addf %1178, %1179 : vector<5x32xf32>
    %c7_374 = arith.constant 7 : index
    %c0_375 = arith.constant 0 : index
    %c0_376 = arith.constant 0 : index
    %1181 = vector.load %arg4[%c7_374, %c0_375, %c0_376] : memref<12x32x128xf32, #tpu.memory_space<vmem>>, vector<1x32x128xf32>
    %1182 = vector.shape_cast %1181 : vector<1x32x128xf32> to vector<32x128xf32>
    %cst_377 = arith.constant dense<0.000000e+00> : vector<5x128xf32>
    %1183 = tpu.matmul %1180, %1182, %cst_377 {dimension_numbers = #tpu.dot_dimension_numbers<[1], [0], [0], [1], [0, 0, 1, 1], [], []>} : vector<5x32xf32>, vector<32x128xf32>, vector<5x128xf32> -> vector<5x128xf32>
    %1184 = vector.broadcast %1059 : vector<1x128xf32> to vector<5x128xf32>
    %1185 = arith.addf %1183, %1184 : vector<5x128xf32>
    %cst_378 = arith.constant 5.000000e-01 : f32
    %1186 = vector.broadcast %cst_378 : f32 to vector<5x128xf32>
    %1187 = arith.mulf %1186, %1185 : vector<5x128xf32>
    %cst_379 = arith.constant 0.707106769 : f32
    %1188 = vector.broadcast %cst_379 : f32 to vector<5x128xf32>
    %1189 = arith.mulf %1185, %1188 : vector<5x128xf32>
    %1190 = math.erf %1189 : vector<5x128xf32>
    %cst_380 = arith.constant 1.000000e+00 : f32
    %1191 = vector.broadcast %cst_380 : f32 to vector<5x128xf32>
    %1192 = arith.addf %1191, %1190 : vector<5x128xf32>
    %1193 = arith.mulf %1187, %1192 : vector<5x128xf32>
    %c7_381 = arith.constant 7 : index
    %c0_382 = arith.constant 0 : index
    %c0_383 = arith.constant 0 : index
    %1194 = vector.load %arg5[%c7_381, %c0_382, %c0_383] : memref<12x128x32xf32, #tpu.memory_space<vmem>>, vector<1x128x32xf32>
    %1195 = vector.shape_cast %1194 : vector<1x128x32xf32> to vector<128x32xf32>
    %cst_384 = arith.constant dense<0.000000e+00> : vector<5x32xf32>
    %1196 = tpu.matmul %1193, %1195, %cst_384 {dimension_numbers = #tpu.dot_dimension_numbers<[1], [0], [0], [1], [0, 0, 1, 1], [], []>} : vector<5x128xf32>, vector<128x32xf32>, vector<5x32xf32> -> vector<5x32xf32>
    %1197 = arith.addf %1158, %1196 : vector<5x32xf32>
    %1198 = vector.broadcast %1060 : vector<1x32xf32> to vector<5x32xf32>
    %1199 = arith.addf %1197, %1198 : vector<5x32xf32>
    %1200 = vector.extract_strided_slice %1199 {offsets = [0, 0], sizes = [1, 32], strides = [1, 1]} : vector<5x32xf32> to vector<1x32xf32>
    %c8 = arith.constant 8 : index
    %c0_385 = arith.constant 0 : index
    %c0_386 = arith.constant 0 : index
    %1201 = vector.load %arg2[%c8, %c0_385, %c0_386] : memref<12x8x128xf32, #tpu.memory_space<vmem>>, vector<1x8x128xf32>
    %1202 = vector.shape_cast %1201 : vector<1x8x128xf32> to vector<8x128xf32>
    %1203 = vector.extract_strided_slice %1202 {offsets = [0, 0], sizes = [1, 32], strides = [1, 1]} : vector<8x128xf32> to vector<1x32xf32>
    %1204 = vector.extract_strided_slice %1202 {offsets = [1, 0], sizes = [1, 32], strides = [1, 1]} : vector<8x128xf32> to vector<1x32xf32>
    %1205 = vector.extract_strided_slice %1202 {offsets = [2, 0], sizes = [1, 96], strides = [1, 1]} : vector<8x128xf32> to vector<1x96xf32>
    %1206 = vector.extract_strided_slice %1202 {offsets = [3, 0], sizes = [1, 32], strides = [1, 1]} : vector<8x128xf32> to vector<1x32xf32>
    %1207 = vector.extract_strided_slice %1202 {offsets = [4, 0], sizes = [1, 32], strides = [1, 1]} : vector<8x128xf32> to vector<1x32xf32>
    %1208 = vector.extract_strided_slice %1202 {offsets = [5, 0], sizes = [1, 32], strides = [1, 1]} : vector<8x128xf32> to vector<1x32xf32>
    %1209 = vector.extract_strided_slice %1202 {offsets = [6, 0], sizes = [1, 128], strides = [1, 1]} : vector<8x128xf32> to vector<1x128xf32>
    %1210 = vector.extract_strided_slice %1202 {offsets = [7, 0], sizes = [1, 32], strides = [1, 1]} : vector<8x128xf32> to vector<1x32xf32>
    %c8_387 = arith.constant 8 : index
    %c0_388 = arith.constant 0 : index
    %c0_389 = arith.constant 0 : index
    %1211 = vector.load %arg3[%c8_387, %c0_388, %c0_389] : memref<12x32x128xf32, #tpu.memory_space<vmem>>, vector<1x32x128xf32>
    %1212 = vector.shape_cast %1211 : vector<1x32x128xf32> to vector<32x128xf32>
    %1213 = vector.extract_strided_slice %1212 {offsets = [0, 0], sizes = [32, 96], strides = [1, 1]} : vector<32x128xf32> to vector<32x96xf32>
    %1214 = vector.extract_strided_slice %1212 {offsets = [0, 96], sizes = [32, 32], strides = [1, 1]} : vector<32x128xf32> to vector<32x32xf32>
    %cst_390 = arith.constant dense<0.000000e+00> : vector<5xf32>
    %1215 = vector.multi_reduction <add>, %1199, %cst_390 [1] : vector<5x32xf32> to vector<5xf32>
    %1216 = vector.shape_cast %1215 : vector<5xf32> to vector<5x1xf32>
    %cst_391 = arith.constant 3.200000e+01 : f32
    %1217 = vector.broadcast %cst_391 : f32 to vector<5x1xf32>
    %1218 = arith.divf %1216, %1217 : vector<5x1xf32>
    %1219 = vector.broadcast %1218 : vector<5x1xf32> to vector<5x32xf32>
    %1220 = arith.subf %1199, %1219 : vector<5x32xf32>
    %1221 = arith.mulf %1220, %1220 : vector<5x32xf32>
    %cst_392 = arith.constant dense<0.000000e+00> : vector<5xf32>
    %1222 = vector.multi_reduction <add>, %1221, %cst_392 [1] : vector<5x32xf32> to vector<5xf32>
    %1223 = vector.shape_cast %1222 : vector<5xf32> to vector<5x1xf32>
    %cst_393 = arith.constant 3.200000e+01 : f32
    %1224 = vector.broadcast %cst_393 : f32 to vector<5x1xf32>
    %1225 = arith.divf %1223, %1224 : vector<5x1xf32>
    %1226 = vector.broadcast %1218 : vector<5x1xf32> to vector<5x32xf32>
    %1227 = arith.subf %1199, %1226 : vector<5x32xf32>
    %cst_394 = arith.constant 9.99999997E-7 : f32
    %1228 = vector.broadcast %cst_394 : f32 to vector<5x1xf32>
    %1229 = arith.addf %1225, %1228 : vector<5x1xf32>
    %1230 = math.rsqrt %1229 : vector<5x1xf32>
    %1231 = vector.broadcast %1230 : vector<5x1xf32> to vector<5x32xf32>
    %1232 = arith.mulf %1227, %1231 : vector<5x32xf32>
    %1233 = vector.broadcast %1203 : vector<1x32xf32> to vector<5x32xf32>
    %1234 = arith.mulf %1232, %1233 : vector<5x32xf32>
    %1235 = vector.broadcast %1204 : vector<1x32xf32> to vector<5x32xf32>
    %1236 = arith.addf %1234, %1235 : vector<5x32xf32>
    %cst_395 = arith.constant dense<0.000000e+00> : vector<5x96xf32>
    %1237 = tpu.matmul %1236, %1213, %cst_395 {dimension_numbers = #tpu.dot_dimension_numbers<[1], [0], [0], [1], [0, 0, 1, 1], [], []>} : vector<5x32xf32>, vector<32x96xf32>, vector<5x96xf32> -> vector<5x96xf32>
    %1238 = vector.broadcast %1205 : vector<1x96xf32> to vector<5x96xf32>
    %1239 = arith.addf %1237, %1238 : vector<5x96xf32>
    %1240 = vector.extract_strided_slice %1239 {offsets = [0, 0], sizes = [5, 8], strides = [1, 1]} : vector<5x96xf32> to vector<5x8xf32>
    %1241 = vector.extract_strided_slice %1239 {offsets = [0, 32], sizes = [5, 8], strides = [1, 1]} : vector<5x96xf32> to vector<5x8xf32>
    %1242 = vector.extract_strided_slice %1239 {offsets = [0, 64], sizes = [5, 8], strides = [1, 1]} : vector<5x96xf32> to vector<5x8xf32>
    %cst_396 = arith.constant dense<0.000000e+00> : vector<5x5xf32>
    %1243 = tpu.matmul %1240, %1241, %cst_396 {dimension_numbers = #tpu.dot_dimension_numbers<[1], [1], [0], [0], [0, 0, 1, 0], [], []>} : vector<5x8xf32>, vector<5x8xf32>, vector<5x5xf32> -> vector<5x5xf32>
    %cst_397 = arith.constant 0.353553385 : f32
    %1244 = vector.broadcast %cst_397 : f32 to vector<5x5xf32>
    %1245 = arith.mulf %1243, %1244 : vector<5x5xf32>
    %cst_398 = arith.constant dense<0xFF800000> : vector<5xf32>
    %1246 = vector.multi_reduction <maximumf>, %1245, %cst_398 [1] : vector<5x5xf32> to vector<5xf32>
    %1247 = vector.shape_cast %1246 : vector<5xf32> to vector<5x1xf32>
    %1248 = vector.broadcast %1247 : vector<5x1xf32> to vector<5x5xf32>
    %1249 = arith.subf %1245, %1248 : vector<5x5xf32>
    %1250 = math.exp %1249 : vector<5x5xf32>
    %cst_399 = arith.constant dense<0.000000e+00> : vector<5xf32>
    %1251 = vector.multi_reduction <add>, %1250, %cst_399 [1] : vector<5x5xf32> to vector<5xf32>
    %1252 = vector.shape_cast %1251 : vector<5xf32> to vector<5x1xf32>
    %1253 = vector.broadcast %1252 : vector<5x1xf32> to vector<5x5xf32>
    %1254 = arith.divf %1250, %1253 : vector<5x5xf32>
    %cst_400 = arith.constant dense<0.000000e+00> : vector<5x8xf32>
    %1255 = tpu.matmul %1254, %1242, %cst_400 {dimension_numbers = #tpu.dot_dimension_numbers<[1], [0], [0], [1], [0, 0, 1, 1], [], []>} : vector<5x5xf32>, vector<5x8xf32>, vector<5x8xf32> -> vector<5x8xf32>
    %1256 = vector.extract_strided_slice %1239 {offsets = [0, 8], sizes = [5, 8], strides = [1, 1]} : vector<5x96xf32> to vector<5x8xf32>
    %1257 = vector.extract_strided_slice %1239 {offsets = [0, 40], sizes = [5, 8], strides = [1, 1]} : vector<5x96xf32> to vector<5x8xf32>
    %1258 = vector.extract_strided_slice %1239 {offsets = [0, 72], sizes = [5, 8], strides = [1, 1]} : vector<5x96xf32> to vector<5x8xf32>
    %cst_401 = arith.constant dense<0.000000e+00> : vector<5x5xf32>
    %1259 = tpu.matmul %1256, %1257, %cst_401 {dimension_numbers = #tpu.dot_dimension_numbers<[1], [1], [0], [0], [0, 0, 1, 0], [], []>} : vector<5x8xf32>, vector<5x8xf32>, vector<5x5xf32> -> vector<5x5xf32>
    %cst_402 = arith.constant 0.353553385 : f32
    %1260 = vector.broadcast %cst_402 : f32 to vector<5x5xf32>
    %1261 = arith.mulf %1259, %1260 : vector<5x5xf32>
    %cst_403 = arith.constant dense<0xFF800000> : vector<5xf32>
    %1262 = vector.multi_reduction <maximumf>, %1261, %cst_403 [1] : vector<5x5xf32> to vector<5xf32>
    %1263 = vector.shape_cast %1262 : vector<5xf32> to vector<5x1xf32>
    %1264 = vector.broadcast %1263 : vector<5x1xf32> to vector<5x5xf32>
    %1265 = arith.subf %1261, %1264 : vector<5x5xf32>
    %1266 = math.exp %1265 : vector<5x5xf32>
    %cst_404 = arith.constant dense<0.000000e+00> : vector<5xf32>
    %1267 = vector.multi_reduction <add>, %1266, %cst_404 [1] : vector<5x5xf32> to vector<5xf32>
    %1268 = vector.shape_cast %1267 : vector<5xf32> to vector<5x1xf32>
    %1269 = vector.broadcast %1268 : vector<5x1xf32> to vector<5x5xf32>
    %1270 = arith.divf %1266, %1269 : vector<5x5xf32>
    %cst_405 = arith.constant dense<0.000000e+00> : vector<5x8xf32>
    %1271 = tpu.matmul %1270, %1258, %cst_405 {dimension_numbers = #tpu.dot_dimension_numbers<[1], [0], [0], [1], [0, 0, 1, 1], [], []>} : vector<5x5xf32>, vector<5x8xf32>, vector<5x8xf32> -> vector<5x8xf32>
    %1272 = vector.extract_strided_slice %1239 {offsets = [0, 16], sizes = [5, 8], strides = [1, 1]} : vector<5x96xf32> to vector<5x8xf32>
    %1273 = vector.extract_strided_slice %1239 {offsets = [0, 48], sizes = [5, 8], strides = [1, 1]} : vector<5x96xf32> to vector<5x8xf32>
    %1274 = vector.extract_strided_slice %1239 {offsets = [0, 80], sizes = [5, 8], strides = [1, 1]} : vector<5x96xf32> to vector<5x8xf32>
    %cst_406 = arith.constant dense<0.000000e+00> : vector<5x5xf32>
    %1275 = tpu.matmul %1272, %1273, %cst_406 {dimension_numbers = #tpu.dot_dimension_numbers<[1], [1], [0], [0], [0, 0, 1, 0], [], []>} : vector<5x8xf32>, vector<5x8xf32>, vector<5x5xf32> -> vector<5x5xf32>
    %cst_407 = arith.constant 0.353553385 : f32
    %1276 = vector.broadcast %cst_407 : f32 to vector<5x5xf32>
    %1277 = arith.mulf %1275, %1276 : vector<5x5xf32>
    %cst_408 = arith.constant dense<0xFF800000> : vector<5xf32>
    %1278 = vector.multi_reduction <maximumf>, %1277, %cst_408 [1] : vector<5x5xf32> to vector<5xf32>
    %1279 = vector.shape_cast %1278 : vector<5xf32> to vector<5x1xf32>
    %1280 = vector.broadcast %1279 : vector<5x1xf32> to vector<5x5xf32>
    %1281 = arith.subf %1277, %1280 : vector<5x5xf32>
    %1282 = math.exp %1281 : vector<5x5xf32>
    %cst_409 = arith.constant dense<0.000000e+00> : vector<5xf32>
    %1283 = vector.multi_reduction <add>, %1282, %cst_409 [1] : vector<5x5xf32> to vector<5xf32>
    %1284 = vector.shape_cast %1283 : vector<5xf32> to vector<5x1xf32>
    %1285 = vector.broadcast %1284 : vector<5x1xf32> to vector<5x5xf32>
    %1286 = arith.divf %1282, %1285 : vector<5x5xf32>
    %cst_410 = arith.constant dense<0.000000e+00> : vector<5x8xf32>
    %1287 = tpu.matmul %1286, %1274, %cst_410 {dimension_numbers = #tpu.dot_dimension_numbers<[1], [0], [0], [1], [0, 0, 1, 1], [], []>} : vector<5x5xf32>, vector<5x8xf32>, vector<5x8xf32> -> vector<5x8xf32>
    %1288 = vector.extract_strided_slice %1239 {offsets = [0, 24], sizes = [5, 8], strides = [1, 1]} : vector<5x96xf32> to vector<5x8xf32>
    %1289 = vector.extract_strided_slice %1239 {offsets = [0, 56], sizes = [5, 8], strides = [1, 1]} : vector<5x96xf32> to vector<5x8xf32>
    %1290 = vector.extract_strided_slice %1239 {offsets = [0, 88], sizes = [5, 8], strides = [1, 1]} : vector<5x96xf32> to vector<5x8xf32>
    %cst_411 = arith.constant dense<0.000000e+00> : vector<5x5xf32>
    %1291 = tpu.matmul %1288, %1289, %cst_411 {dimension_numbers = #tpu.dot_dimension_numbers<[1], [1], [0], [0], [0, 0, 1, 0], [], []>} : vector<5x8xf32>, vector<5x8xf32>, vector<5x5xf32> -> vector<5x5xf32>
    %cst_412 = arith.constant 0.353553385 : f32
    %1292 = vector.broadcast %cst_412 : f32 to vector<5x5xf32>
    %1293 = arith.mulf %1291, %1292 : vector<5x5xf32>
    %cst_413 = arith.constant dense<0xFF800000> : vector<5xf32>
    %1294 = vector.multi_reduction <maximumf>, %1293, %cst_413 [1] : vector<5x5xf32> to vector<5xf32>
    %1295 = vector.shape_cast %1294 : vector<5xf32> to vector<5x1xf32>
    %1296 = vector.broadcast %1295 : vector<5x1xf32> to vector<5x5xf32>
    %1297 = arith.subf %1293, %1296 : vector<5x5xf32>
    %1298 = math.exp %1297 : vector<5x5xf32>
    %cst_414 = arith.constant dense<0.000000e+00> : vector<5xf32>
    %1299 = vector.multi_reduction <add>, %1298, %cst_414 [1] : vector<5x5xf32> to vector<5xf32>
    %1300 = vector.shape_cast %1299 : vector<5xf32> to vector<5x1xf32>
    %1301 = vector.broadcast %1300 : vector<5x1xf32> to vector<5x5xf32>
    %1302 = arith.divf %1298, %1301 : vector<5x5xf32>
    %cst_415 = arith.constant dense<0.000000e+00> : vector<5x8xf32>
    %1303 = tpu.matmul %1302, %1290, %cst_415 {dimension_numbers = #tpu.dot_dimension_numbers<[1], [0], [0], [1], [0, 0, 1, 1], [], []>} : vector<5x5xf32>, vector<5x8xf32>, vector<5x8xf32> -> vector<5x8xf32>
    %1304 = tpu.concatenate %1255, %1271, %1287, %1303 in 1 : vector<5x8xf32>, vector<5x8xf32>, vector<5x8xf32>, vector<5x8xf32> -> vector<5x32xf32>
    %cst_416 = arith.constant dense<0.000000e+00> : vector<5x32xf32>
    %1305 = tpu.matmul %1304, %1214, %cst_416 {dimension_numbers = #tpu.dot_dimension_numbers<[1], [0], [0], [1], [0, 0, 1, 1], [], []>} : vector<5x32xf32>, vector<32x32xf32>, vector<5x32xf32> -> vector<5x32xf32>
    %1306 = arith.addf %1199, %1305 : vector<5x32xf32>
    %1307 = vector.broadcast %1206 : vector<1x32xf32> to vector<5x32xf32>
    %1308 = arith.addf %1306, %1307 : vector<5x32xf32>
    %cst_417 = arith.constant dense<0.000000e+00> : vector<5xf32>
    %1309 = vector.multi_reduction <add>, %1308, %cst_417 [1] : vector<5x32xf32> to vector<5xf32>
    %1310 = vector.shape_cast %1309 : vector<5xf32> to vector<5x1xf32>
    %cst_418 = arith.constant 3.200000e+01 : f32
    %1311 = vector.broadcast %cst_418 : f32 to vector<5x1xf32>
    %1312 = arith.divf %1310, %1311 : vector<5x1xf32>
    %1313 = vector.broadcast %1312 : vector<5x1xf32> to vector<5x32xf32>
    %1314 = arith.subf %1308, %1313 : vector<5x32xf32>
    %1315 = arith.mulf %1314, %1314 : vector<5x32xf32>
    %cst_419 = arith.constant dense<0.000000e+00> : vector<5xf32>
    %1316 = vector.multi_reduction <add>, %1315, %cst_419 [1] : vector<5x32xf32> to vector<5xf32>
    %1317 = vector.shape_cast %1316 : vector<5xf32> to vector<5x1xf32>
    %cst_420 = arith.constant 3.200000e+01 : f32
    %1318 = vector.broadcast %cst_420 : f32 to vector<5x1xf32>
    %1319 = arith.divf %1317, %1318 : vector<5x1xf32>
    %1320 = vector.broadcast %1312 : vector<5x1xf32> to vector<5x32xf32>
    %1321 = arith.subf %1308, %1320 : vector<5x32xf32>
    %cst_421 = arith.constant 9.99999997E-7 : f32
    %1322 = vector.broadcast %cst_421 : f32 to vector<5x1xf32>
    %1323 = arith.addf %1319, %1322 : vector<5x1xf32>
    %1324 = math.rsqrt %1323 : vector<5x1xf32>
    %1325 = vector.broadcast %1324 : vector<5x1xf32> to vector<5x32xf32>
    %1326 = arith.mulf %1321, %1325 : vector<5x32xf32>
    %1327 = vector.broadcast %1207 : vector<1x32xf32> to vector<5x32xf32>
    %1328 = arith.mulf %1326, %1327 : vector<5x32xf32>
    %1329 = vector.broadcast %1208 : vector<1x32xf32> to vector<5x32xf32>
    %1330 = arith.addf %1328, %1329 : vector<5x32xf32>
    %c8_422 = arith.constant 8 : index
    %c0_423 = arith.constant 0 : index
    %c0_424 = arith.constant 0 : index
    %1331 = vector.load %arg4[%c8_422, %c0_423, %c0_424] : memref<12x32x128xf32, #tpu.memory_space<vmem>>, vector<1x32x128xf32>
    %1332 = vector.shape_cast %1331 : vector<1x32x128xf32> to vector<32x128xf32>
    %cst_425 = arith.constant dense<0.000000e+00> : vector<5x128xf32>
    %1333 = tpu.matmul %1330, %1332, %cst_425 {dimension_numbers = #tpu.dot_dimension_numbers<[1], [0], [0], [1], [0, 0, 1, 1], [], []>} : vector<5x32xf32>, vector<32x128xf32>, vector<5x128xf32> -> vector<5x128xf32>
    %1334 = vector.broadcast %1209 : vector<1x128xf32> to vector<5x128xf32>
    %1335 = arith.addf %1333, %1334 : vector<5x128xf32>
    %cst_426 = arith.constant 5.000000e-01 : f32
    %1336 = vector.broadcast %cst_426 : f32 to vector<5x128xf32>
    %1337 = arith.mulf %1336, %1335 : vector<5x128xf32>
    %cst_427 = arith.constant 0.707106769 : f32
    %1338 = vector.broadcast %cst_427 : f32 to vector<5x128xf32>
    %1339 = arith.mulf %1335, %1338 : vector<5x128xf32>
    %1340 = math.erf %1339 : vector<5x128xf32>
    %cst_428 = arith.constant 1.000000e+00 : f32
    %1341 = vector.broadcast %cst_428 : f32 to vector<5x128xf32>
    %1342 = arith.addf %1341, %1340 : vector<5x128xf32>
    %1343 = arith.mulf %1337, %1342 : vector<5x128xf32>
    %c8_429 = arith.constant 8 : index
    %c0_430 = arith.constant 0 : index
    %c0_431 = arith.constant 0 : index
    %1344 = vector.load %arg5[%c8_429, %c0_430, %c0_431] : memref<12x128x32xf32, #tpu.memory_space<vmem>>, vector<1x128x32xf32>
    %1345 = vector.shape_cast %1344 : vector<1x128x32xf32> to vector<128x32xf32>
    %cst_432 = arith.constant dense<0.000000e+00> : vector<5x32xf32>
    %1346 = tpu.matmul %1343, %1345, %cst_432 {dimension_numbers = #tpu.dot_dimension_numbers<[1], [0], [0], [1], [0, 0, 1, 1], [], []>} : vector<5x128xf32>, vector<128x32xf32>, vector<5x32xf32> -> vector<5x32xf32>
    %1347 = arith.addf %1308, %1346 : vector<5x32xf32>
    %1348 = vector.broadcast %1210 : vector<1x32xf32> to vector<5x32xf32>
    %1349 = arith.addf %1347, %1348 : vector<5x32xf32>
    %1350 = vector.extract_strided_slice %1349 {offsets = [0, 0], sizes = [1, 32], strides = [1, 1]} : vector<5x32xf32> to vector<1x32xf32>
    %c9 = arith.constant 9 : index
    %c0_433 = arith.constant 0 : index
    %c0_434 = arith.constant 0 : index
    %1351 = vector.load %arg2[%c9, %c0_433, %c0_434] : memref<12x8x128xf32, #tpu.memory_space<vmem>>, vector<1x8x128xf32>
    %1352 = vector.shape_cast %1351 : vector<1x8x128xf32> to vector<8x128xf32>
    %1353 = vector.extract_strided_slice %1352 {offsets = [0, 0], sizes = [1, 32], strides = [1, 1]} : vector<8x128xf32> to vector<1x32xf32>
    %1354 = vector.extract_strided_slice %1352 {offsets = [1, 0], sizes = [1, 32], strides = [1, 1]} : vector<8x128xf32> to vector<1x32xf32>
    %1355 = vector.extract_strided_slice %1352 {offsets = [2, 0], sizes = [1, 96], strides = [1, 1]} : vector<8x128xf32> to vector<1x96xf32>
    %1356 = vector.extract_strided_slice %1352 {offsets = [3, 0], sizes = [1, 32], strides = [1, 1]} : vector<8x128xf32> to vector<1x32xf32>
    %1357 = vector.extract_strided_slice %1352 {offsets = [4, 0], sizes = [1, 32], strides = [1, 1]} : vector<8x128xf32> to vector<1x32xf32>
    %1358 = vector.extract_strided_slice %1352 {offsets = [5, 0], sizes = [1, 32], strides = [1, 1]} : vector<8x128xf32> to vector<1x32xf32>
    %1359 = vector.extract_strided_slice %1352 {offsets = [6, 0], sizes = [1, 128], strides = [1, 1]} : vector<8x128xf32> to vector<1x128xf32>
    %1360 = vector.extract_strided_slice %1352 {offsets = [7, 0], sizes = [1, 32], strides = [1, 1]} : vector<8x128xf32> to vector<1x32xf32>
    %c9_435 = arith.constant 9 : index
    %c0_436 = arith.constant 0 : index
    %c0_437 = arith.constant 0 : index
    %1361 = vector.load %arg3[%c9_435, %c0_436, %c0_437] : memref<12x32x128xf32, #tpu.memory_space<vmem>>, vector<1x32x128xf32>
    %1362 = vector.shape_cast %1361 : vector<1x32x128xf32> to vector<32x128xf32>
    %1363 = vector.extract_strided_slice %1362 {offsets = [0, 0], sizes = [32, 96], strides = [1, 1]} : vector<32x128xf32> to vector<32x96xf32>
    %1364 = vector.extract_strided_slice %1362 {offsets = [0, 96], sizes = [32, 32], strides = [1, 1]} : vector<32x128xf32> to vector<32x32xf32>
    %cst_438 = arith.constant dense<0.000000e+00> : vector<5xf32>
    %1365 = vector.multi_reduction <add>, %1349, %cst_438 [1] : vector<5x32xf32> to vector<5xf32>
    %1366 = vector.shape_cast %1365 : vector<5xf32> to vector<5x1xf32>
    %cst_439 = arith.constant 3.200000e+01 : f32
    %1367 = vector.broadcast %cst_439 : f32 to vector<5x1xf32>
    %1368 = arith.divf %1366, %1367 : vector<5x1xf32>
    %1369 = vector.broadcast %1368 : vector<5x1xf32> to vector<5x32xf32>
    %1370 = arith.subf %1349, %1369 : vector<5x32xf32>
    %1371 = arith.mulf %1370, %1370 : vector<5x32xf32>
    %cst_440 = arith.constant dense<0.000000e+00> : vector<5xf32>
    %1372 = vector.multi_reduction <add>, %1371, %cst_440 [1] : vector<5x32xf32> to vector<5xf32>
    %1373 = vector.shape_cast %1372 : vector<5xf32> to vector<5x1xf32>
    %cst_441 = arith.constant 3.200000e+01 : f32
    %1374 = vector.broadcast %cst_441 : f32 to vector<5x1xf32>
    %1375 = arith.divf %1373, %1374 : vector<5x1xf32>
    %1376 = vector.broadcast %1368 : vector<5x1xf32> to vector<5x32xf32>
    %1377 = arith.subf %1349, %1376 : vector<5x32xf32>
    %cst_442 = arith.constant 9.99999997E-7 : f32
    %1378 = vector.broadcast %cst_442 : f32 to vector<5x1xf32>
    %1379 = arith.addf %1375, %1378 : vector<5x1xf32>
    %1380 = math.rsqrt %1379 : vector<5x1xf32>
    %1381 = vector.broadcast %1380 : vector<5x1xf32> to vector<5x32xf32>
    %1382 = arith.mulf %1377, %1381 : vector<5x32xf32>
    %1383 = vector.broadcast %1353 : vector<1x32xf32> to vector<5x32xf32>
    %1384 = arith.mulf %1382, %1383 : vector<5x32xf32>
    %1385 = vector.broadcast %1354 : vector<1x32xf32> to vector<5x32xf32>
    %1386 = arith.addf %1384, %1385 : vector<5x32xf32>
    %cst_443 = arith.constant dense<0.000000e+00> : vector<5x96xf32>
    %1387 = tpu.matmul %1386, %1363, %cst_443 {dimension_numbers = #tpu.dot_dimension_numbers<[1], [0], [0], [1], [0, 0, 1, 1], [], []>} : vector<5x32xf32>, vector<32x96xf32>, vector<5x96xf32> -> vector<5x96xf32>
    %1388 = vector.broadcast %1355 : vector<1x96xf32> to vector<5x96xf32>
    %1389 = arith.addf %1387, %1388 : vector<5x96xf32>
    %1390 = vector.extract_strided_slice %1389 {offsets = [0, 0], sizes = [5, 8], strides = [1, 1]} : vector<5x96xf32> to vector<5x8xf32>
    %1391 = vector.extract_strided_slice %1389 {offsets = [0, 32], sizes = [5, 8], strides = [1, 1]} : vector<5x96xf32> to vector<5x8xf32>
    %1392 = vector.extract_strided_slice %1389 {offsets = [0, 64], sizes = [5, 8], strides = [1, 1]} : vector<5x96xf32> to vector<5x8xf32>
    %cst_444 = arith.constant dense<0.000000e+00> : vector<5x5xf32>
    %1393 = tpu.matmul %1390, %1391, %cst_444 {dimension_numbers = #tpu.dot_dimension_numbers<[1], [1], [0], [0], [0, 0, 1, 0], [], []>} : vector<5x8xf32>, vector<5x8xf32>, vector<5x5xf32> -> vector<5x5xf32>
    %cst_445 = arith.constant 0.353553385 : f32
    %1394 = vector.broadcast %cst_445 : f32 to vector<5x5xf32>
    %1395 = arith.mulf %1393, %1394 : vector<5x5xf32>
    %cst_446 = arith.constant dense<0xFF800000> : vector<5xf32>
    %1396 = vector.multi_reduction <maximumf>, %1395, %cst_446 [1] : vector<5x5xf32> to vector<5xf32>
    %1397 = vector.shape_cast %1396 : vector<5xf32> to vector<5x1xf32>
    %1398 = vector.broadcast %1397 : vector<5x1xf32> to vector<5x5xf32>
    %1399 = arith.subf %1395, %1398 : vector<5x5xf32>
    %1400 = math.exp %1399 : vector<5x5xf32>
    %cst_447 = arith.constant dense<0.000000e+00> : vector<5xf32>
    %1401 = vector.multi_reduction <add>, %1400, %cst_447 [1] : vector<5x5xf32> to vector<5xf32>
    %1402 = vector.shape_cast %1401 : vector<5xf32> to vector<5x1xf32>
    %1403 = vector.broadcast %1402 : vector<5x1xf32> to vector<5x5xf32>
    %1404 = arith.divf %1400, %1403 : vector<5x5xf32>
    %cst_448 = arith.constant dense<0.000000e+00> : vector<5x8xf32>
    %1405 = tpu.matmul %1404, %1392, %cst_448 {dimension_numbers = #tpu.dot_dimension_numbers<[1], [0], [0], [1], [0, 0, 1, 1], [], []>} : vector<5x5xf32>, vector<5x8xf32>, vector<5x8xf32> -> vector<5x8xf32>
    %1406 = vector.extract_strided_slice %1389 {offsets = [0, 8], sizes = [5, 8], strides = [1, 1]} : vector<5x96xf32> to vector<5x8xf32>
    %1407 = vector.extract_strided_slice %1389 {offsets = [0, 40], sizes = [5, 8], strides = [1, 1]} : vector<5x96xf32> to vector<5x8xf32>
    %1408 = vector.extract_strided_slice %1389 {offsets = [0, 72], sizes = [5, 8], strides = [1, 1]} : vector<5x96xf32> to vector<5x8xf32>
    %cst_449 = arith.constant dense<0.000000e+00> : vector<5x5xf32>
    %1409 = tpu.matmul %1406, %1407, %cst_449 {dimension_numbers = #tpu.dot_dimension_numbers<[1], [1], [0], [0], [0, 0, 1, 0], [], []>} : vector<5x8xf32>, vector<5x8xf32>, vector<5x5xf32> -> vector<5x5xf32>
    %cst_450 = arith.constant 0.353553385 : f32
    %1410 = vector.broadcast %cst_450 : f32 to vector<5x5xf32>
    %1411 = arith.mulf %1409, %1410 : vector<5x5xf32>
    %cst_451 = arith.constant dense<0xFF800000> : vector<5xf32>
    %1412 = vector.multi_reduction <maximumf>, %1411, %cst_451 [1] : vector<5x5xf32> to vector<5xf32>
    %1413 = vector.shape_cast %1412 : vector<5xf32> to vector<5x1xf32>
    %1414 = vector.broadcast %1413 : vector<5x1xf32> to vector<5x5xf32>
    %1415 = arith.subf %1411, %1414 : vector<5x5xf32>
    %1416 = math.exp %1415 : vector<5x5xf32>
    %cst_452 = arith.constant dense<0.000000e+00> : vector<5xf32>
    %1417 = vector.multi_reduction <add>, %1416, %cst_452 [1] : vector<5x5xf32> to vector<5xf32>
    %1418 = vector.shape_cast %1417 : vector<5xf32> to vector<5x1xf32>
    %1419 = vector.broadcast %1418 : vector<5x1xf32> to vector<5x5xf32>
    %1420 = arith.divf %1416, %1419 : vector<5x5xf32>
    %cst_453 = arith.constant dense<0.000000e+00> : vector<5x8xf32>
    %1421 = tpu.matmul %1420, %1408, %cst_453 {dimension_numbers = #tpu.dot_dimension_numbers<[1], [0], [0], [1], [0, 0, 1, 1], [], []>} : vector<5x5xf32>, vector<5x8xf32>, vector<5x8xf32> -> vector<5x8xf32>
    %1422 = vector.extract_strided_slice %1389 {offsets = [0, 16], sizes = [5, 8], strides = [1, 1]} : vector<5x96xf32> to vector<5x8xf32>
    %1423 = vector.extract_strided_slice %1389 {offsets = [0, 48], sizes = [5, 8], strides = [1, 1]} : vector<5x96xf32> to vector<5x8xf32>
    %1424 = vector.extract_strided_slice %1389 {offsets = [0, 80], sizes = [5, 8], strides = [1, 1]} : vector<5x96xf32> to vector<5x8xf32>
    %cst_454 = arith.constant dense<0.000000e+00> : vector<5x5xf32>
    %1425 = tpu.matmul %1422, %1423, %cst_454 {dimension_numbers = #tpu.dot_dimension_numbers<[1], [1], [0], [0], [0, 0, 1, 0], [], []>} : vector<5x8xf32>, vector<5x8xf32>, vector<5x5xf32> -> vector<5x5xf32>
    %cst_455 = arith.constant 0.353553385 : f32
    %1426 = vector.broadcast %cst_455 : f32 to vector<5x5xf32>
    %1427 = arith.mulf %1425, %1426 : vector<5x5xf32>
    %cst_456 = arith.constant dense<0xFF800000> : vector<5xf32>
    %1428 = vector.multi_reduction <maximumf>, %1427, %cst_456 [1] : vector<5x5xf32> to vector<5xf32>
    %1429 = vector.shape_cast %1428 : vector<5xf32> to vector<5x1xf32>
    %1430 = vector.broadcast %1429 : vector<5x1xf32> to vector<5x5xf32>
    %1431 = arith.subf %1427, %1430 : vector<5x5xf32>
    %1432 = math.exp %1431 : vector<5x5xf32>
    %cst_457 = arith.constant dense<0.000000e+00> : vector<5xf32>
    %1433 = vector.multi_reduction <add>, %1432, %cst_457 [1] : vector<5x5xf32> to vector<5xf32>
    %1434 = vector.shape_cast %1433 : vector<5xf32> to vector<5x1xf32>
    %1435 = vector.broadcast %1434 : vector<5x1xf32> to vector<5x5xf32>
    %1436 = arith.divf %1432, %1435 : vector<5x5xf32>
    %cst_458 = arith.constant dense<0.000000e+00> : vector<5x8xf32>
    %1437 = tpu.matmul %1436, %1424, %cst_458 {dimension_numbers = #tpu.dot_dimension_numbers<[1], [0], [0], [1], [0, 0, 1, 1], [], []>} : vector<5x5xf32>, vector<5x8xf32>, vector<5x8xf32> -> vector<5x8xf32>
    %1438 = vector.extract_strided_slice %1389 {offsets = [0, 24], sizes = [5, 8], strides = [1, 1]} : vector<5x96xf32> to vector<5x8xf32>
    %1439 = vector.extract_strided_slice %1389 {offsets = [0, 56], sizes = [5, 8], strides = [1, 1]} : vector<5x96xf32> to vector<5x8xf32>
    %1440 = vector.extract_strided_slice %1389 {offsets = [0, 88], sizes = [5, 8], strides = [1, 1]} : vector<5x96xf32> to vector<5x8xf32>
    %cst_459 = arith.constant dense<0.000000e+00> : vector<5x5xf32>
    %1441 = tpu.matmul %1438, %1439, %cst_459 {dimension_numbers = #tpu.dot_dimension_numbers<[1], [1], [0], [0], [0, 0, 1, 0], [], []>} : vector<5x8xf32>, vector<5x8xf32>, vector<5x5xf32> -> vector<5x5xf32>
    %cst_460 = arith.constant 0.353553385 : f32
    %1442 = vector.broadcast %cst_460 : f32 to vector<5x5xf32>
    %1443 = arith.mulf %1441, %1442 : vector<5x5xf32>
    %cst_461 = arith.constant dense<0xFF800000> : vector<5xf32>
    %1444 = vector.multi_reduction <maximumf>, %1443, %cst_461 [1] : vector<5x5xf32> to vector<5xf32>
    %1445 = vector.shape_cast %1444 : vector<5xf32> to vector<5x1xf32>
    %1446 = vector.broadcast %1445 : vector<5x1xf32> to vector<5x5xf32>
    %1447 = arith.subf %1443, %1446 : vector<5x5xf32>
    %1448 = math.exp %1447 : vector<5x5xf32>
    %cst_462 = arith.constant dense<0.000000e+00> : vector<5xf32>
    %1449 = vector.multi_reduction <add>, %1448, %cst_462 [1] : vector<5x5xf32> to vector<5xf32>
    %1450 = vector.shape_cast %1449 : vector<5xf32> to vector<5x1xf32>
    %1451 = vector.broadcast %1450 : vector<5x1xf32> to vector<5x5xf32>
    %1452 = arith.divf %1448, %1451 : vector<5x5xf32>
    %cst_463 = arith.constant dense<0.000000e+00> : vector<5x8xf32>
    %1453 = tpu.matmul %1452, %1440, %cst_463 {dimension_numbers = #tpu.dot_dimension_numbers<[1], [0], [0], [1], [0, 0, 1, 1], [], []>} : vector<5x5xf32>, vector<5x8xf32>, vector<5x8xf32> -> vector<5x8xf32>
    %1454 = tpu.concatenate %1405, %1421, %1437, %1453 in 1 : vector<5x8xf32>, vector<5x8xf32>, vector<5x8xf32>, vector<5x8xf32> -> vector<5x32xf32>
    %cst_464 = arith.constant dense<0.000000e+00> : vector<5x32xf32>
    %1455 = tpu.matmul %1454, %1364, %cst_464 {dimension_numbers = #tpu.dot_dimension_numbers<[1], [0], [0], [1], [0, 0, 1, 1], [], []>} : vector<5x32xf32>, vector<32x32xf32>, vector<5x32xf32> -> vector<5x32xf32>
    %1456 = arith.addf %1349, %1455 : vector<5x32xf32>
    %1457 = vector.broadcast %1356 : vector<1x32xf32> to vector<5x32xf32>
    %1458 = arith.addf %1456, %1457 : vector<5x32xf32>
    %cst_465 = arith.constant dense<0.000000e+00> : vector<5xf32>
    %1459 = vector.multi_reduction <add>, %1458, %cst_465 [1] : vector<5x32xf32> to vector<5xf32>
    %1460 = vector.shape_cast %1459 : vector<5xf32> to vector<5x1xf32>
    %cst_466 = arith.constant 3.200000e+01 : f32
    %1461 = vector.broadcast %cst_466 : f32 to vector<5x1xf32>
    %1462 = arith.divf %1460, %1461 : vector<5x1xf32>
    %1463 = vector.broadcast %1462 : vector<5x1xf32> to vector<5x32xf32>
    %1464 = arith.subf %1458, %1463 : vector<5x32xf32>
    %1465 = arith.mulf %1464, %1464 : vector<5x32xf32>
    %cst_467 = arith.constant dense<0.000000e+00> : vector<5xf32>
    %1466 = vector.multi_reduction <add>, %1465, %cst_467 [1] : vector<5x32xf32> to vector<5xf32>
    %1467 = vector.shape_cast %1466 : vector<5xf32> to vector<5x1xf32>
    %cst_468 = arith.constant 3.200000e+01 : f32
    %1468 = vector.broadcast %cst_468 : f32 to vector<5x1xf32>
    %1469 = arith.divf %1467, %1468 : vector<5x1xf32>
    %1470 = vector.broadcast %1462 : vector<5x1xf32> to vector<5x32xf32>
    %1471 = arith.subf %1458, %1470 : vector<5x32xf32>
    %cst_469 = arith.constant 9.99999997E-7 : f32
    %1472 = vector.broadcast %cst_469 : f32 to vector<5x1xf32>
    %1473 = arith.addf %1469, %1472 : vector<5x1xf32>
    %1474 = math.rsqrt %1473 : vector<5x1xf32>
    %1475 = vector.broadcast %1474 : vector<5x1xf32> to vector<5x32xf32>
    %1476 = arith.mulf %1471, %1475 : vector<5x32xf32>
    %1477 = vector.broadcast %1357 : vector<1x32xf32> to vector<5x32xf32>
    %1478 = arith.mulf %1476, %1477 : vector<5x32xf32>
    %1479 = vector.broadcast %1358 : vector<1x32xf32> to vector<5x32xf32>
    %1480 = arith.addf %1478, %1479 : vector<5x32xf32>
    %c9_470 = arith.constant 9 : index
    %c0_471 = arith.constant 0 : index
    %c0_472 = arith.constant 0 : index
    %1481 = vector.load %arg4[%c9_470, %c0_471, %c0_472] : memref<12x32x128xf32, #tpu.memory_space<vmem>>, vector<1x32x128xf32>
    %1482 = vector.shape_cast %1481 : vector<1x32x128xf32> to vector<32x128xf32>
    %cst_473 = arith.constant dense<0.000000e+00> : vector<5x128xf32>
    %1483 = tpu.matmul %1480, %1482, %cst_473 {dimension_numbers = #tpu.dot_dimension_numbers<[1], [0], [0], [1], [0, 0, 1, 1], [], []>} : vector<5x32xf32>, vector<32x128xf32>, vector<5x128xf32> -> vector<5x128xf32>
    %1484 = vector.broadcast %1359 : vector<1x128xf32> to vector<5x128xf32>
    %1485 = arith.addf %1483, %1484 : vector<5x128xf32>
    %cst_474 = arith.constant 5.000000e-01 : f32
    %1486 = vector.broadcast %cst_474 : f32 to vector<5x128xf32>
    %1487 = arith.mulf %1486, %1485 : vector<5x128xf32>
    %cst_475 = arith.constant 0.707106769 : f32
    %1488 = vector.broadcast %cst_475 : f32 to vector<5x128xf32>
    %1489 = arith.mulf %1485, %1488 : vector<5x128xf32>
    %1490 = math.erf %1489 : vector<5x128xf32>
    %cst_476 = arith.constant 1.000000e+00 : f32
    %1491 = vector.broadcast %cst_476 : f32 to vector<5x128xf32>
    %1492 = arith.addf %1491, %1490 : vector<5x128xf32>
    %1493 = arith.mulf %1487, %1492 : vector<5x128xf32>
    %c9_477 = arith.constant 9 : index
    %c0_478 = arith.constant 0 : index
    %c0_479 = arith.constant 0 : index
    %1494 = vector.load %arg5[%c9_477, %c0_478, %c0_479] : memref<12x128x32xf32, #tpu.memory_space<vmem>>, vector<1x128x32xf32>
    %1495 = vector.shape_cast %1494 : vector<1x128x32xf32> to vector<128x32xf32>
    %cst_480 = arith.constant dense<0.000000e+00> : vector<5x32xf32>
    %1496 = tpu.matmul %1493, %1495, %cst_480 {dimension_numbers = #tpu.dot_dimension_numbers<[1], [0], [0], [1], [0, 0, 1, 1], [], []>} : vector<5x128xf32>, vector<128x32xf32>, vector<5x32xf32> -> vector<5x32xf32>
    %1497 = arith.addf %1458, %1496 : vector<5x32xf32>
    %1498 = vector.broadcast %1360 : vector<1x32xf32> to vector<5x32xf32>
    %1499 = arith.addf %1497, %1498 : vector<5x32xf32>
    %1500 = vector.extract_strided_slice %1499 {offsets = [0, 0], sizes = [1, 32], strides = [1, 1]} : vector<5x32xf32> to vector<1x32xf32>
    %c10 = arith.constant 10 : index
    %c0_481 = arith.constant 0 : index
    %c0_482 = arith.constant 0 : index
    %1501 = vector.load %arg2[%c10, %c0_481, %c0_482] : memref<12x8x128xf32, #tpu.memory_space<vmem>>, vector<1x8x128xf32>
    %1502 = vector.shape_cast %1501 : vector<1x8x128xf32> to vector<8x128xf32>
    %1503 = vector.extract_strided_slice %1502 {offsets = [0, 0], sizes = [1, 32], strides = [1, 1]} : vector<8x128xf32> to vector<1x32xf32>
    %1504 = vector.extract_strided_slice %1502 {offsets = [1, 0], sizes = [1, 32], strides = [1, 1]} : vector<8x128xf32> to vector<1x32xf32>
    %1505 = vector.extract_strided_slice %1502 {offsets = [2, 0], sizes = [1, 96], strides = [1, 1]} : vector<8x128xf32> to vector<1x96xf32>
    %1506 = vector.extract_strided_slice %1502 {offsets = [3, 0], sizes = [1, 32], strides = [1, 1]} : vector<8x128xf32> to vector<1x32xf32>
    %1507 = vector.extract_strided_slice %1502 {offsets = [4, 0], sizes = [1, 32], strides = [1, 1]} : vector<8x128xf32> to vector<1x32xf32>
    %1508 = vector.extract_strided_slice %1502 {offsets = [5, 0], sizes = [1, 32], strides = [1, 1]} : vector<8x128xf32> to vector<1x32xf32>
    %1509 = vector.extract_strided_slice %1502 {offsets = [6, 0], sizes = [1, 128], strides = [1, 1]} : vector<8x128xf32> to vector<1x128xf32>
    %1510 = vector.extract_strided_slice %1502 {offsets = [7, 0], sizes = [1, 32], strides = [1, 1]} : vector<8x128xf32> to vector<1x32xf32>
    %c10_483 = arith.constant 10 : index
    %c0_484 = arith.constant 0 : index
    %c0_485 = arith.constant 0 : index
    %1511 = vector.load %arg3[%c10_483, %c0_484, %c0_485] : memref<12x32x128xf32, #tpu.memory_space<vmem>>, vector<1x32x128xf32>
    %1512 = vector.shape_cast %1511 : vector<1x32x128xf32> to vector<32x128xf32>
    %1513 = vector.extract_strided_slice %1512 {offsets = [0, 0], sizes = [32, 96], strides = [1, 1]} : vector<32x128xf32> to vector<32x96xf32>
    %1514 = vector.extract_strided_slice %1512 {offsets = [0, 96], sizes = [32, 32], strides = [1, 1]} : vector<32x128xf32> to vector<32x32xf32>
    %cst_486 = arith.constant dense<0.000000e+00> : vector<5xf32>
    %1515 = vector.multi_reduction <add>, %1499, %cst_486 [1] : vector<5x32xf32> to vector<5xf32>
    %1516 = vector.shape_cast %1515 : vector<5xf32> to vector<5x1xf32>
    %cst_487 = arith.constant 3.200000e+01 : f32
    %1517 = vector.broadcast %cst_487 : f32 to vector<5x1xf32>
    %1518 = arith.divf %1516, %1517 : vector<5x1xf32>
    %1519 = vector.broadcast %1518 : vector<5x1xf32> to vector<5x32xf32>
    %1520 = arith.subf %1499, %1519 : vector<5x32xf32>
    %1521 = arith.mulf %1520, %1520 : vector<5x32xf32>
    %cst_488 = arith.constant dense<0.000000e+00> : vector<5xf32>
    %1522 = vector.multi_reduction <add>, %1521, %cst_488 [1] : vector<5x32xf32> to vector<5xf32>
    %1523 = vector.shape_cast %1522 : vector<5xf32> to vector<5x1xf32>
    %cst_489 = arith.constant 3.200000e+01 : f32
    %1524 = vector.broadcast %cst_489 : f32 to vector<5x1xf32>
    %1525 = arith.divf %1523, %1524 : vector<5x1xf32>
    %1526 = vector.broadcast %1518 : vector<5x1xf32> to vector<5x32xf32>
    %1527 = arith.subf %1499, %1526 : vector<5x32xf32>
    %cst_490 = arith.constant 9.99999997E-7 : f32
    %1528 = vector.broadcast %cst_490 : f32 to vector<5x1xf32>
    %1529 = arith.addf %1525, %1528 : vector<5x1xf32>
    %1530 = math.rsqrt %1529 : vector<5x1xf32>
    %1531 = vector.broadcast %1530 : vector<5x1xf32> to vector<5x32xf32>
    %1532 = arith.mulf %1527, %1531 : vector<5x32xf32>
    %1533 = vector.broadcast %1503 : vector<1x32xf32> to vector<5x32xf32>
    %1534 = arith.mulf %1532, %1533 : vector<5x32xf32>
    %1535 = vector.broadcast %1504 : vector<1x32xf32> to vector<5x32xf32>
    %1536 = arith.addf %1534, %1535 : vector<5x32xf32>
    %cst_491 = arith.constant dense<0.000000e+00> : vector<5x96xf32>
    %1537 = tpu.matmul %1536, %1513, %cst_491 {dimension_numbers = #tpu.dot_dimension_numbers<[1], [0], [0], [1], [0, 0, 1, 1], [], []>} : vector<5x32xf32>, vector<32x96xf32>, vector<5x96xf32> -> vector<5x96xf32>
    %1538 = vector.broadcast %1505 : vector<1x96xf32> to vector<5x96xf32>
    %1539 = arith.addf %1537, %1538 : vector<5x96xf32>
    %1540 = vector.extract_strided_slice %1539 {offsets = [0, 0], sizes = [5, 8], strides = [1, 1]} : vector<5x96xf32> to vector<5x8xf32>
    %1541 = vector.extract_strided_slice %1539 {offsets = [0, 32], sizes = [5, 8], strides = [1, 1]} : vector<5x96xf32> to vector<5x8xf32>
    %1542 = vector.extract_strided_slice %1539 {offsets = [0, 64], sizes = [5, 8], strides = [1, 1]} : vector<5x96xf32> to vector<5x8xf32>
    %cst_492 = arith.constant dense<0.000000e+00> : vector<5x5xf32>
    %1543 = tpu.matmul %1540, %1541, %cst_492 {dimension_numbers = #tpu.dot_dimension_numbers<[1], [1], [0], [0], [0, 0, 1, 0], [], []>} : vector<5x8xf32>, vector<5x8xf32>, vector<5x5xf32> -> vector<5x5xf32>
    %cst_493 = arith.constant 0.353553385 : f32
    %1544 = vector.broadcast %cst_493 : f32 to vector<5x5xf32>
    %1545 = arith.mulf %1543, %1544 : vector<5x5xf32>
    %cst_494 = arith.constant dense<0xFF800000> : vector<5xf32>
    %1546 = vector.multi_reduction <maximumf>, %1545, %cst_494 [1] : vector<5x5xf32> to vector<5xf32>
    %1547 = vector.shape_cast %1546 : vector<5xf32> to vector<5x1xf32>
    %1548 = vector.broadcast %1547 : vector<5x1xf32> to vector<5x5xf32>
    %1549 = arith.subf %1545, %1548 : vector<5x5xf32>
    %1550 = math.exp %1549 : vector<5x5xf32>
    %cst_495 = arith.constant dense<0.000000e+00> : vector<5xf32>
    %1551 = vector.multi_reduction <add>, %1550, %cst_495 [1] : vector<5x5xf32> to vector<5xf32>
    %1552 = vector.shape_cast %1551 : vector<5xf32> to vector<5x1xf32>
    %1553 = vector.broadcast %1552 : vector<5x1xf32> to vector<5x5xf32>
    %1554 = arith.divf %1550, %1553 : vector<5x5xf32>
    %cst_496 = arith.constant dense<0.000000e+00> : vector<5x8xf32>
    %1555 = tpu.matmul %1554, %1542, %cst_496 {dimension_numbers = #tpu.dot_dimension_numbers<[1], [0], [0], [1], [0, 0, 1, 1], [], []>} : vector<5x5xf32>, vector<5x8xf32>, vector<5x8xf32> -> vector<5x8xf32>
    %1556 = vector.extract_strided_slice %1539 {offsets = [0, 8], sizes = [5, 8], strides = [1, 1]} : vector<5x96xf32> to vector<5x8xf32>
    %1557 = vector.extract_strided_slice %1539 {offsets = [0, 40], sizes = [5, 8], strides = [1, 1]} : vector<5x96xf32> to vector<5x8xf32>
    %1558 = vector.extract_strided_slice %1539 {offsets = [0, 72], sizes = [5, 8], strides = [1, 1]} : vector<5x96xf32> to vector<5x8xf32>
    %cst_497 = arith.constant dense<0.000000e+00> : vector<5x5xf32>
    %1559 = tpu.matmul %1556, %1557, %cst_497 {dimension_numbers = #tpu.dot_dimension_numbers<[1], [1], [0], [0], [0, 0, 1, 0], [], []>} : vector<5x8xf32>, vector<5x8xf32>, vector<5x5xf32> -> vector<5x5xf32>
    %cst_498 = arith.constant 0.353553385 : f32
    %1560 = vector.broadcast %cst_498 : f32 to vector<5x5xf32>
    %1561 = arith.mulf %1559, %1560 : vector<5x5xf32>
    %cst_499 = arith.constant dense<0xFF800000> : vector<5xf32>
    %1562 = vector.multi_reduction <maximumf>, %1561, %cst_499 [1] : vector<5x5xf32> to vector<5xf32>
    %1563 = vector.shape_cast %1562 : vector<5xf32> to vector<5x1xf32>
    %1564 = vector.broadcast %1563 : vector<5x1xf32> to vector<5x5xf32>
    %1565 = arith.subf %1561, %1564 : vector<5x5xf32>
    %1566 = math.exp %1565 : vector<5x5xf32>
    %cst_500 = arith.constant dense<0.000000e+00> : vector<5xf32>
    %1567 = vector.multi_reduction <add>, %1566, %cst_500 [1] : vector<5x5xf32> to vector<5xf32>
    %1568 = vector.shape_cast %1567 : vector<5xf32> to vector<5x1xf32>
    %1569 = vector.broadcast %1568 : vector<5x1xf32> to vector<5x5xf32>
    %1570 = arith.divf %1566, %1569 : vector<5x5xf32>
    %cst_501 = arith.constant dense<0.000000e+00> : vector<5x8xf32>
    %1571 = tpu.matmul %1570, %1558, %cst_501 {dimension_numbers = #tpu.dot_dimension_numbers<[1], [0], [0], [1], [0, 0, 1, 1], [], []>} : vector<5x5xf32>, vector<5x8xf32>, vector<5x8xf32> -> vector<5x8xf32>
    %1572 = vector.extract_strided_slice %1539 {offsets = [0, 16], sizes = [5, 8], strides = [1, 1]} : vector<5x96xf32> to vector<5x8xf32>
    %1573 = vector.extract_strided_slice %1539 {offsets = [0, 48], sizes = [5, 8], strides = [1, 1]} : vector<5x96xf32> to vector<5x8xf32>
    %1574 = vector.extract_strided_slice %1539 {offsets = [0, 80], sizes = [5, 8], strides = [1, 1]} : vector<5x96xf32> to vector<5x8xf32>
    %cst_502 = arith.constant dense<0.000000e+00> : vector<5x5xf32>
    %1575 = tpu.matmul %1572, %1573, %cst_502 {dimension_numbers = #tpu.dot_dimension_numbers<[1], [1], [0], [0], [0, 0, 1, 0], [], []>} : vector<5x8xf32>, vector<5x8xf32>, vector<5x5xf32> -> vector<5x5xf32>
    %cst_503 = arith.constant 0.353553385 : f32
    %1576 = vector.broadcast %cst_503 : f32 to vector<5x5xf32>
    %1577 = arith.mulf %1575, %1576 : vector<5x5xf32>
    %cst_504 = arith.constant dense<0xFF800000> : vector<5xf32>
    %1578 = vector.multi_reduction <maximumf>, %1577, %cst_504 [1] : vector<5x5xf32> to vector<5xf32>
    %1579 = vector.shape_cast %1578 : vector<5xf32> to vector<5x1xf32>
    %1580 = vector.broadcast %1579 : vector<5x1xf32> to vector<5x5xf32>
    %1581 = arith.subf %1577, %1580 : vector<5x5xf32>
    %1582 = math.exp %1581 : vector<5x5xf32>
    %cst_505 = arith.constant dense<0.000000e+00> : vector<5xf32>
    %1583 = vector.multi_reduction <add>, %1582, %cst_505 [1] : vector<5x5xf32> to vector<5xf32>
    %1584 = vector.shape_cast %1583 : vector<5xf32> to vector<5x1xf32>
    %1585 = vector.broadcast %1584 : vector<5x1xf32> to vector<5x5xf32>
    %1586 = arith.divf %1582, %1585 : vector<5x5xf32>
    %cst_506 = arith.constant dense<0.000000e+00> : vector<5x8xf32>
    %1587 = tpu.matmul %1586, %1574, %cst_506 {dimension_numbers = #tpu.dot_dimension_numbers<[1], [0], [0], [1], [0, 0, 1, 1], [], []>} : vector<5x5xf32>, vector<5x8xf32>, vector<5x8xf32> -> vector<5x8xf32>
    %1588 = vector.extract_strided_slice %1539 {offsets = [0, 24], sizes = [5, 8], strides = [1, 1]} : vector<5x96xf32> to vector<5x8xf32>
    %1589 = vector.extract_strided_slice %1539 {offsets = [0, 56], sizes = [5, 8], strides = [1, 1]} : vector<5x96xf32> to vector<5x8xf32>
    %1590 = vector.extract_strided_slice %1539 {offsets = [0, 88], sizes = [5, 8], strides = [1, 1]} : vector<5x96xf32> to vector<5x8xf32>
    %cst_507 = arith.constant dense<0.000000e+00> : vector<5x5xf32>
    %1591 = tpu.matmul %1588, %1589, %cst_507 {dimension_numbers = #tpu.dot_dimension_numbers<[1], [1], [0], [0], [0, 0, 1, 0], [], []>} : vector<5x8xf32>, vector<5x8xf32>, vector<5x5xf32> -> vector<5x5xf32>
    %cst_508 = arith.constant 0.353553385 : f32
    %1592 = vector.broadcast %cst_508 : f32 to vector<5x5xf32>
    %1593 = arith.mulf %1591, %1592 : vector<5x5xf32>
    %cst_509 = arith.constant dense<0xFF800000> : vector<5xf32>
    %1594 = vector.multi_reduction <maximumf>, %1593, %cst_509 [1] : vector<5x5xf32> to vector<5xf32>
    %1595 = vector.shape_cast %1594 : vector<5xf32> to vector<5x1xf32>
    %1596 = vector.broadcast %1595 : vector<5x1xf32> to vector<5x5xf32>
    %1597 = arith.subf %1593, %1596 : vector<5x5xf32>
    %1598 = math.exp %1597 : vector<5x5xf32>
    %cst_510 = arith.constant dense<0.000000e+00> : vector<5xf32>
    %1599 = vector.multi_reduction <add>, %1598, %cst_510 [1] : vector<5x5xf32> to vector<5xf32>
    %1600 = vector.shape_cast %1599 : vector<5xf32> to vector<5x1xf32>
    %1601 = vector.broadcast %1600 : vector<5x1xf32> to vector<5x5xf32>
    %1602 = arith.divf %1598, %1601 : vector<5x5xf32>
    %cst_511 = arith.constant dense<0.000000e+00> : vector<5x8xf32>
    %1603 = tpu.matmul %1602, %1590, %cst_511 {dimension_numbers = #tpu.dot_dimension_numbers<[1], [0], [0], [1], [0, 0, 1, 1], [], []>} : vector<5x5xf32>, vector<5x8xf32>, vector<5x8xf32> -> vector<5x8xf32>
    %1604 = tpu.concatenate %1555, %1571, %1587, %1603 in 1 : vector<5x8xf32>, vector<5x8xf32>, vector<5x8xf32>, vector<5x8xf32> -> vector<5x32xf32>
    %cst_512 = arith.constant dense<0.000000e+00> : vector<5x32xf32>
    %1605 = tpu.matmul %1604, %1514, %cst_512 {dimension_numbers = #tpu.dot_dimension_numbers<[1], [0], [0], [1], [0, 0, 1, 1], [], []>} : vector<5x32xf32>, vector<32x32xf32>, vector<5x32xf32> -> vector<5x32xf32>
    %1606 = arith.addf %1499, %1605 : vector<5x32xf32>
    %1607 = vector.broadcast %1506 : vector<1x32xf32> to vector<5x32xf32>
    %1608 = arith.addf %1606, %1607 : vector<5x32xf32>
    %cst_513 = arith.constant dense<0.000000e+00> : vector<5xf32>
    %1609 = vector.multi_reduction <add>, %1608, %cst_513 [1] : vector<5x32xf32> to vector<5xf32>
    %1610 = vector.shape_cast %1609 : vector<5xf32> to vector<5x1xf32>
    %cst_514 = arith.constant 3.200000e+01 : f32
    %1611 = vector.broadcast %cst_514 : f32 to vector<5x1xf32>
    %1612 = arith.divf %1610, %1611 : vector<5x1xf32>
    %1613 = vector.broadcast %1612 : vector<5x1xf32> to vector<5x32xf32>
    %1614 = arith.subf %1608, %1613 : vector<5x32xf32>
    %1615 = arith.mulf %1614, %1614 : vector<5x32xf32>
    %cst_515 = arith.constant dense<0.000000e+00> : vector<5xf32>
    %1616 = vector.multi_reduction <add>, %1615, %cst_515 [1] : vector<5x32xf32> to vector<5xf32>
    %1617 = vector.shape_cast %1616 : vector<5xf32> to vector<5x1xf32>
    %cst_516 = arith.constant 3.200000e+01 : f32
    %1618 = vector.broadcast %cst_516 : f32 to vector<5x1xf32>
    %1619 = arith.divf %1617, %1618 : vector<5x1xf32>
    %1620 = vector.broadcast %1612 : vector<5x1xf32> to vector<5x32xf32>
    %1621 = arith.subf %1608, %1620 : vector<5x32xf32>
    %cst_517 = arith.constant 9.99999997E-7 : f32
    %1622 = vector.broadcast %cst_517 : f32 to vector<5x1xf32>
    %1623 = arith.addf %1619, %1622 : vector<5x1xf32>
    %1624 = math.rsqrt %1623 : vector<5x1xf32>
    %1625 = vector.broadcast %1624 : vector<5x1xf32> to vector<5x32xf32>
    %1626 = arith.mulf %1621, %1625 : vector<5x32xf32>
    %1627 = vector.broadcast %1507 : vector<1x32xf32> to vector<5x32xf32>
    %1628 = arith.mulf %1626, %1627 : vector<5x32xf32>
    %1629 = vector.broadcast %1508 : vector<1x32xf32> to vector<5x32xf32>
    %1630 = arith.addf %1628, %1629 : vector<5x32xf32>
    %c10_518 = arith.constant 10 : index
    %c0_519 = arith.constant 0 : index
    %c0_520 = arith.constant 0 : index
    %1631 = vector.load %arg4[%c10_518, %c0_519, %c0_520] : memref<12x32x128xf32, #tpu.memory_space<vmem>>, vector<1x32x128xf32>
    %1632 = vector.shape_cast %1631 : vector<1x32x128xf32> to vector<32x128xf32>
    %cst_521 = arith.constant dense<0.000000e+00> : vector<5x128xf32>
    %1633 = tpu.matmul %1630, %1632, %cst_521 {dimension_numbers = #tpu.dot_dimension_numbers<[1], [0], [0], [1], [0, 0, 1, 1], [], []>} : vector<5x32xf32>, vector<32x128xf32>, vector<5x128xf32> -> vector<5x128xf32>
    %1634 = vector.broadcast %1509 : vector<1x128xf32> to vector<5x128xf32>
    %1635 = arith.addf %1633, %1634 : vector<5x128xf32>
    %cst_522 = arith.constant 5.000000e-01 : f32
    %1636 = vector.broadcast %cst_522 : f32 to vector<5x128xf32>
    %1637 = arith.mulf %1636, %1635 : vector<5x128xf32>
    %cst_523 = arith.constant 0.707106769 : f32
    %1638 = vector.broadcast %cst_523 : f32 to vector<5x128xf32>
    %1639 = arith.mulf %1635, %1638 : vector<5x128xf32>
    %1640 = math.erf %1639 : vector<5x128xf32>
    %cst_524 = arith.constant 1.000000e+00 : f32
    %1641 = vector.broadcast %cst_524 : f32 to vector<5x128xf32>
    %1642 = arith.addf %1641, %1640 : vector<5x128xf32>
    %1643 = arith.mulf %1637, %1642 : vector<5x128xf32>
    %c10_525 = arith.constant 10 : index
    %c0_526 = arith.constant 0 : index
    %c0_527 = arith.constant 0 : index
    %1644 = vector.load %arg5[%c10_525, %c0_526, %c0_527] : memref<12x128x32xf32, #tpu.memory_space<vmem>>, vector<1x128x32xf32>
    %1645 = vector.shape_cast %1644 : vector<1x128x32xf32> to vector<128x32xf32>
    %cst_528 = arith.constant dense<0.000000e+00> : vector<5x32xf32>
    %1646 = tpu.matmul %1643, %1645, %cst_528 {dimension_numbers = #tpu.dot_dimension_numbers<[1], [0], [0], [1], [0, 0, 1, 1], [], []>} : vector<5x128xf32>, vector<128x32xf32>, vector<5x32xf32> -> vector<5x32xf32>
    %1647 = arith.addf %1608, %1646 : vector<5x32xf32>
    %1648 = vector.broadcast %1510 : vector<1x32xf32> to vector<5x32xf32>
    %1649 = arith.addf %1647, %1648 : vector<5x32xf32>
    %1650 = vector.extract_strided_slice %1649 {offsets = [0, 0], sizes = [1, 32], strides = [1, 1]} : vector<5x32xf32> to vector<1x32xf32>
    %c11 = arith.constant 11 : index
    %c0_529 = arith.constant 0 : index
    %c0_530 = arith.constant 0 : index
    %1651 = vector.load %arg2[%c11, %c0_529, %c0_530] : memref<12x8x128xf32, #tpu.memory_space<vmem>>, vector<1x8x128xf32>
    %1652 = vector.shape_cast %1651 : vector<1x8x128xf32> to vector<8x128xf32>
    %1653 = vector.extract_strided_slice %1652 {offsets = [0, 0], sizes = [1, 32], strides = [1, 1]} : vector<8x128xf32> to vector<1x32xf32>
    %1654 = vector.extract_strided_slice %1652 {offsets = [1, 0], sizes = [1, 32], strides = [1, 1]} : vector<8x128xf32> to vector<1x32xf32>
    %1655 = vector.extract_strided_slice %1652 {offsets = [2, 0], sizes = [1, 96], strides = [1, 1]} : vector<8x128xf32> to vector<1x96xf32>
    %1656 = vector.extract_strided_slice %1652 {offsets = [3, 0], sizes = [1, 32], strides = [1, 1]} : vector<8x128xf32> to vector<1x32xf32>
    %1657 = vector.extract_strided_slice %1652 {offsets = [4, 0], sizes = [1, 32], strides = [1, 1]} : vector<8x128xf32> to vector<1x32xf32>
    %1658 = vector.extract_strided_slice %1652 {offsets = [5, 0], sizes = [1, 32], strides = [1, 1]} : vector<8x128xf32> to vector<1x32xf32>
    %1659 = vector.extract_strided_slice %1652 {offsets = [6, 0], sizes = [1, 128], strides = [1, 1]} : vector<8x128xf32> to vector<1x128xf32>
    %1660 = vector.extract_strided_slice %1652 {offsets = [7, 0], sizes = [1, 32], strides = [1, 1]} : vector<8x128xf32> to vector<1x32xf32>
    %c11_531 = arith.constant 11 : index
    %c0_532 = arith.constant 0 : index
    %c0_533 = arith.constant 0 : index
    %1661 = vector.load %arg3[%c11_531, %c0_532, %c0_533] : memref<12x32x128xf32, #tpu.memory_space<vmem>>, vector<1x32x128xf32>
    %1662 = vector.shape_cast %1661 : vector<1x32x128xf32> to vector<32x128xf32>
    %1663 = vector.extract_strided_slice %1662 {offsets = [0, 0], sizes = [32, 96], strides = [1, 1]} : vector<32x128xf32> to vector<32x96xf32>
    %1664 = vector.extract_strided_slice %1662 {offsets = [0, 96], sizes = [32, 32], strides = [1, 1]} : vector<32x128xf32> to vector<32x32xf32>
    %cst_534 = arith.constant dense<0.000000e+00> : vector<5xf32>
    %1665 = vector.multi_reduction <add>, %1649, %cst_534 [1] : vector<5x32xf32> to vector<5xf32>
    %1666 = vector.shape_cast %1665 : vector<5xf32> to vector<5x1xf32>
    %cst_535 = arith.constant 3.200000e+01 : f32
    %1667 = vector.broadcast %cst_535 : f32 to vector<5x1xf32>
    %1668 = arith.divf %1666, %1667 : vector<5x1xf32>
    %1669 = vector.broadcast %1668 : vector<5x1xf32> to vector<5x32xf32>
    %1670 = arith.subf %1649, %1669 : vector<5x32xf32>
    %1671 = arith.mulf %1670, %1670 : vector<5x32xf32>
    %cst_536 = arith.constant dense<0.000000e+00> : vector<5xf32>
    %1672 = vector.multi_reduction <add>, %1671, %cst_536 [1] : vector<5x32xf32> to vector<5xf32>
    %1673 = vector.shape_cast %1672 : vector<5xf32> to vector<5x1xf32>
    %cst_537 = arith.constant 3.200000e+01 : f32
    %1674 = vector.broadcast %cst_537 : f32 to vector<5x1xf32>
    %1675 = arith.divf %1673, %1674 : vector<5x1xf32>
    %1676 = vector.broadcast %1668 : vector<5x1xf32> to vector<5x32xf32>
    %1677 = arith.subf %1649, %1676 : vector<5x32xf32>
    %cst_538 = arith.constant 9.99999997E-7 : f32
    %1678 = vector.broadcast %cst_538 : f32 to vector<5x1xf32>
    %1679 = arith.addf %1675, %1678 : vector<5x1xf32>
    %1680 = math.rsqrt %1679 : vector<5x1xf32>
    %1681 = vector.broadcast %1680 : vector<5x1xf32> to vector<5x32xf32>
    %1682 = arith.mulf %1677, %1681 : vector<5x32xf32>
    %1683 = vector.broadcast %1653 : vector<1x32xf32> to vector<5x32xf32>
    %1684 = arith.mulf %1682, %1683 : vector<5x32xf32>
    %1685 = vector.broadcast %1654 : vector<1x32xf32> to vector<5x32xf32>
    %1686 = arith.addf %1684, %1685 : vector<5x32xf32>
    %cst_539 = arith.constant dense<0.000000e+00> : vector<5x96xf32>
    %1687 = tpu.matmul %1686, %1663, %cst_539 {dimension_numbers = #tpu.dot_dimension_numbers<[1], [0], [0], [1], [0, 0, 1, 1], [], []>} : vector<5x32xf32>, vector<32x96xf32>, vector<5x96xf32> -> vector<5x96xf32>
    %1688 = vector.broadcast %1655 : vector<1x96xf32> to vector<5x96xf32>
    %1689 = arith.addf %1687, %1688 : vector<5x96xf32>
    %1690 = vector.extract_strided_slice %1689 {offsets = [0, 0], sizes = [5, 8], strides = [1, 1]} : vector<5x96xf32> to vector<5x8xf32>
    %1691 = vector.extract_strided_slice %1689 {offsets = [0, 32], sizes = [5, 8], strides = [1, 1]} : vector<5x96xf32> to vector<5x8xf32>
    %1692 = vector.extract_strided_slice %1689 {offsets = [0, 64], sizes = [5, 8], strides = [1, 1]} : vector<5x96xf32> to vector<5x8xf32>
    %cst_540 = arith.constant dense<0.000000e+00> : vector<5x5xf32>
    %1693 = tpu.matmul %1690, %1691, %cst_540 {dimension_numbers = #tpu.dot_dimension_numbers<[1], [1], [0], [0], [0, 0, 1, 0], [], []>} : vector<5x8xf32>, vector<5x8xf32>, vector<5x5xf32> -> vector<5x5xf32>
    %cst_541 = arith.constant 0.353553385 : f32
    %1694 = vector.broadcast %cst_541 : f32 to vector<5x5xf32>
    %1695 = arith.mulf %1693, %1694 : vector<5x5xf32>
    %cst_542 = arith.constant dense<0xFF800000> : vector<5xf32>
    %1696 = vector.multi_reduction <maximumf>, %1695, %cst_542 [1] : vector<5x5xf32> to vector<5xf32>
    %1697 = vector.shape_cast %1696 : vector<5xf32> to vector<5x1xf32>
    %1698 = vector.broadcast %1697 : vector<5x1xf32> to vector<5x5xf32>
    %1699 = arith.subf %1695, %1698 : vector<5x5xf32>
    %1700 = math.exp %1699 : vector<5x5xf32>
    %cst_543 = arith.constant dense<0.000000e+00> : vector<5xf32>
    %1701 = vector.multi_reduction <add>, %1700, %cst_543 [1] : vector<5x5xf32> to vector<5xf32>
    %1702 = vector.shape_cast %1701 : vector<5xf32> to vector<5x1xf32>
    %1703 = vector.broadcast %1702 : vector<5x1xf32> to vector<5x5xf32>
    %1704 = arith.divf %1700, %1703 : vector<5x5xf32>
    %cst_544 = arith.constant dense<0.000000e+00> : vector<5x8xf32>
    %1705 = tpu.matmul %1704, %1692, %cst_544 {dimension_numbers = #tpu.dot_dimension_numbers<[1], [0], [0], [1], [0, 0, 1, 1], [], []>} : vector<5x5xf32>, vector<5x8xf32>, vector<5x8xf32> -> vector<5x8xf32>
    %1706 = vector.extract_strided_slice %1689 {offsets = [0, 8], sizes = [5, 8], strides = [1, 1]} : vector<5x96xf32> to vector<5x8xf32>
    %1707 = vector.extract_strided_slice %1689 {offsets = [0, 40], sizes = [5, 8], strides = [1, 1]} : vector<5x96xf32> to vector<5x8xf32>
    %1708 = vector.extract_strided_slice %1689 {offsets = [0, 72], sizes = [5, 8], strides = [1, 1]} : vector<5x96xf32> to vector<5x8xf32>
    %cst_545 = arith.constant dense<0.000000e+00> : vector<5x5xf32>
    %1709 = tpu.matmul %1706, %1707, %cst_545 {dimension_numbers = #tpu.dot_dimension_numbers<[1], [1], [0], [0], [0, 0, 1, 0], [], []>} : vector<5x8xf32>, vector<5x8xf32>, vector<5x5xf32> -> vector<5x5xf32>
    %cst_546 = arith.constant 0.353553385 : f32
    %1710 = vector.broadcast %cst_546 : f32 to vector<5x5xf32>
    %1711 = arith.mulf %1709, %1710 : vector<5x5xf32>
    %cst_547 = arith.constant dense<0xFF800000> : vector<5xf32>
    %1712 = vector.multi_reduction <maximumf>, %1711, %cst_547 [1] : vector<5x5xf32> to vector<5xf32>
    %1713 = vector.shape_cast %1712 : vector<5xf32> to vector<5x1xf32>
    %1714 = vector.broadcast %1713 : vector<5x1xf32> to vector<5x5xf32>
    %1715 = arith.subf %1711, %1714 : vector<5x5xf32>
    %1716 = math.exp %1715 : vector<5x5xf32>
    %cst_548 = arith.constant dense<0.000000e+00> : vector<5xf32>
    %1717 = vector.multi_reduction <add>, %1716, %cst_548 [1] : vector<5x5xf32> to vector<5xf32>
    %1718 = vector.shape_cast %1717 : vector<5xf32> to vector<5x1xf32>
    %1719 = vector.broadcast %1718 : vector<5x1xf32> to vector<5x5xf32>
    %1720 = arith.divf %1716, %1719 : vector<5x5xf32>
    %cst_549 = arith.constant dense<0.000000e+00> : vector<5x8xf32>
    %1721 = tpu.matmul %1720, %1708, %cst_549 {dimension_numbers = #tpu.dot_dimension_numbers<[1], [0], [0], [1], [0, 0, 1, 1], [], []>} : vector<5x5xf32>, vector<5x8xf32>, vector<5x8xf32> -> vector<5x8xf32>
    %1722 = vector.extract_strided_slice %1689 {offsets = [0, 16], sizes = [5, 8], strides = [1, 1]} : vector<5x96xf32> to vector<5x8xf32>
    %1723 = vector.extract_strided_slice %1689 {offsets = [0, 48], sizes = [5, 8], strides = [1, 1]} : vector<5x96xf32> to vector<5x8xf32>
    %1724 = vector.extract_strided_slice %1689 {offsets = [0, 80], sizes = [5, 8], strides = [1, 1]} : vector<5x96xf32> to vector<5x8xf32>
    %cst_550 = arith.constant dense<0.000000e+00> : vector<5x5xf32>
    %1725 = tpu.matmul %1722, %1723, %cst_550 {dimension_numbers = #tpu.dot_dimension_numbers<[1], [1], [0], [0], [0, 0, 1, 0], [], []>} : vector<5x8xf32>, vector<5x8xf32>, vector<5x5xf32> -> vector<5x5xf32>
    %cst_551 = arith.constant 0.353553385 : f32
    %1726 = vector.broadcast %cst_551 : f32 to vector<5x5xf32>
    %1727 = arith.mulf %1725, %1726 : vector<5x5xf32>
    %cst_552 = arith.constant dense<0xFF800000> : vector<5xf32>
    %1728 = vector.multi_reduction <maximumf>, %1727, %cst_552 [1] : vector<5x5xf32> to vector<5xf32>
    %1729 = vector.shape_cast %1728 : vector<5xf32> to vector<5x1xf32>
    %1730 = vector.broadcast %1729 : vector<5x1xf32> to vector<5x5xf32>
    %1731 = arith.subf %1727, %1730 : vector<5x5xf32>
    %1732 = math.exp %1731 : vector<5x5xf32>
    %cst_553 = arith.constant dense<0.000000e+00> : vector<5xf32>
    %1733 = vector.multi_reduction <add>, %1732, %cst_553 [1] : vector<5x5xf32> to vector<5xf32>
    %1734 = vector.shape_cast %1733 : vector<5xf32> to vector<5x1xf32>
    %1735 = vector.broadcast %1734 : vector<5x1xf32> to vector<5x5xf32>
    %1736 = arith.divf %1732, %1735 : vector<5x5xf32>
    %cst_554 = arith.constant dense<0.000000e+00> : vector<5x8xf32>
    %1737 = tpu.matmul %1736, %1724, %cst_554 {dimension_numbers = #tpu.dot_dimension_numbers<[1], [0], [0], [1], [0, 0, 1, 1], [], []>} : vector<5x5xf32>, vector<5x8xf32>, vector<5x8xf32> -> vector<5x8xf32>
    %1738 = vector.extract_strided_slice %1689 {offsets = [0, 24], sizes = [5, 8], strides = [1, 1]} : vector<5x96xf32> to vector<5x8xf32>
    %1739 = vector.extract_strided_slice %1689 {offsets = [0, 56], sizes = [5, 8], strides = [1, 1]} : vector<5x96xf32> to vector<5x8xf32>
    %1740 = vector.extract_strided_slice %1689 {offsets = [0, 88], sizes = [5, 8], strides = [1, 1]} : vector<5x96xf32> to vector<5x8xf32>
    %cst_555 = arith.constant dense<0.000000e+00> : vector<5x5xf32>
    %1741 = tpu.matmul %1738, %1739, %cst_555 {dimension_numbers = #tpu.dot_dimension_numbers<[1], [1], [0], [0], [0, 0, 1, 0], [], []>} : vector<5x8xf32>, vector<5x8xf32>, vector<5x5xf32> -> vector<5x5xf32>
    %cst_556 = arith.constant 0.353553385 : f32
    %1742 = vector.broadcast %cst_556 : f32 to vector<5x5xf32>
    %1743 = arith.mulf %1741, %1742 : vector<5x5xf32>
    %cst_557 = arith.constant dense<0xFF800000> : vector<5xf32>
    %1744 = vector.multi_reduction <maximumf>, %1743, %cst_557 [1] : vector<5x5xf32> to vector<5xf32>
    %1745 = vector.shape_cast %1744 : vector<5xf32> to vector<5x1xf32>
    %1746 = vector.broadcast %1745 : vector<5x1xf32> to vector<5x5xf32>
    %1747 = arith.subf %1743, %1746 : vector<5x5xf32>
    %1748 = math.exp %1747 : vector<5x5xf32>
    %cst_558 = arith.constant dense<0.000000e+00> : vector<5xf32>
    %1749 = vector.multi_reduction <add>, %1748, %cst_558 [1] : vector<5x5xf32> to vector<5xf32>
    %1750 = vector.shape_cast %1749 : vector<5xf32> to vector<5x1xf32>
    %1751 = vector.broadcast %1750 : vector<5x1xf32> to vector<5x5xf32>
    %1752 = arith.divf %1748, %1751 : vector<5x5xf32>
    %cst_559 = arith.constant dense<0.000000e+00> : vector<5x8xf32>
    %1753 = tpu.matmul %1752, %1740, %cst_559 {dimension_numbers = #tpu.dot_dimension_numbers<[1], [0], [0], [1], [0, 0, 1, 1], [], []>} : vector<5x5xf32>, vector<5x8xf32>, vector<5x8xf32> -> vector<5x8xf32>
    %1754 = tpu.concatenate %1705, %1721, %1737, %1753 in 1 : vector<5x8xf32>, vector<5x8xf32>, vector<5x8xf32>, vector<5x8xf32> -> vector<5x32xf32>
    %cst_560 = arith.constant dense<0.000000e+00> : vector<5x32xf32>
    %1755 = tpu.matmul %1754, %1664, %cst_560 {dimension_numbers = #tpu.dot_dimension_numbers<[1], [0], [0], [1], [0, 0, 1, 1], [], []>} : vector<5x32xf32>, vector<32x32xf32>, vector<5x32xf32> -> vector<5x32xf32>
    %1756 = arith.addf %1649, %1755 : vector<5x32xf32>
    %1757 = vector.broadcast %1656 : vector<1x32xf32> to vector<5x32xf32>
    %1758 = arith.addf %1756, %1757 : vector<5x32xf32>
    %cst_561 = arith.constant dense<0.000000e+00> : vector<5xf32>
    %1759 = vector.multi_reduction <add>, %1758, %cst_561 [1] : vector<5x32xf32> to vector<5xf32>
    %1760 = vector.shape_cast %1759 : vector<5xf32> to vector<5x1xf32>
    %cst_562 = arith.constant 3.200000e+01 : f32
    %1761 = vector.broadcast %cst_562 : f32 to vector<5x1xf32>
    %1762 = arith.divf %1760, %1761 : vector<5x1xf32>
    %1763 = vector.broadcast %1762 : vector<5x1xf32> to vector<5x32xf32>
    %1764 = arith.subf %1758, %1763 : vector<5x32xf32>
    %1765 = arith.mulf %1764, %1764 : vector<5x32xf32>
    %cst_563 = arith.constant dense<0.000000e+00> : vector<5xf32>
    %1766 = vector.multi_reduction <add>, %1765, %cst_563 [1] : vector<5x32xf32> to vector<5xf32>
    %1767 = vector.shape_cast %1766 : vector<5xf32> to vector<5x1xf32>
    %cst_564 = arith.constant 3.200000e+01 : f32
    %1768 = vector.broadcast %cst_564 : f32 to vector<5x1xf32>
    %1769 = arith.divf %1767, %1768 : vector<5x1xf32>
    %1770 = vector.broadcast %1762 : vector<5x1xf32> to vector<5x32xf32>
    %1771 = arith.subf %1758, %1770 : vector<5x32xf32>
    %cst_565 = arith.constant 9.99999997E-7 : f32
    %1772 = vector.broadcast %cst_565 : f32 to vector<5x1xf32>
    %1773 = arith.addf %1769, %1772 : vector<5x1xf32>
    %1774 = math.rsqrt %1773 : vector<5x1xf32>
    %1775 = vector.broadcast %1774 : vector<5x1xf32> to vector<5x32xf32>
    %1776 = arith.mulf %1771, %1775 : vector<5x32xf32>
    %1777 = vector.broadcast %1657 : vector<1x32xf32> to vector<5x32xf32>
    %1778 = arith.mulf %1776, %1777 : vector<5x32xf32>
    %1779 = vector.broadcast %1658 : vector<1x32xf32> to vector<5x32xf32>
    %1780 = arith.addf %1778, %1779 : vector<5x32xf32>
    %c11_566 = arith.constant 11 : index
    %c0_567 = arith.constant 0 : index
    %c0_568 = arith.constant 0 : index
    %1781 = vector.load %arg4[%c11_566, %c0_567, %c0_568] : memref<12x32x128xf32, #tpu.memory_space<vmem>>, vector<1x32x128xf32>
    %1782 = vector.shape_cast %1781 : vector<1x32x128xf32> to vector<32x128xf32>
    %cst_569 = arith.constant dense<0.000000e+00> : vector<5x128xf32>
    %1783 = tpu.matmul %1780, %1782, %cst_569 {dimension_numbers = #tpu.dot_dimension_numbers<[1], [0], [0], [1], [0, 0, 1, 1], [], []>} : vector<5x32xf32>, vector<32x128xf32>, vector<5x128xf32> -> vector<5x128xf32>
    %1784 = vector.broadcast %1659 : vector<1x128xf32> to vector<5x128xf32>
    %1785 = arith.addf %1783, %1784 : vector<5x128xf32>
    %cst_570 = arith.constant 5.000000e-01 : f32
    %1786 = vector.broadcast %cst_570 : f32 to vector<5x128xf32>
    %1787 = arith.mulf %1786, %1785 : vector<5x128xf32>
    %cst_571 = arith.constant 0.707106769 : f32
    %1788 = vector.broadcast %cst_571 : f32 to vector<5x128xf32>
    %1789 = arith.mulf %1785, %1788 : vector<5x128xf32>
    %1790 = math.erf %1789 : vector<5x128xf32>
    %cst_572 = arith.constant 1.000000e+00 : f32
    %1791 = vector.broadcast %cst_572 : f32 to vector<5x128xf32>
    %1792 = arith.addf %1791, %1790 : vector<5x128xf32>
    %1793 = arith.mulf %1787, %1792 : vector<5x128xf32>
    %c11_573 = arith.constant 11 : index
    %c0_574 = arith.constant 0 : index
    %c0_575 = arith.constant 0 : index
    %1794 = vector.load %arg5[%c11_573, %c0_574, %c0_575] : memref<12x128x32xf32, #tpu.memory_space<vmem>>, vector<1x128x32xf32>
    %1795 = vector.shape_cast %1794 : vector<1x128x32xf32> to vector<128x32xf32>
    %cst_576 = arith.constant dense<0.000000e+00> : vector<5x32xf32>
    %1796 = tpu.matmul %1793, %1795, %cst_576 {dimension_numbers = #tpu.dot_dimension_numbers<[1], [0], [0], [1], [0, 0, 1, 1], [], []>} : vector<5x128xf32>, vector<128x32xf32>, vector<5x32xf32> -> vector<5x32xf32>
    %1797 = arith.addf %1758, %1796 : vector<5x32xf32>
    %1798 = vector.broadcast %1660 : vector<1x32xf32> to vector<5x32xf32>
    %1799 = arith.addf %1797, %1798 : vector<5x32xf32>
    %1800 = vector.extract_strided_slice %1799 {offsets = [0, 0], sizes = [1, 32], strides = [1, 1]} : vector<5x32xf32> to vector<1x32xf32>
    %1801 = tpu.concatenate %150, %300, %450, %600, %750, %900, %1050, %1200, %1350, %1500, %1650, %1800 in 0 : vector<1x32xf32>, vector<1x32xf32>, vector<1x32xf32>, vector<1x32xf32>, vector<1x32xf32>, vector<1x32xf32>, vector<1x32xf32>, vector<1x32xf32>, vector<1x32xf32>, vector<1x32xf32>, vector<1x32xf32>, vector<1x32xf32> -> vector<12x32xf32>
    %c0_577 = arith.constant 0 : index
    %c0_578 = arith.constant 0 : index
    %1802 = vector.load %arg1[%c0_577, %c0_578] : memref<2x32xf32, #tpu.memory_space<vmem>>, vector<1x32xf32>
    %c1_579 = arith.constant 1 : index
    %c0_580 = arith.constant 0 : index
    %1803 = vector.load %arg1[%c1_579, %c0_580] : memref<2x32xf32, #tpu.memory_space<vmem>>, vector<1x32xf32>
    %cst_581 = arith.constant dense<0.000000e+00> : vector<12xf32>
    %1804 = vector.multi_reduction <add>, %1801, %cst_581 [1] : vector<12x32xf32> to vector<12xf32>
    %1805 = vector.shape_cast %1804 : vector<12xf32> to vector<12x1xf32>
    %cst_582 = arith.constant 3.200000e+01 : f32
    %1806 = vector.broadcast %cst_582 : f32 to vector<12x1xf32>
    %1807 = arith.divf %1805, %1806 : vector<12x1xf32>
    %1808 = vector.broadcast %1807 : vector<12x1xf32> to vector<12x32xf32>
    %1809 = arith.subf %1801, %1808 : vector<12x32xf32>
    %1810 = arith.mulf %1809, %1809 : vector<12x32xf32>
    %cst_583 = arith.constant dense<0.000000e+00> : vector<12xf32>
    %1811 = vector.multi_reduction <add>, %1810, %cst_583 [1] : vector<12x32xf32> to vector<12xf32>
    %1812 = vector.shape_cast %1811 : vector<12xf32> to vector<12x1xf32>
    %cst_584 = arith.constant 3.200000e+01 : f32
    %1813 = vector.broadcast %cst_584 : f32 to vector<12x1xf32>
    %1814 = arith.divf %1812, %1813 : vector<12x1xf32>
    %1815 = vector.broadcast %1807 : vector<12x1xf32> to vector<12x32xf32>
    %1816 = arith.subf %1801, %1815 : vector<12x32xf32>
    %cst_585 = arith.constant 9.99999997E-7 : f32
    %1817 = vector.broadcast %cst_585 : f32 to vector<12x1xf32>
    %1818 = arith.addf %1814, %1817 : vector<12x1xf32>
    %1819 = math.rsqrt %1818 : vector<12x1xf32>
    %1820 = vector.broadcast %1819 : vector<12x1xf32> to vector<12x32xf32>
    %1821 = arith.mulf %1816, %1820 : vector<12x32xf32>
    %1822 = vector.broadcast %1802 : vector<1x32xf32> to vector<12x32xf32>
    %1823 = arith.mulf %1821, %1822 : vector<12x32xf32>
    %1824 = vector.broadcast %1803 : vector<1x32xf32> to vector<12x32xf32>
    %1825 = arith.addf %1823, %1824 : vector<12x32xf32>
    %c0_586 = arith.constant 0 : index
    %c0_587 = arith.constant 0 : index
    %1826 = vector.load %arg6[%c0_586, %c0_587] : memref<12x32xf32, #tpu.memory_space<vmem>>, vector<12x32xf32>
    tpu.vector_store %arg6[%c0_586, %c0_587], %1825 {strides = array<i32>} : memref<12x32xf32, #tpu.memory_space<vmem>>, vector<12x32xf32>,
    %c0_588 = arith.constant 0 : index
    %c0_589 = arith.constant 0 : index
    %c0_590 = arith.constant 0 : index
    %1827 = vector.load %arg7[%c0_588, %c0_589, %c0_590] : memref<4x5x5xf32, #tpu.memory_space<vmem>>, vector<1x5x5xf32>
    %1828 = vector.shape_cast %1827 : vector<1x5x5xf32> to vector<5x5xf32>
    %1829 = vector.shape_cast %1704 : vector<5x5xf32> to vector<1x5x5xf32>
    tpu.vector_store %arg7[%c0_588, %c0_589, %c0_590], %1829 {strides = array<i32>} : memref<4x5x5xf32, #tpu.memory_space<vmem>>, vector<1x5x5xf32>,
    %c1_591 = arith.constant 1 : index
    %c0_592 = arith.constant 0 : index
    %c0_593 = arith.constant 0 : index
    %1830 = vector.load %arg7[%c1_591, %c0_592, %c0_593] : memref<4x5x5xf32, #tpu.memory_space<vmem>>, vector<1x5x5xf32>
    %1831 = vector.shape_cast %1830 : vector<1x5x5xf32> to vector<5x5xf32>
    %1832 = vector.shape_cast %1720 : vector<5x5xf32> to vector<1x5x5xf32>
    tpu.vector_store %arg7[%c1_591, %c0_592, %c0_593], %1832 {strides = array<i32>} : memref<4x5x5xf32, #tpu.memory_space<vmem>>, vector<1x5x5xf32>,
    %c2_594 = arith.constant 2 : index
    %c0_595 = arith.constant 0 : index
    %c0_596 = arith.constant 0 : index
    %1833 = vector.load %arg7[%c2_594, %c0_595, %c0_596] : memref<4x5x5xf32, #tpu.memory_space<vmem>>, vector<1x5x5xf32>
    %1834 = vector.shape_cast %1833 : vector<1x5x5xf32> to vector<5x5xf32>
    %1835 = vector.shape_cast %1736 : vector<5x5xf32> to vector<1x5x5xf32>
    tpu.vector_store %arg7[%c2_594, %c0_595, %c0_596], %1835 {strides = array<i32>} : memref<4x5x5xf32, #tpu.memory_space<vmem>>, vector<1x5x5xf32>,
    %c3_597 = arith.constant 3 : index
    %c0_598 = arith.constant 0 : index
    %c0_599 = arith.constant 0 : index
    %1836 = vector.load %arg7[%c3_597, %c0_598, %c0_599] : memref<4x5x5xf32, #tpu.memory_space<vmem>>, vector<1x5x5xf32>
    %1837 = vector.shape_cast %1836 : vector<1x5x5xf32> to vector<5x5xf32>
    %1838 = vector.shape_cast %1752 : vector<5x5xf32> to vector<1x5x5xf32>
    tpu.vector_store %arg7[%c3_597, %c0_598, %c0_599], %1838 {strides = array<i32>} : memref<4x5x5xf32, #tpu.memory_space<vmem>>, vector<1x5x5xf32>,
    return
  }
}

</mosaic_0001>

<bundles_post_ra>
// kernel: dino_forward.1
= control target key start
LH: loop header
LB: loop body
LE: loop exit
PB: predicated region body
PF: predicated region fallthrough
CT: control target
= control target key end

     0   :  { %vm31_vm0 = vcmask 258048   ;;  %v16469_v7 = vmov 0.0|0.0   ;;  %vm16470_vm1 = vmmov 0   ;;  %v16471_v11 = vmov 0.0   ;;  %s16472_s12 = smov 120   ;;  %s16473_s13 = smov 96   ;;  %s19392_s0 = inlined_call_operand.vmem [shape: f32[5,32], index: 0, kind: input, shape index: {}]   ;;  %s19393_s3 = inlined_call_operand.vmem [shape: f32[12,32,128], index: 3, kind: input, shape index: {}]   ;;  %s19394_s2 = inlined_call_operand.vmem [shape: f32[12,8,128], index: 2, kind: input, shape index: {}]   ;;  %s19395_s4 = inlined_call_operand.vmem [shape: f32[12,32,128], index: 4, kind: input, shape index: {}]   ;;  %s19396_s5 = inlined_call_operand.vmem [shape: f32[12,128,32], index: 5, kind: input, shape index: {}]   ;;  %s19397_s7 = inlined_call_operand.vmem [shape: f32[4,5,5], index: 7, kind: output, shape index: {1}]   ;;  %s19398_s1 = inlined_call_operand.vmem [shape: f32[2,32], index: 1, kind: input, shape index: {}]   ;;  %s19399_s6 = inlined_call_operand.vmem [shape: f32[12,32], index: 6, kind: output, shape index: {0}]  }
   0x1   :  { %v16530_v0 = vld [vmem:[%s19392_s0] sm:$0x1f]  ;;  %15559 = vmatprep.subr.bf16.mxu1 %v16469_v7  ;;  %v16545_v9 = vld [vmem:[%s19393_s3 + $0x8] sm:$0xff]  ;;  %v16550_v10 = vld [vmem:[%s19393_s3 + $0x10] sm:$0xff]  ;;  %14271 = vmatprep.mubr.msk.f32.mxu1 %vm16470_vm1, %v16471_v11  ;;  %v46_v18 = vlaneseq  ;;  %vm60_vm2 = vcmask 261120   ;;  %s16474_s14 = smov 88  }
   0x2   :  { %v32_v1 = vsel %vm31_vm0, %v16530_v0, 0.0  ;;  %v16540_v8 = vld [vmem:[%s19393_s3] sm:$0xff]  ;;  %v16561_v14 = vld [vmem:[%s19393_s3 + $0x18] sm:$0xff]  ;;  %14284 = vmatprep.subr.mxu0 %v16471_v11  ;;  %14286 = vmatprep.mubr.msk.f32.mxu0 %vm16470_vm1, %v16471_v11  ;;  %s16475_s15 = smov 80   ;;  %s16476_s16 = smov 112   ;;  %vm137_vm3 = vcmask 64512  }
   0x3   :  { %33 = vadd.xlane.f32.xlu0 %v32_v1  ;;  %v16081_v12 = vpack.i.bf16 %v16545_v9, %v16540_v8  ;;  %v15560_v13 = vpack.c.bf16 %v16545_v9, %v16540_v8  ;;  %v15563_v15 = vpack.c.bf16 %v16561_v14, %v16550_v10  ;;  %v16570_v20 = vshrl.u32 %v46_v18, 7  ;;  %v16578_v22 = vld [vmem:[%s19394_s2] sm:$0xff]  ;;  %s16477_s17 = smov 72   ;;  %s16478_s18 = smov 104  }
   0x4   :  { %vm213_vm4 = vcmask 36864   ;;  %s16479_s19 = smov 64   ;;  %vm231_vm5 = vcmask 1044480   ;;  %s16480_s20 = smov 48   ;;  %vm227_vm6 = vcmask 39936   ;;  %vm818_vm7 = vcmask 130048  }
   0x5   :  { %15561 = vmatpush3.bf16.msra.mxu1 %v15560_v13  ;;  %v16573_v21 = vsub.s32 0, %v16570_v20  ;;  %v16581_v23 = vsub.s32 1, %v16570_v20  ;;  %v16591_v30 = vsub.s32 2, %v16570_v20  ;;  %s16481_s21 = smov 40   ;;  %s16482_s22 = smov 56   ;;  %vm820_vm8 = vcmask 195584  }
   0x6   :  { %15562 = vmatprep.subr.bf16.mxu1 %v16469_v7  ;;  %s16483_s23 = smov 32   ;;  %s16484_s24 = smov 8   ;;  %vm13105_vm9 = vcmask 1040384   ;;  %vm13107_vm10 = vcmask 1041408   ;;  %vm13109_vm11 = vcmask 1042432   ;;  %vm13111_vm12 = vcmask 1043456  }
   0x7   :  { %v49_v24 = vrot.slane %v16578_v22, %v16573_v21  ;;  %v54_v27 = vrot.slane %v16578_v22, %v16581_v23  ;;  %v59_v31 = vrot.slane %v16578_v22, %v16591_v30  ;;  %s16485_s25 = smov 16   ;;  %s16486_s26 = smov 24   ;;  %vm13114_vm13 = vcmask 1045504  }
   0x8   :  { %vm13116_vm14 = vcmask 1046528   ;;  %vm13126_vm15 = vcmask 257024  }
   0x9   :  { %15564 = vmatpush3.bf16.msra.mxu1 %v15563_v15 }
   0xa   :  { %14274 = vmatprep.subr.mxu1 %v16471_v11 }
  0x90   :  { %v34_v2 = vpop.xlane.xlu0 %33 }
  0x91   :  { %v36_v3 = vmul.f32 0.03125, %v34_v2 }
  0x93   :  { %v37_v4 = vsub.f32 %v16530_v0, %v36_v3 }
  0x95   :  { %v38_v5 = vmul.f32 %v37_v4, %v37_v4 }
  0x97   :  { %v39_v6 = vsel %vm31_vm0, %v38_v5, 0.0 }
  0x98   :  { %40 = vadd.xlane.f32.xlu0 %v39_v6 }
 0x125   :  { %v41_v16 = vpop.xlane.xlu0 %40 }
 0x126   :  { %v42_v17 = vmul.f32 0.03125, %v41_v16 }
 0x128   :  { %v43_v19 = vadd.f32 1e-06, %v42_v17 }
 0x12a   :  { %16201 = vrsqrt.f32 %v43_v19 }
 0x134   :  { %v16202_v25 = vpop.eup %16201 }
 0x135   :  { %v45_v26 = vmul.f32 %v16202_v25, %v37_v4 }
 0x137   :  { %v50_v28 = vmul.f32 %v49_v24, %v45_v26 }
 0x139   :  { %v55_v29 = vadd.f32 %v54_v27, %v50_v28 }
 0x13b   :  { %14272 = vmatmul.mubr.msk.f32.vlgmr.msra.gmra.mrb[0].mxu1 %vm60_vm2, %v55_v29 }
 0x13c   :  { %14276 = vmatprep.mubr.msk.f32.mxu1 %vm16470_vm1, %v16471_v11 }
 0x20e   :  { %v130_v32 = vpop.f32.mrb[0].mxu1 }
 0x20f   :  { %v16595_v33 = vadd.f32 %v130_v32, %v59_v31  ;;  %v14273_v34 = vpop.f32.mrb[1].mxu1 }
 0x211   :  { %304 = vrot.lane.b32.xlu0 %v16595_v33, %s16472_s12  ;;  %135 = vrot.lane.b32.xlu1 %v16595_v33, %s16473_s13 }
 0x215   :  { %306 = vrot.lane.b32.xlu1 %v16595_v33, %s16474_s14 }
 0x219   :  { %473 = vrot.lane.b32.xlu1 %v16595_v33, %s16475_s15 }
 0x21d   :  { %471 = vrot.lane.b32.xlu1 %v16595_v33, %s16476_s16 }
 0x221   :  { %640 = vrot.lane.b32.xlu1 %v16595_v33, %s16477_s17 }
 0x225   :  { %638 = vrot.lane.b32.xlu1 %v16595_v33, %s16478_s18 }
 0x283   :  { %v136_v35 = vpop.permute.xlu1 %135  ;;  %v305_v37 = vpop.permute.xlu0 %304 }
 0x284   :  { %14275 = vmatpush3.xpose.msk.msra.mxu1 %vm137_vm3, %v136_v35 }
 0x285   :  { %14279 = vmatprep.subr.mxu1 %v16471_v11 }
 0x287   :  { %14277 = vmatmul.mubr.msk.f32.vlgmr.msra.gmra.mrb[2].mxu1 %vm137_vm3, %v16595_v33  ;;  %v307_v36 = vpop.permute.xlu1 %306 }
 0x288   :  { %14285 = vmatpush3.xpose.msk.msra.mxu0 %vm137_vm3, %v307_v36  ;;  %14281 = vmatprep.mubr.msk.f32.mxu1 %vm16470_vm1, %v16471_v11 }
 0x289   :  { %14294 = vmatprep.subr.mxu0 %v16471_v11 }
 0x28b   :  { %14287 = vmatmul.mubr.msk.f32.vlgmr.msra.gmra.mrb[0].mxu0 %vm137_vm3, %v305_v37  ;;  %v474_v38 = vpop.permute.xlu1 %473 }
 0x28c   :  { %14295 = vmatpush3.xpose.msk.msra.mxu0 %vm137_vm3, %v474_v38  ;;  %14296 = vmatprep.mubr.msk.f32.mxu0 %vm16470_vm1, %v16471_v11 }
 0x28d   :  { %14304 = vmatprep.subr.mxu0 %v16471_v11 }
 0x28f   :  { %v472_v39 = vpop.permute.xlu1 %471 }
 0x290   :  { %14297 = vmatmul.mubr.msk.f32.vlgmr.msra.gmra.mrb[2].mxu0 %vm137_vm3, %v472_v39 }
 0x291   :  { %14306 = vmatprep.mubr.msk.f32.mxu0 %vm16470_vm1, %v16471_v11 }
 0x293   :  { %v641_v40 = vpop.permute.xlu1 %640 }
 0x294   :  { %14305 = vmatpush3.xpose.msk.msra.mxu0 %vm137_vm3, %v641_v40 }
 0x295   :  { %15577 = vmatprep.subr.bf16.mxu0 %v16469_v7 }
 0x297   :  { %v639_v41 = vpop.permute.xlu1 %638 }
 0x298   :  { %14307 = vmatmul.mubr.msk.f32.vlgmr.msra.gmra.mrb[4].mxu0 %vm137_vm3, %v639_v41 }
 0x299   :  { %14368 = vmatprep.mubr.msk.f32.mxu0 %vm16470_vm1, %v16471_v11 }
 0x35a   :  { %v208_v42 = vpop.f32.mrb[2].mxu1 }
 0x35b   :  { %v212_v43 = vmul.f32 0.35355338, %v208_v42  ;;  %v14278_v44 = vpop.f32.mrb[3].mxu1 }
 0x35d   :  { %v214_v45 = vsel %vm213_vm4, %v212_v43, -inf }
 0x35e   :  { %v378_v46 = vpop.f32.mrb[0].mxu0  ;;  %215 = vmax.xlane.f32.xlu1 %v214_v45 }
 0x35f   :  { %v382_v47 = vmul.f32 0.35355338, %v378_v46  ;;  %v14288_v48 = vpop.f32.mrb[1].mxu0 }
 0x361   :  { %v383_v49 = vsel %vm213_vm4, %v382_v47, -inf }
 0x362   :  { %384 = vmax.xlane.f32.xlu0 %v383_v49 }
 0x363   :  { %v545_v50 = vpop.f32.mrb[2].mxu0 }
 0x364   :  { %v549_v51 = vmul.f32 0.35355338, %v545_v50  ;;  %v14298_v52 = vpop.f32.mrb[3].mxu0 }
 0x366   :  { %v550_v53 = vsel %vm213_vm4, %v549_v51, -inf }
 0x367   :  { %551 = vmax.xlane.f32.xlu1 %v550_v53 }
 0x36b   :  { %v712_v54 = vpop.f32.mrb[4].mxu0 }
 0x36c   :  { %v716_v55 = vmul.f32 0.35355338, %v712_v54  ;;  %v14308_v56 = vpop.f32.mrb[5].mxu0 }
 0x36e   :  { %v717_v57 = vsel %vm213_vm4, %v716_v55, -inf }
 0x36f   :  { %718 = vmax.xlane.f32.xlu0 %v717_v57 }
 0x378   :  { %225 = vrot.lane.b32.xlu1 %v16595_v33, %s16479_s19 }
 0x3eb   :  { %v216_v58 = vpop.xlane.xlu1 %215 }
 0x3ec   :  { %v217_v59 = vsub.f32 %v212_v43, %v216_v58  ;;  %v16086_v43 = vpack.i.bf16 %v16561_v14, %v16550_v10 }
 0x3ee   :  { %v218_v60 = vmul.f32 1.442695, %v217_v59 }
 0x3ef   :  { %v385_v61 = vpop.xlane.xlu0 %384 }
 0x3f0   :  { %16203 = vpow2.f32 %v218_v60  ;;  %v386_v62 = vsub.f32 %v382_v47, %v385_v61  ;;  %v16687_v61 = vsub.s32 3, %v16570_v20 }
 0x3f2   :  { %v387_v63 = vmul.f32 1.442695, %v386_v62  ;;  %v915_v62 = vrot.slane %v16578_v22, %v16687_v61 }
 0x3f4   :  { %16205 = vpow2.f32 %v387_v63  ;;  %v552_v1 = vpop.xlane.xlu1 %551 }
 0x3f5   :  { %v553_v2 = vsub.f32 %v549_v51, %v552_v1 }
 0x3f7   :  { %v554_v3 = vmul.f32 1.442695, %v553_v2 }
 0x3f8   :  { %v226_v4 = vpop.permute.xlu1 %225 }
 0x3f9   :  { %16207 = vpow2.f32 %v554_v3  ;;  %14280 = vmatpush3.msk.msra.mxu1 %vm231_vm5, %v226_v4 }
 0x3fa   :  { %v16204_v5 = vpop.eup %16203  ;;  %14289 = vmatprep.subr.mxu1 %v16471_v11 }
 0x3fb   :  { %v220_v6 = vsel %vm213_vm4, %v16204_v5, 0.0 }
 0x3fc   :  { %v719_v13 = vpop.xlane.xlu0 %718  ;;  %221 = vadd.xlane.f32.xlu1 %v220_v6 }
 0x3fd   :  { %v720_v15 = vsub.f32 %v716_v55, %v719_v13 }
 0x3fe   :  { %v16206_v16 = vpop.eup %16205 }
 0x3ff   :  { %v721_v17 = vmul.f32 1.442695, %v720_v15  ;;  %v389_v18 = vsel %vm213_vm4, %v16206_v16, 0.0 }
 0x400   :  { %390 = vadd.xlane.f32.xlu0 %v389_v18 }
 0x401   :  { %16209 = vpow2.f32 %v721_v17  ;;  %v940_v17 = vld [vmem:[%s19395_s4] sm:$0xff] }
 0x403   :  { %v16208_v19 = vpop.eup %16207 }
 0x404   :  { %v556_v24 = vsel %vm213_vm4, %v16208_v19, 0.0 }
 0x405   :  { %557 = vadd.xlane.f32.xlu1 %v556_v24  ;;  %v943_v24 = vld [vmem:[%s19395_s4 + $0x18] sm:$0xff] }
 0x40b   :  { %v16210_v25 = vpop.eup %16209 }
 0x40c   :  { %v723_v26 = vsel %vm213_vm4, %v16210_v25, 0.0 }
 0x40d   :  { %724 = vadd.xlane.f32.xlu0 %v723_v26  ;;  %v1026_v26 = vld [vmem:[%s19396_s5] sm:$0xff] }
 0x416   :  { %561 = vrot.lane.b32.xlu1 %v16595_v33, %s16480_s20 }
 0x41a   :  { %728 = vrot.lane.b32.xlu1 %v16595_v33, %s16481_s21 }
 0x41e   :  { %16087 = vrot.lane.b32.xlu1 %v16086_v43, %s16483_s23 }
 0x423   :  { %394 = vrot.lane.b32.xlu0 %v16595_v33, %s16482_s22 }
 0x427   :  { %16082 = vrot.lane.b32.xlu0 %v16081_v12, %s16483_s23 }
 0x489   :  { %v222_v27 = vpop.xlane.xlu1 %221 }
 0x48a   :  { %16211 = vrcp.f32 %v222_v27  ;;  %v1027_v27 = vld [vmem:[%s19396_s5 + $0x8] sm:$0xff] }
 0x48d   :  { %v391_v28 = vpop.xlane.xlu0 %390 }
 0x48e   :  { %16213 = vrcp.f32 %v391_v28  ;;  %v1028_v28 = vld [vmem:[%s19396_s5 + $0x10] sm:$0xff] }
 0x492   :  { %v558_v29 = vpop.xlane.xlu1 %557 }
 0x493   :  { %16215 = vrcp.f32 %v558_v29  ;;  %v15578_v29 = vpack.c.bf16 %v1027_v27, %v1026_v26 }
 0x494   :  { %v16212_v31 = vpop.eup %16211 }
 0x495   :  { %v224_v32 = vmul.f32 %v16212_v31, %v16204_v5  ;;  %v1029_v31 = vld [vmem:[%s19396_s5 + $0x18] sm:$0xff]  ;;  %15579 = vmatpush3.bf16.msra.mxu0 %v15578_v29 }
 0x496   :  { %v562_v36 = vpop.permute.xlu1 %561  ;;  %15580 = vmatprep.subr.bf16.mxu0 %v16469_v7  ;;  %v16820_v29 = vld [vmem:[%s19393_s3 + $0x38] sm:$0xff] }
 0x497   :  { %14282 = vmatmul.mubr.msk.f32.vlgmr.msra.gmra.mrb[4].mxu1 %vm227_vm6, %v224_v32  ;;  %v15581_v32 = vpack.c.bf16 %v1029_v31, %v1028_v28  ;;  %v16815_v28 = vld [vmem:[%s19393_s3 + $0x30] sm:$0xff] }
 0x498   :  { %14291 = vmatprep.mubr.msk.f32.mxu1 %vm16470_vm1, %v16471_v11  ;;  %v16214_v35 = vpop.eup %16213  ;;  %v15605_v31 = vpack.c.bf16 %v16820_v29, %v16815_v28 }
 0x499   :  { %v393_v33 = vmul.f32 %v16214_v35, %v16206_v16  ;;  %v1031_v35 = vld [vmem:[%s19396_s5 + $0x28] sm:$0xff]  ;;  %15582 = vmatpush3.bf16.msra.mxu0 %v15581_v32 }
 0x49a   :  { %v725_v34 = vpop.xlane.xlu0 %724  ;;  %v729_v40 = vpop.permute.xlu1 %728  ;;  %15583 = vmatprep.subr.bf16.mxu0 %v16469_v7 }
 0x49b   :  { %16217 = vrcp.f32 %v725_v34  ;;  %v1030_v34 = vld [vmem:[%s19396_s5 + $0x20] sm:$0xff] }
 0x49d   :  { %v16216_v38 = vpop.eup %16215 }
 0x49e   :  { %v395_v37 = vpop.permute.xlu0 %394  ;;  %v560_v39 = vmul.f32 %v16216_v38, %v16208_v19  ;;  %v16088_v48 = vpop.permute.xlu1 %16087  ;;  %v942_v19 = vld [vmem:[%s19395_s4 + $0x10] sm:$0xff] }
 0x49f   :  { %14290 = vmatpush3.msk.msra.mxu1 %vm231_vm5, %v395_v37  ;;  %v16090_v49 = vunpack.i.h.bf16 %v16088_v48  ;;  %v16089_v50 = vunpack.i.l.bf16 %v16088_v48  ;;  %v1033_v48 = vld [vmem:[%s19396_s5 + $0x38] sm:$0xff] }
 0x4a0   :  { %14292 = vmatmul.mubr.msk.f32.vlgmr.msra.gmra.mrb[6].mxu1 %vm227_vm6, %v393_v33  ;;  %14299 = vmatprep.subr.mxu1 %v16471_v11 }
 0x4a1   :  { %14300 = vmatpush3.msk.msra.mxu1 %vm231_vm5, %v562_v36  ;;  %14301 = vmatprep.mubr.msk.f32.mxu1 %vm16470_vm1, %v16471_v11  ;;  %v15569_v52 = vpack.c.bf16 %v16090_v49, %v16089_v50  ;;  %v15584_v36 = vpack.c.bf16 %v1031_v35, %v1030_v34  ;;  %v1034_v50 = vld [vmem:[%s19396_s5 + $0x40] sm:$0xff] }
 0x4a2   :  { %14309 = vmatprep.subr.mxu1 %v16471_v11  ;;  %v16083_v44 = vpop.permute.xlu0 %16082 }
 0x4a3   :  { %v16085_v45 = vunpack.i.h.bf16 %v16083_v44  ;;  %v16084_v46 = vunpack.i.l.bf16 %v16083_v44  ;;  %15585 = vmatpush3.bf16.msra.mxu0 %v15584_v36  ;;  %v16829_v36 = vld [vmem:[%s19394_s2 + $0x8] sm:$0xff] }
 0x4a4   :  { %14302 = vmatmul.mubr.msk.f32.vlgmr.msra.gmra.mrb[8].mxu1 %vm227_vm6, %v560_v39  ;;  %15586 = vmatprep.subr.bf16.mxu0 %v16469_v7  ;;  %v16734_v39 = vsub.s32 4, %v16570_v20 }
 0x4a5   :  { %v16218_v41 = vpop.eup %16217  ;;  %14310 = vmatpush3.msk.msra.mxu1 %vm231_vm5, %v729_v40  ;;  %14311 = vmatprep.mubr.msk.f32.mxu1 %vm16470_vm1, %v16471_v11  ;;  %v15566_v47 = vpack.c.bf16 %v16085_v45, %v16084_v46  ;;  %v16737_v40 = vsub.s32 5, %v16570_v20 }
 0x4a6   :  { %v727_v42 = vmul.f32 %v16218_v41, %v16210_v25  ;;  %15565 = vmatprep.subr.bf16.mxu1 %v16469_v7  ;;  %v15575_v25 = vpack.c.bf16 %v943_v24, %v942_v19  ;;  %v933_v41 = vrot.slane %v16578_v22, %v16734_v39 }
 0x4a7   :  { %v938_v44 = vrot.slane %v16578_v22, %v16737_v40 }
 0x4a8   :  { %14312 = vmatmul.mubr.msk.f32.vlgmr.msra.gmra.mrb[10].mxu1 %vm227_vm6, %v727_v42 }
 0x4a9   :  { %14322 = vmatprep.mubr.msk.f32.mxu1 %vm16470_vm1, %v16471_v11  ;;  %15567 = vmatpush3.bf16.msra.mxu1 %v15566_v47  ;;  %v1032_v47 = vld [vmem:[%s19396_s5 + $0x30] sm:$0xff] }
 0x4aa   :  { %15568 = vmatprep.subr.bf16.mxu1 %v16469_v7  ;;  %v15587_v49 = vpack.c.bf16 %v1033_v48, %v1032_v47 }
 0x4ac   :  { %15588 = vmatpush3.bf16.msra.mxu0 %v15587_v49 }
 0x4ad   :  { %15570 = vmatpush3.bf16.msra.mxu1 %v15569_v52  ;;  %15589 = vmatprep.subr.bf16.mxu0 %v16469_v7 }
 0x4ae   :  { %15571 = vmatprep.subr.bf16.mxu1 %v16469_v7 }
 0x56a   :  { %v300_v51 = vpop.f32.mrb[4].mxu1 }
 0x56b   :  { %v14283_v53 = vpop.f32.mrb[5].mxu1 }
 0x56c   :  { %v1036_v53 = vld [vmem:[%s19396_s5 + $0x50] sm:$0xff] }
 0x573   :  { %v467_v8 = vpop.f32.mrb[6].mxu1 }
 0x574   :  { %806 = vrot.lane.b32.xlu0 %v467_v8, %s16484_s24  ;;  %v14293_v9 = vpop.f32.mrb[7].mxu1  ;;  %v1037_v8 = vld [vmem:[%s19396_s5 + $0x58] sm:$0xff] }
 0x575   :  { %v15593_v9 = vpack.c.bf16 %v1037_v8, %v1036_v53 }
 0x577   :  { %v634_v10 = vpop.f32.mrb[8].mxu1 }
 0x578   :  { %810 = vrot.lane.b32.xlu1 %v634_v10, %s16485_s25  ;;  %v14303_v12 = vpop.f32.mrb[9].mxu1  ;;  %v1038_v10 = vld [vmem:[%s19396_s5 + $0x60] sm:$0xff] }
 0x579   :  { %v1039_v12 = vld [vmem:[%s19396_s5 + $0x68] sm:$0xff] }
 0x57b   :  { %v801_v14 = vpop.f32.mrb[10].mxu1 }
 0x57c   :  { %814 = vrot.lane.b32.xlu0 %v801_v14, %s16486_s26  ;;  %v14313_v54 = vpop.f32.mrb[11].mxu1  ;;  %v15596_v14 = vpack.c.bf16 %v1039_v12, %v1038_v10 }
 0x57d   :  { %v1040_v54 = vld [vmem:[%s19396_s5 + $0x70] sm:$0xff] }
 0x5e6   :  { %v807_v55 = vpop.permute.xlu0 %806 }
 0x5e7   :  { %v817_v57 = vsel %vm137_vm3, %v300_v51, %v807_v55  ;;  %v1035_v51 = vld [vmem:[%s19396_s5 + $0x48] sm:$0xff]  ;;  %v1041_v55 = vld [vmem:[%s19396_s5 + $0x78] sm:$0xff] }
 0x5e8   :  { %v15590_v52 = vpack.c.bf16 %v1035_v51, %v1034_v50 }
 0x5ea   :  { %v811_v56 = vpop.permute.xlu1 %810  ;;  %15591 = vmatpush3.bf16.msra.mxu0 %v15590_v52 }
 0x5eb   :  { %v819_v58 = vsel %vm818_vm7, %v817_v57, %v811_v56  ;;  %15592 = vmatprep.subr.bf16.mxu0 %v16469_v7  ;;  %v15599_v56 = vpack.c.bf16 %v1041_v55, %v1040_v54  ;;  %v16782_v57 = vsub.s32 6, %v16570_v20 }
 0x5ee   :  { %v815_v59 = vpop.permute.xlu0 %814  ;;  %15594 = vmatpush3.bf16.msra.mxu0 %v15593_v9 }
 0x5ef   :  { %v821_v60 = vsel %vm820_vm8, %v819_v58, %v815_v59  ;;  %15595 = vmatprep.subr.bf16.mxu0 %v16469_v7  ;;  %v947_v58 = vrot.slane %v16578_v22, %v16782_v57 }
 0x5f0   :  { %14323 = vmatmul.mubr.msk.f32.vlgmr.msra.gmra.mrb[12].mxu1 %vm60_vm2, %v821_v60 }
 0x5f1   :  { %14333 = vmatprep.mubr.msk.f32.mxu1 %vm16470_vm1, %v16471_v11 }
 0x5f2   :  { %15597 = vmatpush3.bf16.msra.mxu0 %v15596_v14 }
 0x5f3   :  { %15598 = vmatprep.subr.bf16.mxu0 %v16469_v7 }
 0x5f6   :  { %15600 = vmatpush3.bf16.msra.mxu0 %v15599_v56 }
 0x5f7   :  { %14412 = vmatprep.subr.mxu0 %v16471_v11 }
 0x6c3   :  { %v907_v63 = vpop.f32.mrb[12].mxu1 }
 0x6c4   :  { %v911_v1 = vadd.f32 %v907_v63, %v16530_v0  ;;  %v14324_v2 = vpop.f32.mrb[13].mxu1  ;;  %v941_v0 = vld [vmem:[%s19395_s4 + $0x8] sm:$0xff] }
 0x6c5   :  { %v15572_v18 = vpack.c.bf16 %v941_v0, %v940_v17 }
 0x6c6   :  { %v16692_v3 = vadd.f32 %v915_v62, %v911_v1 }
 0x6c7   :  { %15573 = vmatpush3.bf16.msra.mxu1 %v15572_v18 }
 0x6c8   :  { %v917_v4 = vsel %vm31_vm0, %v16692_v3, 0.0  ;;  %15574 = vmatprep.subr.bf16.mxu1 %v16469_v7 }
 0x6c9   :  { %918 = vadd.xlane.f32.xlu1 %v917_v4 }
 0x6cb   :  { %15576 = vmatpush3.bf16.msra.mxu1 %v15575_v25 }
 0x6cc   :  { %15601 = vmatprep.subr.bf16.mxu1 %v16469_v7 }
 0x756   :  { %v919_v5 = vpop.xlane.xlu1 %918 }
 0x757   :  { %v920_v6 = vmul.f32 0.03125, %v919_v5 }
 0x759   :  { %v921_v13 = vsub.f32 %v16692_v3, %v920_v6  ;;  %v16789_v6 = vsub.s32 7, %v16570_v20 }
 0x75b   :  { %v922_v15 = vmul.f32 %v921_v13, %v921_v13 }
 0x75d   :  { %v923_v16 = vsel %vm31_vm0, %v922_v15, 0.0 }
 0x75e   :  { %924 = vadd.xlane.f32.xlu0 %v923_v16 }
 0x7eb   :  { %v925_v37 = vpop.xlane.xlu0 %924 }
 0x7ec   :  { %v926_v33 = vmul.f32 0.03125, %v925_v37  ;;  %v1141_v37 = vrot.slane %v16829_v36, %v16573_v21 }
 0x7ee   :  { %v927_v38 = vadd.f32 1e-06, %v926_v33 }
 0x7f0   :  { %16219 = vrsqrt.f32 %v927_v38 }
 0x7fa   :  { %v16220_v42 = vpop.eup %16219 }
 0x7fb   :  { %v929_v43 = vmul.f32 %v16220_v42, %v921_v13  ;;  %v1116_v13 = vrot.slane %v16578_v22, %v16789_v6  ;;  %v16803_v22 = vld [vmem:[%s19393_s3 + $0x20] sm:$0xff] }
 0x7fd   :  { %v934_v45 = vmul.f32 %v933_v41, %v929_v43  ;;  %v1146_v41 = vrot.slane %v16829_v36, %v16581_v23 }
 0x7ff   :  { %v939_v46 = vadd.f32 %v938_v44, %v934_v45  ;;  %v1151_v44 = vrot.slane %v16829_v36, %v16591_v30 }
 0x801   :  { %14334 = vmatmul.mubr.msk.f32.vlgmr.msra.gmra.mrb[14].mxu1 %vm60_vm2, %v939_v46 }
 0x802   :  { %14379 = vmatprep.mubr.msk.f32.mxu1 %vm16470_vm1, %v16471_v11 }
 0x8d4   :  { %v1017_v59 = vpop.f32.mrb[14].mxu1 }
 0x8d5   :  { %v1018_v60 = vadd.f32 %v1017_v59, %v947_v58  ;;  %v14335_v62 = vpop.f32.mrb[15].mxu1 }
 0x8d7   :  { %v1022_v63 = vmul.f32 0.70710677, %v1018_v60  ;;  %v1021_v2 = vmul.f32 0.5, %v1018_v60 }
 0x8d9   :  { %16221 = verf.f32 %v1022_v63 }
 0x8e3   :  { %v16222_v1 = vpop.eup %16221 }
 0x8e4   :  { %v1024_v4 = vadd.f32 1.0, %v16222_v1 }
 0x8e6   :  { %v1025_v5 = vmul.f32 %v1024_v4, %v1021_v2 }
 0x8e8   :  { %14369 = vmatmul.mubr.f32.vlgmr.msra.gmra.mrb[6].mxu0 %v1025_v5 }
 0x8e9   :  { %14414 = vmatprep.mubr.msk.f32.mxu0 %vm16470_vm1, %v16471_v11 }
 0x9bb   :  { %v1108_v15 = vpop.f32.mrb[6].mxu0 }
 0x9bc   :  { %v1112_v16 = vadd.f32 %v1108_v15, %v16692_v3  ;;  %v14370_v17 = vpop.f32.mrb[7].mxu0  ;;  %v16808_v3 = vld [vmem:[%s19393_s3 + $0x28] sm:$0xff] }
 0x9bd   :  { %v15602_v27 = vpack.c.bf16 %v16808_v3, %v16803_v22 }
 0x9be   :  { %v16794_v0 = vadd.f32 %v1116_v13, %v1112_v16 }
 0x9bf   :  { %15603 = vmatpush3.bf16.msra.mxu1 %v15602_v27 }
 0x9c0   :  { %v1125_v18 = vsel %vm31_vm0, %v16794_v0, 0.0  ;;  %15604 = vmatprep.subr.bf16.mxu1 %v16469_v7 }
 0x9c1   :  { %1126 = vadd.xlane.f32.xlu0 %v1125_v18 }
 0x9c3   :  { %15606 = vmatpush3.bf16.msra.mxu1 %v15605_v31 }
 0x9c4   :  { %14382 = vmatprep.subr.mxu1 %v16471_v11 }
 0xa4e   :  { %v1127_v19 = vpop.xlane.xlu0 %1126 }
 0xa4f   :  { %v1128_v24 = vmul.f32 0.03125, %v1127_v19 }
 0xa51   :  { %v1129_v25 = vsub.f32 %v16794_v0, %v1128_v24 }
 0xa53   :  { %v1130_v26 = vmul.f32 %v1129_v25, %v1129_v25 }
 0xa55   :  { %v1131_v20 = vsel %vm31_vm0, %v1130_v26, 0.0 }
 0xa56   :  { %1132 = vadd.xlane.f32.xlu1 %v1131_v20 }
 0xae3   :  { %v1133_v32 = vpop.xlane.xlu1 %1132 }
 0xae4   :  { %v1134_v34 = vmul.f32 0.03125, %v1133_v32 }
 0xae6   :  { %v1135_v35 = vadd.f32 1e-06, %v1134_v34 }
 0xae8   :  { %16223 = vrsqrt.f32 %v1135_v35 }
 0xaf2   :  { %v16224_v33 = vpop.eup %16223 }
 0xaf3   :  { %v1137_v38 = vmul.f32 %v16224_v33, %v1129_v25 }
 0xaf5   :  { %v1142_v42 = vmul.f32 %v1141_v37, %v1137_v38 }
 0xaf7   :  { %v1147_v43 = vadd.f32 %v1146_v41, %v1142_v42 }
 0xaf9   :  { %14380 = vmatmul.mubr.msk.f32.vlgmr.msra.gmra.mrb[16].mxu1 %vm60_vm2, %v1147_v43 }
 0xafa   :  { %14384 = vmatprep.mubr.msk.f32.mxu1 %vm16470_vm1, %v16471_v11 }
 0xbcc   :  { %v1221_v45 = vpop.f32.mrb[16].mxu1 }
 0xbcd   :  { %v16840_v46 = vadd.f32 %v1221_v45, %v1151_v44  ;;  %v14381_v47 = vpop.f32.mrb[17].mxu1 }
 0xbcf   :  { %1226 = vrot.lane.b32.xlu0 %v16840_v46, %s16473_s13 }
 0xbd3   :  { %1393 = vrot.lane.b32.xlu0 %v16840_v46, %s16474_s14 }
 0xbd7   :  { %1391 = vrot.lane.b32.xlu0 %v16840_v46, %s16472_s12 }
 0xc41   :  { %v1227_v48 = vpop.permute.xlu0 %1226 }
 0xc42   :  { %14383 = vmatpush3.xpose.msk.msra.mxu1 %vm137_vm3, %v1227_v48 }
 0xc43   :  { %14387 = vmatprep.subr.mxu1 %v16471_v11 }
 0xc45   :  { %14385 = vmatmul.mubr.msk.f32.vlgmr.msra.gmra.mrb[18].mxu1 %vm137_vm3, %v16840_v46  ;;  %v1394_v56 = vpop.permute.xlu0 %1393 }
 0xc46   :  { %14389 = vmatprep.mubr.msk.f32.mxu1 %vm16470_vm1, %v16471_v11 }
 0xc49   :  { %v1392_v59 = vpop.permute.xlu0 %1391 }
 0xd18   :  { %v1298_v49 = vpop.f32.mrb[18].mxu1 }
 0xd19   :  { %v1302_v50 = vmul.f32 0.35355338, %v1298_v49  ;;  %v14386_v51 = vpop.f32.mrb[19].mxu1 }
 0xd1b   :  { %v1303_v52 = vsel %vm213_vm4, %v1302_v50, -inf }
 0xd1c   :  { %1304 = vmax.xlane.f32.xlu1 %v1303_v52 }
 0xda9   :  { %v1305_v53 = vpop.xlane.xlu1 %1304 }
 0xdaa   :  { %v1306_v8 = vsub.f32 %v1302_v50, %v1305_v53 }
 0xdac   :  { %v1307_v9 = vmul.f32 1.442695, %v1306_v8 }
 0xdae   :  { %16225 = vpow2.f32 %v1307_v9 }
 0xdb8   :  { %v16226_v10 = vpop.eup %16225 }
 0xdb9   :  { %v1309_v12 = vsel %vm213_vm4, %v16226_v10, 0.0 }
 0xdba   :  { %1310 = vadd.xlane.f32.xlu1 %v1309_v12  ;;  %v16091_v12 = vpack.i.bf16 %v16808_v3, %v16803_v22 }
 0xdcb   :  { %1314 = vrot.lane.b32.xlu1 %v16840_v46, %s16479_s19 }
 0xe47   :  { %v1311_v14 = vpop.xlane.xlu1 %1310 }
 0xe48   :  { %16227 = vrcp.f32 %v1311_v14  ;;  %v16096_v14 = vpack.i.bf16 %v16820_v29, %v16815_v28 }
 0xe4b   :  { %v1315_v54 = vpop.permute.xlu1 %1314 }
 0xe4c   :  { %14388 = vmatpush3.msk.msra.mxu1 %vm231_vm5, %v1315_v54 }
 0xe4d   :  { %14392 = vmatprep.subr.mxu1 %v16471_v11 }
 0xe52   :  { %v16228_v55 = vpop.eup %16227 }
 0xe53   :  { %v1313_v58 = vmul.f32 %v16228_v55, %v16226_v10 }
 0xe55   :  { %14390 = vmatmul.mubr.msk.f32.vlgmr.msra.gmra.mrb[20].mxu1 %vm227_vm6, %v1313_v58 }
 0xe56   :  { %14393 = vmatpush3.xpose.msk.msra.mxu1 %vm137_vm3, %v1394_v56  ;;  %14394 = vmatprep.mubr.msk.f32.mxu1 %vm16470_vm1, %v16471_v11 }
 0xe57   :  { %14397 = vmatprep.subr.mxu1 %v16471_v11 }
 0xe59   :  { %14395 = vmatmul.mubr.msk.f32.vlgmr.msra.gmra.mrb[22].mxu1 %vm137_vm3, %v1392_v59 }
 0xe5a   :  { %14399 = vmatprep.mubr.msk.f32.mxu1 %vm16470_vm1, %v16471_v11 }
 0xf28   :  { %v16868_v60 = vpop.f32.mrb[20].mxu1 }
 0xf29   :  { %v14391_v62 = vpop.f32.mrb[21].mxu1 }
 0xf2c   :  { %v1465_v63 = vpop.f32.mrb[22].mxu1 }
 0xf2d   :  { %v1469_v1 = vmul.f32 0.35355338, %v1465_v63  ;;  %v14396_v2 = vpop.f32.mrb[23].mxu1 }
 0xf2f   :  { %v1470_v4 = vsel %vm213_vm4, %v1469_v1, -inf }
 0xf30   :  { %1471 = vmax.xlane.f32.xlu1 %v1470_v4 }
 0xf41   :  { %1560 = vrot.lane.b32.xlu1 %v16840_v46, %s16475_s15 }
 0xf45   :  { %1558 = vrot.lane.b32.xlu1 %v16840_v46, %s16476_s16 }
 0xf49   :  { %1725 = vrot.lane.b32.xlu1 %v16840_v46, %s16478_s18 }
 0xfbd   :  { %v1472_v5 = vpop.xlane.xlu1 %1471 }
 0xfbe   :  { %v1473_v13 = vsub.f32 %v1469_v1, %v1472_v5 }
 0xfc0   :  { %v1474_v15 = vmul.f32 1.442695, %v1473_v13 }
 0xfc1   :  { %v1561_v18 = vpop.permute.xlu1 %1560 }
 0xfc2   :  { %16229 = vpow2.f32 %v1474_v15 }
 0xfc5   :  { %v1559_v25 = vpop.permute.xlu1 %1558 }
 0xfc9   :  { %v1726_v27 = vpop.permute.xlu1 %1725 }
 0xfcc   :  { %v16230_v16 = vpop.eup %16229 }
 0xfcd   :  { %v1476_v17 = vsel %vm213_vm4, %v16230_v16, 0.0 }
 0xfce   :  { %1477 = vadd.xlane.f32.xlu0 %v1476_v17 }
 0xfe4   :  { %1481 = vrot.lane.b32.xlu0 %v16840_v46, %s16482_s22 }
 0xfe8   :  { %1727 = vrot.lane.b32.xlu0 %v16840_v46, %s16477_s17 }
0x105b   :  { %v1478_v19 = vpop.xlane.xlu0 %1477 }
0x105c   :  { %16231 = vrcp.f32 %v1478_v19 }
0x105f   :  { %v1482_v24 = vpop.permute.xlu0 %1481 }
0x1060   :  { %14398 = vmatpush3.msk.msra.mxu1 %vm231_vm5, %v1482_v24 }
0x1061   :  { %14402 = vmatprep.subr.mxu1 %v16471_v11 }
0x1063   :  { %v1728_v26 = vpop.permute.xlu0 %1727 }
0x1064   :  { %14413 = vmatpush3.xpose.msk.msra.mxu0 %vm137_vm3, %v1728_v26 }
0x1065   :  { %15607 = vmatprep.subr.bf16.mxu0 %v16469_v7 }
0x1066   :  { %v16232_v20 = vpop.eup %16231 }
0x1067   :  { %14415 = vmatmul.mubr.msk.f32.vlgmr.msra.gmra.mrb[8].mxu0 %vm137_vm3, %v1726_v27  ;;  %v1480_v31 = vmul.f32 %v16232_v20, %v16230_v16  ;;  %v2000_v20 = vrot.slane %v16829_v36, %v16687_v61 }
0x1068   :  { %14430 = vmatprep.mubr.msk.f32.mxu0 %vm16470_vm1, %v16471_v11 }
0x1069   :  { %14400 = vmatmul.mubr.msk.f32.vlgmr.msra.gmra.mrb[24].mxu1 %vm227_vm6, %v1480_v31 }
0x106a   :  { %14403 = vmatpush3.xpose.msk.msra.mxu1 %vm137_vm3, %v1561_v18  ;;  %14404 = vmatprep.mubr.msk.f32.mxu1 %vm16470_vm1, %v16471_v11 }
0x106b   :  { %14407 = vmatprep.subr.mxu1 %v16471_v11 }
0x106d   :  { %14405 = vmatmul.mubr.msk.f32.vlgmr.msra.gmra.mrb[26].mxu1 %vm137_vm3, %v1559_v25 }
0x106e   :  { %14409 = vmatprep.mubr.msk.f32.mxu1 %vm16470_vm1, %v16471_v11 }
0x113a   :  { %v1799_v32 = vpop.f32.mrb[8].mxu0 }
0x113b   :  { %v1803_v34 = vmul.f32 0.35355338, %v1799_v32  ;;  %v14416_v35 = vpop.f32.mrb[9].mxu0 }
0x113c   :  { %v1554_v37 = vpop.f32.mrb[24].mxu1 }
0x113d   :  { %v14401_v33 = vpop.f32.mrb[25].mxu1  ;;  %v1804_v38 = vsel %vm213_vm4, %v1803_v34, -inf }
0x113e   :  { %1805 = vmax.xlane.f32.xlu1 %v1804_v38 }
0x1140   :  { %v1632_v41 = vpop.f32.mrb[26].mxu1 }
0x1141   :  { %v1636_v42 = vmul.f32 0.35355338, %v1632_v41  ;;  %v14406_v43 = vpop.f32.mrb[27].mxu1 }
0x1142   :  { %v13222_v43 = vld [vmem:[%s19395_s4 + $0x28] sm:$0xff] }
0x1143   :  { %v1637_v44 = vsel %vm213_vm4, %v1636_v42, -inf }
0x1144   :  { %1638 = vmax.xlane.f32.xlu0 %v1637_v44 }
0x114f   :  { %1648 = vrot.lane.b32.xlu1 %v16840_v46, %s16480_s20 }
0x1153   :  { %16092 = vrot.lane.b32.xlu1 %v16091_v12, %s16483_s23 }
0x1157   :  { %16097 = vrot.lane.b32.xlu1 %v16096_v14, %s16483_s23 }
0x11cb   :  { %v1806_v45 = vpop.xlane.xlu1 %1805 }
0x11cc   :  { %v1807_v47 = vsub.f32 %v1803_v34, %v1806_v45  ;;  %v13223_v45 = vld [vmem:[%s19395_s4 + $0x30] sm:$0xff] }
0x11ce   :  { %v1808_v48 = vmul.f32 1.442695, %v1807_v47  ;;  %v13224_v47 = vld [vmem:[%s19395_s4 + $0x38] sm:$0xff] }
0x11cf   :  { %v1649_v49 = vpop.permute.xlu1 %1648 }
0x11d0   :  { %16233 = vpow2.f32 %v1808_v48  ;;  %14408 = vmatpush3.msk.msra.mxu1 %vm231_vm5, %v1649_v49  ;;  %v15617_v48 = vpack.c.bf16 %v13224_v47, %v13223_v45  ;;  %v13226_v49 = vld [vmem:[%s19396_s5 + $0x80] sm:$0xff] }
0x11d1   :  { %v1639_v50 = vpop.xlane.xlu0 %1638  ;;  %14417 = vmatprep.subr.mxu1 %v16471_v11 }
0x11d2   :  { %v1640_v51 = vsub.f32 %v1636_v42, %v1639_v50  ;;  %v13221_v42 = vld [vmem:[%s19395_s4 + $0x20] sm:$0xff]  ;;  %v13227_v50 = vld [vmem:[%s19396_s5 + $0x88] sm:$0xff] }
0x11d3   :  { %v16093_v3 = vpop.permute.xlu1 %16092  ;;  %v15614_v44 = vpack.c.bf16 %v13222_v43, %v13221_v42 }
0x11d4   :  { %v1641_v52 = vmul.f32 1.442695, %v1640_v51  ;;  %v16095_v28 = vunpack.i.h.bf16 %v16093_v3  ;;  %v16094_v29 = vunpack.i.l.bf16 %v16093_v3  ;;  %v13228_v51 = vld [vmem:[%s19396_s5 + $0x90] sm:$0xff] }
0x11d6   :  { %16235 = vpow2.f32 %v1641_v52  ;;  %v15608_v62 = vpack.c.bf16 %v16095_v28, %v16094_v29  ;;  %v15620_v52 = vpack.c.bf16 %v13227_v50, %v13226_v49  ;;  %v13232_v28 = vld [vmem:[%s19396_s5 + $0xb0] sm:$0xff]  ;;  %v13233_v29 = vld [vmem:[%s19396_s5 + $0xb8] sm:$0xff] }
0x11d7   :  { %v16098_v63 = vpop.permute.xlu1 %16097 }
0x11d8   :  { %v16100_v1 = vunpack.i.h.bf16 %v16098_v63  ;;  %v16099_v2 = vunpack.i.l.bf16 %v16098_v63  ;;  %15609 = vmatpush3.bf16.msra.mxu0 %v15608_v62  ;;  %v15629_v62 = vpack.c.bf16 %v13233_v29, %v13232_v28  ;;  %v13234_v63 = vld [vmem:[%s19396_s5 + $0xc0] sm:$0xff] }
0x11d9   :  { %15610 = vmatprep.subr.bf16.mxu0 %v16469_v7 }
0x11da   :  { %v16234_v53 = vpop.eup %16233  ;;  %v15611_v4 = vpack.c.bf16 %v16100_v1, %v16099_v2  ;;  %v13235_v1 = vld [vmem:[%s19396_s5 + $0xc8] sm:$0xff] }
0x11db   :  { %v1810_v8 = vsel %vm213_vm4, %v16234_v53, 0.0  ;;  %v15632_v2 = vpack.c.bf16 %v13235_v1, %v13234_v63 }
0x11dc   :  { %1811 = vadd.xlane.f32.xlu0 %v1810_v8  ;;  %15612 = vmatpush3.bf16.msra.mxu0 %v15611_v4  ;;  %v13236_v4 = vld [vmem:[%s19396_s5 + $0xd0] sm:$0xff] }
0x11dd   :  { %15619 = vmatprep.subr.bf16.mxu0 %v16469_v7 }
0x11e0   :  { %v16236_v9 = vpop.eup %16235 }
0x11e1   :  { %v1643_v10 = vsel %vm213_vm4, %v16236_v9, 0.0 }
0x11e2   :  { %1644 = vadd.xlane.f32.xlu0 %v1643_v10  ;;  %v13231_v10 = vld [vmem:[%s19396_s5 + $0xa8] sm:$0xff] }
0x11f8   :  { %1815 = vrot.lane.b32.xlu0 %v16840_v46, %s16481_s21 }
0x11fc   :  { %1893 = vrot.lane.b32.xlu0 %v1554_v37, %s16484_s24 }
0x1269   :  { %v1812_v54 = vpop.xlane.xlu0 %1811 }
0x126f   :  { %v1645_v55 = vpop.xlane.xlu0 %1644 }
0x1270   :  { %16237 = vrcp.f32 %v1645_v55 }
0x1271   :  { %16239 = vrcp.f32 %v1812_v54 }
0x1273   :  { %v1816_v46 = vpop.permute.xlu0 %1815 }
0x1277   :  { %v1894_v17 = vpop.permute.xlu0 %1893 }
0x1278   :  { %v1904_v19 = vsel %vm137_vm3, %v16868_v60, %v1894_v17 }
0x127a   :  { %v16238_v56 = vpop.eup %16237 }
0x127b   :  { %v1647_v58 = vmul.f32 %v16238_v56, %v16236_v9  ;;  %v16240_v59 = vpop.eup %16239  ;;  %v13230_v9 = vld [vmem:[%s19396_s5 + $0xa0] sm:$0xff]  ;;  %v2018_v56 = vrot.slane %v16829_v36, %v16734_v39 }
0x127c   :  { %v1814_v22 = vmul.f32 %v16240_v59, %v16234_v53  ;;  %v13229_v53 = vld [vmem:[%s19396_s5 + $0x98] sm:$0xff]  ;;  %v15626_v12 = vpack.c.bf16 %v13231_v10, %v13230_v9 }
0x127d   :  { %14410 = vmatmul.mubr.msk.f32.vlgmr.msra.gmra.mrb[28].mxu1 %vm227_vm6, %v1647_v58  ;;  %v15623_v8 = vpack.c.bf16 %v13229_v53, %v13228_v51  ;;  %v17052_v53 = vld [vmem:[%s19393_s3 + $0x58] sm:$0xff] }
0x127e   :  { %14418 = vmatpush3.msk.msra.mxu1 %vm231_vm5, %v1816_v46  ;;  %14419 = vmatprep.mubr.msk.f32.mxu1 %vm16470_vm1, %v16471_v11  ;;  %v2023_v46 = vrot.slane %v16829_v36, %v16737_v40 }
0x127f   :  { %15613 = vmatprep.subr.bf16.mxu1 %v16469_v7 }
0x1281   :  { %14420 = vmatmul.mubr.msk.f32.vlgmr.msra.gmra.mrb[30].mxu1 %vm227_vm6, %v1814_v22 }
0x1282   :  { %14441 = vmatprep.mubr.msk.f32.mxu1 %vm16470_vm1, %v16471_v11  ;;  %15615 = vmatpush3.bf16.msra.mxu1 %v15614_v44 }
0x1283   :  { %15616 = vmatprep.subr.bf16.mxu1 %v16469_v7 }
0x1286   :  { %15618 = vmatpush3.bf16.msra.mxu1 %v15617_v48 }
0x1287   :  { %15643 = vmatprep.subr.bf16.mxu1 %v16469_v7 }
0x1350   :  { %v1721_v5 = vpop.f32.mrb[28].mxu1 }
0x1351   :  { %1897 = vrot.lane.b32.xlu1 %v1721_v5, %s16485_s25  ;;  %v14411_v13 = vpop.f32.mrb[29].mxu1  ;;  %v13237_v5 = vld [vmem:[%s19396_s5 + $0xd8] sm:$0xff] }
0x1352   :  { %v15635_v13 = vpack.c.bf16 %v13237_v5, %v13236_v4 }
0x1354   :  { %v1888_v15 = vpop.f32.mrb[30].mxu1 }
0x1355   :  { %1901 = vrot.lane.b32.xlu0 %v1888_v15, %s16486_s26  ;;  %v14421_v16 = vpop.f32.mrb[31].mxu1  ;;  %v13238_v15 = vld [vmem:[%s19396_s5 + $0xe0] sm:$0xff] }
0x1356   :  { %v13239_v16 = vld [vmem:[%s19396_s5 + $0xe8] sm:$0xff] }
0x1357   :  { %v15638_v17 = vpack.c.bf16 %v13239_v16, %v13238_v15 }
0x13c3   :  { %v1898_v18 = vpop.permute.xlu1 %1897 }
0x13c4   :  { %v1905_v24 = vsel %vm818_vm7, %v1904_v19, %v1898_v18  ;;  %v13240_v18 = vld [vmem:[%s19396_s5 + $0xf0] sm:$0xff]  ;;  %v13241_v19 = vld [vmem:[%s19396_s5 + $0xf8] sm:$0xff] }
0x13c7   :  { %v1902_v25 = vpop.permute.xlu0 %1901 }
0x13c8   :  { %v1906_v26 = vsel %vm820_vm8, %v1905_v24, %v1902_v25  ;;  %v15641_v24 = vpack.c.bf16 %v13241_v19, %v13240_v18  ;;  %v2033_v25 = vrot.slane %v16829_v36, %v16782_v57 }
0x13c9   :  { %14431 = vmatmul.mubr.msk.f32.vlgmr.msra.gmra.mrb[10].mxu0 %vm60_vm2, %v1906_v26 }
0x13ca   :  { %14476 = vmatprep.mubr.msk.f32.mxu0 %vm16470_vm1, %v16471_v11  ;;  %15621 = vmatpush3.bf16.msra.mxu0 %v15620_v52  ;;  %v17047_v52 = vld [vmem:[%s19393_s3 + $0x50] sm:$0xff] }
0x13cb   :  { %15622 = vmatprep.subr.bf16.mxu0 %v16469_v7 }
0x13ce   :  { %15624 = vmatpush3.bf16.msra.mxu0 %v15623_v8  ;;  %v15647_v8 = vpack.c.bf16 %v17052_v53, %v17047_v52 }
0x13cf   :  { %15625 = vmatprep.subr.bf16.mxu0 %v16469_v7 }
0x13d2   :  { %15627 = vmatpush3.bf16.msra.mxu0 %v15626_v12 }
0x13d3   :  { %15628 = vmatprep.subr.bf16.mxu0 %v16469_v7 }
0x13d6   :  { %15630 = vmatpush3.bf16.msra.mxu0 %v15629_v62 }
0x13d7   :  { %15631 = vmatprep.subr.bf16.mxu0 %v16469_v7 }
0x13da   :  { %15633 = vmatpush3.bf16.msra.mxu0 %v15632_v2 }
0x13db   :  { %15634 = vmatprep.subr.bf16.mxu0 %v16469_v7 }
0x13de   :  { %15636 = vmatpush3.bf16.msra.mxu0 %v15635_v13 }
0x13df   :  { %15637 = vmatprep.subr.bf16.mxu0 %v16469_v7 }
0x13e2   :  { %15639 = vmatpush3.bf16.msra.mxu0 %v15638_v17 }
0x13e3   :  { %15640 = vmatprep.subr.bf16.mxu0 %v16469_v7 }
0x13e6   :  { %15642 = vmatpush3.bf16.msra.mxu0 %v15641_v24 }
0x13e7   :  { %14520 = vmatprep.subr.mxu0 %v16471_v11 }
0x149c   :  { %v1992_v27 = vpop.f32.mrb[10].mxu0 }
0x149d   :  { %v1996_v31 = vadd.f32 %v1992_v27, %v16794_v0  ;;  %v14432_v32 = vpop.f32.mrb[11].mxu0 }
0x149f   :  { %v16936_v34 = vadd.f32 %v2000_v20, %v1996_v31 }
0x14a1   :  { %v2002_v60 = vsel %vm31_vm0, %v16936_v34, 0.0 }
0x14a2   :  { %2003 = vadd.xlane.f32.xlu1 %v2002_v60 }
0x152f   :  { %v2004_v35 = vpop.xlane.xlu1 %2003 }
0x1530   :  { %v2005_v37 = vmul.f32 0.03125, %v2004_v35 }
0x1532   :  { %v2006_v33 = vsub.f32 %v16936_v34, %v2005_v37 }
0x1534   :  { %v2007_v38 = vmul.f32 %v2006_v33, %v2006_v33 }
0x1536   :  { %v2008_v41 = vsel %vm31_vm0, %v2007_v38, 0.0 }
0x1537   :  { %2009 = vadd.xlane.f32.xlu0 %v2008_v41 }
0x15c4   :  { %v2010_v14 = vpop.xlane.xlu0 %2009 }
0x15c5   :  { %v2011_v54 = vmul.f32 0.03125, %v2010_v14  ;;  %v17061_v14 = vld [vmem:[%s19394_s2 + $0x10] sm:$0xff] }
0x15c7   :  { %v2012_v55 = vadd.f32 1e-06, %v2011_v54  ;;  %v2228_v54 = vrot.slane %v17061_v14, %v16573_v21 }
0x15c9   :  { %16241 = vrsqrt.f32 %v2012_v55 }
0x15d3   :  { %v16242_v58 = vpop.eup %16241 }
0x15d4   :  { %v2014_v59 = vmul.f32 %v16242_v58, %v2006_v33  ;;  %v2203_v33 = vrot.slane %v16829_v36, %v16789_v6  ;;  %v17035_v36 = vld [vmem:[%s19393_s3 + $0x40] sm:$0xff]  ;;  %v2233_v58 = vrot.slane %v17061_v14, %v16581_v23 }
0x15d6   :  { %v2019_v22 = vmul.f32 %v2018_v56, %v2014_v59 }
0x15d8   :  { %v2024_v3 = vadd.f32 %v2023_v46, %v2019_v22  ;;  %v2238_v22 = vrot.slane %v17061_v14, %v16591_v30 }
0x15da   :  { %14442 = vmatmul.mubr.msk.f32.vlgmr.msra.gmra.mrb[32].mxu1 %vm60_vm2, %v2024_v3 }
0x15db   :  { %14487 = vmatprep.mubr.msk.f32.mxu1 %vm16470_vm1, %v16471_v11 }
0x16ad   :  { %v2103_v26 = vpop.f32.mrb[32].mxu1 }
0x16ae   :  { %v2104_v20 = vadd.f32 %v2103_v26, %v2033_v25  ;;  %v14443_v27 = vpop.f32.mrb[33].mxu1 }
0x16b0   :  { %v2108_v31 = vmul.f32 0.70710677, %v2104_v20  ;;  %v2107_v60 = vmul.f32 0.5, %v2104_v20 }
0x16b2   :  { %16243 = verf.f32 %v2108_v31 }
0x16bc   :  { %v16244_v32 = vpop.eup %16243 }
0x16bd   :  { %v2110_v35 = vadd.f32 1.0, %v16244_v32 }
0x16bf   :  { %v2111_v37 = vmul.f32 %v2110_v35, %v2107_v60 }
0x16c1   :  { %14477 = vmatmul.mubr.f32.vlgmr.msra.gmra.mrb[12].mxu0 %v2111_v37 }
0x16c2   :  { %14522 = vmatprep.mubr.msk.f32.mxu0 %vm16470_vm1, %v16471_v11 }
0x1794   :  { %v2195_v38 = vpop.f32.mrb[12].mxu0 }
0x1795   :  { %v2199_v41 = vadd.f32 %v2195_v38, %v16936_v34  ;;  %v14478_v42 = vpop.f32.mrb[13].mxu0  ;;  %v17040_v34 = vld [vmem:[%s19393_s3 + $0x48] sm:$0xff] }
0x1796   :  { %v15644_v51 = vpack.c.bf16 %v17040_v34, %v17035_v36 }
0x1797   :  { %v17026_v43 = vadd.f32 %v2203_v33, %v2199_v41 }
0x1798   :  { %15645 = vmatpush3.bf16.msra.mxu1 %v15644_v51 }
0x1799   :  { %v2212_v44 = vsel %vm31_vm0, %v17026_v43, 0.0  ;;  %15646 = vmatprep.subr.bf16.mxu1 %v16469_v7 }
0x179a   :  { %2213 = vadd.xlane.f32.xlu0 %v2212_v44 }
0x179c   :  { %15648 = vmatpush3.bf16.msra.mxu1 %v15647_v8 }
0x179d   :  { %14490 = vmatprep.subr.mxu1 %v16471_v11 }
0x1827   :  { %v2214_v45 = vpop.xlane.xlu0 %2213 }
0x1828   :  { %v2215_v47 = vmul.f32 0.03125, %v2214_v45 }
0x182a   :  { %v2216_v48 = vsub.f32 %v17026_v43, %v2215_v47 }
0x182c   :  { %v2217_v49 = vmul.f32 %v2216_v48, %v2216_v48 }
0x182e   :  { %v2218_v50 = vsel %vm31_vm0, %v2217_v49, 0.0 }
0x182f   :  { %2219 = vadd.xlane.f32.xlu1 %v2218_v50 }
0x18bc   :  { %v2220_v9 = vpop.xlane.xlu1 %2219 }
0x18bd   :  { %v2221_v10 = vmul.f32 0.03125, %v2220_v9 }
0x18bf   :  { %v2222_v12 = vadd.f32 1e-06, %v2221_v10 }
0x18c1   :  { %16245 = vrsqrt.f32 %v2222_v12 }
0x18cb   :  { %v16246_v55 = vpop.eup %16245 }
0x18cc   :  { %v2224_v56 = vmul.f32 %v16246_v55, %v2216_v48 }
0x18ce   :  { %v2229_v59 = vmul.f32 %v2228_v54, %v2224_v56 }
0x18d0   :  { %v2234_v46 = vadd.f32 %v2233_v58, %v2229_v59 }
0x18d2   :  { %14488 = vmatmul.mubr.msk.f32.vlgmr.msra.gmra.mrb[34].mxu1 %vm60_vm2, %v2234_v46 }
0x18d3   :  { %14492 = vmatprep.mubr.msk.f32.mxu1 %vm16470_vm1, %v16471_v11 }
0x19a5   :  { %v2308_v3 = vpop.f32.mrb[34].mxu1 }
0x19a6   :  { %v17072_v28 = vadd.f32 %v2308_v3, %v2238_v22  ;;  %v14489_v29 = vpop.f32.mrb[35].mxu1 }
0x19a8   :  { %2313 = vrot.lane.b32.xlu0 %v17072_v28, %s16473_s13 }
0x19ac   :  { %2480 = vrot.lane.b32.xlu0 %v17072_v28, %s16474_s14 }
0x19b0   :  { %2478 = vrot.lane.b32.xlu0 %v17072_v28, %s16472_s12 }
0x1a1a   :  { %v2314_v62 = vpop.permute.xlu0 %2313 }
0x1a1b   :  { %14491 = vmatpush3.xpose.msk.msra.mxu1 %vm137_vm3, %v2314_v62 }
0x1a1c   :  { %14495 = vmatprep.subr.mxu1 %v16471_v11 }
0x1a1e   :  { %14493 = vmatmul.mubr.msk.f32.vlgmr.msra.gmra.mrb[36].mxu1 %vm137_vm3, %v17072_v28  ;;  %v2481_v25 = vpop.permute.xlu0 %2480 }
0x1a1f   :  { %14497 = vmatprep.mubr.msk.f32.mxu1 %vm16470_vm1, %v16471_v11 }
0x1a22   :  { %v2479_v20 = vpop.permute.xlu0 %2478 }
0x1af1   :  { %v2385_v63 = vpop.f32.mrb[36].mxu1 }
0x1af2   :  { %v2389_v1 = vmul.f32 0.35355338, %v2385_v63  ;;  %v14494_v2 = vpop.f32.mrb[37].mxu1 }
0x1af4   :  { %v2390_v4 = vsel %vm213_vm4, %v2389_v1, -inf }
0x1af5   :  { %2391 = vmax.xlane.f32.xlu1 %v2390_v4 }
0x1b82   :  { %v2392_v5 = vpop.xlane.xlu1 %2391 }
0x1b83   :  { %v2393_v13 = vsub.f32 %v2389_v1, %v2392_v5 }
0x1b85   :  { %v2394_v15 = vmul.f32 1.442695, %v2393_v13 }
0x1b87   :  { %16247 = vpow2.f32 %v2394_v15 }
0x1b91   :  { %v16248_v16 = vpop.eup %16247 }
0x1b92   :  { %v2396_v17 = vsel %vm213_vm4, %v16248_v16, 0.0 }
0x1b93   :  { %2397 = vadd.xlane.f32.xlu1 %v2396_v17 }
0x1ba4   :  { %2401 = vrot.lane.b32.xlu1 %v17072_v28, %s16479_s19 }
0x1c20   :  { %v2398_v18 = vpop.xlane.xlu1 %2397 }
0x1c21   :  { %16249 = vrcp.f32 %v2398_v18  ;;  %v16101_v18 = vpack.i.bf16 %v17040_v34, %v17035_v36 }
0x1c24   :  { %v2402_v19 = vpop.permute.xlu1 %2401 }
0x1c25   :  { %14496 = vmatpush3.msk.msra.mxu1 %vm231_vm5, %v2402_v19  ;;  %v16106_v19 = vpack.i.bf16 %v17052_v53, %v17047_v52 }
0x1c26   :  { %14500 = vmatprep.subr.mxu1 %v16471_v11 }
0x1c2b   :  { %v16250_v24 = vpop.eup %16249 }
0x1c2c   :  { %v2400_v26 = vmul.f32 %v16250_v24, %v16248_v16 }
0x1c2e   :  { %14498 = vmatmul.mubr.msk.f32.vlgmr.msra.gmra.mrb[38].mxu1 %vm227_vm6, %v2400_v26 }
0x1c2f   :  { %14501 = vmatpush3.xpose.msk.msra.mxu1 %vm137_vm3, %v2481_v25  ;;  %14502 = vmatprep.mubr.msk.f32.mxu1 %vm16470_vm1, %v16471_v11 }
0x1c30   :  { %14505 = vmatprep.subr.mxu1 %v16471_v11 }
0x1c32   :  { %14503 = vmatmul.mubr.msk.f32.vlgmr.msra.gmra.mrb[40].mxu1 %vm137_vm3, %v2479_v20 }
0x1c33   :  { %14507 = vmatprep.mubr.msk.f32.mxu1 %vm16470_vm1, %v16471_v11 }
0x1d01   :  { %v17100_v27 = vpop.f32.mrb[38].mxu1 }
0x1d02   :  { %v14499_v31 = vpop.f32.mrb[39].mxu1 }
0x1d05   :  { %v2552_v32 = vpop.f32.mrb[40].mxu1 }
0x1d06   :  { %v2556_v60 = vmul.f32 0.35355338, %v2552_v32  ;;  %v14504_v35 = vpop.f32.mrb[41].mxu1 }
0x1d08   :  { %v2557_v37 = vsel %vm213_vm4, %v2556_v60, -inf }
0x1d09   :  { %2558 = vmax.xlane.f32.xlu1 %v2557_v37 }
0x1d1a   :  { %2647 = vrot.lane.b32.xlu1 %v17072_v28, %s16475_s15 }
0x1d1e   :  { %2645 = vrot.lane.b32.xlu1 %v17072_v28, %s16476_s16 }
0x1d22   :  { %2812 = vrot.lane.b32.xlu1 %v17072_v28, %s16478_s18 }
0x1d96   :  { %v2559_v33 = vpop.xlane.xlu1 %2558 }
0x1d97   :  { %v2560_v38 = vsub.f32 %v2556_v60, %v2559_v33 }
0x1d99   :  { %v2561_v41 = vmul.f32 1.442695, %v2560_v38 }
0x1d9a   :  { %v2648_v45 = vpop.permute.xlu1 %2647 }
0x1d9b   :  { %16251 = vpow2.f32 %v2561_v41 }
0x1d9e   :  { %v2646_v49 = vpop.permute.xlu1 %2645 }
0x1da2   :  { %v2813_v8 = vpop.permute.xlu1 %2812 }
0x1da5   :  { %v16252_v42 = vpop.eup %16251 }
0x1da6   :  { %v2563_v44 = vsel %vm213_vm4, %v16252_v42, 0.0 }
0x1da7   :  { %2564 = vadd.xlane.f32.xlu0 %v2563_v44 }
0x1dbd   :  { %2568 = vrot.lane.b32.xlu0 %v17072_v28, %s16482_s22 }
0x1dc1   :  { %2814 = vrot.lane.b32.xlu0 %v17072_v28, %s16477_s17 }
0x1e34   :  { %v2565_v47 = vpop.xlane.xlu0 %2564 }
0x1e35   :  { %16253 = vrcp.f32 %v2565_v47 }
0x1e38   :  { %v2569_v48 = vpop.permute.xlu0 %2568 }
0x1e39   :  { %14506 = vmatpush3.msk.msra.mxu1 %vm231_vm5, %v2569_v48 }
0x1e3a   :  { %14510 = vmatprep.subr.mxu1 %v16471_v11 }
0x1e3c   :  { %v2815_v50 = vpop.permute.xlu0 %2814 }
0x1e3d   :  { %14521 = vmatpush3.xpose.msk.msra.mxu0 %vm137_vm3, %v2815_v50 }
0x1e3e   :  { %15649 = vmatprep.subr.bf16.mxu0 %v16469_v7 }
0x1e3f   :  { %v16254_v51 = vpop.eup %16253 }
0x1e40   :  { %14523 = vmatmul.mubr.msk.f32.vlgmr.msra.gmra.mrb[14].mxu0 %vm137_vm3, %v2813_v8  ;;  %v2567_v9 = vmul.f32 %v16254_v51, %v16252_v42  ;;  %v3087_v8 = vrot.slane %v17061_v14, %v16687_v61 }
0x1e41   :  { %14538 = vmatprep.mubr.msk.f32.mxu0 %vm16470_vm1, %v16471_v11 }
0x1e42   :  { %14508 = vmatmul.mubr.msk.f32.vlgmr.msra.gmra.mrb[42].mxu1 %vm227_vm6, %v2567_v9 }
0x1e43   :  { %14511 = vmatpush3.xpose.msk.msra.mxu1 %vm137_vm3, %v2648_v45  ;;  %14512 = vmatprep.mubr.msk.f32.mxu1 %vm16470_vm1, %v16471_v11 }
0x1e44   :  { %14515 = vmatprep.subr.mxu1 %v16471_v11 }
0x1e46   :  { %14513 = vmatmul.mubr.msk.f32.vlgmr.msra.gmra.mrb[44].mxu1 %vm137_vm3, %v2646_v49 }
0x1e47   :  { %14517 = vmatprep.mubr.msk.f32.mxu1 %vm16470_vm1, %v16471_v11 }
0x1f13   :  { %v2886_v10 = vpop.f32.mrb[14].mxu0 }
0x1f14   :  { %v2890_v12 = vmul.f32 0.35355338, %v2886_v10  ;;  %v14524_v54 = vpop.f32.mrb[15].mxu0 }
0x1f15   :  { %v2641_v55 = vpop.f32.mrb[42].mxu1 }
0x1f16   :  { %v14509_v56 = vpop.f32.mrb[43].mxu1  ;;  %v2891_v58 = vsel %vm213_vm4, %v2890_v12, -inf }
0x1f17   :  { %2892 = vmax.xlane.f32.xlu1 %v2891_v58 }
0x1f19   :  { %v2719_v59 = vpop.f32.mrb[44].mxu1 }
0x1f1a   :  { %v2723_v46 = vmul.f32 0.35355338, %v2719_v59  ;;  %v14514_v22 = vpop.f32.mrb[45].mxu1 }
0x1f1b   :  { %v13265_v22 = vld [vmem:[%s19395_s4 + $0x40] sm:$0xff] }
0x1f1c   :  { %v2724_v3 = vsel %vm213_vm4, %v2723_v46, -inf }
0x1f1d   :  { %2725 = vmax.xlane.f32.xlu0 %v2724_v3  ;;  %v13266_v3 = vld [vmem:[%s19395_s4 + $0x48] sm:$0xff] }
0x1f28   :  { %2735 = vrot.lane.b32.xlu1 %v17072_v28, %s16480_s20 }
0x1f2c   :  { %16102 = vrot.lane.b32.xlu1 %v16101_v18, %s16483_s23  ;;  %v13275_v18 = vld [vmem:[%s19396_s5 + $0x128] sm:$0xff] }
0x1f30   :  { %16107 = vrot.lane.b32.xlu1 %v16106_v19, %s16483_s23 }
0x1fa4   :  { %v2893_v29 = vpop.xlane.xlu1 %2892 }
0x1fa5   :  { %v2894_v62 = vsub.f32 %v2890_v12, %v2893_v29  ;;  %v15656_v29 = vpack.c.bf16 %v13266_v3, %v13265_v22 }
0x1fa7   :  { %v2895_v63 = vmul.f32 1.442695, %v2894_v62  ;;  %v13267_v62 = vld [vmem:[%s19395_s4 + $0x50] sm:$0xff] }
0x1fa8   :  { %v2736_v1 = vpop.permute.xlu1 %2735 }
0x1fa9   :  { %16255 = vpow2.f32 %v2895_v63  ;;  %14516 = vmatpush3.msk.msra.mxu1 %vm231_vm5, %v2736_v1  ;;  %v13268_v63 = vld [vmem:[%s19395_s4 + $0x58] sm:$0xff] }
0x1faa   :  { %v2726_v2 = vpop.xlane.xlu0 %2725  ;;  %14525 = vmatprep.subr.mxu1 %v16471_v11  ;;  %v15659_v1 = vpack.c.bf16 %v13268_v63, %v13267_v62 }
0x1fab   :  { %v2727_v4 = vsub.f32 %v2723_v46, %v2726_v2  ;;  %v13270_v2 = vld [vmem:[%s19396_s5 + $0x100] sm:$0xff] }
0x1fac   :  { %v16103_v34 = vpop.permute.xlu1 %16102 }
0x1fad   :  { %v2728_v5 = vmul.f32 1.442695, %v2727_v4  ;;  %v16105_v52 = vunpack.i.h.bf16 %v16103_v34  ;;  %v16104_v53 = vunpack.i.l.bf16 %v16103_v34  ;;  %v13271_v4 = vld [vmem:[%s19396_s5 + $0x108] sm:$0xff] }
0x1faf   :  { %16257 = vpow2.f32 %v2728_v5  ;;  %v15650_v32 = vpack.c.bf16 %v16105_v52, %v16104_v53  ;;  %v13272_v5 = vld [vmem:[%s19396_s5 + $0x110] sm:$0xff] }
0x1fb0   :  { %v16108_v60 = vpop.permute.xlu1 %16107  ;;  %v13276_v53 = vld [vmem:[%s19396_s5 + $0x130] sm:$0xff] }
0x1fb1   :  { %v16110_v35 = vunpack.i.h.bf16 %v16108_v60  ;;  %v16109_v37 = vunpack.i.l.bf16 %v16108_v60  ;;  %15651 = vmatpush3.bf16.msra.mxu0 %v15650_v32  ;;  %v13277_v32 = vld [vmem:[%s19396_s5 + $0x138] sm:$0xff] }
0x1fb2   :  { %15652 = vmatprep.subr.bf16.mxu0 %v16469_v7  ;;  %v15671_v60 = vpack.c.bf16 %v13277_v32, %v13276_v53 }
0x1fb3   :  { %v16256_v13 = vpop.eup %16255  ;;  %v15653_v33 = vpack.c.bf16 %v16110_v35, %v16109_v37  ;;  %v13278_v35 = vld [vmem:[%s19396_s5 + $0x140] sm:$0xff]  ;;  %v13279_v37 = vld [vmem:[%s19396_s5 + $0x148] sm:$0xff] }
0x1fb4   :  { %v2897_v15 = vsel %vm213_vm4, %v16256_v13, 0.0 }
0x1fb5   :  { %2898 = vadd.xlane.f32.xlu0 %v2897_v15  ;;  %15654 = vmatpush3.bf16.msra.mxu0 %v15653_v33  ;;  %v13273_v15 = vld [vmem:[%s19396_s5 + $0x118] sm:$0xff]  ;;  %v15674_v33 = vpack.c.bf16 %v13279_v37, %v13278_v35 }
0x1fb6   :  { %15661 = vmatprep.subr.bf16.mxu0 %v16469_v7 }
0x1fb9   :  { %v16258_v16 = vpop.eup %16257 }
0x1fba   :  { %v2730_v17 = vsel %vm213_vm4, %v16258_v16, 0.0 }
0x1fbb   :  { %2731 = vadd.xlane.f32.xlu0 %v2730_v17  ;;  %v13274_v17 = vld [vmem:[%s19396_s5 + $0x120] sm:$0xff] }
0x1fbc   :  { %v15668_v19 = vpack.c.bf16 %v13275_v18, %v13274_v17 }
0x1fd1   :  { %2902 = vrot.lane.b32.xlu0 %v17072_v28, %s16481_s21 }
0x1fd5   :  { %2980 = vrot.lane.b32.xlu0 %v2641_v55, %s16484_s24 }
0x2042   :  { %v2899_v24 = vpop.xlane.xlu0 %2898 }
0x2048   :  { %v2732_v25 = vpop.xlane.xlu0 %2731 }
0x2049   :  { %16259 = vrcp.f32 %v2732_v25 }
0x204a   :  { %16261 = vrcp.f32 %v2899_v24 }
0x204c   :  { %v2903_v28 = vpop.permute.xlu0 %2902 }
0x2050   :  { %v2981_v45 = vpop.permute.xlu0 %2980 }
0x2051   :  { %v2991_v48 = vsel %vm137_vm3, %v17100_v27, %v2981_v45  ;;  %v13283_v45 = vld [vmem:[%s19396_s5 + $0x168] sm:$0xff] }
0x2053   :  { %v16260_v26 = vpop.eup %16259 }
0x2054   :  { %v2734_v20 = vmul.f32 %v16260_v26, %v16258_v16  ;;  %v16262_v31 = vpop.eup %16261  ;;  %v15665_v16 = vpack.c.bf16 %v13273_v15, %v13272_v5  ;;  %v17279_v15 = vld [vmem:[%s19393_s3 + $0x70] sm:$0xff] }
0x2055   :  { %v2901_v36 = vmul.f32 %v16262_v31, %v16256_v13  ;;  %v15662_v13 = vpack.c.bf16 %v13271_v4, %v13270_v2 }
0x2056   :  { %14518 = vmatmul.mubr.msk.f32.vlgmr.msra.gmra.mrb[46].mxu1 %vm227_vm6, %v2734_v20  ;;  %v3105_v20 = vrot.slane %v17061_v14, %v16734_v39 }
0x2057   :  { %14526 = vmatpush3.msk.msra.mxu1 %vm231_vm5, %v2903_v28  ;;  %14527 = vmatprep.mubr.msk.f32.mxu1 %vm16470_vm1, %v16471_v11 }
0x2058   :  { %15655 = vmatprep.subr.bf16.mxu1 %v16469_v7 }
0x205a   :  { %14528 = vmatmul.mubr.msk.f32.vlgmr.msra.gmra.mrb[48].mxu1 %vm227_vm6, %v2901_v36  ;;  %v3110_v36 = vrot.slane %v17061_v14, %v16737_v40 }
0x205b   :  { %14549 = vmatprep.mubr.msk.f32.mxu1 %vm16470_vm1, %v16471_v11  ;;  %15657 = vmatpush3.bf16.msra.mxu1 %v15656_v29 }
0x205c   :  { %15658 = vmatprep.subr.bf16.mxu1 %v16469_v7 }
0x205f   :  { %15660 = vmatpush3.bf16.msra.mxu1 %v15659_v1 }
0x2060   :  { %15685 = vmatprep.subr.bf16.mxu1 %v16469_v7 }
0x2129   :  { %v2808_v38 = vpop.f32.mrb[46].mxu1 }
0x212a   :  { %2984 = vrot.lane.b32.xlu1 %v2808_v38, %s16485_s25  ;;  %v14519_v41 = vpop.f32.mrb[47].mxu1  ;;  %v13280_v38 = vld [vmem:[%s19396_s5 + $0x150] sm:$0xff] }
0x212b   :  { %v13281_v41 = vld [vmem:[%s19396_s5 + $0x158] sm:$0xff] }
0x212d   :  { %v2975_v42 = vpop.f32.mrb[48].mxu1 }
0x212e   :  { %2988 = vrot.lane.b32.xlu0 %v2975_v42, %s16486_s26  ;;  %v14529_v44 = vpop.f32.mrb[49].mxu1  ;;  %v15677_v42 = vpack.c.bf16 %v13281_v41, %v13280_v38 }
0x212f   :  { %v13282_v44 = vld [vmem:[%s19396_s5 + $0x160] sm:$0xff] }
0x219c   :  { %v2985_v47 = vpop.permute.xlu1 %2984 }
0x219d   :  { %v2992_v49 = vsel %vm818_vm7, %v2991_v48, %v2985_v47  ;;  %v15680_v47 = vpack.c.bf16 %v13283_v45, %v13282_v44  ;;  %v13284_v48 = vld [vmem:[%s19396_s5 + $0x170] sm:$0xff] }
0x21a0   :  { %v2989_v50 = vpop.permute.xlu0 %2988 }
0x21a1   :  { %v2993_v51 = vsel %vm820_vm8, %v2992_v49, %v2989_v50  ;;  %v13285_v49 = vld [vmem:[%s19396_s5 + $0x178] sm:$0xff] }
0x21a2   :  { %14539 = vmatmul.mubr.msk.f32.vlgmr.msra.gmra.mrb[16].mxu0 %vm60_vm2, %v2993_v51  ;;  %v15683_v50 = vpack.c.bf16 %v13285_v49, %v13284_v48  ;;  %v3120_v51 = vrot.slane %v17061_v14, %v16782_v57 }
0x21a3   :  { %14584 = vmatprep.mubr.msk.f32.mxu0 %vm16470_vm1, %v16471_v11  ;;  %15663 = vmatpush3.bf16.msra.mxu0 %v15662_v13 }
0x21a4   :  { %15664 = vmatprep.subr.bf16.mxu0 %v16469_v7 }
0x21a7   :  { %15666 = vmatpush3.bf16.msra.mxu0 %v15665_v16  ;;  %v17284_v16 = vld [vmem:[%s19393_s3 + $0x78] sm:$0xff] }
0x21a8   :  { %15667 = vmatprep.subr.bf16.mxu0 %v16469_v7  ;;  %v15689_v17 = vpack.c.bf16 %v17284_v16, %v17279_v15 }
0x21ab   :  { %15669 = vmatpush3.bf16.msra.mxu0 %v15668_v19 }
0x21ac   :  { %15670 = vmatprep.subr.bf16.mxu0 %v16469_v7 }
0x21af   :  { %15672 = vmatpush3.bf16.msra.mxu0 %v15671_v60 }
0x21b0   :  { %15673 = vmatprep.subr.bf16.mxu0 %v16469_v7 }
0x21b3   :  { %15675 = vmatpush3.bf16.msra.mxu0 %v15674_v33 }
0x21b4   :  { %15676 = vmatprep.subr.bf16.mxu0 %v16469_v7 }
0x21b7   :  { %15678 = vmatpush3.bf16.msra.mxu0 %v15677_v42 }
0x21b8   :  { %15679 = vmatprep.subr.bf16.mxu0 %v16469_v7 }
0x21bb   :  { %15681 = vmatpush3.bf16.msra.mxu0 %v15680_v47 }
0x21bc   :  { %15682 = vmatprep.subr.bf16.mxu0 %v16469_v7 }
0x21bf   :  { %15684 = vmatpush3.bf16.msra.mxu0 %v15683_v50 }
0x21c0   :  { %14628 = vmatprep.subr.mxu0 %v16471_v11 }
0x2275   :  { %v3079_v9 = vpop.f32.mrb[16].mxu0 }
0x2276   :  { %v3083_v10 = vadd.f32 %v3079_v9, %v17026_v43  ;;  %v14540_v12 = vpop.f32.mrb[17].mxu0 }
0x2278   :  { %v17168_v54 = vadd.f32 %v3087_v8, %v3083_v10 }
0x227a   :  { %v3089_v27 = vsel %vm31_vm0, %v17168_v54, 0.0 }
0x227b   :  { %3090 = vadd.xlane.f32.xlu1 %v3089_v27 }
0x2308   :  { %v3091_v55 = vpop.xlane.xlu1 %3090 }
0x2309   :  { %v3092_v56 = vmul.f32 0.03125, %v3091_v55 }
0x230b   :  { %v3093_v58 = vsub.f32 %v17168_v54, %v3092_v56 }
0x230d   :  { %v3094_v59 = vmul.f32 %v3093_v58, %v3093_v58 }
0x230f   :  { %v3095_v46 = vsel %vm31_vm0, %v3094_v59, 0.0  ;;  %v3290_v59 = vrot.slane %v17061_v14, %v16789_v6  ;;  %v17267_v14 = vld [vmem:[%s19393_s3 + $0x60] sm:$0xff] }
0x2310   :  { %3096 = vadd.xlane.f32.xlu0 %v3095_v46 }
0x239d   :  { %v3097_v24 = vpop.xlane.xlu0 %3096 }
0x239e   :  { %v3098_v25 = vmul.f32 0.03125, %v3097_v24 }
0x23a0   :  { %v3099_v26 = vadd.f32 1e-06, %v3098_v25  ;;  %v17293_v25 = vld [vmem:[%s19394_s2 + $0x18] sm:$0xff] }
0x23a2   :  { %16263 = vrsqrt.f32 %v3099_v26  ;;  %v3315_v26 = vrot.slane %v17293_v25, %v16573_v21 }
0x23ac   :  { %v16264_v31 = vpop.eup %16263 }
0x23ad   :  { %v3101_v28 = vmul.f32 %v16264_v31, %v3093_v58 }
0x23af   :  { %v3106_v34 = vmul.f32 %v3105_v20, %v3101_v28  ;;  %v3320_v28 = vrot.slane %v17293_v25, %v16581_v23 }
0x23b1   :  { %v3111_v52 = vadd.f32 %v3110_v36, %v3106_v34 }
0x23b3   :  { %14550 = vmatmul.mubr.msk.f32.vlgmr.msra.gmra.mrb[50].mxu1 %vm60_vm2, %v3111_v52  ;;  %v3325_v52 = vrot.slane %v17293_v25, %v16591_v30 }
0x23b4   :  { %14595 = vmatprep.mubr.msk.f32.mxu1 %vm16470_vm1, %v16471_v11 }
0x2486   :  { %v3190_v8 = vpop.f32.mrb[50].mxu1 }
0x2487   :  { %v3191_v9 = vadd.f32 %v3190_v8, %v3120_v51  ;;  %v14551_v10 = vpop.f32.mrb[51].mxu1 }
0x2489   :  { %v3195_v12 = vmul.f32 0.70710677, %v3191_v9  ;;  %v3194_v55 = vmul.f32 0.5, %v3191_v9 }
0x248b   :  { %16265 = verf.f32 %v3195_v12 }
0x2495   :  { %v16266_v27 = vpop.eup %16265 }
0x2496   :  { %v3197_v56 = vadd.f32 1.0, %v16266_v27 }
0x2498   :  { %v3198_v58 = vmul.f32 %v3197_v56, %v3194_v55 }
0x249a   :  { %14585 = vmatmul.mubr.f32.vlgmr.msra.gmra.mrb[18].mxu0 %v3198_v58 }
0x249b   :  { %14630 = vmatprep.mubr.msk.f32.mxu0 %vm16470_vm1, %v16471_v11 }
0x256d   :  { %v3282_v46 = vpop.f32.mrb[18].mxu0 }
0x256e   :  { %v3286_v22 = vadd.f32 %v3282_v46, %v17168_v54  ;;  %v14586_v3 = vpop.f32.mrb[19].mxu0  ;;  %v17272_v54 = vld [vmem:[%s19393_s3 + $0x68] sm:$0xff] }
0x256f   :  { %v15686_v13 = vpack.c.bf16 %v17272_v54, %v17267_v14 }
0x2570   :  { %v17258_v29 = vadd.f32 %v3290_v59, %v3286_v22 }
0x2571   :  { %15687 = vmatpush3.bf16.msra.mxu1 %v15686_v13 }
0x2572   :  { %v3299_v62 = vsel %vm31_vm0, %v17258_v29, 0.0  ;;  %15688 = vmatprep.subr.bf16.mxu1 %v16469_v7 }
0x2573   :  { %3300 = vadd.xlane.f32.xlu0 %v3299_v62 }
0x2575   :  { %15690 = vmatpush3.bf16.msra.mxu1 %v15689_v17 }
0x2576   :  { %14598 = vmatprep.subr.mxu1 %v16471_v11 }
0x2600   :  { %v3301_v63 = vpop.xlane.xlu0 %3300 }
0x2601   :  { %v3302_v1 = vmul.f32 0.03125, %v3301_v63 }
0x2603   :  { %v3303_v2 = vsub.f32 %v17258_v29, %v3302_v1 }
0x2605   :  { %v3304_v4 = vmul.f32 %v3303_v2, %v3303_v2 }
0x2607   :  { %v3305_v5 = vsel %vm31_vm0, %v3304_v4, 0.0 }
0x2608   :  { %3306 = vadd.xlane.f32.xlu1 %v3305_v5 }
0x2695   :  { %v3307_v18 = vpop.xlane.xlu1 %3306 }
0x2696   :  { %v3308_v19 = vmul.f32 0.03125, %v3307_v18 }
0x2698   :  { %v3309_v24 = vadd.f32 1e-06, %v3308_v19 }
0x269a   :  { %16267 = vrsqrt.f32 %v3309_v24 }
0x26a4   :  { %v16268_v20 = vpop.eup %16267 }
0x26a5   :  { %v3311_v31 = vmul.f32 %v16268_v20, %v3303_v2 }
0x26a7   :  { %v3316_v36 = vmul.f32 %v3315_v26, %v3311_v31 }
0x26a9   :  { %v3321_v34 = vadd.f32 %v3320_v28, %v3316_v36 }
0x26ab   :  { %14596 = vmatmul.mubr.msk.f32.vlgmr.msra.gmra.mrb[52].mxu1 %vm60_vm2, %v3321_v34 }
0x26ac   :  { %14600 = vmatprep.mubr.msk.f32.mxu1 %vm16470_vm1, %v16471_v11 }
0x277e   :  { %v3395_v53 = vpop.f32.mrb[52].mxu1 }
0x277f   :  { %v17304_v32 = vadd.f32 %v3395_v53, %v3325_v52  ;;  %v14597_v60 = vpop.f32.mrb[53].mxu1 }
0x2781   :  { %3400 = vrot.lane.b32.xlu0 %v17304_v32, %s16473_s13 }
0x2785   :  { %3567 = vrot.lane.b32.xlu0 %v17304_v32, %s16474_s14 }
0x2789   :  { %3565 = vrot.lane.b32.xlu0 %v17304_v32, %s16472_s12 }
0x27f3   :  { %v3401_v35 = vpop.permute.xlu0 %3400 }
0x27f4   :  { %14599 = vmatpush3.xpose.msk.msra.mxu1 %vm137_vm3, %v3401_v35 }
0x27f5   :  { %14603 = vmatprep.subr.mxu1 %v16471_v11 }
0x27f7   :  { %14601 = vmatmul.mubr.msk.f32.vlgmr.msra.gmra.mrb[54].mxu1 %vm137_vm3, %v17304_v32  ;;  %v3568_v8 = vpop.permute.xlu0 %3567 }
0x27f8   :  { %14605 = vmatprep.mubr.msk.f32.mxu1 %vm16470_vm1, %v16471_v11 }
0x27fb   :  { %v3566_v10 = vpop.permute.xlu0 %3565 }
0x28ca   :  { %v3472_v37 = vpop.f32.mrb[54].mxu1 }
0x28cb   :  { %v3476_v33 = vmul.f32 0.35355338, %v3472_v37  ;;  %v14602_v38 = vpop.f32.mrb[55].mxu1 }
0x28cd   :  { %v3477_v41 = vsel %vm213_vm4, %v3476_v33, -inf }
0x28ce   :  { %3478 = vmax.xlane.f32.xlu1 %v3477_v41 }
0x295b   :  { %v3479_v42 = vpop.xlane.xlu1 %3478 }
0x295c   :  { %v3480_v44 = vsub.f32 %v3476_v33, %v3479_v42 }
0x295e   :  { %v3481_v45 = vmul.f32 1.442695, %v3480_v44 }
0x2960   :  { %16269 = vpow2.f32 %v3481_v45 }
0x296a   :  { %v16270_v47 = vpop.eup %16269 }
0x296b   :  { %v3483_v48 = vsel %vm213_vm4, %v16270_v47, 0.0 }
0x296c   :  { %3484 = vadd.xlane.f32.xlu1 %v3483_v48 }
0x297d   :  { %3488 = vrot.lane.b32.xlu1 %v17304_v32, %s16479_s19 }
0x29f9   :  { %v3485_v49 = vpop.xlane.xlu1 %3484 }
0x29fa   :  { %16271 = vrcp.f32 %v3485_v49 }
0x29fd   :  { %v3489_v50 = vpop.permute.xlu1 %3488 }
0x29fe   :  { %14604 = vmatpush3.msk.msra.mxu1 %vm231_vm5, %v3489_v50  ;;  %v16111_v50 = vpack.i.bf16 %v17272_v54, %v17267_v14 }
0x29ff   :  { %14608 = vmatprep.subr.mxu1 %v16471_v11 }
0x2a04   :  { %v16272_v51 = vpop.eup %16271 }
0x2a05   :  { %v3487_v9 = vmul.f32 %v16272_v51, %v16270_v47  ;;  %v16116_v51 = vpack.i.bf16 %v17284_v16, %v17279_v15 }
0x2a07   :  { %14606 = vmatmul.mubr.msk.f32.vlgmr.msra.gmra.mrb[56].mxu1 %vm227_vm6, %v3487_v9 }
0x2a08   :  { %14609 = vmatpush3.xpose.msk.msra.mxu1 %vm137_vm3, %v3568_v8  ;;  %14610 = vmatprep.mubr.msk.f32.mxu1 %vm16470_vm1, %v16471_v11 }
0x2a09   :  { %14613 = vmatprep.subr.mxu1 %v16471_v11 }
0x2a0b   :  { %14611 = vmatmul.mubr.msk.f32.vlgmr.msra.gmra.mrb[58].mxu1 %vm137_vm3, %v3566_v10 }
0x2a0c   :  { %14615 = vmatprep.mubr.msk.f32.mxu1 %vm16470_vm1, %v16471_v11 }
0x2ada   :  { %v17332_v12 = vpop.f32.mrb[56].mxu1 }
0x2adb   :  { %v14607_v27 = vpop.f32.mrb[57].mxu1 }
0x2ade   :  { %v3639_v55 = vpop.f32.mrb[58].mxu1 }
0x2adf   :  { %v3643_v56 = vmul.f32 0.35355338, %v3639_v55  ;;  %v14612_v58 = vpop.f32.mrb[59].mxu1 }
0x2ae1   :  { %v3644_v59 = vsel %vm213_vm4, %v3643_v56, -inf }
0x2ae2   :  { %3645 = vmax.xlane.f32.xlu1 %v3644_v59 }
0x2af3   :  { %3734 = vrot.lane.b32.xlu1 %v17304_v32, %s16475_s15 }
0x2af7   :  { %3732 = vrot.lane.b32.xlu1 %v17304_v32, %s16476_s16 }
0x2afb   :  { %3899 = vrot.lane.b32.xlu1 %v17304_v32, %s16478_s18 }
0x2b6f   :  { %v3646_v46 = vpop.xlane.xlu1 %3645 }
0x2b70   :  { %v3647_v22 = vsub.f32 %v3643_v56, %v3646_v46 }
0x2b72   :  { %v3648_v3 = vmul.f32 1.442695, %v3647_v22 }
0x2b73   :  { %v3735_v1 = vpop.permute.xlu1 %3734 }
0x2b74   :  { %16273 = vpow2.f32 %v3648_v3 }
0x2b77   :  { %v3733_v5 = vpop.permute.xlu1 %3732 }
0x2b7b   :  { %v3900_v18 = vpop.permute.xlu1 %3899 }
0x2b7e   :  { %v16274_v62 = vpop.eup %16273 }
0x2b7f   :  { %v3650_v63 = vsel %vm213_vm4, %v16274_v62, 0.0 }
0x2b80   :  { %3651 = vadd.xlane.f32.xlu0 %v3650_v63 }
0x2b96   :  { %3655 = vrot.lane.b32.xlu0 %v17304_v32, %s16482_s22 }
0x2b9a   :  { %3901 = vrot.lane.b32.xlu0 %v17304_v32, %s16477_s17 }
0x2c0d   :  { %v3652_v2 = vpop.xlane.xlu0 %3651 }
0x2c0e   :  { %16275 = vrcp.f32 %v3652_v2 }
0x2c11   :  { %v3656_v4 = vpop.permute.xlu0 %3655 }
0x2c12   :  { %14614 = vmatpush3.msk.msra.mxu1 %vm231_vm5, %v3656_v4 }
0x2c13   :  { %14618 = vmatprep.subr.mxu1 %v16471_v11 }
0x2c15   :  { %v3902_v13 = vpop.permute.xlu0 %3901 }
0x2c16   :  { %14629 = vmatpush3.xpose.msk.msra.mxu0 %vm137_vm3, %v3902_v13 }
0x2c17   :  { %15691 = vmatprep.subr.bf16.mxu0 %v16469_v7 }
0x2c18   :  { %v16276_v17 = vpop.eup %16275 }
0x2c19   :  { %14631 = vmatmul.mubr.msk.f32.vlgmr.msra.gmra.mrb[20].mxu0 %vm137_vm3, %v3900_v18  ;;  %v3654_v19 = vmul.f32 %v16276_v17, %v16274_v62 }
0x2c1a   :  { %14646 = vmatprep.mubr.msk.f32.mxu0 %vm16470_vm1, %v16471_v11 }
0x2c1b   :  { %14616 = vmatmul.mubr.msk.f32.vlgmr.msra.gmra.mrb[60].mxu1 %vm227_vm6, %v3654_v19  ;;  %v4174_v19 = vrot.slane %v17293_v25, %v16687_v61 }
0x2c1c   :  { %14619 = vmatpush3.xpose.msk.msra.mxu1 %vm137_vm3, %v3735_v1  ;;  %14620 = vmatprep.mubr.msk.f32.mxu1 %vm16470_vm1, %v16471_v11 }
0x2c1d   :  { %14623 = vmatprep.subr.mxu1 %v16471_v11 }
0x2c1f   :  { %14621 = vmatmul.mubr.msk.f32.vlgmr.msra.gmra.mrb[62].mxu1 %vm137_vm3, %v3733_v5 }
0x2c20   :  { %14625 = vmatprep.mubr.msk.f32.mxu1 %vm16470_vm1, %v16471_v11 }
0x2cec   :  { %v3973_v24 = vpop.f32.mrb[20].mxu0 }
0x2ced   :  { %v3977_v26 = vmul.f32 0.35355338, %v3973_v24  ;;  %v14632_v20 = vpop.f32.mrb[21].mxu0 }
0x2cee   :  { %v3728_v31 = vpop.f32.mrb[60].mxu1 }
0x2cef   :  { %v14617_v28 = vpop.f32.mrb[61].mxu1  ;;  %v3978_v36 = vsel %vm213_vm4, %v3977_v26, -inf }
0x2cf0   :  { %3979 = vmax.xlane.f32.xlu1 %v3978_v36 }
0x2cf2   :  { %v3806_v34 = vpop.f32.mrb[62].mxu1 }
0x2cf3   :  { %v3810_v52 = vmul.f32 0.35355338, %v3806_v34  ;;  %v14622_v53 = vpop.f32.mrb[63].mxu1 }
0x2cf5   :  { %v3811_v60 = vsel %vm213_vm4, %v3810_v52, -inf }
0x2cf6   :  { %3812 = vmax.xlane.f32.xlu0 %v3811_v60  ;;  %v13309_v60 = vld [vmem:[%s19395_s4 + $0x60] sm:$0xff] }
0x2d01   :  { %3822 = vrot.lane.b32.xlu1 %v17304_v32, %s16480_s20 }
0x2d05   :  { %16112 = vrot.lane.b32.xlu1 %v16111_v50, %s16483_s23  ;;  %v13318_v50 = vld [vmem:[%s19396_s5 + $0x1a0] sm:$0xff] }
0x2d09   :  { %16117 = vrot.lane.b32.xlu1 %v16116_v51, %s16483_s23  ;;  %v13319_v51 = vld [vmem:[%s19396_s5 + $0x1a8] sm:$0xff] }
0x2d7d   :  { %v3980_v35 = vpop.xlane.xlu1 %3979 }
0x2d7e   :  { %v3981_v37 = vsub.f32 %v3977_v26, %v3980_v35  ;;  %v13310_v35 = vld [vmem:[%s19395_s4 + $0x68] sm:$0xff] }
0x2d80   :  { %v3982_v33 = vmul.f32 1.442695, %v3981_v37  ;;  %v15698_v37 = vpack.c.bf16 %v13310_v35, %v13309_v60 }
0x2d81   :  { %v3823_v38 = vpop.permute.xlu1 %3822 }
0x2d82   :  { %16277 = vpow2.f32 %v3982_v33  ;;  %14624 = vmatpush3.msk.msra.mxu1 %vm231_vm5, %v3823_v38  ;;  %v13311_v33 = vld [vmem:[%s19395_s4 + $0x70] sm:$0xff]  ;;  %v13312_v38 = vld [vmem:[%s19395_s4 + $0x78] sm:$0xff] }
0x2d83   :  { %v3813_v41 = vpop.xlane.xlu0 %3812  ;;  %14633 = vmatprep.subr.mxu1 %v16471_v11 }
0x2d84   :  { %v3814_v42 = vsub.f32 %v3810_v52, %v3813_v41  ;;  %v15701_v41 = vpack.c.bf16 %v13312_v38, %v13311_v33 }
0x2d85   :  { %v16113_v54 = vpop.permute.xlu1 %16112 }
0x2d86   :  { %v3815_v44 = vmul.f32 1.442695, %v3814_v42  ;;  %v16115_v15 = vunpack.i.h.bf16 %v16113_v54  ;;  %v16114_v16 = vunpack.i.l.bf16 %v16113_v54  ;;  %v13314_v42 = vld [vmem:[%s19396_s5 + $0x180] sm:$0xff]  ;;  %v4197_v54 = vrot.slane %v17293_v25, %v16737_v40 }
0x2d88   :  { %16279 = vpow2.f32 %v3815_v44  ;;  %v15692_v56 = vpack.c.bf16 %v16115_v15, %v16114_v16  ;;  %v13315_v44 = vld [vmem:[%s19396_s5 + $0x188] sm:$0xff] }
0x2d89   :  { %v16118_v58 = vpop.permute.xlu1 %16117 }
0x2d8a   :  { %v16120_v59 = vunpack.i.h.bf16 %v16118_v58  ;;  %v16119_v46 = vunpack.i.l.bf16 %v16118_v58  ;;  %15693 = vmatpush3.bf16.msra.mxu0 %v15692_v56  ;;  %v13320_v56 = vld [vmem:[%s19396_s5 + $0x1b0] sm:$0xff]  ;;  %v13321_v58 = vld [vmem:[%s19396_s5 + $0x1b8] sm:$0xff] }
0x2d8b   :  { %15694 = vmatprep.subr.bf16.mxu0 %v16469_v7 }
0x2d8c   :  { %v16278_v45 = vpop.eup %16277  ;;  %v15695_v22 = vpack.c.bf16 %v16120_v59, %v16119_v46  ;;  %v15713_v59 = vpack.c.bf16 %v13321_v58, %v13320_v56  ;;  %v13322_v46 = vld [vmem:[%s19396_s5 + $0x1c0] sm:$0xff] }
0x2d8d   :  { %v3984_v47 = vsel %vm213_vm4, %v16278_v45, 0.0 }
0x2d8e   :  { %3985 = vadd.xlane.f32.xlu0 %v3984_v47  ;;  %15696 = vmatpush3.bf16.msra.mxu0 %v15695_v22  ;;  %v15704_v47 = vpack.c.bf16 %v13315_v44, %v13314_v42  ;;  %v13323_v22 = vld [vmem:[%s19396_s5 + $0x1c8] sm:$0xff] }
0x2d8f   :  { %15703 = vmatprep.subr.bf16.mxu0 %v16469_v7 }
0x2d92   :  { %v16280_v48 = vpop.eup %16279 }
0x2d93   :  { %v3817_v49 = vsel %vm213_vm4, %v16280_v48, 0.0 }
0x2d94   :  { %3818 = vadd.xlane.f32.xlu0 %v3817_v49 }
0x2daa   :  { %3989 = vrot.lane.b32.xlu0 %v17304_v32, %s16481_s21 }
0x2dae   :  { %4067 = vrot.lane.b32.xlu0 %v3728_v31, %s16484_s24 }
0x2e1b   :  { %v3986_v8 = vpop.xlane.xlu0 %3985 }
0x2e21   :  { %v3819_v9 = vpop.xlane.xlu0 %3818 }
0x2e22   :  { %16281 = vrcp.f32 %v3819_v9 }
0x2e23   :  { %16283 = vrcp.f32 %v3986_v8  ;;  %v15710_v8 = vpack.c.bf16 %v13319_v51, %v13318_v50  ;;  %v17516_v50 = vld [vmem:[%s19393_s3 + $0x98] sm:$0xff] }
0x2e25   :  { %v3990_v32 = vpop.permute.xlu0 %3989 }
0x2e29   :  { %v4068_v2 = vpop.permute.xlu0 %4067 }
0x2e2a   :  { %v4078_v5 = vsel %vm137_vm3, %v17332_v12, %v4068_v2  ;;  %v13326_v2 = vld [vmem:[%s19396_s5 + $0x1e0] sm:$0xff] }
0x2e2c   :  { %v16282_v10 = vpop.eup %16281 }
0x2e2d   :  { %v3821_v27 = vmul.f32 %v16282_v10, %v16280_v48  ;;  %v16284_v55 = vpop.eup %16283  ;;  %v13317_v48 = vld [vmem:[%s19396_s5 + $0x198] sm:$0xff] }
0x2e2e   :  { %v3988_v14 = vmul.f32 %v16284_v55, %v16278_v45  ;;  %v13316_v45 = vld [vmem:[%s19396_s5 + $0x190] sm:$0xff]  ;;  %v4192_v55 = vrot.slane %v17293_v25, %v16734_v39 }
0x2e2f   :  { %14626 = vmatmul.mubr.msk.f32.vlgmr.msra.gmra.mrb[64].mxu1 %vm227_vm6, %v3821_v27  ;;  %v15707_v49 = vpack.c.bf16 %v13317_v48, %v13316_v45 }
0x2e30   :  { %14634 = vmatpush3.msk.msra.mxu1 %vm231_vm5, %v3990_v32  ;;  %14635 = vmatprep.mubr.msk.f32.mxu1 %vm16470_vm1, %v16471_v11 }
0x2e31   :  { %15697 = vmatprep.subr.bf16.mxu1 %v16469_v7 }
0x2e33   :  { %14636 = vmatmul.mubr.msk.f32.vlgmr.msra.gmra.mrb[66].mxu1 %vm227_vm6, %v3988_v14 }
0x2e34   :  { %14657 = vmatprep.mubr.msk.f32.mxu1 %vm16470_vm1, %v16471_v11  ;;  %15699 = vmatpush3.bf16.msra.mxu1 %v15698_v37 }
0x2e35   :  { %15700 = vmatprep.subr.bf16.mxu1 %v16469_v7 }
0x2e38   :  { %15702 = vmatpush3.bf16.msra.mxu1 %v15701_v41 }
0x2e39   :  { %15727 = vmatprep.subr.bf16.mxu1 %v16469_v7 }
0x2f02   :  { %v3895_v3 = vpop.f32.mrb[64].mxu1 }
0x2f03   :  { %4071 = vrot.lane.b32.xlu1 %v3895_v3, %s16485_s25  ;;  %v14627_v62 = vpop.f32.mrb[65].mxu1  ;;  %v15716_v3 = vpack.c.bf16 %v13323_v22, %v13322_v46 }
0x2f04   :  { %v13324_v62 = vld [vmem:[%s19396_s5 + $0x1d0] sm:$0xff] }
0x2f06   :  { %v4062_v63 = vpop.f32.mrb[66].mxu1 }
0x2f07   :  { %4075 = vrot.lane.b32.xlu0 %v4062_v63, %s16486_s26  ;;  %v14637_v1 = vpop.f32.mrb[67].mxu1  ;;  %v13325_v63 = vld [vmem:[%s19396_s5 + $0x1d8] sm:$0xff] }
0x2f08   :  { %v15719_v1 = vpack.c.bf16 %v13325_v63, %v13324_v62 }
0x2f75   :  { %v4072_v4 = vpop.permute.xlu1 %4071 }
0x2f76   :  { %v4079_v13 = vsel %vm818_vm7, %v4078_v5, %v4072_v4  ;;  %v13327_v4 = vld [vmem:[%s19396_s5 + $0x1e8] sm:$0xff] }
0x2f77   :  { %v15722_v5 = vpack.c.bf16 %v13327_v4, %v13326_v2 }
0x2f79   :  { %v4076_v17 = vpop.permute.xlu0 %4075 }
0x2f7a   :  { %v4080_v18 = vsel %vm820_vm8, %v4079_v13, %v4076_v17  ;;  %v13328_v13 = vld [vmem:[%s19396_s5 + $0x1f0] sm:$0xff]  ;;  %v13329_v17 = vld [vmem:[%s19396_s5 + $0x1f8] sm:$0xff] }
0x2f7b   :  { %14647 = vmatmul.mubr.msk.f32.vlgmr.msra.gmra.mrb[22].mxu0 %vm60_vm2, %v4080_v18  ;;  %v15725_v18 = vpack.c.bf16 %v13329_v17, %v13328_v13 }
0x2f7c   :  { %14692 = vmatprep.mubr.msk.f32.mxu0 %vm16470_vm1, %v16471_v11  ;;  %15705 = vmatpush3.bf16.msra.mxu0 %v15704_v47 }
0x2f7d   :  { %15706 = vmatprep.subr.bf16.mxu0 %v16469_v7 }
0x2f80   :  { %15708 = vmatpush3.bf16.msra.mxu0 %v15707_v49  ;;  %v17511_v49 = vld [vmem:[%s19393_s3 + $0x90] sm:$0xff] }
0x2f81   :  { %15709 = vmatprep.subr.bf16.mxu0 %v16469_v7  ;;  %v15731_v51 = vpack.c.bf16 %v17516_v50, %v17511_v49 }
0x2f84   :  { %15711 = vmatpush3.bf16.msra.mxu0 %v15710_v8 }
0x2f85   :  { %15712 = vmatprep.subr.bf16.mxu0 %v16469_v7 }
0x2f88   :  { %15714 = vmatpush3.bf16.msra.mxu0 %v15713_v59 }
0x2f89   :  { %15715 = vmatprep.subr.bf16.mxu0 %v16469_v7 }
0x2f8c   :  { %15717 = vmatpush3.bf16.msra.mxu0 %v15716_v3 }
0x2f8d   :  { %15718 = vmatprep.subr.bf16.mxu0 %v16469_v7 }
0x2f90   :  { %15720 = vmatpush3.bf16.msra.mxu0 %v15719_v1 }
0x2f91   :  { %15721 = vmatprep.subr.bf16.mxu0 %v16469_v7 }
0x2f94   :  { %15723 = vmatpush3.bf16.msra.mxu0 %v15722_v5 }
0x2f95   :  { %15724 = vmatprep.subr.bf16.mxu0 %v16469_v7 }
0x2f98   :  { %15726 = vmatpush3.bf16.msra.mxu0 %v15725_v18 }
0x2f99   :  { %14736 = vmatprep.subr.mxu0 %v16471_v11 }
0x304e   :  { %v4166_v24 = vpop.f32.mrb[22].mxu0 }
0x304f   :  { %v4170_v26 = vadd.f32 %v4166_v24, %v17258_v29  ;;  %v14648_v20 = vpop.f32.mrb[23].mxu0 }
0x3051   :  { %v17400_v31 = vadd.f32 %v4174_v19, %v4170_v26  ;;  %v4207_v19 = vrot.slane %v17293_v25, %v16782_v57 }
0x3053   :  { %v4176_v12 = vsel %vm31_vm0, %v17400_v31, 0.0 }
0x3054   :  { %4177 = vadd.xlane.f32.xlu1 %v4176_v12 }
0x30e1   :  { %v4178_v28 = vpop.xlane.xlu1 %4177 }
0x30e2   :  { %v4179_v36 = vmul.f32 0.03125, %v4178_v28 }
0x30e4   :  { %v4180_v34 = vsub.f32 %v17400_v31, %v4179_v36 }
0x30e6   :  { %v4181_v52 = vmul.f32 %v4180_v34, %v4180_v34 }
0x30e8   :  { %v4182_v53 = vsel %vm31_vm0, %v4181_v52, 0.0 }
0x30e9   :  { %4183 = vadd.xlane.f32.xlu0 %v4182_v53  ;;  %v4377_v53 = vrot.slane %v17293_v25, %v16789_v6  ;;  %v17499_v25 = vld [vmem:[%s19393_s3 + $0x80] sm:$0xff] }
0x3176   :  { %v4184_v9 = vpop.xlane.xlu0 %4183 }
0x3177   :  { %v4185_v10 = vmul.f32 0.03125, %v4184_v9 }
0x3179   :  { %v4186_v27 = vadd.f32 1e-06, %v4185_v10 }
0x317b   :  { %16285 = vrsqrt.f32 %v4186_v27  ;;  %v17525_v27 = vld [vmem:[%s19394_s2 + $0x20] sm:$0xff] }
0x317c   :  { %v4412_v56 = vrot.slane %v17525_v27, %v16591_v30 }
0x3185   :  { %v16286_v32 = vpop.eup %16285 }
0x3186   :  { %v4188_v14 = vmul.f32 %v16286_v32, %v4180_v34 }
0x3188   :  { %v4193_v15 = vmul.f32 %v4192_v55, %v4188_v14  ;;  %v4402_v55 = vrot.slane %v17525_v27, %v16573_v21 }
0x318a   :  { %v4198_v16 = vadd.f32 %v4197_v54, %v4193_v15  ;;  %v4407_v54 = vrot.slane %v17525_v27, %v16581_v23 }
0x318c   :  { %14658 = vmatmul.mubr.msk.f32.vlgmr.msra.gmra.mrb[68].mxu1 %vm60_vm2, %v4198_v16 }
0x318d   :  { %14703 = vmatprep.mubr.msk.f32.mxu1 %vm16470_vm1, %v16471_v11 }
0x325f   :  { %v4277_v24 = vpop.f32.mrb[68].mxu1 }
0x3260   :  { %v4278_v26 = vadd.f32 %v4277_v24, %v4207_v19  ;;  %v14659_v20 = vpop.f32.mrb[69].mxu1 }
0x3262   :  { %v4282_v12 = vmul.f32 0.70710677, %v4278_v26  ;;  %v4281_v36 = vmul.f32 0.5, %v4278_v26 }
0x3264   :  { %16287 = verf.f32 %v4282_v12 }
0x326e   :  { %v16288_v28 = vpop.eup %16287 }
0x326f   :  { %v4284_v34 = vadd.f32 1.0, %v16288_v28 }
0x3271   :  { %v4285_v52 = vmul.f32 %v4284_v34, %v4281_v36 }
0x3273   :  { %14693 = vmatmul.mubr.f32.vlgmr.msra.gmra.mrb[24].mxu0 %v4285_v52 }
0x3274   :  { %14738 = vmatprep.mubr.msk.f32.mxu0 %vm16470_vm1, %v16471_v11 }
0x3346   :  { %v4369_v60 = vpop.f32.mrb[24].mxu0 }
0x3347   :  { %v4373_v35 = vadd.f32 %v4369_v60, %v17400_v31  ;;  %v14694_v37 = vpop.f32.mrb[25].mxu0  ;;  %v17504_v31 = vld [vmem:[%s19393_s3 + $0x88] sm:$0xff] }
0x3348   :  { %v15728_v48 = vpack.c.bf16 %v17504_v31, %v17499_v25 }
0x3349   :  { %v17490_v33 = vadd.f32 %v4377_v53, %v4373_v35 }
0x334a   :  { %15729 = vmatpush3.bf16.msra.mxu1 %v15728_v48 }
0x334b   :  { %v4386_v38 = vsel %vm31_vm0, %v17490_v33, 0.0  ;;  %15730 = vmatprep.subr.bf16.mxu1 %v16469_v7 }
0x334c   :  { %4387 = vadd.xlane.f32.xlu0 %v4386_v38 }
0x334e   :  { %15732 = vmatpush3.bf16.msra.mxu1 %v15731_v51 }
0x334f   :  { %14706 = vmatprep.subr.mxu1 %v16471_v11 }
0x33d9   :  { %v4388_v41 = vpop.xlane.xlu0 %4387 }
0x33da   :  { %v4389_v42 = vmul.f32 0.03125, %v4388_v41 }
0x33dc   :  { %v4390_v44 = vsub.f32 %v17490_v33, %v4389_v42 }
0x33de   :  { %v4391_v45 = vmul.f32 %v4390_v44, %v4390_v44 }
0x33e0   :  { %v4392_v47 = vsel %vm31_vm0, %v4391_v45, 0.0 }
0x33e1   :  { %4393 = vadd.xlane.f32.xlu1 %v4392_v47 }
0x346e   :  { %v4394_v8 = vpop.xlane.xlu1 %4393 }
0x346f   :  { %v4395_v9 = vmul.f32 0.03125, %v4394_v8 }
0x3471   :  { %v4396_v10 = vadd.f32 1e-06, %v4395_v9 }
0x3473   :  { %16289 = vrsqrt.f32 %v4396_v10 }
0x347d   :  { %v16290_v32 = vpop.eup %16289 }
0x347e   :  { %v4398_v14 = vmul.f32 %v16290_v32, %v4390_v44 }
0x3480   :  { %v4403_v15 = vmul.f32 %v4402_v55, %v4398_v14 }
0x3482   :  { %v4408_v16 = vadd.f32 %v4407_v54, %v4403_v15 }
0x3484   :  { %14704 = vmatmul.mubr.msk.f32.vlgmr.msra.gmra.mrb[70].mxu1 %vm60_vm2, %v4408_v16 }
0x3485   :  { %14708 = vmatprep.mubr.msk.f32.mxu1 %vm16470_vm1, %v16471_v11 }
0x3557   :  { %v4482_v58 = vpop.f32.mrb[70].mxu1 }
0x3558   :  { %v17536_v59 = vadd.f32 %v4482_v58, %v4412_v56  ;;  %v14705_v46 = vpop.f32.mrb[71].mxu1 }
0x355a   :  { %4487 = vrot.lane.b32.xlu0 %v17536_v59, %s16473_s13 }
0x355e   :  { %4654 = vrot.lane.b32.xlu0 %v17536_v59, %s16474_s14 }
0x3562   :  { %4652 = vrot.lane.b32.xlu0 %v17536_v59, %s16472_s12 }
0x35cc   :  { %v4488_v22 = vpop.permute.xlu0 %4487 }
0x35cd   :  { %14707 = vmatpush3.xpose.msk.msra.mxu1 %vm137_vm3, %v4488_v22 }
0x35ce   :  { %14711 = vmatprep.subr.mxu1 %v16471_v11 }
0x35d0   :  { %14709 = vmatmul.mubr.msk.f32.vlgmr.msra.gmra.mrb[72].mxu1 %vm137_vm3, %v17536_v59  ;;  %v4655_v26 = vpop.permute.xlu0 %4654 }
0x35d1   :  { %14713 = vmatprep.mubr.msk.f32.mxu1 %vm16470_vm1, %v16471_v11 }
0x35d4   :  { %v4653_v12 = vpop.permute.xlu0 %4652 }
0x36a3   :  { %v4559_v3 = vpop.f32.mrb[72].mxu1 }
0x36a4   :  { %v4563_v62 = vmul.f32 0.35355338, %v4559_v3  ;;  %v14710_v63 = vpop.f32.mrb[73].mxu1 }
0x36a6   :  { %v4564_v1 = vsel %vm213_vm4, %v4563_v62, -inf }
0x36a7   :  { %4565 = vmax.xlane.f32.xlu1 %v4564_v1 }
0x3734   :  { %v4566_v2 = vpop.xlane.xlu1 %4565 }
0x3735   :  { %v4567_v4 = vsub.f32 %v4563_v62, %v4566_v2 }
0x3737   :  { %v4568_v5 = vmul.f32 1.442695, %v4567_v4 }
0x3739   :  { %16291 = vpow2.f32 %v4568_v5 }
0x3743   :  { %v16292_v13 = vpop.eup %16291 }
0x3744   :  { %v4570_v17 = vsel %vm213_vm4, %v16292_v13, 0.0 }
0x3745   :  { %4571 = vadd.xlane.f32.xlu1 %v4570_v17 }
0x3756   :  { %4575 = vrot.lane.b32.xlu1 %v17536_v59, %s16479_s19 }
0x37d2   :  { %v4572_v18 = vpop.xlane.xlu1 %4571 }
0x37d3   :  { %16293 = vrcp.f32 %v4572_v18 }
0x37d6   :  { %v4576_v19 = vpop.permute.xlu1 %4575 }
0x37d7   :  { %14712 = vmatpush3.msk.msra.mxu1 %vm231_vm5, %v4576_v19 }
0x37d8   :  { %14716 = vmatprep.subr.mxu1 %v16471_v11 }
0x37dd   :  { %v16294_v24 = vpop.eup %16293 }
0x37de   :  { %v4574_v20 = vmul.f32 %v16294_v24, %v16292_v13  ;;  %v16121_v24 = vpack.i.bf16 %v17504_v31, %v17499_v25 }
0x37e0   :  { %14714 = vmatmul.mubr.msk.f32.vlgmr.msra.gmra.mrb[74].mxu1 %vm227_vm6, %v4574_v20 }
0x37e1   :  { %14717 = vmatpush3.xpose.msk.msra.mxu1 %vm137_vm3, %v4655_v26  ;;  %14718 = vmatprep.mubr.msk.f32.mxu1 %vm16470_vm1, %v16471_v11  ;;  %v16126_v26 = vpack.i.bf16 %v17516_v50, %v17511_v49 }
0x37e2   :  { %14721 = vmatprep.subr.mxu1 %v16471_v11 }
0x37e4   :  { %14719 = vmatmul.mubr.msk.f32.vlgmr.msra.gmra.mrb[76].mxu1 %vm137_vm3, %v4653_v12 }
0x37e5   :  { %14723 = vmatprep.mubr.msk.f32.mxu1 %vm16470_vm1, %v16471_v11 }
0x38b3   :  { %v17564_v28 = vpop.f32.mrb[74].mxu1 }
0x38b4   :  { %v14715_v36 = vpop.f32.mrb[75].mxu1 }
0x38b7   :  { %v4726_v34 = vpop.f32.mrb[76].mxu1 }
0x38b8   :  { %v4730_v52 = vmul.f32 0.35355338, %v4726_v34  ;;  %v14720_v53 = vpop.f32.mrb[77].mxu1 }
0x38ba   :  { %v4731_v60 = vsel %vm213_vm4, %v4730_v52, -inf }
0x38bb   :  { %4732 = vmax.xlane.f32.xlu1 %v4731_v60 }
0x38cc   :  { %4821 = vrot.lane.b32.xlu1 %v17536_v59, %s16475_s15 }
0x38d0   :  { %4819 = vrot.lane.b32.xlu1 %v17536_v59, %s16476_s16 }
0x38d4   :  { %4986 = vrot.lane.b32.xlu1 %v17536_v59, %s16478_s18 }
0x3948   :  { %v4733_v35 = vpop.xlane.xlu1 %4732 }
0x3949   :  { %v4734_v37 = vsub.f32 %v4730_v52, %v4733_v35 }
0x394b   :  { %v4735_v38 = vmul.f32 1.442695, %v4734_v37 }
0x394c   :  { %v4822_v44 = vpop.permute.xlu1 %4821 }
0x394d   :  { %16295 = vpow2.f32 %v4735_v38 }
0x3950   :  { %v4820_v48 = vpop.permute.xlu1 %4819 }
0x3954   :  { %v4987_v9 = vpop.permute.xlu1 %4986 }
0x3957   :  { %v16296_v41 = vpop.eup %16295 }
0x3958   :  { %v4737_v42 = vsel %vm213_vm4, %v16296_v41, 0.0 }
0x3959   :  { %4738 = vadd.xlane.f32.xlu0 %v4737_v42 }
0x396f   :  { %4742 = vrot.lane.b32.xlu0 %v17536_v59, %s16482_s22 }
0x3973   :  { %4988 = vrot.lane.b32.xlu0 %v17536_v59, %s16477_s17 }
0x39e6   :  { %v4739_v45 = vpop.xlane.xlu0 %4738 }
0x39e7   :  { %16297 = vrcp.f32 %v4739_v45 }
0x39ea   :  { %v4743_v47 = vpop.permute.xlu0 %4742 }
0x39eb   :  { %14722 = vmatpush3.msk.msra.mxu1 %vm231_vm5, %v4743_v47 }
0x39ec   :  { %14726 = vmatprep.subr.mxu1 %v16471_v11 }
0x39ee   :  { %v4989_v51 = vpop.permute.xlu0 %4988 }
0x39ef   :  { %14737 = vmatpush3.xpose.msk.msra.mxu0 %vm137_vm3, %v4989_v51 }
0x39f0   :  { %15733 = vmatprep.subr.bf16.mxu0 %v16469_v7 }
0x39f1   :  { %v16298_v8 = vpop.eup %16297 }
0x39f2   :  { %14739 = vmatmul.mubr.msk.f32.vlgmr.msra.gmra.mrb[26].mxu0 %vm137_vm3, %v4987_v9  ;;  %v4741_v10 = vmul.f32 %v16298_v8, %v16296_v41 }
0x39f3   :  { %14754 = vmatprep.mubr.msk.f32.mxu0 %vm16470_vm1, %v16471_v11 }
0x39f4   :  { %14724 = vmatmul.mubr.msk.f32.vlgmr.msra.gmra.mrb[78].mxu1 %vm227_vm6, %v4741_v10 }
0x39f5   :  { %14727 = vmatpush3.xpose.msk.msra.mxu1 %vm137_vm3, %v4822_v44  ;;  %14728 = vmatprep.mubr.msk.f32.mxu1 %vm16470_vm1, %v16471_v11 }
0x39f6   :  { %14731 = vmatprep.subr.mxu1 %v16471_v11 }
0x39f8   :  { %14729 = vmatmul.mubr.msk.f32.vlgmr.msra.gmra.mrb[80].mxu1 %vm137_vm3, %v4820_v48 }
0x39f9   :  { %14733 = vmatprep.mubr.msk.f32.mxu1 %vm16470_vm1, %v16471_v11 }
0x3ac5   :  { %v5060_v55 = vpop.f32.mrb[26].mxu0 }
0x3ac6   :  { %v5064_v32 = vmul.f32 0.35355338, %v5060_v55  ;;  %v14740_v14 = vpop.f32.mrb[27].mxu0  ;;  %v5261_v55 = vrot.slane %v17525_v27, %v16687_v61 }
0x3ac7   :  { %v4815_v54 = vpop.f32.mrb[78].mxu1 }
0x3ac8   :  { %v14725_v15 = vpop.f32.mrb[79].mxu1  ;;  %v5065_v16 = vsel %vm213_vm4, %v5064_v32, -inf }
0x3ac9   :  { %5066 = vmax.xlane.f32.xlu1 %v5065_v16 }
0x3acb   :  { %v4893_v56 = vpop.f32.mrb[80].mxu1 }
0x3acc   :  { %v4897_v58 = vmul.f32 0.35355338, %v4893_v56  ;;  %v14730_v46 = vpop.f32.mrb[81].mxu1 }
0x3ace   :  { %v4898_v22 = vsel %vm213_vm4, %v4897_v58, -inf }
0x3acf   :  { %4899 = vmax.xlane.f32.xlu0 %v4898_v22 }
0x3ada   :  { %4909 = vrot.lane.b32.xlu1 %v17536_v59, %s16480_s20 }
0x3ade   :  { %16122 = vrot.lane.b32.xlu1 %v16121_v24, %s16483_s23 }
0x3ae2   :  { %16127 = vrot.lane.b32.xlu1 %v16126_v26, %s16483_s23  ;;  %v13362_v26 = vld [vmem:[%s19396_s5 + $0x220] sm:$0xff] }
0x3b56   :  { %v5067_v3 = vpop.xlane.xlu1 %5066 }
0x3b57   :  { %v5068_v62 = vsub.f32 %v5064_v32, %v5067_v3  ;;  %v13353_v3 = vld [vmem:[%s19395_s4 + $0x80] sm:$0xff] }
0x3b59   :  { %v5069_v63 = vmul.f32 1.442695, %v5068_v62  ;;  %v13354_v62 = vld [vmem:[%s19395_s4 + $0x88] sm:$0xff] }
0x3b5a   :  { %v4910_v1 = vpop.permute.xlu1 %4909 }
0x3b5b   :  { %16299 = vpow2.f32 %v5069_v63  ;;  %14732 = vmatpush3.msk.msra.mxu1 %vm231_vm5, %v4910_v1  ;;  %v15740_v63 = vpack.c.bf16 %v13354_v62, %v13353_v3  ;;  %v13355_v1 = vld [vmem:[%s19395_s4 + $0x90] sm:$0xff]  ;;  %v5464_v3 = vrot.slane %v17525_v27, %v16789_v6 }
0x3b5c   :  { %v4900_v2 = vpop.xlane.xlu0 %4899  ;;  %14741 = vmatprep.subr.mxu1 %v16471_v11 }
0x3b5d   :  { %v4901_v4 = vsub.f32 %v4897_v58, %v4900_v2  ;;  %v13356_v2 = vld [vmem:[%s19395_s4 + $0x98] sm:$0xff] }
0x3b5e   :  { %v16123_v31 = vpop.permute.xlu1 %16122 }
0x3b5f   :  { %v4902_v5 = vmul.f32 1.442695, %v4901_v4  ;;  %v16125_v49 = vunpack.i.h.bf16 %v16123_v31  ;;  %v16124_v50 = vunpack.i.l.bf16 %v16123_v31  ;;  %v15743_v4 = vpack.c.bf16 %v13356_v2, %v13355_v1 }
0x3b61   :  { %16301 = vpow2.f32 %v4902_v5  ;;  %v15734_v53 = vpack.c.bf16 %v16125_v49, %v16124_v50  ;;  %v13358_v5 = vld [vmem:[%s19396_s5 + $0x200] sm:$0xff]  ;;  %v5284_v49 = vrot.slane %v17525_v27, %v16737_v40 }
0x3b62   :  { %v16128_v60 = vpop.permute.xlu1 %16127 }
0x3b63   :  { %v16130_v35 = vunpack.i.h.bf16 %v16128_v60  ;;  %v16129_v37 = vunpack.i.l.bf16 %v16128_v60  ;;  %15735 = vmatpush3.bf16.msra.mxu0 %v15734_v53  ;;  %v13364_v60 = vld [vmem:[%s19396_s5 + $0x230] sm:$0xff] }
0x3b64   :  { %15736 = vmatprep.subr.bf16.mxu0 %v16469_v7 }
0x3b65   :  { %v16300_v13 = vpop.eup %16299  ;;  %v15737_v38 = vpack.c.bf16 %v16130_v35, %v16129_v37  ;;  %v13365_v35 = vld [vmem:[%s19396_s5 + $0x238] sm:$0xff] }
0x3b66   :  { %v5071_v17 = vsel %vm213_vm4, %v16300_v13, 0.0  ;;  %v15755_v37 = vpack.c.bf16 %v13365_v35, %v13364_v60 }
0x3b67   :  { %5072 = vadd.xlane.f32.xlu0 %v5071_v17  ;;  %15738 = vmatpush3.bf16.msra.mxu0 %v15737_v38  ;;  %v13360_v17 = vld [vmem:[%s19396_s5 + $0x210] sm:$0xff]  ;;  %v13366_v38 = vld [vmem:[%s19396_s5 + $0x240] sm:$0xff] }
0x3b68   :  { %15745 = vmatprep.subr.bf16.mxu0 %v16469_v7 }
0x3b6b   :  { %v16302_v18 = vpop.eup %16301 }
0x3b6c   :  { %v4904_v19 = vsel %vm213_vm4, %v16302_v18, 0.0 }
0x3b6d   :  { %4905 = vadd.xlane.f32.xlu0 %v4904_v19  ;;  %v13361_v19 = vld [vmem:[%s19396_s5 + $0x218] sm:$0xff] }
0x3b6e   :  { %v15749_v24 = vpack.c.bf16 %v13361_v19, %v13360_v17 }
0x3b83   :  { %5076 = vrot.lane.b32.xlu0 %v17536_v59, %s16481_s21 }
0x3b87   :  { %5154 = vrot.lane.b32.xlu0 %v4815_v54, %s16484_s24 }
0x3bf4   :  { %v5073_v20 = vpop.xlane.xlu0 %5072 }
0x3bfa   :  { %v4906_v12 = vpop.xlane.xlu0 %4905 }
0x3bfb   :  { %16303 = vrcp.f32 %v4906_v12 }
0x3bfc   :  { %16305 = vrcp.f32 %v5073_v20  ;;  %v13363_v20 = vld [vmem:[%s19396_s5 + $0x228] sm:$0xff] }
0x3bfd   :  { %v15752_v12 = vpack.c.bf16 %v13363_v20, %v13362_v26  ;;  %v17743_v26 = vld [vmem:[%s19393_s3 + $0xb0] sm:$0xff]  ;;  %v17748_v20 = vld [vmem:[%s19393_s3 + $0xb8] sm:$0xff] }
0x3bfe   :  { %v5077_v59 = vpop.permute.xlu0 %5076 }
0x3c02   :  { %v5155_v47 = vpop.permute.xlu0 %5154 }
0x3c03   :  { %v5165_v51 = vsel %vm137_vm3, %v17564_v28, %v5155_v47 }
0x3c05   :  { %v16304_v36 = vpop.eup %16303 }
0x3c06   :  { %v4908_v34 = vmul.f32 %v16304_v36, %v16302_v18  ;;  %v16306_v52 = vpop.eup %16305 }
0x3c07   :  { %v5075_v25 = vmul.f32 %v16306_v52, %v16300_v13  ;;  %v13359_v13 = vld [vmem:[%s19396_s5 + $0x208] sm:$0xff] }
0x3c08   :  { %14734 = vmatmul.mubr.msk.f32.vlgmr.msra.gmra.mrb[82].mxu1 %vm227_vm6, %v4908_v34  ;;  %v15746_v18 = vpack.c.bf16 %v13359_v13, %v13358_v5 }
0x3c09   :  { %14742 = vmatpush3.msk.msra.mxu1 %vm231_vm5, %v5077_v59  ;;  %14743 = vmatprep.mubr.msk.f32.mxu1 %vm16470_vm1, %v16471_v11  ;;  %v5279_v59 = vrot.slane %v17525_v27, %v16734_v39 }
0x3c0a   :  { %15739 = vmatprep.subr.bf16.mxu1 %v16469_v7 }
0x3c0c   :  { %14744 = vmatmul.mubr.msk.f32.vlgmr.msra.gmra.mrb[84].mxu1 %vm227_vm6, %v5075_v25 }
0x3c0d   :  { %14765 = vmatprep.mubr.msk.f32.mxu1 %vm16470_vm1, %v16471_v11  ;;  %15741 = vmatpush3.bf16.msra.mxu1 %v15740_v63 }
0x3c0e   :  { %15742 = vmatprep.subr.bf16.mxu1 %v16469_v7 }
0x3c11   :  { %15744 = vmatpush3.bf16.msra.mxu1 %v15743_v4 }
0x3c12   :  { %15769 = vmatprep.subr.bf16.mxu1 %v16469_v7 }
0x3cdb   :  { %v4982_v41 = vpop.f32.mrb[82].mxu1 }
0x3cdc   :  { %5158 = vrot.lane.b32.xlu1 %v4982_v41, %s16485_s25  ;;  %v14735_v42 = vpop.f32.mrb[83].mxu1  ;;  %v13367_v41 = vld [vmem:[%s19396_s5 + $0x248] sm:$0xff] }
0x3cdd   :  { %v15758_v42 = vpack.c.bf16 %v13367_v41, %v13366_v38 }
0x3cdf   :  { %v5149_v44 = vpop.f32.mrb[84].mxu1 }
0x3ce0   :  { %5162 = vrot.lane.b32.xlu0 %v5149_v44, %s16486_s26  ;;  %v14745_v45 = vpop.f32.mrb[85].mxu1  ;;  %v13368_v44 = vld [vmem:[%s19396_s5 + $0x250] sm:$0xff] }
0x3ce1   :  { %v13369_v45 = vld [vmem:[%s19396_s5 + $0x258] sm:$0xff] }
0x3ce2   :  { %v15761_v47 = vpack.c.bf16 %v13369_v45, %v13368_v44 }
0x3d4e   :  { %v5159_v48 = vpop.permute.xlu1 %5158 }
0x3d4f   :  { %v5166_v8 = vsel %vm818_vm7, %v5165_v51, %v5159_v48  ;;  %v13370_v48 = vld [vmem:[%s19396_s5 + $0x260] sm:$0xff]  ;;  %v13371_v51 = vld [vmem:[%s19396_s5 + $0x268] sm:$0xff] }
0x3d52   :  { %v5163_v9 = vpop.permute.xlu0 %5162 }
0x3d53   :  { %v5167_v10 = vsel %vm820_vm8, %v5166_v8, %v5163_v9  ;;  %v15764_v8 = vpack.c.bf16 %v13371_v51, %v13370_v48  ;;  %v13372_v9 = vld [vmem:[%s19396_s5 + $0x270] sm:$0xff] }
0x3d54   :  { %14755 = vmatmul.mubr.msk.f32.vlgmr.msra.gmra.mrb[28].mxu0 %vm60_vm2, %v5167_v10  ;;  %v13373_v10 = vld [vmem:[%s19396_s5 + $0x278] sm:$0xff] }
0x3d55   :  { %14800 = vmatprep.mubr.msk.f32.mxu0 %vm16470_vm1, %v16471_v11  ;;  %15747 = vmatpush3.bf16.msra.mxu0 %v15746_v18 }
0x3d56   :  { %15748 = vmatprep.subr.bf16.mxu0 %v16469_v7 }
0x3d59   :  { %15750 = vmatpush3.bf16.msra.mxu0 %v15749_v24 }
0x3d5a   :  { %15751 = vmatprep.subr.bf16.mxu0 %v16469_v7 }
0x3d5d   :  { %15753 = vmatpush3.bf16.msra.mxu0 %v15752_v12  ;;  %v15773_v12 = vpack.c.bf16 %v17748_v20, %v17743_v26 }
0x3d5e   :  { %15754 = vmatprep.subr.bf16.mxu0 %v16469_v7 }
0x3d61   :  { %15756 = vmatpush3.bf16.msra.mxu0 %v15755_v37 }
0x3d62   :  { %15757 = vmatprep.subr.bf16.mxu0 %v16469_v7 }
0x3d65   :  { %15759 = vmatpush3.bf16.msra.mxu0 %v15758_v42 }
0x3d66   :  { %15760 = vmatprep.subr.bf16.mxu0 %v16469_v7 }
0x3d69   :  { %15762 = vmatpush3.bf16.msra.mxu0 %v15761_v47 }
0x3d6a   :  { %15763 = vmatprep.subr.bf16.mxu0 %v16469_v7 }
0x3d6d   :  { %15765 = vmatpush3.bf16.msra.mxu0 %v15764_v8 }
0x3d6e   :  { %15766 = vmatprep.subr.bf16.mxu0 %v16469_v7 }
0x3e27   :  { %v5253_v32 = vpop.f32.mrb[28].mxu0 }
0x3e28   :  { %v5257_v14 = vadd.f32 %v5253_v32, %v17490_v33  ;;  %v14756_v54 = vpop.f32.mrb[29].mxu0  ;;  %v5294_v32 = vrot.slane %v17525_v27, %v16782_v57  ;;  %v17731_v27 = vld [vmem:[%s19393_s3 + $0xa0] sm:$0xff] }
0x3e2a   :  { %v17632_v15 = vadd.f32 %v5261_v55, %v5257_v14  ;;  %v15767_v55 = vpack.c.bf16 %v13373_v10, %v13372_v9 }
0x3e2c   :  { %v5263_v28 = vsel %vm31_vm0, %v17632_v15, 0.0  ;;  %15768 = vmatpush3.bf16.msra.mxu0 %v15767_v55 }
0x3e2d   :  { %5264 = vadd.xlane.f32.xlu1 %v5263_v28  ;;  %14844 = vmatprep.subr.mxu0 %v16471_v11 }
0x3eba   :  { %v5265_v16 = vpop.xlane.xlu1 %5264 }
0x3ebb   :  { %v5266_v56 = vmul.f32 0.03125, %v5265_v16 }
0x3ebd   :  { %v5267_v58 = vsub.f32 %v17632_v15, %v5266_v56 }
0x3ebf   :  { %v5268_v46 = vmul.f32 %v5267_v58, %v5267_v58 }
0x3ec1   :  { %v5269_v22 = vsel %vm31_vm0, %v5268_v46, 0.0 }
0x3ec2   :  { %5270 = vadd.xlane.f32.xlu0 %v5269_v22 }
0x3f4f   :  { %v5271_v36 = vpop.xlane.xlu0 %5270 }
0x3f50   :  { %v5272_v34 = vmul.f32 0.03125, %v5271_v36 }
0x3f52   :  { %v5273_v52 = vadd.f32 1e-06, %v5272_v34 }
0x3f54   :  { %16307 = vrsqrt.f32 %v5273_v52 }
0x3f5e   :  { %v16308_v25 = vpop.eup %16307 }
0x3f5f   :  { %v5275_v31 = vmul.f32 %v16308_v25, %v5267_v58 }
0x3f61   :  { %v5280_v50 = vmul.f32 %v5279_v59, %v5275_v31  ;;  %v17757_v59 = vld [vmem:[%s19394_s2 + $0x28] sm:$0xff] }
0x3f62   :  { %v5489_v25 = vrot.slane %v17757_v59, %v16573_v21  ;;  %v5499_v35 = vrot.slane %v17757_v59, %v16591_v30 }
0x3f63   :  { %v5285_v53 = vadd.f32 %v5284_v49, %v5280_v50  ;;  %v5494_v50 = vrot.slane %v17757_v59, %v16581_v23 }
0x3f65   :  { %14766 = vmatmul.mubr.msk.f32.vlgmr.msra.gmra.mrb[86].mxu1 %vm60_vm2, %v5285_v53 }
0x3f66   :  { %14811 = vmatprep.mubr.msk.f32.mxu1 %vm16470_vm1, %v16471_v11 }
0x4038   :  { %v5364_v14 = vpop.f32.mrb[86].mxu1 }
0x4039   :  { %v5365_v54 = vadd.f32 %v5364_v14, %v5294_v32  ;;  %v14767_v28 = vpop.f32.mrb[87].mxu1 }
0x403b   :  { %v5369_v16 = vmul.f32 0.70710677, %v5365_v54  ;;  %v5368_v58 = vmul.f32 0.5, %v5365_v54 }
0x403d   :  { %16309 = verf.f32 %v5369_v16 }
0x4047   :  { %v16310_v56 = vpop.eup %16309 }
0x4048   :  { %v5371_v46 = vadd.f32 1.0, %v16310_v56 }
0x404a   :  { %v5372_v22 = vmul.f32 %v5371_v46, %v5368_v58 }
0x404c   :  { %14801 = vmatmul.mubr.f32.vlgmr.msra.gmra.mrb[30].mxu0 %v5372_v22 }
0x404d   :  { %14846 = vmatprep.mubr.msk.f32.mxu0 %vm16470_vm1, %v16471_v11 }
0x411f   :  { %v5456_v62 = vpop.f32.mrb[30].mxu0 }
0x4120   :  { %v5460_v63 = vadd.f32 %v5456_v62, %v17632_v15  ;;  %v14802_v1 = vpop.f32.mrb[31].mxu0  ;;  %v17736_v15 = vld [vmem:[%s19393_s3 + $0xa8] sm:$0xff] }
0x4121   :  { %v15770_v24 = vpack.c.bf16 %v17736_v15, %v17731_v27 }
0x4122   :  { %v17722_v2 = vadd.f32 %v5464_v3, %v5460_v63 }
0x4123   :  { %15771 = vmatpush3.bf16.msra.mxu1 %v15770_v24 }
0x4124   :  { %v5473_v4 = vsel %vm31_vm0, %v17722_v2, 0.0  ;;  %15772 = vmatprep.subr.bf16.mxu1 %v16469_v7 }
0x4125   :  { %5474 = vadd.xlane.f32.xlu0 %v5473_v4 }
0x4127   :  { %15774 = vmatpush3.bf16.msra.mxu1 %v15773_v12 }
0x4128   :  { %14814 = vmatprep.subr.mxu1 %v16471_v11 }
0x41b2   :  { %v5475_v5 = vpop.xlane.xlu0 %5474 }
0x41b3   :  { %v5476_v13 = vmul.f32 0.03125, %v5475_v5 }
0x41b5   :  { %v5477_v17 = vsub.f32 %v17722_v2, %v5476_v13 }
0x41b7   :  { %v5478_v18 = vmul.f32 %v5477_v17, %v5477_v17 }
0x41b9   :  { %v5479_v19 = vsel %vm31_vm0, %v5478_v18, 0.0 }
0x41ba   :  { %5480 = vadd.xlane.f32.xlu1 %v5479_v19 }
0x4247   :  { %v5481_v36 = vpop.xlane.xlu1 %5480 }
0x4248   :  { %v5482_v34 = vmul.f32 0.03125, %v5481_v36 }
0x424a   :  { %v5483_v52 = vadd.f32 1e-06, %v5482_v34 }
0x424c   :  { %16311 = vrsqrt.f32 %v5483_v52 }
0x4256   :  { %v16312_v31 = vpop.eup %16311 }
0x4257   :  { %v5485_v49 = vmul.f32 %v16312_v31, %v5477_v17 }
0x4259   :  { %v5490_v53 = vmul.f32 %v5489_v25, %v5485_v49 }
0x425b   :  { %v5495_v60 = vadd.f32 %v5494_v50, %v5490_v53 }
0x425d   :  { %14812 = vmatmul.mubr.msk.f32.vlgmr.msra.gmra.mrb[88].mxu1 %vm60_vm2, %v5495_v60 }
0x425e   :  { %14816 = vmatprep.mubr.msk.f32.mxu1 %vm16470_vm1, %v16471_v11 }
0x4330   :  { %v5569_v37 = vpop.f32.mrb[88].mxu1 }
0x4331   :  { %v17768_v38 = vadd.f32 %v5569_v37, %v5499_v35  ;;  %v14813_v41 = vpop.f32.mrb[89].mxu1 }
0x4333   :  { %5574 = vrot.lane.b32.xlu0 %v17768_v38, %s16473_s13 }
0x4337   :  { %5741 = vrot.lane.b32.xlu0 %v17768_v38, %s16474_s14 }
0x433b   :  { %5739 = vrot.lane.b32.xlu0 %v17768_v38, %s16472_s12 }
0x43a5   :  { %v5575_v42 = vpop.permute.xlu0 %5574 }
0x43a6   :  { %14815 = vmatpush3.xpose.msk.msra.mxu1 %vm137_vm3, %v5575_v42 }
0x43a7   :  { %14819 = vmatprep.subr.mxu1 %v16471_v11 }
0x43a9   :  { %14817 = vmatmul.mubr.msk.f32.vlgmr.msra.gmra.mrb[90].mxu1 %vm137_vm3, %v17768_v38  ;;  %v5742_v28 = vpop.permute.xlu0 %5741 }
0x43aa   :  { %14821 = vmatprep.mubr.msk.f32.mxu1 %vm16470_vm1, %v16471_v11 }
0x43ad   :  { %v5740_v56 = vpop.permute.xlu0 %5739 }
0x447c   :  { %v5646_v44 = vpop.f32.mrb[90].mxu1 }
0x447d   :  { %v5650_v45 = vmul.f32 0.35355338, %v5646_v44  ;;  %v14818_v47 = vpop.f32.mrb[91].mxu1 }
0x447f   :  { %v5651_v48 = vsel %vm213_vm4, %v5650_v45, -inf }
0x4480   :  { %5652 = vmax.xlane.f32.xlu1 %v5651_v48 }
0x450d   :  { %v5653_v51 = vpop.xlane.xlu1 %5652 }
0x450e   :  { %v5654_v8 = vsub.f32 %v5650_v45, %v5653_v51 }
0x4510   :  { %v5655_v9 = vmul.f32 1.442695, %v5654_v8 }
0x4512   :  { %16313 = vpow2.f32 %v5655_v9 }
0x451c   :  { %v16314_v10 = vpop.eup %16313 }
0x451d   :  { %v5657_v55 = vsel %vm213_vm4, %v16314_v10, 0.0 }
0x451e   :  { %5658 = vadd.xlane.f32.xlu1 %v5657_v55 }
0x452f   :  { %5662 = vrot.lane.b32.xlu1 %v17768_v38, %s16479_s19 }
0x45ab   :  { %v5659_v32 = vpop.xlane.xlu1 %5658 }
0x45ac   :  { %16315 = vrcp.f32 %v5659_v32 }
0x45af   :  { %v5663_v14 = vpop.permute.xlu1 %5662 }
0x45b0   :  { %14820 = vmatpush3.msk.msra.mxu1 %vm231_vm5, %v5663_v14 }
0x45b1   :  { %14824 = vmatprep.subr.mxu1 %v16471_v11 }
0x45b6   :  { %v16316_v54 = vpop.eup %16315 }
0x45b7   :  { %v5661_v16 = vmul.f32 %v16316_v54, %v16314_v10 }
0x45b9   :  { %14822 = vmatmul.mubr.msk.f32.vlgmr.msra.gmra.mrb[92].mxu1 %vm227_vm6, %v5661_v16  ;;  %v16136_v16 = vpack.i.bf16 %v17748_v20, %v17743_v26 }
0x45ba   :  { %14825 = vmatpush3.xpose.msk.msra.mxu1 %vm137_vm3, %v5742_v28  ;;  %14826 = vmatprep.mubr.msk.f32.mxu1 %vm16470_vm1, %v16471_v11  ;;  %v16131_v28 = vpack.i.bf16 %v17736_v15, %v17731_v27 }
0x45bb   :  { %14829 = vmatprep.subr.mxu1 %v16471_v11 }
0x45bd   :  { %14827 = vmatmul.mubr.msk.f32.vlgmr.msra.gmra.mrb[94].mxu1 %vm137_vm3, %v5740_v56 }
0x45be   :  { %14831 = vmatprep.mubr.msk.f32.mxu1 %vm16470_vm1, %v16471_v11 }
0x468c   :  { %v17796_v58 = vpop.f32.mrb[92].mxu1 }
0x468d   :  { %v14823_v46 = vpop.f32.mrb[93].mxu1 }
0x4690   :  { %v5813_v22 = vpop.f32.mrb[94].mxu1 }
0x4691   :  { %v5817_v3 = vmul.f32 0.35355338, %v5813_v22  ;;  %v14828_v62 = vpop.f32.mrb[95].mxu1 }
0x4693   :  { %v5818_v63 = vsel %vm213_vm4, %v5817_v3, -inf }
0x4694   :  { %5819 = vmax.xlane.f32.xlu1 %v5818_v63 }
0x46a5   :  { %5908 = vrot.lane.b32.xlu1 %v17768_v38, %s16475_s15 }
0x46a9   :  { %5906 = vrot.lane.b32.xlu1 %v17768_v38, %s16476_s16 }
0x46ad   :  { %6073 = vrot.lane.b32.xlu1 %v17768_v38, %s16478_s18 }
0x4721   :  { %v5820_v1 = vpop.xlane.xlu1 %5819 }
0x4722   :  { %v5821_v4 = vsub.f32 %v5817_v3, %v5820_v1 }
0x4724   :  { %v5822_v5 = vmul.f32 1.442695, %v5821_v4 }
0x4725   :  { %v5909_v18 = vpop.permute.xlu1 %5908 }
0x4726   :  { %16317 = vpow2.f32 %v5822_v5 }
0x4729   :  { %v5907_v12 = vpop.permute.xlu1 %5906 }
0x472d   :  { %v6074_v52 = vpop.permute.xlu1 %6073 }
0x4730   :  { %v16318_v13 = vpop.eup %16317 }
0x4731   :  { %v5824_v17 = vsel %vm213_vm4, %v16318_v13, 0.0 }
0x4732   :  { %5825 = vadd.xlane.f32.xlu0 %v5824_v17 }
0x4748   :  { %5829 = vrot.lane.b32.xlu0 %v17768_v38, %s16482_s22 }
0x474c   :  { %6075 = vrot.lane.b32.xlu0 %v17768_v38, %s16477_s17 }
0x47bf   :  { %v5826_v19 = vpop.xlane.xlu0 %5825 }
0x47c0   :  { %16319 = vrcp.f32 %v5826_v19 }
0x47c3   :  { %v5830_v24 = vpop.permute.xlu0 %5829 }
0x47c4   :  { %14830 = vmatpush3.msk.msra.mxu1 %vm231_vm5, %v5830_v24 }
0x47c5   :  { %14834 = vmatprep.subr.mxu1 %v16471_v11 }
0x47c7   :  { %v6076_v36 = vpop.permute.xlu0 %6075 }
0x47c8   :  { %14845 = vmatpush3.xpose.msk.msra.mxu0 %vm137_vm3, %v6076_v36 }
0x47c9   :  { %15775 = vmatprep.subr.bf16.mxu0 %v16469_v7 }
0x47ca   :  { %v16320_v34 = vpop.eup %16319 }
0x47cb   :  { %14847 = vmatmul.mubr.msk.f32.vlgmr.msra.gmra.mrb[32].mxu0 %vm137_vm3, %v6074_v52  ;;  %v5828_v25 = vmul.f32 %v16320_v34, %v16318_v13 }
0x47cc   :  { %14862 = vmatprep.mubr.msk.f32.mxu0 %vm16470_vm1, %v16471_v11 }
0x47cd   :  { %14832 = vmatmul.mubr.msk.f32.vlgmr.msra.gmra.mrb[96].mxu1 %vm227_vm6, %v5828_v25 }
0x47ce   :  { %14835 = vmatpush3.xpose.msk.msra.mxu1 %vm137_vm3, %v5909_v18  ;;  %14836 = vmatprep.mubr.msk.f32.mxu1 %vm16470_vm1, %v16471_v11 }
0x47cf   :  { %14839 = vmatprep.subr.mxu1 %v16471_v11 }
0x47d1   :  { %14837 = vmatmul.mubr.msk.f32.vlgmr.msra.gmra.mrb[98].mxu1 %vm137_vm3, %v5907_v12 }
0x47d2   :  { %14841 = vmatprep.mubr.msk.f32.mxu1 %vm16470_vm1, %v16471_v11 }
0x489e   :  { %v6147_v31 = vpop.f32.mrb[32].mxu0 }
0x489f   :  { %v6151_v49 = vmul.f32 0.35355338, %v6147_v31  ;;  %v14848_v50 = vpop.f32.mrb[33].mxu0 }
0x48a0   :  { %v5902_v53 = vpop.f32.mrb[96].mxu1 }
0x48a1   :  { %v14833_v60 = vpop.f32.mrb[97].mxu1  ;;  %v6152_v35 = vsel %vm213_vm4, %v6151_v49, -inf }
0x48a2   :  { %6153 = vmax.xlane.f32.xlu1 %v6152_v35 }
0x48a4   :  { %v5980_v37 = vpop.f32.mrb[98].mxu1 }
0x48a5   :  { %v5984_v41 = vmul.f32 0.35355338, %v5980_v37  ;;  %v14838_v42 = vpop.f32.mrb[99].mxu1 }
0x48a7   :  { %v5985_v44 = vsel %vm213_vm4, %v5984_v41, -inf }
0x48a8   :  { %5986 = vmax.xlane.f32.xlu0 %v5985_v44 }
0x48b3   :  { %5996 = vrot.lane.b32.xlu1 %v17768_v38, %s16480_s20 }
0x48b7   :  { %16132 = vrot.lane.b32.xlu1 %v16131_v28, %s16483_s23  ;;  %v13405_v28 = vld [vmem:[%s19396_s5 + $0x298] sm:$0xff] }
0x48bb   :  { %16137 = vrot.lane.b32.xlu1 %v16136_v16, %s16483_s23 }
0x492f   :  { %v6154_v45 = vpop.xlane.xlu1 %6153 }
0x4930   :  { %v6155_v47 = vsub.f32 %v6151_v49, %v6154_v45  ;;  %v6348_v49 = vrot.slane %v17757_v59, %v16687_v61 }
0x4932   :  { %v6156_v48 = vmul.f32 1.442695, %v6155_v47  ;;  %v13397_v47 = vld [vmem:[%s19395_s4 + $0xa0] sm:$0xff] }
0x4933   :  { %v5997_v51 = vpop.permute.xlu1 %5996 }
0x4934   :  { %16321 = vpow2.f32 %v6156_v48  ;;  %14840 = vmatpush3.msk.msra.mxu1 %vm231_vm5, %v5997_v51  ;;  %v13398_v48 = vld [vmem:[%s19395_s4 + $0xa8] sm:$0xff] }
0x4935   :  { %v5987_v8 = vpop.xlane.xlu0 %5986  ;;  %14849 = vmatprep.subr.mxu1 %v16471_v11  ;;  %v15782_v51 = vpack.c.bf16 %v13398_v48, %v13397_v47  ;;  %v6551_v48 = vrot.slane %v17757_v59, %v16789_v6 }
0x4936   :  { %v5988_v9 = vsub.f32 %v5984_v41, %v5987_v8  ;;  %v13399_v8 = vld [vmem:[%s19395_s4 + $0xb0] sm:$0xff] }
0x4937   :  { %v16133_v15 = vpop.permute.xlu1 %16132 }
0x4938   :  { %v5989_v10 = vmul.f32 1.442695, %v5988_v9  ;;  %v16135_v26 = vunpack.i.h.bf16 %v16133_v15  ;;  %v16134_v20 = vunpack.i.l.bf16 %v16133_v15  ;;  %v13400_v9 = vld [vmem:[%s19395_s4 + $0xb8] sm:$0xff] }
0x493a   :  { %16323 = vpow2.f32 %v5989_v10  ;;  %v15776_v63 = vpack.c.bf16 %v16135_v26, %v16134_v20  ;;  %v15785_v10 = vpack.c.bf16 %v13400_v9, %v13399_v8  ;;  %v6371_v20 = vrot.slane %v17757_v59, %v16737_v40 }
0x493b   :  { %v16138_v1 = vpop.permute.xlu1 %16137 }
0x493c   :  { %v16140_v4 = vunpack.i.h.bf16 %v16138_v1  ;;  %v16139_v5 = vunpack.i.l.bf16 %v16138_v1  ;;  %15777 = vmatpush3.bf16.msra.mxu0 %v15776_v63 }
0x493d   :  { %15778 = vmatprep.subr.bf16.mxu0 %v16469_v7 }
0x493e   :  { %v16322_v55 = vpop.eup %16321  ;;  %v15779_v13 = vpack.c.bf16 %v16140_v4, %v16139_v5  ;;  %v13408_v4 = vld [vmem:[%s19396_s5 + $0x2b0] sm:$0xff]  ;;  %v13409_v5 = vld [vmem:[%s19396_s5 + $0x2b8] sm:$0xff] }
0x493f   :  { %v6158_v32 = vsel %vm213_vm4, %v16322_v55, 0.0 }
0x4940   :  { %6159 = vadd.xlane.f32.xlu0 %v6158_v32  ;;  %15780 = vmatpush3.bf16.msra.mxu0 %v15779_v13  ;;  %v13403_v32 = vld [vmem:[%s19396_s5 + $0x288] sm:$0xff]  ;;  %v15797_v13 = vpack.c.bf16 %v13409_v5, %v13408_v4 }
0x4941   :  { %15787 = vmatprep.subr.bf16.mxu0 %v16469_v7 }
0x4944   :  { %v16324_v14 = vpop.eup %16323 }
0x4945   :  { %v5991_v54 = vsel %vm213_vm4, %v16324_v14, 0.0 }
0x4946   :  { %5992 = vadd.xlane.f32.xlu0 %v5991_v54 }
0x495c   :  { %6163 = vrot.lane.b32.xlu0 %v17768_v38, %s16481_s21 }
0x4960   :  { %6241 = vrot.lane.b32.xlu0 %v5902_v53, %s16484_s24 }
0x49cd   :  { %v6160_v56 = vpop.xlane.xlu0 %6159 }
0x49d3   :  { %v5993_v46 = vpop.xlane.xlu0 %5992 }
0x49d4   :  { %16325 = vrcp.f32 %v5993_v46  ;;  %v13407_v46 = vld [vmem:[%s19396_s5 + $0x2a8] sm:$0xff] }
0x49d5   :  { %16327 = vrcp.f32 %v6160_v56  ;;  %v13406_v56 = vld [vmem:[%s19396_s5 + $0x2a0] sm:$0xff] }
0x49d7   :  { %v6164_v38 = vpop.permute.xlu0 %6163 }
0x49db   :  { %v6242_v12 = vpop.permute.xlu0 %6241 }
0x49dc   :  { %v6252_v34 = vsel %vm137_vm3, %v17796_v58, %v6242_v12  ;;  %v13413_v12 = vld [vmem:[%s19396_s5 + $0x2d8] sm:$0xff] }
0x49de   :  { %v16326_v22 = vpop.eup %16325 }
0x49df   :  { %v5995_v3 = vmul.f32 %v16326_v22, %v16324_v14  ;;  %v16328_v62 = vpop.eup %16327  ;;  %v13404_v14 = vld [vmem:[%s19396_s5 + $0x290] sm:$0xff]  ;;  %v15794_v22 = vpack.c.bf16 %v13407_v46, %v13406_v56 }
0x49e0   :  { %v6162_v27 = vmul.f32 %v16328_v62, %v16322_v55  ;;  %v13402_v55 = vld [vmem:[%s19396_s5 + $0x280] sm:$0xff]  ;;  %v15791_v16 = vpack.c.bf16 %v13405_v28, %v13404_v14  ;;  %v17975_v46 = vld [vmem:[%s19393_s3 + $0xd0] sm:$0xff] }
0x49e1   :  { %14842 = vmatmul.mubr.msk.f32.vlgmr.msra.gmra.mrb[100].mxu1 %vm227_vm6, %v5995_v3  ;;  %v15788_v54 = vpack.c.bf16 %v13403_v32, %v13402_v55 }
0x49e2   :  { %14850 = vmatpush3.msk.msra.mxu1 %vm231_vm5, %v6164_v38  ;;  %14851 = vmatprep.mubr.msk.f32.mxu1 %vm16470_vm1, %v16471_v11 }
0x49e3   :  { %15781 = vmatprep.subr.bf16.mxu1 %v16469_v7 }
0x49e5   :  { %14852 = vmatmul.mubr.msk.f32.vlgmr.msra.gmra.mrb[102].mxu1 %vm227_vm6, %v6162_v27  ;;  %v6366_v27 = vrot.slane %v17757_v59, %v16734_v39 }
0x49e6   :  { %14873 = vmatprep.mubr.msk.f32.mxu1 %vm16470_vm1, %v16471_v11  ;;  %15783 = vmatpush3.bf16.msra.mxu1 %v15782_v51 }
0x49e7   :  { %15784 = vmatprep.subr.bf16.mxu1 %v16469_v7 }
0x49ea   :  { %15786 = vmatpush3.bf16.msra.mxu1 %v15785_v10 }
0x49eb   :  { %15811 = vmatprep.subr.bf16.mxu1 %v16469_v7 }
0x4ab4   :  { %v6069_v17 = vpop.f32.mrb[100].mxu1 }
0x4ab5   :  { %6245 = vrot.lane.b32.xlu1 %v6069_v17, %s16485_s25  ;;  %v14843_v18 = vpop.f32.mrb[101].mxu1  ;;  %v13410_v17 = vld [vmem:[%s19396_s5 + $0x2c0] sm:$0xff] }
0x4ab6   :  { %v13411_v18 = vld [vmem:[%s19396_s5 + $0x2c8] sm:$0xff] }
0x4ab8   :  { %v6236_v19 = vpop.f32.mrb[102].mxu1 }
0x4ab9   :  { %6249 = vrot.lane.b32.xlu0 %v6236_v19, %s16486_s26  ;;  %v14853_v24 = vpop.f32.mrb[103].mxu1  ;;  %v15800_v19 = vpack.c.bf16 %v13411_v18, %v13410_v17 }
0x4aba   :  { %v13412_v24 = vld [vmem:[%s19396_s5 + $0x2d0] sm:$0xff] }
0x4b27   :  { %v6246_v36 = vpop.permute.xlu1 %6245 }
0x4b28   :  { %v6253_v52 = vsel %vm818_vm7, %v6252_v34, %v6246_v36  ;;  %v15803_v36 = vpack.c.bf16 %v13413_v12, %v13412_v24  ;;  %v13414_v34 = vld [vmem:[%s19396_s5 + $0x2e0] sm:$0xff] }
0x4b2b   :  { %v6250_v25 = vpop.permute.xlu0 %6249 }
0x4b2c   :  { %v6254_v31 = vsel %vm820_vm8, %v6253_v52, %v6250_v25  ;;  %v13415_v52 = vld [vmem:[%s19396_s5 + $0x2e8] sm:$0xff] }
0x4b2d   :  { %14863 = vmatmul.mubr.msk.f32.vlgmr.msra.gmra.mrb[34].mxu0 %vm60_vm2, %v6254_v31  ;;  %v15806_v25 = vpack.c.bf16 %v13415_v52, %v13414_v34  ;;  %v13416_v31 = vld [vmem:[%s19396_s5 + $0x2f0] sm:$0xff] }
0x4b2e   :  { %14908 = vmatprep.mubr.msk.f32.mxu0 %vm16470_vm1, %v16471_v11  ;;  %15789 = vmatpush3.bf16.msra.mxu0 %v15788_v54 }
0x4b2f   :  { %15790 = vmatprep.subr.bf16.mxu0 %v16469_v7 }
0x4b32   :  { %15792 = vmatpush3.bf16.msra.mxu0 %v15791_v16 }
0x4b33   :  { %15793 = vmatprep.subr.bf16.mxu0 %v16469_v7 }
0x4b36   :  { %15795 = vmatpush3.bf16.msra.mxu0 %v15794_v22  ;;  %v17980_v22 = vld [vmem:[%s19393_s3 + $0xd8] sm:$0xff] }
0x4b37   :  { %15796 = vmatprep.subr.bf16.mxu0 %v16469_v7 }
0x4b3a   :  { %15798 = vmatpush3.bf16.msra.mxu0 %v15797_v13 }
0x4b3b   :  { %15799 = vmatprep.subr.bf16.mxu0 %v16469_v7 }
0x4b3e   :  { %15801 = vmatpush3.bf16.msra.mxu0 %v15800_v19 }
0x4b3f   :  { %15802 = vmatprep.subr.bf16.mxu0 %v16469_v7 }
0x4b42   :  { %15804 = vmatpush3.bf16.msra.mxu0 %v15803_v36 }
0x4b43   :  { %15805 = vmatprep.subr.bf16.mxu0 %v16469_v7 }
0x4b46   :  { %15807 = vmatpush3.bf16.msra.mxu0 %v15806_v25 }
0x4b47   :  { %15808 = vmatprep.subr.bf16.mxu0 %v16469_v7 }
0x4c00   :  { %v6340_v50 = vpop.f32.mrb[34].mxu0 }
0x4c01   :  { %v6344_v53 = vadd.f32 %v6340_v50, %v17722_v2  ;;  %v14864_v60 = vpop.f32.mrb[35].mxu0 }
0x4c03   :  { %v17864_v35 = vadd.f32 %v6348_v49, %v6344_v53  ;;  %v13417_v49 = vld [vmem:[%s19396_s5 + $0x2f8] sm:$0xff]  ;;  %v6381_v53 = vrot.slane %v17757_v59, %v16782_v57  ;;  %v17963_v59 = vld [vmem:[%s19393_s3 + $0xc0] sm:$0xff] }
0x4c04   :  { %v15809_v50 = vpack.c.bf16 %v13417_v49, %v13416_v31 }
0x4c05   :  { %v6350_v58 = vsel %vm31_vm0, %v17864_v35, 0.0 }
0x4c06   :  { %6351 = vadd.xlane.f32.xlu1 %v6350_v58  ;;  %15810 = vmatpush3.bf16.msra.mxu0 %v15809_v50 }
0x4c07   :  { %14952 = vmatprep.subr.mxu0 %v16471_v11 }
0x4c93   :  { %v6352_v37 = vpop.xlane.xlu1 %6351 }
0x4c94   :  { %v6353_v41 = vmul.f32 0.03125, %v6352_v37 }
0x4c96   :  { %v6354_v42 = vsub.f32 %v17864_v35, %v6353_v41 }
0x4c98   :  { %v6355_v44 = vmul.f32 %v6354_v42, %v6354_v42 }
0x4c9a   :  { %v6356_v45 = vsel %vm31_vm0, %v6355_v44, 0.0 }
0x4c9b   :  { %6357 = vadd.xlane.f32.xlu0 %v6356_v45 }
0x4d28   :  { %v6358_v3 = vpop.xlane.xlu0 %6357 }
0x4d29   :  { %v6359_v62 = vmul.f32 0.03125, %v6358_v3  ;;  %v15815_v3 = vpack.c.bf16 %v17980_v22, %v17975_v46 }
0x4d2b   :  { %v6360_v38 = vadd.f32 1e-06, %v6359_v62 }
0x4d2d   :  { %16329 = vrsqrt.f32 %v6360_v38 }
0x4d37   :  { %v16330_v15 = vpop.eup %16329 }
0x4d38   :  { %v6362_v26 = vmul.f32 %v16330_v15, %v6354_v42  ;;  %v17989_v15 = vld [vmem:[%s19394_s2 + $0x30] sm:$0xff] }
0x4d39   :  { %v6586_v13 = vrot.slane %v17989_v15, %v16591_v30 }
0x4d3a   :  { %v6367_v63 = vmul.f32 %v6366_v27, %v6362_v26  ;;  %v6576_v26 = vrot.slane %v17989_v15, %v16573_v21 }
0x4d3c   :  { %v6372_v1 = vadd.f32 %v6371_v20, %v6367_v63 }
0x4d3e   :  { %14874 = vmatmul.mubr.msk.f32.vlgmr.msra.gmra.mrb[104].mxu1 %vm60_vm2, %v6372_v1  ;;  %v6581_v1 = vrot.slane %v17989_v15, %v16581_v23 }
0x4d3f   :  { %14919 = vmatprep.mubr.msk.f32.mxu1 %vm16470_vm1, %v16471_v11 }
0x4e11   :  { %v6451_v60 = vpop.f32.mrb[104].mxu1 }
0x4e12   :  { %v6452_v58 = vadd.f32 %v6451_v60, %v6381_v53  ;;  %v14875_v37 = vpop.f32.mrb[105].mxu1 }
0x4e14   :  { %v6456_v41 = vmul.f32 0.70710677, %v6452_v58  ;;  %v6455_v44 = vmul.f32 0.5, %v6452_v58 }
0x4e16   :  { %16331 = verf.f32 %v6456_v41 }
0x4e20   :  { %v16332_v42 = vpop.eup %16331 }
0x4e21   :  { %v6458_v45 = vadd.f32 1.0, %v16332_v42 }
0x4e23   :  { %v6459_v47 = vmul.f32 %v6458_v45, %v6455_v44 }
0x4e25   :  { %14909 = vmatmul.mubr.f32.vlgmr.msra.gmra.mrb[36].mxu0 %v6459_v47 }
0x4e26   :  { %14954 = vmatprep.mubr.msk.f32.mxu0 %vm16470_vm1, %v16471_v11 }
0x4ef8   :  { %v6543_v51 = vpop.f32.mrb[36].mxu0 }
0x4ef9   :  { %v6547_v8 = vadd.f32 %v6543_v51, %v17864_v35  ;;  %v14910_v9 = vpop.f32.mrb[37].mxu0  ;;  %v17968_v35 = vld [vmem:[%s19393_s3 + $0xc8] sm:$0xff] }
0x4efa   :  { %v15812_v56 = vpack.c.bf16 %v17968_v35, %v17963_v59 }
0x4efb   :  { %v17954_v10 = vadd.f32 %v6551_v48, %v6547_v8 }
0x4efc   :  { %15813 = vmatpush3.bf16.msra.mxu1 %v15812_v56 }
0x4efd   :  { %v6560_v55 = vsel %vm31_vm0, %v17954_v10, 0.0  ;;  %15814 = vmatprep.subr.bf16.mxu1 %v16469_v7 }
0x4efe   :  { %6561 = vadd.xlane.f32.xlu0 %v6560_v55 }
0x4f00   :  { %15816 = vmatpush3.bf16.msra.mxu1 %v15815_v3 }
0x4f01   :  { %14922 = vmatprep.subr.mxu1 %v16471_v11 }
0x4f8b   :  { %v6562_v32 = vpop.xlane.xlu0 %6561 }
0x4f8c   :  { %v6563_v14 = vmul.f32 0.03125, %v6562_v32 }
0x4f8e   :  { %v6564_v54 = vsub.f32 %v17954_v10, %v6563_v14 }
0x4f90   :  { %v6565_v28 = vmul.f32 %v6564_v54, %v6564_v54 }
0x4f92   :  { %v6566_v16 = vsel %vm31_vm0, %v6565_v28, 0.0 }
0x4f93   :  { %6567 = vadd.xlane.f32.xlu1 %v6566_v16 }
0x5020   :  { %v6568_v62 = vpop.xlane.xlu1 %6567 }
0x5021   :  { %v6569_v38 = vmul.f32 0.03125, %v6568_v62 }
0x5023   :  { %v6570_v27 = vadd.f32 1e-06, %v6569_v38 }
0x5025   :  { %16333 = vrsqrt.f32 %v6570_v27 }
0x502f   :  { %v16334_v20 = vpop.eup %16333 }
0x5030   :  { %v6572_v63 = vmul.f32 %v16334_v20, %v6564_v54 }
0x5032   :  { %v6577_v4 = vmul.f32 %v6576_v26, %v6572_v63 }
0x5034   :  { %v6582_v5 = vadd.f32 %v6581_v1, %v6577_v4 }
0x5036   :  { %14920 = vmatmul.mubr.msk.f32.vlgmr.msra.gmra.mrb[106].mxu1 %vm60_vm2, %v6582_v5 }
0x5037   :  { %14924 = vmatprep.mubr.msk.f32.mxu1 %vm16470_vm1, %v16471_v11 }
0x5109   :  { %v6656_v17 = vpop.f32.mrb[106].mxu1 }
0x510a   :  { %v18000_v18 = vadd.f32 %v6656_v17, %v6586_v13  ;;  %v14921_v19 = vpop.f32.mrb[107].mxu1 }
0x510c   :  { %6661 = vrot.lane.b32.xlu0 %v18000_v18, %s16473_s13 }
0x5110   :  { %6828 = vrot.lane.b32.xlu0 %v18000_v18, %s16474_s14 }
0x5114   :  { %6826 = vrot.lane.b32.xlu0 %v18000_v18, %s16472_s12 }
0x517e   :  { %v6662_v24 = vpop.permute.xlu0 %6661 }
0x517f   :  { %14923 = vmatpush3.xpose.msk.msra.mxu1 %vm137_vm3, %v6662_v24 }
0x5180   :  { %14927 = vmatprep.subr.mxu1 %v16471_v11 }
0x5182   :  { %14925 = vmatmul.mubr.msk.f32.vlgmr.msra.gmra.mrb[108].mxu1 %vm137_vm3, %v18000_v18  ;;  %v6829_v41 = vpop.permute.xlu0 %6828 }
0x5183   :  { %14929 = vmatprep.mubr.msk.f32.mxu1 %vm16470_vm1, %v16471_v11 }
0x5186   :  { %v6827_v44 = vpop.permute.xlu0 %6826 }
0x5255   :  { %v6733_v12 = vpop.f32.mrb[108].mxu1 }
0x5256   :  { %v6737_v36 = vmul.f32 0.35355338, %v6733_v12  ;;  %v14926_v34 = vpop.f32.mrb[109].mxu1 }
0x5258   :  { %v6738_v52 = vsel %vm213_vm4, %v6737_v36, -inf }
0x5259   :  { %6739 = vmax.xlane.f32.xlu1 %v6738_v52 }
0x52e6   :  { %v6740_v25 = vpop.xlane.xlu1 %6739 }
0x52e7   :  { %v6741_v31 = vsub.f32 %v6737_v36, %v6740_v25 }
0x52e9   :  { %v6742_v49 = vmul.f32 1.442695, %v6741_v31 }
0x52eb   :  { %16335 = vpow2.f32 %v6742_v49 }
0x52f5   :  { %v16336_v50 = vpop.eup %16335 }
0x52f6   :  { %v6744_v53 = vsel %vm213_vm4, %v16336_v50, 0.0 }
0x52f7   :  { %6745 = vadd.xlane.f32.xlu1 %v6744_v53 }
0x5308   :  { %6749 = vrot.lane.b32.xlu1 %v18000_v18, %s16479_s19 }
0x5384   :  { %v6746_v60 = vpop.xlane.xlu1 %6745 }
0x5385   :  { %16337 = vrcp.f32 %v6746_v60 }
0x5388   :  { %v6750_v58 = vpop.permute.xlu1 %6749 }
0x5389   :  { %14928 = vmatpush3.msk.msra.mxu1 %vm231_vm5, %v6750_v58 }
0x538a   :  { %14932 = vmatprep.subr.mxu1 %v16471_v11 }
0x538f   :  { %v16338_v37 = vpop.eup %16337 }
0x5390   :  { %v6748_v42 = vmul.f32 %v16338_v37, %v16336_v50 }
0x5392   :  { %14930 = vmatmul.mubr.msk.f32.vlgmr.msra.gmra.mrb[110].mxu1 %vm227_vm6, %v6748_v42  ;;  %v16141_v42 = vpack.i.bf16 %v17968_v35, %v17963_v59 }
0x5393   :  { %14933 = vmatpush3.xpose.msk.msra.mxu1 %vm137_vm3, %v6829_v41  ;;  %14934 = vmatprep.mubr.msk.f32.mxu1 %vm16470_vm1, %v16471_v11 }
0x5394   :  { %14937 = vmatprep.subr.mxu1 %v16471_v11 }
0x5396   :  { %14935 = vmatmul.mubr.msk.f32.vlgmr.msra.gmra.mrb[112].mxu1 %vm137_vm3, %v6827_v44  ;;  %v16146_v44 = vpack.i.bf16 %v17980_v22, %v17975_v46 }
0x5397   :  { %14939 = vmatprep.mubr.msk.f32.mxu1 %vm16470_vm1, %v16471_v11 }
0x5465   :  { %v18028_v45 = vpop.f32.mrb[110].mxu1 }
0x5466   :  { %v14931_v47 = vpop.f32.mrb[111].mxu1 }
0x5469   :  { %v6900_v48 = vpop.f32.mrb[112].mxu1 }
0x546a   :  { %v6904_v51 = vmul.f32 0.35355338, %v6900_v48  ;;  %v14936_v8 = vpop.f32.mrb[113].mxu1 }
0x546c   :  { %v6905_v9 = vsel %vm213_vm4, %v6904_v51, -inf }
0x546d   :  { %6906 = vmax.xlane.f32.xlu1 %v6905_v9 }
0x547e   :  { %6995 = vrot.lane.b32.xlu1 %v18000_v18, %s16475_s15 }
0x5482   :  { %6993 = vrot.lane.b32.xlu1 %v18000_v18, %s16476_s16 }
0x5486   :  { %7160 = vrot.lane.b32.xlu1 %v18000_v18, %s16478_s18 }
0x54fa   :  { %v6907_v55 = vpop.xlane.xlu1 %6906 }
0x54fb   :  { %v6908_v32 = vsub.f32 %v6904_v51, %v6907_v55 }
0x54fd   :  { %v6909_v14 = vmul.f32 1.442695, %v6908_v32 }
0x54fe   :  { %v6996_v16 = vpop.permute.xlu1 %6995 }
0x54ff   :  { %16339 = vpow2.f32 %v6909_v14 }
0x5502   :  { %v6994_v62 = vpop.permute.xlu1 %6993 }
0x5506   :  { %v7161_v26 = vpop.permute.xlu1 %7160 }
0x5509   :  { %v16340_v54 = vpop.eup %16339 }
0x550a   :  { %v6911_v28 = vsel %vm213_vm4, %v16340_v54, 0.0 }
0x550b   :  { %6912 = vadd.xlane.f32.xlu0 %v6911_v28 }
0x5521   :  { %6916 = vrot.lane.b32.xlu0 %v18000_v18, %s16482_s22 }
0x5525   :  { %7162 = vrot.lane.b32.xlu0 %v18000_v18, %s16477_s17 }
0x5598   :  { %v6913_v56 = vpop.xlane.xlu0 %6912 }
0x5599   :  { %16341 = vrcp.f32 %v6913_v56 }
0x559c   :  { %v6917_v3 = vpop.permute.xlu0 %6916 }
0x559d   :  { %14938 = vmatpush3.msk.msra.mxu1 %vm231_vm5, %v6917_v3 }
0x559e   :  { %14942 = vmatprep.subr.mxu1 %v16471_v11 }
0x55a0   :  { %v7163_v38 = vpop.permute.xlu0 %7162 }
0x55a1   :  { %14953 = vmatpush3.xpose.msk.msra.mxu0 %vm137_vm3, %v7163_v38 }
0x55a2   :  { %15817 = vmatprep.subr.bf16.mxu0 %v16469_v7 }
0x55a3   :  { %v16342_v27 = vpop.eup %16341 }
0x55a4   :  { %14955 = vmatmul.mubr.msk.f32.vlgmr.msra.gmra.mrb[38].mxu0 %vm137_vm3, %v7161_v26  ;;  %v6915_v20 = vmul.f32 %v16342_v27, %v16340_v54 }
0x55a5   :  { %14970 = vmatprep.mubr.msk.f32.mxu0 %vm16470_vm1, %v16471_v11 }
0x55a6   :  { %14940 = vmatmul.mubr.msk.f32.vlgmr.msra.gmra.mrb[114].mxu1 %vm227_vm6, %v6915_v20 }
0x55a7   :  { %14943 = vmatpush3.xpose.msk.msra.mxu1 %vm137_vm3, %v6996_v16  ;;  %14944 = vmatprep.mubr.msk.f32.mxu1 %vm16470_vm1, %v16471_v11 }
0x55a8   :  { %14947 = vmatprep.subr.mxu1 %v16471_v11 }
0x55aa   :  { %14945 = vmatmul.mubr.msk.f32.vlgmr.msra.gmra.mrb[116].mxu1 %vm137_vm3, %v6994_v62 }
0x55ab   :  { %14949 = vmatprep.mubr.msk.f32.mxu1 %vm16470_vm1, %v16471_v11 }
0x5677   :  { %v7234_v63 = vpop.f32.mrb[38].mxu0 }
0x5678   :  { %v7238_v1 = vmul.f32 0.35355338, %v7234_v63  ;;  %v14956_v4 = vpop.f32.mrb[39].mxu0 }
0x5679   :  { %v6989_v5 = vpop.f32.mrb[114].mxu1  ;;  %v7435_v4 = vrot.slane %v17989_v15, %v16687_v61 }
0x567a   :  { %v14941_v13 = vpop.f32.mrb[115].mxu1  ;;  %v7239_v17 = vsel %vm213_vm4, %v7238_v1, -inf }
0x567b   :  { %7240 = vmax.xlane.f32.xlu1 %v7239_v17 }
0x567d   :  { %v7067_v19 = vpop.f32.mrb[116].mxu1 }
0x567e   :  { %v7071_v24 = vmul.f32 0.35355338, %v7067_v19  ;;  %v14946_v12 = vpop.f32.mrb[117].mxu1 }
0x5680   :  { %v7072_v36 = vsel %vm213_vm4, %v7071_v24, -inf }
0x5681   :  { %7073 = vmax.xlane.f32.xlu0 %v7072_v36 }
0x568c   :  { %7083 = vrot.lane.b32.xlu1 %v18000_v18, %s16480_s20 }
0x5690   :  { %16142 = vrot.lane.b32.xlu1 %v16141_v42, %s16483_s23 }
0x5694   :  { %16147 = vrot.lane.b32.xlu1 %v16146_v44, %s16483_s23  ;;  %v13449_v44 = vld [vmem:[%s19396_s5 + $0x318] sm:$0xff] }
0x5708   :  { %v7241_v34 = vpop.xlane.xlu1 %7240 }
0x5709   :  { %v7242_v52 = vsub.f32 %v7238_v1, %v7241_v34 }
0x570b   :  { %v7243_v25 = vmul.f32 1.442695, %v7242_v52 }
0x570c   :  { %v7084_v31 = vpop.permute.xlu1 %7083 }
0x570d   :  { %16343 = vpow2.f32 %v7243_v25  ;;  %14948 = vmatpush3.msk.msra.mxu1 %vm231_vm5, %v7084_v31  ;;  %v13441_v25 = vld [vmem:[%s19395_s4 + $0xc0] sm:$0xff]  ;;  %v13442_v31 = vld [vmem:[%s19395_s4 + $0xc8] sm:$0xff] }
0x570e   :  { %v7074_v49 = vpop.xlane.xlu0 %7073  ;;  %14957 = vmatprep.subr.mxu1 %v16471_v11 }
0x570f   :  { %v7075_v50 = vsub.f32 %v7071_v24, %v7074_v49  ;;  %v15824_v49 = vpack.c.bf16 %v13442_v31, %v13441_v25 }
0x5710   :  { %v16143_v35 = vpop.permute.xlu1 %16142 }
0x5711   :  { %v7076_v53 = vmul.f32 1.442695, %v7075_v50  ;;  %v16145_v46 = vunpack.i.h.bf16 %v16143_v35  ;;  %v16144_v22 = vunpack.i.l.bf16 %v16143_v35  ;;  %v13443_v50 = vld [vmem:[%s19395_s4 + $0xd0] sm:$0xff]  ;;  %v7453_v35 = vrot.slane %v17989_v15, %v16734_v39 }
0x5713   :  { %16345 = vpow2.f32 %v7076_v53  ;;  %v15818_v55 = vpack.c.bf16 %v16145_v46, %v16144_v22  ;;  %v13444_v53 = vld [vmem:[%s19395_s4 + $0xd8] sm:$0xff] }
0x5714   :  { %v16148_v32 = vpop.permute.xlu1 %16147 }
0x5715   :  { %v16150_v14 = vunpack.i.h.bf16 %v16148_v32  ;;  %v16149_v54 = vunpack.i.l.bf16 %v16148_v32  ;;  %15819 = vmatpush3.bf16.msra.mxu0 %v15818_v55  ;;  %v7458_v55 = vrot.slane %v17989_v15, %v16737_v40 }
0x5716   :  { %15820 = vmatprep.subr.bf16.mxu0 %v16469_v7 }
0x5717   :  { %v16344_v60 = vpop.eup %16343  ;;  %v15821_v28 = vpack.c.bf16 %v16150_v14, %v16149_v54  ;;  %v13452_v54 = vld [vmem:[%s19396_s5 + $0x330] sm:$0xff] }
0x5718   :  { %v7245_v58 = vsel %vm213_vm4, %v16344_v60, 0.0 }
0x5719   :  { %7246 = vadd.xlane.f32.xlu0 %v7245_v58  ;;  %15822 = vmatpush3.bf16.msra.mxu0 %v15821_v28  ;;  %v13446_v58 = vld [vmem:[%s19396_s5 + $0x300] sm:$0xff]  ;;  %v13453_v28 = vld [vmem:[%s19396_s5 + $0x338] sm:$0xff] }
0x571a   :  { %15829 = vmatprep.subr.bf16.mxu0 %v16469_v7 }
0x571d   :  { %v16346_v37 = vpop.eup %16345 }
0x571e   :  { %v7078_v41 = vsel %vm213_vm4, %v16346_v37, 0.0 }
0x571f   :  { %7079 = vadd.xlane.f32.xlu0 %v7078_v41  ;;  %v13448_v41 = vld [vmem:[%s19396_s5 + $0x310] sm:$0xff] }
0x5735   :  { %7250 = vrot.lane.b32.xlu0 %v18000_v18, %s16481_s21 }
0x5739   :  { %7328 = vrot.lane.b32.xlu0 %v6989_v5, %s16484_s24 }
0x57a6   :  { %v7247_v47 = vpop.xlane.xlu0 %7246 }
0x57ac   :  { %v7080_v48 = vpop.xlane.xlu0 %7079 }
0x57ad   :  { %16347 = vrcp.f32 %v7080_v48  ;;  %v13450_v48 = vld [vmem:[%s19396_s5 + $0x320] sm:$0xff] }
0x57ae   :  { %16349 = vrcp.f32 %v7247_v47  ;;  %v15833_v47 = vpack.c.bf16 %v13449_v44, %v13448_v41 }
0x57b0   :  { %v7251_v18 = vpop.permute.xlu0 %7250 }
0x57b4   :  { %v7329_v38 = vpop.permute.xlu0 %7328 }
0x57b5   :  { %v7339_v26 = vsel %vm137_vm3, %v18028_v45, %v7329_v38  ;;  %v13456_v38 = vld [vmem:[%s19396_s5 + $0x350] sm:$0xff] }
0x57b7   :  { %v16348_v51 = vpop.eup %16347 }
0x57b8   :  { %v7082_v8 = vmul.f32 %v16348_v51, %v16346_v37  ;;  %v16350_v9 = vpop.eup %16349  ;;  %v13447_v37 = vld [vmem:[%s19396_s5 + $0x308] sm:$0xff] }
0x57b9   :  { %v7249_v59 = vmul.f32 %v16350_v9, %v16344_v60  ;;  %v15827_v60 = vpack.c.bf16 %v13444_v53, %v13443_v50  ;;  %v15830_v42 = vpack.c.bf16 %v13447_v37, %v13446_v58  ;;  %v13451_v51 = vld [vmem:[%s19396_s5 + $0x328] sm:$0xff] }
0x57ba   :  { %14950 = vmatmul.mubr.msk.f32.vlgmr.msra.gmra.mrb[118].mxu1 %vm227_vm6, %v7082_v8  ;;  %v15836_v8 = vpack.c.bf16 %v13451_v51, %v13450_v48 }
0x57bb   :  { %14958 = vmatpush3.msk.msra.mxu1 %vm231_vm5, %v7251_v18  ;;  %14959 = vmatprep.mubr.msk.f32.mxu1 %vm16470_vm1, %v16471_v11 }
0x57bc   :  { %15823 = vmatprep.subr.bf16.mxu1 %v16469_v7 }
0x57be   :  { %14960 = vmatmul.mubr.msk.f32.vlgmr.msra.gmra.mrb[120].mxu1 %vm227_vm6, %v7249_v59 }
0x57bf   :  { %14981 = vmatprep.mubr.msk.f32.mxu1 %vm16470_vm1, %v16471_v11  ;;  %15825 = vmatpush3.bf16.msra.mxu1 %v15824_v49  ;;  %v7638_v49 = vrot.slane %v17989_v15, %v16789_v6 }
0x57c0   :  { %15826 = vmatprep.subr.bf16.mxu1 %v16469_v7 }
0x57c3   :  { %15828 = vmatpush3.bf16.msra.mxu1 %v15827_v60 }
0x57c4   :  { %15853 = vmatprep.subr.bf16.mxu1 %v16469_v7 }
0x588d   :  { %v7156_v16 = vpop.f32.mrb[118].mxu1 }
0x588e   :  { %7332 = vrot.lane.b32.xlu1 %v7156_v16, %s16485_s25  ;;  %v14951_v56 = vpop.f32.mrb[119].mxu1  ;;  %v15839_v16 = vpack.c.bf16 %v13453_v28, %v13452_v54 }
0x588f   :  { %v13454_v56 = vld [vmem:[%s19396_s5 + $0x340] sm:$0xff] }
0x5891   :  { %v7323_v3 = vpop.f32.mrb[120].mxu1 }
0x5892   :  { %7336 = vrot.lane.b32.xlu0 %v7323_v3, %s16486_s26  ;;  %v14961_v62 = vpop.f32.mrb[121].mxu1  ;;  %v13455_v3 = vld [vmem:[%s19396_s5 + $0x348] sm:$0xff] }
0x5893   :  { %v15842_v62 = vpack.c.bf16 %v13455_v3, %v13454_v56 }
0x5900   :  { %v7333_v27 = vpop.permute.xlu1 %7332 }
0x5901   :  { %v7340_v20 = vsel %vm818_vm7, %v7339_v26, %v7333_v27  ;;  %v13457_v27 = vld [vmem:[%s19396_s5 + $0x358] sm:$0xff] }
0x5902   :  { %v15845_v26 = vpack.c.bf16 %v13457_v27, %v13456_v38 }
0x5904   :  { %v7337_v63 = vpop.permute.xlu0 %7336 }
0x5905   :  { %v7341_v1 = vsel %vm820_vm8, %v7340_v20, %v7337_v63  ;;  %v13458_v20 = vld [vmem:[%s19396_s5 + $0x360] sm:$0xff]  ;;  %v13459_v63 = vld [vmem:[%s19396_s5 + $0x368] sm:$0xff] }
0x5906   :  { %14971 = vmatmul.mubr.msk.f32.vlgmr.msra.gmra.mrb[40].mxu0 %vm60_vm2, %v7341_v1  ;;  %v15848_v1 = vpack.c.bf16 %v13459_v63, %v13458_v20 }
0x5907   :  { %15016 = vmatprep.mubr.msk.f32.mxu0 %vm16470_vm1, %v16471_v11  ;;  %15831 = vmatpush3.bf16.msra.mxu0 %v15830_v42 }
0x5908   :  { %15832 = vmatprep.subr.bf16.mxu0 %v16469_v7 }
0x590b   :  { %15834 = vmatpush3.bf16.msra.mxu0 %v15833_v47 }
0x590c   :  { %15835 = vmatprep.subr.bf16.mxu0 %v16469_v7 }
0x590f   :  { %15837 = vmatpush3.bf16.msra.mxu0 %v15836_v8  ;;  %v18207_v8 = vld [vmem:[%s19393_s3 + $0xf0] sm:$0xff] }
0x5910   :  { %15838 = vmatprep.subr.bf16.mxu0 %v16469_v7 }
0x5913   :  { %15840 = vmatpush3.bf16.msra.mxu0 %v15839_v16 }
0x5914   :  { %15841 = vmatprep.subr.bf16.mxu0 %v16469_v7 }
0x5917   :  { %15843 = vmatpush3.bf16.msra.mxu0 %v15842_v62 }
0x5918   :  { %15844 = vmatprep.subr.bf16.mxu0 %v16469_v7 }
0x591b   :  { %15846 = vmatpush3.bf16.msra.mxu0 %v15845_v26 }
0x591c   :  { %15847 = vmatprep.subr.bf16.mxu0 %v16469_v7 }
0x591f   :  { %15849 = vmatpush3.bf16.msra.mxu0 %v15848_v1 }
0x5920   :  { %15850 = vmatprep.subr.bf16.mxu0 %v16469_v7 }
0x59d9   :  { %v7427_v5 = vpop.f32.mrb[40].mxu0 }
0x59da   :  { %v7431_v13 = vadd.f32 %v7427_v5, %v17954_v10  ;;  %v14972_v17 = vpop.f32.mrb[41].mxu0  ;;  %v13461_v5 = vld [vmem:[%s19396_s5 + $0x378] sm:$0xff] }
0x59db   :  { %v7468_v17 = vrot.slane %v17989_v15, %v16782_v57  ;;  %v18195_v15 = vld [vmem:[%s19393_s3 + $0xe0] sm:$0xff] }
0x59dc   :  { %v18096_v19 = vadd.f32 %v7435_v4, %v7431_v13  ;;  %v13460_v4 = vld [vmem:[%s19396_s5 + $0x370] sm:$0xff] }
0x59dd   :  { %v15851_v13 = vpack.c.bf16 %v13461_v5, %v13460_v4 }
0x59de   :  { %v7437_v45 = vsel %vm31_vm0, %v18096_v19, 0.0 }
0x59df   :  { %7438 = vadd.xlane.f32.xlu1 %v7437_v45  ;;  %15852 = vmatpush3.bf16.msra.mxu0 %v15851_v13 }
0x59e0   :  { %15060 = vmatprep.subr.mxu0 %v16471_v11 }
0x5a6c   :  { %v7439_v24 = vpop.xlane.xlu1 %7438 }
0x5a6d   :  { %v7440_v12 = vmul.f32 0.03125, %v7439_v24 }
0x5a6f   :  { %v7441_v36 = vsub.f32 %v18096_v19, %v7440_v12 }
0x5a71   :  { %v7442_v34 = vmul.f32 %v7441_v36, %v7441_v36 }
0x5a73   :  { %v7443_v52 = vsel %vm31_vm0, %v7442_v34, 0.0 }
0x5a74   :  { %7444 = vadd.xlane.f32.xlu0 %v7443_v52 }
0x5b01   :  { %v7445_v9 = vpop.xlane.xlu0 %7444 }
0x5b02   :  { %v7446_v18 = vmul.f32 0.03125, %v7445_v9  ;;  %v18212_v9 = vld [vmem:[%s19393_s3 + $0xf8] sm:$0xff] }
0x5b04   :  { %v7447_v59 = vadd.f32 1e-06, %v7446_v18  ;;  %v15857_v18 = vpack.c.bf16 %v18212_v9, %v18207_v8 }
0x5b06   :  { %16351 = vrsqrt.f32 %v7447_v59 }
0x5b10   :  { %v16352_v46 = vpop.eup %16351 }
0x5b11   :  { %v7449_v22 = vmul.f32 %v16352_v46, %v7441_v36 }
0x5b13   :  { %v7454_v32 = vmul.f32 %v7453_v35, %v7449_v22  ;;  %v18221_v22 = vld [vmem:[%s19394_s2 + $0x38] sm:$0xff] }
0x5b14   :  { %v7668_v54 = vrot.slane %v18221_v22, %v16581_v23  ;;  %v7673_v56 = vrot.slane %v18221_v22, %v16591_v30 }
0x5b15   :  { %v7459_v14 = vadd.f32 %v7458_v55, %v7454_v32  ;;  %v7663_v55 = vrot.slane %v18221_v22, %v16573_v21 }
0x5b17   :  { %14982 = vmatmul.mubr.msk.f32.vlgmr.msra.gmra.mrb[122].mxu1 %vm60_vm2, %v7459_v14 }
0x5b18   :  { %15027 = vmatprep.mubr.msk.f32.mxu1 %vm16470_vm1, %v16471_v11 }
0x5bea   :  { %v7538_v45 = vpop.f32.mrb[122].mxu1 }
0x5beb   :  { %v7539_v24 = vadd.f32 %v7538_v45, %v7468_v17  ;;  %v14983_v12 = vpop.f32.mrb[123].mxu1 }
0x5bed   :  { %v7543_v36 = vmul.f32 0.70710677, %v7539_v24  ;;  %v7542_v52 = vmul.f32 0.5, %v7539_v24 }
0x5bef   :  { %16353 = verf.f32 %v7543_v36 }
0x5bf9   :  { %v16354_v34 = vpop.eup %16353 }
0x5bfa   :  { %v7545_v25 = vadd.f32 1.0, %v16354_v34 }
0x5bfc   :  { %v7546_v31 = vmul.f32 %v7545_v25, %v7542_v52 }
0x5bfe   :  { %15017 = vmatmul.mubr.f32.vlgmr.msra.gmra.mrb[42].mxu0 %v7546_v31 }
0x5bff   :  { %15062 = vmatprep.mubr.msk.f32.mxu0 %vm16470_vm1, %v16471_v11 }
0x5cd1   :  { %v7630_v50 = vpop.f32.mrb[42].mxu0 }
0x5cd2   :  { %v7634_v53 = vadd.f32 %v7630_v50, %v18096_v19  ;;  %v15018_v60 = vpop.f32.mrb[43].mxu0  ;;  %v18200_v19 = vld [vmem:[%s19393_s3 + $0xe8] sm:$0xff] }
0x5cd3   :  { %v15854_v51 = vpack.c.bf16 %v18200_v19, %v18195_v15 }
0x5cd4   :  { %v18186_v58 = vadd.f32 %v7638_v49, %v7634_v53 }
0x5cd5   :  { %15855 = vmatpush3.bf16.msra.mxu1 %v15854_v51 }
0x5cd6   :  { %v7647_v37 = vsel %vm31_vm0, %v18186_v58, 0.0  ;;  %15856 = vmatprep.subr.bf16.mxu1 %v16469_v7 }
0x5cd7   :  { %7648 = vadd.xlane.f32.xlu0 %v7647_v37 }
0x5cd9   :  { %15858 = vmatpush3.bf16.msra.mxu1 %v15857_v18 }
0x5cda   :  { %15030 = vmatprep.subr.mxu1 %v16471_v11 }
0x5d64   :  { %v7649_v41 = vpop.xlane.xlu0 %7648 }
0x5d65   :  { %v7650_v42 = vmul.f32 0.03125, %v7649_v41 }
0x5d67   :  { %v7651_v44 = vsub.f32 %v18186_v58, %v7650_v42 }
0x5d69   :  { %v7652_v47 = vmul.f32 %v7651_v44, %v7651_v44 }
0x5d6b   :  { %v7653_v48 = vsel %vm31_vm0, %v7652_v47, 0.0 }
0x5d6c   :  { %7654 = vadd.xlane.f32.xlu1 %v7653_v48 }
0x5df9   :  { %v7655_v59 = vpop.xlane.xlu1 %7654 }
0x5dfa   :  { %v7656_v35 = vmul.f32 0.03125, %v7655_v59 }
0x5dfc   :  { %v7657_v46 = vadd.f32 1e-06, %v7656_v35 }
0x5dfe   :  { %16355 = vrsqrt.f32 %v7657_v46 }
0x5e08   :  { %v16356_v32 = vpop.eup %16355 }
0x5e09   :  { %v7659_v14 = vmul.f32 %v16356_v32, %v7651_v44 }
0x5e0b   :  { %v7664_v28 = vmul.f32 %v7663_v55, %v7659_v14 }
0x5e0d   :  { %v7669_v16 = vadd.f32 %v7668_v54, %v7664_v28 }
0x5e0f   :  { %15028 = vmatmul.mubr.msk.f32.vlgmr.msra.gmra.mrb[124].mxu1 %vm60_vm2, %v7669_v16 }
0x5e10   :  { %15032 = vmatprep.mubr.msk.f32.mxu1 %vm16470_vm1, %v16471_v11 }
0x5ee2   :  { %v7743_v3 = vpop.f32.mrb[124].mxu1 }
0x5ee3   :  { %v18232_v62 = vadd.f32 %v7743_v3, %v7673_v56  ;;  %v15029_v38 = vpop.f32.mrb[125].mxu1 }
0x5ee5   :  { %7748 = vrot.lane.b32.xlu0 %v18232_v62, %s16473_s13 }
0x5ee9   :  { %7915 = vrot.lane.b32.xlu0 %v18232_v62, %s16474_s14 }
0x5eed   :  { %7913 = vrot.lane.b32.xlu0 %v18232_v62, %s16472_s12 }
0x5f57   :  { %v7749_v27 = vpop.permute.xlu0 %7748 }
0x5f58   :  { %15031 = vmatpush3.xpose.msk.msra.mxu1 %vm137_vm3, %v7749_v27 }
0x5f59   :  { %15035 = vmatprep.subr.mxu1 %v16471_v11 }
0x5f5b   :  { %15033 = vmatmul.mubr.msk.f32.vlgmr.msra.gmra.mrb[126].mxu1 %vm137_vm3, %v18232_v62  ;;  %v7916_v34 = vpop.permute.xlu0 %7915 }
0x5f5c   :  { %15037 = vmatprep.mubr.msk.f32.mxu1 %vm16470_vm1, %v16471_v11 }
0x5f5f   :  { %v7914_v25 = vpop.permute.xlu0 %7913 }
0x602e   :  { %v7820_v26 = vpop.f32.mrb[126].mxu1 }
0x602f   :  { %v7824_v20 = vmul.f32 0.35355338, %v7820_v26  ;;  %v15034_v63 = vpop.f32.mrb[127].mxu1 }
0x6031   :  { %v7825_v1 = vsel %vm213_vm4, %v7824_v20, -inf }
0x6032   :  { %7826 = vmax.xlane.f32.xlu1 %v7825_v1 }
0x60bf   :  { %v7827_v4 = vpop.xlane.xlu1 %7826 }
0x60c0   :  { %v7828_v5 = vsub.f32 %v7824_v20, %v7827_v4 }
0x60c2   :  { %v7829_v13 = vmul.f32 1.442695, %v7828_v5 }
0x60c4   :  { %16357 = vpow2.f32 %v7829_v13 }
0x60ce   :  { %v16358_v17 = vpop.eup %16357 }
0x60cf   :  { %v7831_v45 = vsel %vm213_vm4, %v16358_v17, 0.0 }
0x60d0   :  { %7832 = vadd.xlane.f32.xlu1 %v7831_v45 }
0x60e1   :  { %7836 = vrot.lane.b32.xlu1 %v18232_v62, %s16479_s19 }
0x615d   :  { %v7833_v24 = vpop.xlane.xlu1 %7832 }
0x615e   :  { %16359 = vrcp.f32 %v7833_v24 }
0x6161   :  { %v7837_v12 = vpop.permute.xlu1 %7836 }
0x6162   :  { %15036 = vmatpush3.msk.msra.mxu1 %vm231_vm5, %v7837_v12 }
0x6163   :  { %15040 = vmatprep.subr.mxu1 %v16471_v11 }
0x6168   :  { %v16360_v36 = vpop.eup %16359 }
0x6169   :  { %v7835_v52 = vmul.f32 %v16360_v36, %v16358_v17 }
0x616b   :  { %15038 = vmatmul.mubr.msk.f32.vlgmr.msra.gmra.mrb[128].mxu1 %vm227_vm6, %v7835_v52 }
0x616c   :  { %15041 = vmatpush3.xpose.msk.msra.mxu1 %vm137_vm3, %v7916_v34  ;;  %15042 = vmatprep.mubr.msk.f32.mxu1 %vm16470_vm1, %v16471_v11 }
0x616d   :  { %15045 = vmatprep.subr.mxu1 %v16471_v11 }
0x616f   :  { %15043 = vmatmul.mubr.msk.f32.vlgmr.msra.gmra.mrb[130].mxu1 %vm137_vm3, %v7914_v25  ;;  %v16151_v25 = vpack.i.bf16 %v18200_v19, %v18195_v15 }
0x6170   :  { %15047 = vmatprep.mubr.msk.f32.mxu1 %vm16470_vm1, %v16471_v11 }
0x623e   :  { %v18260_v31 = vpop.f32.mrb[128].mxu1 }
0x623f   :  { %v15039_v49 = vpop.f32.mrb[129].mxu1 }
0x6240   :  { %v16156_v49 = vpack.i.bf16 %v18212_v9, %v18207_v8 }
0x6242   :  { %v7987_v50 = vpop.f32.mrb[130].mxu1 }
0x6243   :  { %v7991_v53 = vmul.f32 0.35355338, %v7987_v50  ;;  %v15044_v60 = vpop.f32.mrb[131].mxu1 }
0x6245   :  { %v7992_v37 = vsel %vm213_vm4, %v7991_v53, -inf }
0x6246   :  { %7993 = vmax.xlane.f32.xlu1 %v7992_v37 }
0x6257   :  { %8082 = vrot.lane.b32.xlu1 %v18232_v62, %s16475_s15 }
0x625b   :  { %8080 = vrot.lane.b32.xlu1 %v18232_v62, %s16476_s16 }
0x625f   :  { %8247 = vrot.lane.b32.xlu1 %v18232_v62, %s16478_s18 }
0x62d3   :  { %v7994_v41 = vpop.xlane.xlu1 %7993 }
0x62d4   :  { %v7995_v42 = vsub.f32 %v7991_v53, %v7994_v41 }
0x62d6   :  { %v7996_v44 = vmul.f32 1.442695, %v7995_v42 }
0x62d7   :  { %v8083_v51 = vpop.permute.xlu1 %8082 }
0x62d8   :  { %16361 = vpow2.f32 %v7996_v44 }
0x62db   :  { %v8081_v35 = vpop.permute.xlu1 %8080 }
0x62df   :  { %v8248_v32 = vpop.permute.xlu1 %8247 }
0x62e2   :  { %v16362_v47 = vpop.eup %16361 }
0x62e3   :  { %v7998_v48 = vsel %vm213_vm4, %v16362_v47, 0.0 }
0x62e4   :  { %7999 = vadd.xlane.f32.xlu0 %v7998_v48 }
0x62fa   :  { %8003 = vrot.lane.b32.xlu0 %v18232_v62, %s16482_s22 }
0x62fe   :  { %8249 = vrot.lane.b32.xlu0 %v18232_v62, %s16477_s17 }
0x6371   :  { %v8000_v18 = vpop.xlane.xlu0 %7999 }
0x6372   :  { %16363 = vrcp.f32 %v8000_v18 }
0x6375   :  { %v8004_v59 = vpop.permute.xlu0 %8003 }
0x6376   :  { %15046 = vmatpush3.msk.msra.mxu1 %vm231_vm5, %v8004_v59 }
0x6377   :  { %15050 = vmatprep.subr.mxu1 %v16471_v11 }
0x6379   :  { %v8250_v46 = vpop.permute.xlu0 %8249 }
0x637a   :  { %15061 = vmatpush3.xpose.msk.msra.mxu0 %vm137_vm3, %v8250_v46 }
0x637b   :  { %15859 = vmatprep.subr.bf16.mxu0 %v16469_v7 }
0x637c   :  { %v16364_v55 = vpop.eup %16363 }
0x637d   :  { %15063 = vmatmul.mubr.msk.f32.vlgmr.msra.gmra.mrb[44].mxu0 %vm137_vm3, %v8248_v32  ;;  %v8002_v14 = vmul.f32 %v16364_v55, %v16362_v47 }
0x637e   :  { %15078 = vmatprep.mubr.msk.f32.mxu0 %vm16470_vm1, %v16471_v11 }
0x637f   :  { %15048 = vmatmul.mubr.msk.f32.vlgmr.msra.gmra.mrb[132].mxu1 %vm227_vm6, %v8002_v14 }
0x6380   :  { %15051 = vmatpush3.xpose.msk.msra.mxu1 %vm137_vm3, %v8083_v51  ;;  %15052 = vmatprep.mubr.msk.f32.mxu1 %vm16470_vm1, %v16471_v11 }
0x6381   :  { %15055 = vmatprep.subr.mxu1 %v16471_v11 }
0x6383   :  { %15053 = vmatmul.mubr.msk.f32.vlgmr.msra.gmra.mrb[134].mxu1 %vm137_vm3, %v8081_v35 }
0x6384   :  { %15057 = vmatprep.mubr.msk.f32.mxu1 %vm16470_vm1, %v16471_v11 }
0x6450   :  { %v8321_v54 = vpop.f32.mrb[44].mxu0 }
0x6451   :  { %v8325_v28 = vmul.f32 0.35355338, %v8321_v54  ;;  %v15064_v16 = vpop.f32.mrb[45].mxu0 }
0x6452   :  { %v8076_v56 = vpop.f32.mrb[132].mxu1 }
0x6453   :  { %v15049_v3 = vpop.f32.mrb[133].mxu1  ;;  %v8326_v38 = vsel %vm213_vm4, %v8325_v28, -inf }
0x6454   :  { %8327 = vmax.xlane.f32.xlu1 %v8326_v38 }
0x6456   :  { %v8154_v27 = vpop.f32.mrb[134].mxu1 }
0x6457   :  { %v8158_v26 = vmul.f32 0.35355338, %v8154_v27  ;;  %v15054_v20 = vpop.f32.mrb[135].mxu1 }
0x6459   :  { %v8159_v63 = vsel %vm213_vm4, %v8158_v26, -inf }
0x645a   :  { %8160 = vmax.xlane.f32.xlu0 %v8159_v63 }
0x6465   :  { %8170 = vrot.lane.b32.xlu1 %v18232_v62, %s16480_s20 }
0x6469   :  { %16152 = vrot.lane.b32.xlu1 %v16151_v25, %s16483_s23  ;;  %v13492_v25 = vld [vmem:[%s19396_s5 + $0x390] sm:$0xff] }
0x646d   :  { %16157 = vrot.lane.b32.xlu1 %v16156_v49, %s16483_s23 }
0x64e1   :  { %v8328_v1 = vpop.xlane.xlu1 %8327 }
0x64e2   :  { %v8329_v4 = vsub.f32 %v8325_v28, %v8328_v1 }
0x64e4   :  { %v8330_v5 = vmul.f32 1.442695, %v8329_v4 }
0x64e5   :  { %v8171_v13 = vpop.permute.xlu1 %8170 }
0x64e6   :  { %16365 = vpow2.f32 %v8330_v5  ;;  %15056 = vmatpush3.msk.msra.mxu1 %vm231_vm5, %v8171_v13  ;;  %v13485_v13 = vld [vmem:[%s19395_s4 + $0xe0] sm:$0xff] }
0x64e7   :  { %v8161_v17 = vpop.xlane.xlu0 %8160  ;;  %15065 = vmatprep.subr.mxu1 %v16471_v11 }
0x64e8   :  { %v8162_v45 = vsub.f32 %v8158_v26, %v8161_v17  ;;  %v13486_v17 = vld [vmem:[%s19395_s4 + $0xe8] sm:$0xff] }
0x64e9   :  { %v16153_v19 = vpop.permute.xlu1 %16152 }
0x64ea   :  { %v8163_v24 = vmul.f32 1.442695, %v8162_v45  ;;  %v16155_v8 = vunpack.i.h.bf16 %v16153_v19  ;;  %v16154_v9 = vunpack.i.l.bf16 %v16153_v19  ;;  %v15866_v45 = vpack.c.bf16 %v13486_v17, %v13485_v13 }
0x64ec   :  { %16367 = vpow2.f32 %v8163_v24  ;;  %v15860_v42 = vpack.c.bf16 %v16155_v8, %v16154_v9  ;;  %v13487_v24 = vld [vmem:[%s19395_s4 + $0xf0] sm:$0xff]  ;;  %v8540_v8 = vrot.slane %v18221_v22, %v16734_v39 }
0x64ed   :  { %v16158_v44 = vpop.permute.xlu1 %16157 }
0x64ee   :  { %v16160_v47 = vunpack.i.h.bf16 %v16158_v44  ;;  %v16159_v48 = vunpack.i.l.bf16 %v16158_v44  ;;  %15861 = vmatpush3.bf16.msra.mxu0 %v15860_v42  ;;  %v8545_v44 = vrot.slane %v18221_v22, %v16737_v40 }
0x64ef   :  { %15862 = vmatprep.subr.bf16.mxu0 %v16469_v7 }
0x64f0   :  { %v16366_v12 = vpop.eup %16365  ;;  %v15863_v51 = vpack.c.bf16 %v16160_v47, %v16159_v48 }
0x64f1   :  { %v8332_v36 = vsel %vm213_vm4, %v16366_v12, 0.0 }
0x64f2   :  { %8333 = vadd.xlane.f32.xlu0 %v8332_v36  ;;  %15864 = vmatpush3.bf16.msra.mxu0 %v15863_v51  ;;  %v13496_v51 = vld [vmem:[%s19396_s5 + $0x3b0] sm:$0xff] }
0x64f3   :  { %15871 = vmatprep.subr.bf16.mxu0 %v16469_v7 }
0x64f6   :  { %v16368_v34 = vpop.eup %16367 }
0x64f7   :  { %v8165_v52 = vsel %vm213_vm4, %v16368_v34, 0.0 }
0x64f8   :  { %8166 = vadd.xlane.f32.xlu0 %v8165_v52  ;;  %v13491_v52 = vld [vmem:[%s19396_s5 + $0x388] sm:$0xff] }
0x650e   :  { %8337 = vrot.lane.b32.xlu0 %v18232_v62, %s16481_s21 }
0x6512   :  { %8415 = vrot.lane.b32.xlu0 %v8076_v56, %s16484_s24  ;;  %v8522_v56 = vrot.slane %v18221_v22, %v16687_v61 }
0x657f   :  { %v8334_v50 = vpop.xlane.xlu0 %8333 }
0x6585   :  { %v8167_v53 = vpop.xlane.xlu0 %8166 }
0x6586   :  { %16369 = vrcp.f32 %v8167_v53 }
0x6587   :  { %16371 = vrcp.f32 %v8334_v50  ;;  %v13493_v50 = vld [vmem:[%s19396_s5 + $0x398] sm:$0xff] }
0x6588   :  { %v15875_v53 = vpack.c.bf16 %v13493_v50, %v13492_v25 }
0x6589   :  { %v8338_v62 = vpop.permute.xlu0 %8337 }
0x658d   :  { %v8416_v55 = vpop.permute.xlu0 %8415 }
0x658e   :  { %v8426_v14 = vsel %vm137_vm3, %v18260_v31, %v8416_v55 }
0x6590   :  { %v16370_v60 = vpop.eup %16369 }
0x6591   :  { %v8169_v37 = vmul.f32 %v16370_v60, %v16368_v34  ;;  %v16372_v41 = vpop.eup %16371  ;;  %v13490_v34 = vld [vmem:[%s19396_s5 + $0x380] sm:$0xff] }
0x6592   :  { %v8336_v15 = vmul.f32 %v16372_v41, %v16366_v12  ;;  %v13488_v12 = vld [vmem:[%s19395_s4 + $0xf8] sm:$0xff]  ;;  %v15872_v49 = vpack.c.bf16 %v13491_v52, %v13490_v34  ;;  %v13494_v60 = vld [vmem:[%s19396_s5 + $0x3a0] sm:$0xff] }
0x6593   :  { %15058 = vmatmul.mubr.msk.f32.vlgmr.msra.gmra.mrb[136].mxu1 %vm227_vm6, %v8169_v37  ;;  %v15869_v36 = vpack.c.bf16 %v13488_v12, %v13487_v24  ;;  %v13495_v37 = vld [vmem:[%s19396_s5 + $0x3a8] sm:$0xff]  ;;  %v8725_v24 = vrot.slane %v18221_v22, %v16789_v6 }
0x6594   :  { %15066 = vmatpush3.msk.msra.mxu1 %vm231_vm5, %v8338_v62  ;;  %15067 = vmatprep.mubr.msk.f32.mxu1 %vm16470_vm1, %v16471_v11  ;;  %v15878_v41 = vpack.c.bf16 %v13495_v37, %v13494_v60 }
0x6595   :  { %15865 = vmatprep.subr.bf16.mxu1 %v16469_v7 }
0x6597   :  { %15068 = vmatmul.mubr.msk.f32.vlgmr.msra.gmra.mrb[138].mxu1 %vm227_vm6, %v8336_v15 }
0x6598   :  { %15089 = vmatprep.mubr.msk.f32.mxu1 %vm16470_vm1, %v16471_v11  ;;  %15867 = vmatpush3.bf16.msra.mxu1 %v15866_v45 }
0x6599   :  { %15868 = vmatprep.subr.bf16.mxu1 %v16469_v7 }
0x659c   :  { %15870 = vmatpush3.bf16.msra.mxu1 %v15869_v36 }
0x659d   :  { %15895 = vmatprep.subr.bf16.mxu1 %v16469_v7 }
0x6666   :  { %v8243_v18 = vpop.f32.mrb[136].mxu1 }
0x6667   :  { %8419 = vrot.lane.b32.xlu1 %v8243_v18, %s16485_s25  ;;  %v15059_v59 = vpop.f32.mrb[137].mxu1  ;;  %v13497_v18 = vld [vmem:[%s19396_s5 + $0x3b8] sm:$0xff] }
0x6668   :  { %v15881_v59 = vpack.c.bf16 %v13497_v18, %v13496_v51 }
0x666a   :  { %v8410_v35 = vpop.f32.mrb[138].mxu1 }
0x666b   :  { %8423 = vrot.lane.b32.xlu0 %v8410_v35, %s16486_s26  ;;  %v15069_v46 = vpop.f32.mrb[139].mxu1  ;;  %v13498_v35 = vld [vmem:[%s19396_s5 + $0x3c0] sm:$0xff] }
0x666c   :  { %v13499_v46 = vld [vmem:[%s19396_s5 + $0x3c8] sm:$0xff] }
0x666d   :  { %v15884_v55 = vpack.c.bf16 %v13499_v46, %v13498_v35 }
0x66d9   :  { %v8420_v32 = vpop.permute.xlu1 %8419 }
0x66da   :  { %v8427_v54 = vsel %vm818_vm7, %v8426_v14, %v8420_v32  ;;  %v13500_v32 = vld [vmem:[%s19396_s5 + $0x3d0] sm:$0xff]  ;;  %v13501_v14 = vld [vmem:[%s19396_s5 + $0x3d8] sm:$0xff] }
0x66dd   :  { %v8424_v28 = vpop.permute.xlu0 %8423 }
0x66de   :  { %v8428_v16 = vsel %vm820_vm8, %v8427_v54, %v8424_v28  ;;  %v15887_v54 = vpack.c.bf16 %v13501_v14, %v13500_v32  ;;  %v13502_v28 = vld [vmem:[%s19396_s5 + $0x3e0] sm:$0xff] }
0x66df   :  { %15079 = vmatmul.mubr.msk.f32.vlgmr.msra.gmra.mrb[46].mxu0 %vm60_vm2, %v8428_v16  ;;  %v13503_v16 = vld [vmem:[%s19396_s5 + $0x3e8] sm:$0xff] }
0x66e0   :  { %15124 = vmatprep.mubr.msk.f32.mxu0 %vm16470_vm1, %v16471_v11  ;;  %15873 = vmatpush3.bf16.msra.mxu0 %v15872_v49 }
0x66e1   :  { %15874 = vmatprep.subr.bf16.mxu0 %v16469_v7 }
0x66e4   :  { %15876 = vmatpush3.bf16.msra.mxu0 %v15875_v53 }
0x66e5   :  { %15877 = vmatprep.subr.bf16.mxu0 %v16469_v7 }
0x66e8   :  { %15879 = vmatpush3.bf16.msra.mxu0 %v15878_v41 }
0x66e9   :  { %15880 = vmatprep.subr.bf16.mxu0 %v16469_v7 }
0x66ec   :  { %15882 = vmatpush3.bf16.msra.mxu0 %v15881_v59 }
0x66ed   :  { %15883 = vmatprep.subr.bf16.mxu0 %v16469_v7 }
0x66f0   :  { %15885 = vmatpush3.bf16.msra.mxu0 %v15884_v55 }
0x66f1   :  { %15886 = vmatprep.subr.bf16.mxu0 %v16469_v7 }
0x66f4   :  { %15888 = vmatpush3.bf16.msra.mxu0 %v15887_v54 }
0x66f5   :  { %15889 = vmatprep.subr.bf16.mxu0 %v16469_v7 }
0x67b2   :  { %v8514_v3 = vpop.f32.mrb[46].mxu0 }
0x67b3   :  { %v8518_v38 = vadd.f32 %v8514_v3, %v18186_v58  ;;  %v15080_v27 = vpop.f32.mrb[47].mxu0  ;;  %v13504_v3 = vld [vmem:[%s19396_s5 + $0x3f0] sm:$0xff] }
0x67b5   :  { %v18328_v26 = vadd.f32 %v8522_v56, %v8518_v38  ;;  %v15890_v56 = vpack.c.bf16 %v13503_v16, %v13502_v28  ;;  %v13505_v38 = vld [vmem:[%s19396_s5 + $0x3f8] sm:$0xff] }
0x67b6   :  { %v15893_v27 = vpack.c.bf16 %v13505_v38, %v13504_v3 }
0x67b7   :  { %v8524_v31 = vsel %vm31_vm0, %v18328_v26, 0.0  ;;  %15891 = vmatpush3.bf16.msra.mxu0 %v15890_v56 }
0x67b8   :  { %8525 = vadd.xlane.f32.xlu1 %v8524_v31  ;;  %15892 = vmatprep.subr.bf16.mxu0 %v16469_v7  ;;  %v8555_v31 = vrot.slane %v18221_v22, %v16782_v57  ;;  %v18427_v22 = vld [vmem:[%s19393_s3 + $0x100] sm:$0xff] }
0x67bb   :  { %15894 = vmatpush3.bf16.msra.mxu0 %v15893_v27 }
0x67bc   :  { %15168 = vmatprep.subr.mxu0 %v16471_v11 }
0x6845   :  { %v8526_v20 = vpop.xlane.xlu1 %8525 }
0x6846   :  { %v8527_v63 = vmul.f32 0.03125, %v8526_v20 }
0x6848   :  { %v8528_v1 = vsub.f32 %v18328_v26, %v8527_v63 }
0x684a   :  { %v8529_v4 = vmul.f32 %v8528_v1, %v8528_v1 }
0x684c   :  { %v8530_v5 = vsel %vm31_vm0, %v8529_v4, 0.0 }
0x684d   :  { %8531 = vadd.xlane.f32.xlu0 %v8530_v5 }
0x68da   :  { %v8532_v62 = vpop.xlane.xlu0 %8531 }
0x68db   :  { %v8533_v15 = vmul.f32 0.03125, %v8532_v62  ;;  %v18439_v62 = vld [vmem:[%s19393_s3 + $0x110] sm:$0xff] }
0x68dd   :  { %v8534_v19 = vadd.f32 1e-06, %v8533_v15  ;;  %v18444_v15 = vld [vmem:[%s19393_s3 + $0x118] sm:$0xff] }
0x68df   :  { %16373 = vrsqrt.f32 %v8534_v19  ;;  %v15899_v19 = vpack.c.bf16 %v18444_v15, %v18439_v62 }
0x68e9   :  { %v16374_v9 = vpop.eup %16373 }
0x68ea   :  { %v8536_v42 = vmul.f32 %v16374_v9, %v8528_v1 }
0x68ec   :  { %v8541_v47 = vmul.f32 %v8540_v8, %v8536_v42 }
0x68ee   :  { %v8546_v48 = vadd.f32 %v8545_v44, %v8541_v47  ;;  %v18453_v44 = vld [vmem:[%s19394_s2 + $0x40] sm:$0xff] }
0x68ef   :  { %v8750_v47 = vrot.slane %v18453_v44, %v16573_v21  ;;  %v8755_v18 = vrot.slane %v18453_v44, %v16581_v23  ;;  %v8760_v46 = vrot.slane %v18453_v44, %v16591_v30 }
0x68f0   :  { %15090 = vmatmul.mubr.msk.f32.vlgmr.msra.gmra.mrb[140].mxu1 %vm60_vm2, %v8546_v48 }
0x68f1   :  { %15135 = vmatprep.mubr.msk.f32.mxu1 %vm16470_vm1, %v16471_v11 }
0x69c3   :  { %v8625_v20 = vpop.f32.mrb[140].mxu1 }
0x69c4   :  { %v8626_v63 = vadd.f32 %v8625_v20, %v8555_v31  ;;  %v15091_v1 = vpop.f32.mrb[141].mxu1 }
0x69c6   :  { %v8630_v4 = vmul.f32 0.70710677, %v8626_v63  ;;  %v8629_v13 = vmul.f32 0.5, %v8626_v63 }
0x69c8   :  { %16375 = verf.f32 %v8630_v4 }
0x69d2   :  { %v16376_v5 = vpop.eup %16375 }
0x69d3   :  { %v8632_v17 = vadd.f32 1.0, %v16376_v5 }
0x69d5   :  { %v8633_v45 = vmul.f32 %v8632_v17, %v8629_v13 }
0x69d7   :  { %15125 = vmatmul.mubr.f32.vlgmr.msra.gmra.mrb[48].mxu0 %v8633_v45 }
0x69d8   :  { %15170 = vmatprep.mubr.msk.f32.mxu0 %vm16470_vm1, %v16471_v11 }
0x6aaa   :  { %v8717_v12 = vpop.f32.mrb[48].mxu0 }
0x6aab   :  { %v8721_v36 = vadd.f32 %v8717_v12, %v18328_v26  ;;  %v15126_v34 = vpop.f32.mrb[49].mxu0  ;;  %v18432_v26 = vld [vmem:[%s19393_s3 + $0x108] sm:$0xff] }
0x6aac   :  { %v15896_v41 = vpack.c.bf16 %v18432_v26, %v18427_v22 }
0x6aad   :  { %v18418_v52 = vadd.f32 %v8725_v24, %v8721_v36 }
0x6aae   :  { %15897 = vmatpush3.bf16.msra.mxu1 %v15896_v41 }
0x6aaf   :  { %v8734_v25 = vsel %vm31_vm0, %v18418_v52, 0.0  ;;  %15898 = vmatprep.subr.bf16.mxu1 %v16469_v7 }
0x6ab0   :  { %8735 = vadd.xlane.f32.xlu0 %v8734_v25 }
0x6ab2   :  { %15900 = vmatpush3.bf16.msra.mxu1 %v15899_v19 }
0x6ab3   :  { %15138 = vmatprep.subr.mxu1 %v16471_v11 }
0x6b3d   :  { %v8736_v49 = vpop.xlane.xlu0 %8735 }
0x6b3e   :  { %v8737_v50 = vmul.f32 0.03125, %v8736_v49 }
0x6b40   :  { %v8738_v53 = vsub.f32 %v18418_v52, %v8737_v50 }
0x6b42   :  { %v8739_v60 = vmul.f32 %v8738_v53, %v8738_v53 }
0x6b44   :  { %v8740_v37 = vsel %vm31_vm0, %v8739_v60, 0.0 }
0x6b45   :  { %8741 = vadd.xlane.f32.xlu1 %v8740_v37 }
0x6bd2   :  { %v8742_v8 = vpop.xlane.xlu1 %8741 }
0x6bd3   :  { %v8743_v9 = vmul.f32 0.03125, %v8742_v8 }
0x6bd5   :  { %v8744_v42 = vadd.f32 1e-06, %v8743_v9 }
0x6bd7   :  { %16377 = vrsqrt.f32 %v8744_v42 }
0x6be1   :  { %v16378_v48 = vpop.eup %16377 }
0x6be2   :  { %v8746_v51 = vmul.f32 %v16378_v48, %v8738_v53 }
0x6be4   :  { %v8751_v59 = vmul.f32 %v8750_v47, %v8746_v51 }
0x6be6   :  { %v8756_v35 = vadd.f32 %v8755_v18, %v8751_v59 }
0x6be8   :  { %15136 = vmatmul.mubr.msk.f32.vlgmr.msra.gmra.mrb[142].mxu1 %vm60_vm2, %v8756_v35 }
0x6be9   :  { %15140 = vmatprep.mubr.msk.f32.mxu1 %vm16470_vm1, %v16471_v11 }
0x6cbb   :  { %v8830_v55 = vpop.f32.mrb[142].mxu1 }
0x6cbc   :  { %v18464_v32 = vadd.f32 %v8830_v55, %v8760_v46  ;;  %v15137_v14 = vpop.f32.mrb[143].mxu1 }
0x6cbe   :  { %8835 = vrot.lane.b32.xlu0 %v18464_v32, %s16473_s13 }
0x6cc2   :  { %9002 = vrot.lane.b32.xlu0 %v18464_v32, %s16474_s14 }
0x6cc6   :  { %9000 = vrot.lane.b32.xlu0 %v18464_v32, %s16472_s12 }
0x6d30   :  { %v8836_v54 = vpop.permute.xlu0 %8835 }
0x6d31   :  { %15139 = vmatpush3.xpose.msk.msra.mxu1 %vm137_vm3, %v8836_v54 }
0x6d32   :  { %15143 = vmatprep.subr.mxu1 %v16471_v11 }
0x6d34   :  { %15141 = vmatmul.mubr.msk.f32.vlgmr.msra.gmra.mrb[144].mxu1 %vm137_vm3, %v18464_v32  ;;  %v9003_v13 = vpop.permute.xlu0 %9002 }
0x6d35   :  { %15145 = vmatprep.mubr.msk.f32.mxu1 %vm16470_vm1, %v16471_v11 }
0x6d38   :  { %v9001_v45 = vpop.permute.xlu0 %9000 }
0x6e07   :  { %v8907_v28 = vpop.f32.mrb[144].mxu1 }
0x6e08   :  { %v8911_v16 = vmul.f32 0.35355338, %v8907_v28  ;;  %v15142_v56 = vpop.f32.mrb[145].mxu1 }
0x6e0a   :  { %v8912_v3 = vsel %vm213_vm4, %v8911_v16, -inf }
0x6e0b   :  { %8913 = vmax.xlane.f32.xlu1 %v8912_v3 }
0x6e98   :  { %v8914_v38 = vpop.xlane.xlu1 %8913 }
0x6e99   :  { %v8915_v27 = vsub.f32 %v8911_v16, %v8914_v38 }
0x6e9b   :  { %v8916_v31 = vmul.f32 1.442695, %v8915_v27 }
0x6e9d   :  { %16379 = vpow2.f32 %v8916_v31 }
0x6ea7   :  { %v16380_v20 = vpop.eup %16379 }
0x6ea8   :  { %v8918_v63 = vsel %vm213_vm4, %v16380_v20, 0.0 }
0x6ea9   :  { %8919 = vadd.xlane.f32.xlu1 %v8918_v63 }
0x6eba   :  { %8923 = vrot.lane.b32.xlu1 %v18464_v32, %s16479_s19 }
0x6f36   :  { %v8920_v1 = vpop.xlane.xlu1 %8919 }
0x6f37   :  { %16381 = vrcp.f32 %v8920_v1 }
0x6f3a   :  { %v8924_v4 = vpop.permute.xlu1 %8923 }
0x6f3b   :  { %15144 = vmatpush3.msk.msra.mxu1 %vm231_vm5, %v8924_v4 }
0x6f3c   :  { %15148 = vmatprep.subr.mxu1 %v16471_v11 }
0x6f41   :  { %v16382_v5 = vpop.eup %16381 }
0x6f42   :  { %v8922_v17 = vmul.f32 %v16382_v5, %v16380_v20 }
0x6f44   :  { %15146 = vmatmul.mubr.msk.f32.vlgmr.msra.gmra.mrb[146].mxu1 %vm227_vm6, %v8922_v17 }
0x6f45   :  { %15149 = vmatpush3.xpose.msk.msra.mxu1 %vm137_vm3, %v9003_v13  ;;  %15150 = vmatprep.mubr.msk.f32.mxu1 %vm16470_vm1, %v16471_v11 }
0x6f46   :  { %15153 = vmatprep.subr.mxu1 %v16471_v11 }
0x6f48   :  { %15151 = vmatmul.mubr.msk.f32.vlgmr.msra.gmra.mrb[148].mxu1 %vm137_vm3, %v9001_v45 }
0x6f49   :  { %15155 = vmatprep.mubr.msk.f32.mxu1 %vm16470_vm1, %v16471_v11 }
0x7017   :  { %v18492_v24 = vpop.f32.mrb[146].mxu1 }
0x7018   :  { %v15147_v12 = vpop.f32.mrb[147].mxu1 }
0x7019   :  { %v16161_v12 = vpack.i.bf16 %v18432_v26, %v18427_v22 }
0x701b   :  { %v9074_v36 = vpop.f32.mrb[148].mxu1 }
0x701c   :  { %v9078_v34 = vmul.f32 0.35355338, %v9074_v36  ;;  %v15152_v25 = vpop.f32.mrb[149].mxu1  ;;  %v16166_v36 = vpack.i.bf16 %v18444_v15, %v18439_v62 }
0x701e   :  { %v9079_v49 = vsel %vm213_vm4, %v9078_v34, -inf }
0x701f   :  { %9080 = vmax.xlane.f32.xlu1 %v9079_v49 }
0x7030   :  { %9169 = vrot.lane.b32.xlu1 %v18464_v32, %s16475_s15 }
0x7034   :  { %9167 = vrot.lane.b32.xlu1 %v18464_v32, %s16476_s16 }
0x7038   :  { %9334 = vrot.lane.b32.xlu1 %v18464_v32, %s16478_s18 }
0x70ac   :  { %v9081_v50 = vpop.xlane.xlu1 %9080 }
0x70ad   :  { %v9082_v53 = vsub.f32 %v9078_v34, %v9081_v50 }
0x70af   :  { %v9083_v60 = vmul.f32 1.442695, %v9082_v53 }
0x70b0   :  { %v9170_v19 = vpop.permute.xlu1 %9169 }
0x70b1   :  { %16383 = vpow2.f32 %v9083_v60 }
0x70b4   :  { %v9168_v42 = vpop.permute.xlu1 %9167 }
0x70b8   :  { %v9335_v51 = vpop.permute.xlu1 %9334 }
0x70bb   :  { %v16384_v37 = vpop.eup %16383 }
0x70bc   :  { %v9085_v41 = vsel %vm213_vm4, %v16384_v37, 0.0 }
0x70bd   :  { %9086 = vadd.xlane.f32.xlu0 %v9085_v41 }
0x70d3   :  { %9090 = vrot.lane.b32.xlu0 %v18464_v32, %s16482_s22 }
0x70d7   :  { %9336 = vrot.lane.b32.xlu0 %v18464_v32, %s16477_s17 }
0x714a   :  { %v9087_v8 = vpop.xlane.xlu0 %9086 }
0x714b   :  { %16385 = vrcp.f32 %v9087_v8 }
0x714e   :  { %v9091_v9 = vpop.permute.xlu0 %9090 }
0x714f   :  { %15154 = vmatpush3.msk.msra.mxu1 %vm231_vm5, %v9091_v9 }
0x7150   :  { %15158 = vmatprep.subr.mxu1 %v16471_v11 }
0x7152   :  { %v9337_v47 = vpop.permute.xlu0 %9336 }
0x7153   :  { %15169 = vmatpush3.xpose.msk.msra.mxu0 %vm137_vm3, %v9337_v47 }
0x7154   :  { %15901 = vmatprep.subr.bf16.mxu0 %v16469_v7 }
0x7155   :  { %v16386_v48 = vpop.eup %16385 }
0x7156   :  { %15171 = vmatmul.mubr.msk.f32.vlgmr.msra.gmra.mrb[50].mxu0 %vm137_vm3, %v9335_v51  ;;  %v9089_v18 = vmul.f32 %v16386_v48, %v16384_v37 }
0x7157   :  { %15186 = vmatprep.mubr.msk.f32.mxu0 %vm16470_vm1, %v16471_v11 }
0x7158   :  { %15156 = vmatmul.mubr.msk.f32.vlgmr.msra.gmra.mrb[150].mxu1 %vm227_vm6, %v9089_v18 }
0x7159   :  { %15159 = vmatpush3.xpose.msk.msra.mxu1 %vm137_vm3, %v9170_v19  ;;  %15160 = vmatprep.mubr.msk.f32.mxu1 %vm16470_vm1, %v16471_v11 }
0x715a   :  { %15163 = vmatprep.subr.mxu1 %v16471_v11 }
0x715c   :  { %15161 = vmatmul.mubr.msk.f32.vlgmr.msra.gmra.mrb[152].mxu1 %vm137_vm3, %v9168_v42 }
0x715d   :  { %15165 = vmatprep.mubr.msk.f32.mxu1 %vm16470_vm1, %v16471_v11 }
0x7229   :  { %v9408_v59 = vpop.f32.mrb[50].mxu0 }
0x722a   :  { %v9412_v35 = vmul.f32 0.35355338, %v9408_v59  ;;  %v15172_v46 = vpop.f32.mrb[51].mxu0 }
0x722b   :  { %v9163_v55 = vpop.f32.mrb[150].mxu1 }
0x722c   :  { %v15157_v14 = vpop.f32.mrb[151].mxu1  ;;  %v9413_v54 = vsel %vm213_vm4, %v9412_v35, -inf }
0x722d   :  { %9414 = vmax.xlane.f32.xlu1 %v9413_v54  ;;  %v9609_v14 = vrot.slane %v18453_v44, %v16687_v61 }
0x722f   :  { %v9241_v28 = vpop.f32.mrb[152].mxu1 }
0x7230   :  { %v9245_v16 = vmul.f32 0.35355338, %v9241_v28  ;;  %v15162_v56 = vpop.f32.mrb[153].mxu1 }
0x7232   :  { %v9246_v3 = vsel %vm213_vm4, %v9245_v16, -inf }
0x7233   :  { %9247 = vmax.xlane.f32.xlu0 %v9246_v3 }
0x723e   :  { %9257 = vrot.lane.b32.xlu1 %v18464_v32, %s16480_s20 }
0x7242   :  { %16162 = vrot.lane.b32.xlu1 %v16161_v12, %s16483_s23  ;;  %v13535_v12 = vld [vmem:[%s19396_s5 + $0x408] sm:$0xff] }
0x7246   :  { %16167 = vrot.lane.b32.xlu1 %v16166_v36, %s16483_s23  ;;  %v13536_v36 = vld [vmem:[%s19396_s5 + $0x410] sm:$0xff] }
0x72ba   :  { %v9415_v38 = vpop.xlane.xlu1 %9414 }
0x72bb   :  { %v9416_v27 = vsub.f32 %v9412_v35, %v9415_v38 }
0x72bd   :  { %v9417_v31 = vmul.f32 1.442695, %v9416_v27 }
0x72be   :  { %v9258_v20 = vpop.permute.xlu1 %9257 }
0x72bf   :  { %16387 = vpow2.f32 %v9417_v31  ;;  %15164 = vmatpush3.msk.msra.mxu1 %vm231_vm5, %v9258_v20 }
0x72c0   :  { %v9248_v63 = vpop.xlane.xlu0 %9247  ;;  %15173 = vmatprep.subr.mxu1 %v16471_v11 }
0x72c1   :  { %v9249_v1 = vsub.f32 %v9245_v16, %v9248_v63  ;;  %v13529_v63 = vld [vmem:[%s19395_s4 + $0x100] sm:$0xff] }
0x72c2   :  { %v16163_v26 = vpop.permute.xlu1 %16162 }
0x72c3   :  { %v9250_v4 = vmul.f32 1.442695, %v9249_v1  ;;  %v16165_v62 = vunpack.i.h.bf16 %v16163_v26  ;;  %v16164_v15 = vunpack.i.l.bf16 %v16163_v26  ;;  %v13530_v1 = vld [vmem:[%s19395_s4 + $0x108] sm:$0xff] }
0x72c5   :  { %16389 = vpow2.f32 %v9250_v4  ;;  %v15902_v60 = vpack.c.bf16 %v16165_v62, %v16164_v15  ;;  %v15908_v4 = vpack.c.bf16 %v13530_v1, %v13529_v63  ;;  %v9627_v15 = vrot.slane %v18453_v44, %v16734_v39 }
0x72c6   :  { %v16168_v37 = vpop.permute.xlu1 %16167 }
0x72c7   :  { %v16170_v41 = vunpack.i.h.bf16 %v16168_v37  ;;  %v16169_v19 = vunpack.i.l.bf16 %v16168_v37  ;;  %15903 = vmatpush3.bf16.msra.mxu0 %v15902_v60 }
0x72c8   :  { %15904 = vmatprep.subr.bf16.mxu0 %v16469_v7 }
0x72c9   :  { %v16388_v5 = vpop.eup %16387  ;;  %v15905_v8 = vpack.c.bf16 %v16170_v41, %v16169_v19  ;;  %v9632_v41 = vrot.slane %v18453_v44, %v16737_v40 }
0x72ca   :  { %v9419_v13 = vsel %vm213_vm4, %v16388_v5, 0.0 }
0x72cb   :  { %9420 = vadd.xlane.f32.xlu0 %v9419_v13  ;;  %15906 = vmatpush3.bf16.msra.mxu0 %v15905_v8  ;;  %v13532_v13 = vld [vmem:[%s19395_s4 + $0x118] sm:$0xff] }
0x72cc   :  { %15913 = vmatprep.subr.bf16.mxu0 %v16469_v7 }
0x72cf   :  { %v16390_v17 = vpop.eup %16389 }
0x72d0   :  { %v9252_v45 = vsel %vm213_vm4, %v16390_v17, 0.0 }
0x72d1   :  { %9253 = vadd.xlane.f32.xlu0 %v9252_v45  ;;  %v13534_v45 = vld [vmem:[%s19396_s5 + $0x400] sm:$0xff] }
0x72e7   :  { %9424 = vrot.lane.b32.xlu0 %v18464_v32, %s16481_s21 }
0x72eb   :  { %9502 = vrot.lane.b32.xlu0 %v9163_v55, %s16484_s24 }
0x7358   :  { %v9421_v34 = vpop.xlane.xlu0 %9420 }
0x735e   :  { %v9254_v25 = vpop.xlane.xlu0 %9253 }
0x735f   :  { %16391 = vrcp.f32 %v9254_v25  ;;  %v13537_v25 = vld [vmem:[%s19396_s5 + $0x418] sm:$0xff] }
0x7360   :  { %16393 = vrcp.f32 %v9421_v34  ;;  %v15914_v34 = vpack.c.bf16 %v13535_v12, %v13534_v45 }
0x7362   :  { %v9425_v32 = vpop.permute.xlu0 %9424 }
0x7366   :  { %v9503_v51 = vpop.permute.xlu0 %9502 }
0x7367   :  { %v9513_v59 = vsel %vm137_vm3, %v18492_v24, %v9503_v51  ;;  %v13543_v51 = vld [vmem:[%s19396_s5 + $0x448] sm:$0xff] }
0x7369   :  { %v16392_v49 = vpop.eup %16391 }
0x736a   :  { %v9256_v50 = vmul.f32 %v16392_v49, %v16390_v17  ;;  %v16394_v53 = vpop.eup %16393  ;;  %v15917_v49 = vpack.c.bf16 %v13537_v25, %v13536_v36 }
0x736b   :  { %v9423_v22 = vmul.f32 %v16394_v53, %v16388_v5  ;;  %v13531_v5 = vld [vmem:[%s19395_s4 + $0x110] sm:$0xff]  ;;  %v13539_v53 = vld [vmem:[%s19396_s5 + $0x428] sm:$0xff] }
0x736c   :  { %15166 = vmatmul.mubr.msk.f32.vlgmr.msra.gmra.mrb[154].mxu1 %vm227_vm6, %v9256_v50  ;;  %v15911_v17 = vpack.c.bf16 %v13532_v13, %v13531_v5  ;;  %v13538_v50 = vld [vmem:[%s19396_s5 + $0x420] sm:$0xff]  ;;  %v9812_v13 = vrot.slane %v18453_v44, %v16789_v6 }
0x736d   :  { %15174 = vmatpush3.msk.msra.mxu1 %vm231_vm5, %v9425_v32  ;;  %15175 = vmatprep.mubr.msk.f32.mxu1 %vm16470_vm1, %v16471_v11  ;;  %v15920_v32 = vpack.c.bf16 %v13539_v53, %v13538_v50 }
0x736e   :  { %15907 = vmatprep.subr.bf16.mxu1 %v16469_v7 }
0x7370   :  { %15176 = vmatmul.mubr.msk.f32.vlgmr.msra.gmra.mrb[156].mxu1 %vm227_vm6, %v9423_v22 }
0x7371   :  { %15197 = vmatprep.mubr.msk.f32.mxu1 %vm16470_vm1, %v16471_v11  ;;  %15909 = vmatpush3.bf16.msra.mxu1 %v15908_v4 }
0x7372   :  { %15910 = vmatprep.subr.bf16.mxu1 %v16469_v7 }
0x7375   :  { %15912 = vmatpush3.bf16.msra.mxu1 %v15911_v17 }
0x7376   :  { %15937 = vmatprep.subr.bf16.mxu1 %v16469_v7 }
0x743f   :  { %v9330_v9 = vpop.f32.mrb[154].mxu1 }
0x7440   :  { %9506 = vrot.lane.b32.xlu1 %v9330_v9, %s16485_s25  ;;  %v15167_v42 = vpop.f32.mrb[155].mxu1  ;;  %v13540_v9 = vld [vmem:[%s19396_s5 + $0x430] sm:$0xff] }
0x7441   :  { %v13541_v42 = vld [vmem:[%s19396_s5 + $0x438] sm:$0xff] }
0x7443   :  { %v9497_v47 = vpop.f32.mrb[156].mxu1 }
0x7444   :  { %9510 = vrot.lane.b32.xlu0 %v9497_v47, %s16486_s26  ;;  %v15177_v48 = vpop.f32.mrb[157].mxu1  ;;  %v15923_v47 = vpack.c.bf16 %v13541_v42, %v13540_v9 }
0x7445   :  { %v13542_v48 = vld [vmem:[%s19396_s5 + $0x440] sm:$0xff] }
0x74b2   :  { %v9507_v18 = vpop.permute.xlu1 %9506 }
0x74b3   :  { %v9514_v35 = vsel %vm818_vm7, %v9513_v59, %v9507_v18  ;;  %v15926_v18 = vpack.c.bf16 %v13543_v51, %v13542_v48  ;;  %v13544_v59 = vld [vmem:[%s19396_s5 + $0x450] sm:$0xff] }
0x74b6   :  { %v9511_v46 = vpop.permute.xlu0 %9510 }
0x74b7   :  { %v9515_v55 = vsel %vm820_vm8, %v9514_v35, %v9511_v46  ;;  %v13545_v35 = vld [vmem:[%s19396_s5 + $0x458] sm:$0xff] }
0x74b8   :  { %15187 = vmatmul.mubr.msk.f32.vlgmr.msra.gmra.mrb[52].mxu0 %vm60_vm2, %v9515_v55  ;;  %v15929_v46 = vpack.c.bf16 %v13545_v35, %v13544_v59  ;;  %v13546_v55 = vld [vmem:[%s19396_s5 + $0x460] sm:$0xff] }
0x74b9   :  { %15232 = vmatprep.mubr.msk.f32.mxu0 %vm16470_vm1, %v16471_v11  ;;  %15915 = vmatpush3.bf16.msra.mxu0 %v15914_v34 }
0x74ba   :  { %15916 = vmatprep.subr.bf16.mxu0 %v16469_v7 }
0x74bd   :  { %15918 = vmatpush3.bf16.msra.mxu0 %v15917_v49 }
0x74be   :  { %15919 = vmatprep.subr.bf16.mxu0 %v16469_v7 }
0x74c1   :  { %15921 = vmatpush3.bf16.msra.mxu0 %v15920_v32 }
0x74c2   :  { %15922 = vmatprep.subr.bf16.mxu0 %v16469_v7 }
0x74c5   :  { %15924 = vmatpush3.bf16.msra.mxu0 %v15923_v47 }
0x74c6   :  { %15925 = vmatprep.subr.bf16.mxu0 %v16469_v7 }
0x74c9   :  { %15927 = vmatpush3.bf16.msra.mxu0 %v15926_v18 }
0x74ca   :  { %15928 = vmatprep.subr.bf16.mxu0 %v16469_v7 }
0x74cd   :  { %15930 = vmatpush3.bf16.msra.mxu0 %v15929_v46 }
0x74ce   :  { %15931 = vmatprep.subr.bf16.mxu0 %v16469_v7 }
0x758b   :  { %v9601_v54 = vpop.f32.mrb[52].mxu0 }
0x758c   :  { %v9605_v28 = vadd.f32 %v9601_v54, %v18418_v52  ;;  %v15188_v16 = vpop.f32.mrb[53].mxu0 }
0x758d   :  { %v13549_v16 = vld [vmem:[%s19396_s5 + $0x478] sm:$0xff] }
0x758e   :  { %v18560_v56 = vadd.f32 %v9609_v14, %v9605_v28  ;;  %v13547_v14 = vld [vmem:[%s19396_s5 + $0x468] sm:$0xff]  ;;  %v13548_v28 = vld [vmem:[%s19396_s5 + $0x470] sm:$0xff] }
0x758f   :  { %v15932_v54 = vpack.c.bf16 %v13547_v14, %v13546_v55 }
0x7590   :  { %v9611_v24 = vsel %vm31_vm0, %v18560_v56, 0.0 }
0x7591   :  { %9612 = vadd.xlane.f32.xlu1 %v9611_v24  ;;  %15933 = vmatpush3.bf16.msra.mxu0 %v15932_v54  ;;  %v15935_v24 = vpack.c.bf16 %v13549_v16, %v13548_v28 }
0x7592   :  { %15934 = vmatprep.subr.bf16.mxu0 %v16469_v7 }
0x7595   :  { %15936 = vmatpush3.bf16.msra.mxu0 %v15935_v24 }
0x7596   :  { %15276 = vmatprep.subr.mxu0 %v16471_v11 }
0x761e   :  { %v9613_v3 = vpop.xlane.xlu1 %9612 }
0x761f   :  { %v9614_v38 = vmul.f32 0.03125, %v9613_v3  ;;  %v9642_v3 = vrot.slane %v18453_v44, %v16782_v57  ;;  %v18659_v44 = vld [vmem:[%s19393_s3 + $0x120] sm:$0xff] }
0x7621   :  { %v9615_v27 = vsub.f32 %v18560_v56, %v9614_v38 }
0x7623   :  { %v9616_v31 = vmul.f32 %v9615_v27, %v9615_v27 }
0x7625   :  { %v9617_v20 = vsel %vm31_vm0, %v9616_v31, 0.0 }
0x7626   :  { %9618 = vadd.xlane.f32.xlu0 %v9617_v20 }
0x76b3   :  { %v9619_v22 = vpop.xlane.xlu0 %9618 }
0x76b4   :  { %v9620_v26 = vmul.f32 0.03125, %v9619_v22 }
0x76b6   :  { %v9621_v62 = vadd.f32 1e-06, %v9620_v26  ;;  %v18671_v26 = vld [vmem:[%s19393_s3 + $0x130] sm:$0xff] }
0x76b8   :  { %16395 = vrsqrt.f32 %v9621_v62  ;;  %v18676_v62 = vld [vmem:[%s19393_s3 + $0x138] sm:$0xff] }
0x76c2   :  { %v16396_v60 = vpop.eup %16395 }
0x76c3   :  { %v9623_v37 = vmul.f32 %v16396_v60, %v9615_v27 }
0x76c5   :  { %v9628_v19 = vmul.f32 %v9627_v15, %v9623_v37  ;;  %v15941_v15 = vpack.c.bf16 %v18676_v62, %v18671_v26 }
0x76c7   :  { %v9633_v8 = vadd.f32 %v9632_v41, %v9628_v19  ;;  %v18685_v19 = vld [vmem:[%s19394_s2 + $0x48] sm:$0xff] }
0x76c8   :  { %v9842_v47 = vrot.slane %v18685_v19, %v16581_v23  ;;  %v9847_v18 = vrot.slane %v18685_v19, %v16591_v30 }
0x76c9   :  { %15198 = vmatmul.mubr.msk.f32.vlgmr.msra.gmra.mrb[158].mxu1 %vm60_vm2, %v9633_v8  ;;  %v9837_v8 = vrot.slane %v18685_v19, %v16573_v21 }
0x76ca   :  { %15243 = vmatprep.mubr.msk.f32.mxu1 %vm16470_vm1, %v16471_v11 }
0x779c   :  { %v9712_v38 = vpop.f32.mrb[158].mxu1 }
0x779d   :  { %v9713_v27 = vadd.f32 %v9712_v38, %v9642_v3  ;;  %v15199_v31 = vpop.f32.mrb[159].mxu1 }
0x779f   :  { %v9717_v20 = vmul.f32 0.70710677, %v9713_v27  ;;  %v9716_v1 = vmul.f32 0.5, %v9713_v27 }
0x77a1   :  { %16397 = verf.f32 %v9717_v20 }
0x77ab   :  { %v16398_v63 = vpop.eup %16397 }
0x77ac   :  { %v9719_v4 = vadd.f32 1.0, %v16398_v63 }
0x77ae   :  { %v9720_v5 = vmul.f32 %v9719_v4, %v9716_v1 }
0x77b0   :  { %15233 = vmatmul.mubr.f32.vlgmr.msra.gmra.mrb[54].mxu0 %v9720_v5 }
0x77b1   :  { %15278 = vmatprep.mubr.msk.f32.mxu0 %vm16470_vm1, %v16471_v11 }
0x7883   :  { %v9804_v17 = vpop.f32.mrb[54].mxu0 }
0x7884   :  { %v9808_v45 = vadd.f32 %v9804_v17, %v18560_v56  ;;  %v15234_v12 = vpop.f32.mrb[55].mxu0  ;;  %v18664_v56 = vld [vmem:[%s19393_s3 + $0x128] sm:$0xff] }
0x7885   :  { %v15938_v22 = vpack.c.bf16 %v18664_v56, %v18659_v44 }
0x7886   :  { %v18650_v36 = vadd.f32 %v9812_v13, %v9808_v45 }
0x7887   :  { %15939 = vmatpush3.bf16.msra.mxu1 %v15938_v22 }
0x7888   :  { %v9821_v34 = vsel %vm31_vm0, %v18650_v36, 0.0  ;;  %15940 = vmatprep.subr.bf16.mxu1 %v16469_v7 }
0x7889   :  { %9822 = vadd.xlane.f32.xlu0 %v9821_v34 }
0x788b   :  { %15942 = vmatpush3.bf16.msra.mxu1 %v15941_v15 }
0x788c   :  { %15246 = vmatprep.subr.mxu1 %v16471_v11 }
0x7916   :  { %v9823_v25 = vpop.xlane.xlu0 %9822 }
0x7917   :  { %v9824_v49 = vmul.f32 0.03125, %v9823_v25 }
0x7919   :  { %v9825_v50 = vsub.f32 %v18650_v36, %v9824_v49 }
0x791b   :  { %v9826_v53 = vmul.f32 %v9825_v50, %v9825_v50 }
0x791d   :  { %v9827_v32 = vsel %vm31_vm0, %v9826_v53, 0.0 }
0x791e   :  { %9828 = vadd.xlane.f32.xlu1 %v9827_v32 }
0x79ab   :  { %v9829_v60 = vpop.xlane.xlu1 %9828 }
0x79ac   :  { %v9830_v37 = vmul.f32 0.03125, %v9829_v60 }
0x79ae   :  { %v9831_v41 = vadd.f32 1e-06, %v9830_v37 }
0x79b0   :  { %16399 = vrsqrt.f32 %v9831_v41 }
0x79ba   :  { %v16400_v9 = vpop.eup %16399 }
0x79bb   :  { %v9833_v42 = vmul.f32 %v16400_v9, %v9825_v50 }
0x79bd   :  { %v9838_v48 = vmul.f32 %v9837_v8, %v9833_v42 }
0x79bf   :  { %v9843_v51 = vadd.f32 %v9842_v47, %v9838_v48 }
0x79c1   :  { %15244 = vmatmul.mubr.msk.f32.vlgmr.msra.gmra.mrb[160].mxu1 %vm60_vm2, %v9843_v51 }
0x79c2   :  { %15248 = vmatprep.mubr.msk.f32.mxu1 %vm16470_vm1, %v16471_v11 }
0x7a94   :  { %v9917_v59 = vpop.f32.mrb[160].mxu1 }
0x7a95   :  { %v18696_v35 = vadd.f32 %v9917_v59, %v9847_v18  ;;  %v15245_v46 = vpop.f32.mrb[161].mxu1 }
0x7a97   :  { %9922 = vrot.lane.b32.xlu0 %v18696_v35, %s16473_s13 }
0x7a9b   :  { %10089 = vrot.lane.b32.xlu0 %v18696_v35, %s16474_s14 }
0x7a9f   :  { %10087 = vrot.lane.b32.xlu0 %v18696_v35, %s16472_s12 }
0x7b09   :  { %v9923_v55 = vpop.permute.xlu0 %9922 }
0x7b0a   :  { %15247 = vmatpush3.xpose.msk.msra.mxu1 %vm137_vm3, %v9923_v55 }
0x7b0b   :  { %15251 = vmatprep.subr.mxu1 %v16471_v11 }
0x7b0d   :  { %15249 = vmatmul.mubr.msk.f32.vlgmr.msra.gmra.mrb[162].mxu1 %vm137_vm3, %v18696_v35  ;;  %v10090_v4 = vpop.permute.xlu0 %10089 }
0x7b0e   :  { %15253 = vmatprep.mubr.msk.f32.mxu1 %vm16470_vm1, %v16471_v11 }
0x7b11   :  { %v10088_v13 = vpop.permute.xlu0 %10087 }
0x7be0   :  { %v9994_v14 = vpop.f32.mrb[162].mxu1 }
0x7be1   :  { %v9998_v54 = vmul.f32 0.35355338, %v9994_v14  ;;  %v15250_v28 = vpop.f32.mrb[163].mxu1 }
0x7be3   :  { %v9999_v16 = vsel %vm213_vm4, %v9998_v54, -inf }
0x7be4   :  { %10000 = vmax.xlane.f32.xlu1 %v9999_v16 }
0x7c71   :  { %v10001_v24 = vpop.xlane.xlu1 %10000 }
0x7c72   :  { %v10002_v3 = vsub.f32 %v9998_v54, %v10001_v24 }
0x7c74   :  { %v10003_v38 = vmul.f32 1.442695, %v10002_v3 }
0x7c76   :  { %16401 = vpow2.f32 %v10003_v38 }
0x7c80   :  { %v16402_v27 = vpop.eup %16401 }
0x7c81   :  { %v10005_v31 = vsel %vm213_vm4, %v16402_v27, 0.0 }
0x7c82   :  { %10006 = vadd.xlane.f32.xlu1 %v10005_v31 }
0x7c93   :  { %10010 = vrot.lane.b32.xlu1 %v18696_v35, %s16479_s19 }
0x7d0f   :  { %v10007_v20 = vpop.xlane.xlu1 %10006 }
0x7d10   :  { %16403 = vrcp.f32 %v10007_v20 }
0x7d13   :  { %v10011_v63 = vpop.permute.xlu1 %10010 }
0x7d14   :  { %15252 = vmatpush3.msk.msra.mxu1 %vm231_vm5, %v10011_v63 }
0x7d15   :  { %15256 = vmatprep.subr.mxu1 %v16471_v11 }
0x7d1a   :  { %v16404_v1 = vpop.eup %16403 }
0x7d1b   :  { %v10009_v5 = vmul.f32 %v16404_v1, %v16402_v27 }
0x7d1d   :  { %15254 = vmatmul.mubr.msk.f32.vlgmr.msra.gmra.mrb[164].mxu1 %vm227_vm6, %v10009_v5 }
0x7d1e   :  { %15257 = vmatpush3.xpose.msk.msra.mxu1 %vm137_vm3, %v10090_v4  ;;  %15258 = vmatprep.mubr.msk.f32.mxu1 %vm16470_vm1, %v16471_v11 }
0x7d1f   :  { %15261 = vmatprep.subr.mxu1 %v16471_v11 }
0x7d21   :  { %15259 = vmatmul.mubr.msk.f32.vlgmr.msra.gmra.mrb[166].mxu1 %vm137_vm3, %v10088_v13 }
0x7d22   :  { %15263 = vmatprep.mubr.msk.f32.mxu1 %vm16470_vm1, %v16471_v11 }
0x7df0   :  { %v18724_v17 = vpop.f32.mrb[164].mxu1 }
0x7df1   :  { %v15255_v45 = vpop.f32.mrb[165].mxu1 }
0x7df4   :  { %v10161_v12 = vpop.f32.mrb[166].mxu1 }
0x7df5   :  { %v10165_v34 = vmul.f32 0.35355338, %v10161_v12  ;;  %v15260_v25 = vpop.f32.mrb[167].mxu1  ;;  %v16171_v12 = vpack.i.bf16 %v18664_v56, %v18659_v44 }
0x7df7   :  { %v10166_v49 = vsel %vm213_vm4, %v10165_v34, -inf }
0x7df8   :  { %10167 = vmax.xlane.f32.xlu1 %v10166_v49 }
0x7e09   :  { %10256 = vrot.lane.b32.xlu1 %v18696_v35, %s16475_s15 }
0x7e0d   :  { %10254 = vrot.lane.b32.xlu1 %v18696_v35, %s16476_s16 }
0x7e11   :  { %10421 = vrot.lane.b32.xlu1 %v18696_v35, %s16478_s18 }
0x7e85   :  { %v10168_v50 = vpop.xlane.xlu1 %10167 }
0x7e86   :  { %v10169_v53 = vsub.f32 %v10165_v34, %v10168_v50  ;;  %v16176_v34 = vpack.i.bf16 %v18676_v62, %v18671_v26 }
0x7e88   :  { %v10170_v32 = vmul.f32 1.442695, %v10169_v53 }
0x7e89   :  { %v10257_v60 = vpop.permute.xlu1 %10256 }
0x7e8a   :  { %16405 = vpow2.f32 %v10170_v32 }
0x7e8d   :  { %v10255_v8 = vpop.permute.xlu1 %10254 }
0x7e91   :  { %v10422_v47 = vpop.permute.xlu1 %10421 }
0x7e94   :  { %v16406_v22 = vpop.eup %16405 }
0x7e95   :  { %v10172_v15 = vsel %vm213_vm4, %v16406_v22, 0.0 }
0x7e96   :  { %10173 = vadd.xlane.f32.xlu0 %v10172_v15 }
0x7eac   :  { %10177 = vrot.lane.b32.xlu0 %v18696_v35, %s16482_s22 }
0x7eb0   :  { %10423 = vrot.lane.b32.xlu0 %v18696_v35, %s16477_s17 }
0x7f23   :  { %v10174_v37 = vpop.xlane.xlu0 %10173 }
0x7f24   :  { %16407 = vrcp.f32 %v10174_v37 }
0x7f27   :  { %v10178_v41 = vpop.permute.xlu0 %10177 }
0x7f28   :  { %15262 = vmatpush3.msk.msra.mxu1 %vm231_vm5, %v10178_v41 }
0x7f29   :  { %15266 = vmatprep.subr.mxu1 %v16471_v11 }
0x7f2b   :  { %v10424_v9 = vpop.permute.xlu0 %10423 }
0x7f2c   :  { %15277 = vmatpush3.xpose.msk.msra.mxu0 %vm137_vm3, %v10424_v9 }
0x7f2d   :  { %15943 = vmatprep.subr.bf16.mxu0 %v16469_v7 }
0x7f2e   :  { %v16408_v42 = vpop.eup %16407 }
0x7f2f   :  { %v10176_v48 = vmul.f32 %v16408_v42, %v16406_v22  ;;  %15279 = vmatmul.mubr.msk.f32.vlgmr.msra.gmra.mrb[56].mxu0 %vm137_vm3, %v10422_v47 }
0x7f30   :  { %15294 = vmatprep.mubr.msk.f32.mxu0 %vm16470_vm1, %v16471_v11 }
0x7f31   :  { %15264 = vmatmul.mubr.msk.f32.vlgmr.msra.gmra.mrb[168].mxu1 %vm227_vm6, %v10176_v48 }
0x7f32   :  { %15267 = vmatpush3.xpose.msk.msra.mxu1 %vm137_vm3, %v10257_v60  ;;  %15268 = vmatprep.mubr.msk.f32.mxu1 %vm16470_vm1, %v16471_v11 }
0x7f33   :  { %15271 = vmatprep.subr.mxu1 %v16471_v11 }
0x7f35   :  { %15269 = vmatmul.mubr.msk.f32.vlgmr.msra.gmra.mrb[170].mxu1 %vm137_vm3, %v10255_v8 }
0x7f36   :  { %15273 = vmatprep.mubr.msk.f32.mxu1 %vm16470_vm1, %v16471_v11 }
0x8002   :  { %v10495_v51 = vpop.f32.mrb[56].mxu0 }
0x8003   :  { %v10499_v18 = vmul.f32 0.35355338, %v10495_v51  ;;  %v15280_v59 = vpop.f32.mrb[57].mxu0 }
0x8004   :  { %v10250_v46 = vpop.f32.mrb[168].mxu1 }
0x8005   :  { %v15265_v55 = vpop.f32.mrb[169].mxu1  ;;  %v10500_v14 = vsel %vm213_vm4, %v10499_v18, -inf }
0x8006   :  { %10501 = vmax.xlane.f32.xlu1 %v10500_v14  ;;  %v10696_v14 = vrot.slane %v18685_v19, %v16687_v61 }
0x8008   :  { %v10328_v54 = vpop.f32.mrb[170].mxu1 }
0x8009   :  { %v10332_v28 = vmul.f32 0.35355338, %v10328_v54  ;;  %v15270_v16 = vpop.f32.mrb[171].mxu1 }
0x800b   :  { %v10333_v24 = vsel %vm213_vm4, %v10332_v28, -inf }
0x800c   :  { %10334 = vmax.xlane.f32.xlu0 %v10333_v24 }
0x8017   :  { %10344 = vrot.lane.b32.xlu1 %v18696_v35, %s16480_s20 }
0x801b   :  { %16172 = vrot.lane.b32.xlu1 %v16171_v12, %s16483_s23  ;;  %v13578_v12 = vld [vmem:[%s19396_s5 + $0x480] sm:$0xff] }
0x801f   :  { %16177 = vrot.lane.b32.xlu1 %v16176_v34, %s16483_s23  ;;  %v13579_v34 = vld [vmem:[%s19396_s5 + $0x488] sm:$0xff] }
0x8093   :  { %v10502_v3 = vpop.xlane.xlu1 %10501 }
0x8094   :  { %v10503_v38 = vsub.f32 %v10499_v18, %v10502_v3 }
0x8096   :  { %v10504_v27 = vmul.f32 1.442695, %v10503_v38 }
0x8097   :  { %v10345_v31 = vpop.permute.xlu1 %10344 }
0x8098   :  { %16409 = vpow2.f32 %v10504_v27  ;;  %15272 = vmatpush3.msk.msra.mxu1 %vm231_vm5, %v10345_v31 }
0x8099   :  { %v10335_v20 = vpop.xlane.xlu0 %10334  ;;  %15281 = vmatprep.subr.mxu1 %v16471_v11 }
0x809a   :  { %v10336_v63 = vsub.f32 %v10332_v28, %v10335_v20 }
0x809b   :  { %v16173_v56 = vpop.permute.xlu1 %16172 }
0x809c   :  { %v10337_v1 = vmul.f32 1.442695, %v10336_v63  ;;  %v16175_v26 = vunpack.i.h.bf16 %v16173_v56  ;;  %v16174_v62 = vunpack.i.l.bf16 %v16173_v56  ;;  %v13573_v63 = vld [vmem:[%s19395_s4 + $0x120] sm:$0xff] }
0x809e   :  { %16411 = vpow2.f32 %v10337_v1  ;;  %v15944_v22 = vpack.c.bf16 %v16175_v26, %v16174_v62  ;;  %v13574_v1 = vld [vmem:[%s19395_s4 + $0x128] sm:$0xff] }
0x809f   :  { %v16178_v15 = vpop.permute.xlu1 %16177 }
0x80a0   :  { %v16180_v60 = vunpack.i.h.bf16 %v16178_v15  ;;  %v16179_v37 = vunpack.i.l.bf16 %v16178_v15  ;;  %15945 = vmatpush3.bf16.msra.mxu0 %v15944_v22  ;;  %v10714_v22 = vrot.slane %v18685_v19, %v16734_v39 }
0x80a1   :  { %15946 = vmatprep.subr.bf16.mxu0 %v16469_v7 }
0x80a2   :  { %v16410_v4 = vpop.eup %16409  ;;  %v15947_v41 = vpack.c.bf16 %v16180_v60, %v16179_v37  ;;  %v10719_v37 = vrot.slane %v18685_v19, %v16737_v40 }
0x80a3   :  { %v10506_v5 = vsel %vm213_vm4, %v16410_v4, 0.0 }
0x80a4   :  { %10507 = vadd.xlane.f32.xlu0 %v10506_v5  ;;  %15948 = vmatpush3.bf16.msra.mxu0 %v15947_v41  ;;  %v13575_v5 = vld [vmem:[%s19395_s4 + $0x130] sm:$0xff] }
0x80a5   :  { %15955 = vmatprep.subr.bf16.mxu0 %v16469_v7 }
0x80a8   :  { %v16412_v13 = vpop.eup %16411 }
0x80a9   :  { %v10339_v45 = vsel %vm213_vm4, %v16412_v13, 0.0 }
0x80aa   :  { %10340 = vadd.xlane.f32.xlu0 %v10339_v45 }
0x80c0   :  { %10511 = vrot.lane.b32.xlu0 %v18696_v35, %s16481_s21 }
0x80c4   :  { %10589 = vrot.lane.b32.xlu0 %v10250_v46, %s16484_s24 }
0x8131   :  { %v10508_v25 = vpop.xlane.xlu0 %10507 }
0x8137   :  { %v10341_v49 = vpop.xlane.xlu0 %10340 }
0x8138   :  { %16413 = vrcp.f32 %v10341_v49  ;;  %v15956_v49 = vpack.c.bf16 %v13579_v34, %v13578_v12 }
0x8139   :  { %16415 = vrcp.f32 %v10508_v25  ;;  %v13580_v25 = vld [vmem:[%s19396_s5 + $0x490] sm:$0xff] }
0x813b   :  { %v10512_v35 = vpop.permute.xlu0 %10511 }
0x813f   :  { %v10590_v48 = vpop.permute.xlu0 %10589 }
0x8140   :  { %v10600_v18 = vsel %vm137_vm3, %v18724_v17, %v10590_v48  ;;  %v13586_v48 = vld [vmem:[%s19396_s5 + $0x4c0] sm:$0xff] }
0x8142   :  { %v16414_v50 = vpop.eup %16413 }
0x8143   :  { %v10343_v53 = vmul.f32 %v16414_v50, %v16412_v13  ;;  %v16416_v32 = vpop.eup %16415  ;;  %v13576_v13 = vld [vmem:[%s19395_s4 + $0x138] sm:$0xff] }
0x8144   :  { %v10510_v44 = vmul.f32 %v16416_v32, %v16410_v4  ;;  %v15950_v4 = vpack.c.bf16 %v13574_v1, %v13573_v63  ;;  %v15953_v45 = vpack.c.bf16 %v13576_v13, %v13575_v5  ;;  %v13581_v50 = vld [vmem:[%s19396_s5 + $0x498] sm:$0xff]  ;;  %v13582_v32 = vld [vmem:[%s19396_s5 + $0x4a0] sm:$0xff] }
0x8145   :  { %15274 = vmatmul.mubr.msk.f32.vlgmr.msra.gmra.mrb[172].mxu1 %vm227_vm6, %v10343_v53  ;;  %v15959_v53 = vpack.c.bf16 %v13581_v50, %v13580_v25 }
0x8146   :  { %15282 = vmatpush3.msk.msra.mxu1 %vm231_vm5, %v10512_v35  ;;  %15283 = vmatprep.mubr.msk.f32.mxu1 %vm16470_vm1, %v16471_v11  ;;  %v13583_v35 = vld [vmem:[%s19396_s5 + $0x4a8] sm:$0xff] }
0x8147   :  { %15949 = vmatprep.subr.bf16.mxu1 %v16469_v7 }
0x8149   :  { %15284 = vmatmul.mubr.msk.f32.vlgmr.msra.gmra.mrb[174].mxu1 %vm227_vm6, %v10510_v44  ;;  %v15962_v44 = vpack.c.bf16 %v13583_v35, %v13582_v32 }
0x814a   :  { %15305 = vmatprep.mubr.msk.f32.mxu1 %vm16470_vm1, %v16471_v11  ;;  %15951 = vmatpush3.bf16.msra.mxu1 %v15950_v4 }
0x814b   :  { %15952 = vmatprep.subr.bf16.mxu1 %v16469_v7 }
0x814e   :  { %15954 = vmatpush3.bf16.msra.mxu1 %v15953_v45  ;;  %v10899_v45 = vrot.slane %v18685_v19, %v16789_v6 }
0x814f   :  { %15979 = vmatprep.subr.bf16.mxu1 %v16469_v7 }
0x8218   :  { %v10417_v8 = vpop.f32.mrb[172].mxu1 }
0x8219   :  { %10593 = vrot.lane.b32.xlu1 %v10417_v8, %s16485_s25  ;;  %v15275_v9 = vpop.f32.mrb[173].mxu1 }
0x821a   :  { %v13584_v9 = vld [vmem:[%s19396_s5 + $0x4b0] sm:$0xff] }
0x821c   :  { %v10584_v42 = vpop.f32.mrb[174].mxu1 }
0x821d   :  { %10597 = vrot.lane.b32.xlu0 %v10584_v42, %s16486_s26  ;;  %v15285_v47 = vpop.f32.mrb[175].mxu1  ;;  %v13585_v42 = vld [vmem:[%s19396_s5 + $0x4b8] sm:$0xff] }
0x821e   :  { %v15965_v47 = vpack.c.bf16 %v13585_v42, %v13584_v9 }
0x828b   :  { %v10594_v51 = vpop.permute.xlu1 %10593 }
0x828c   :  { %v10601_v59 = vsel %vm818_vm7, %v10600_v18, %v10594_v51  ;;  %v13587_v51 = vld [vmem:[%s19396_s5 + $0x4c8] sm:$0xff] }
0x828d   :  { %v15968_v18 = vpack.c.bf16 %v13587_v51, %v13586_v48 }
0x828f   :  { %v10598_v46 = vpop.permute.xlu0 %10597 }
0x8290   :  { %v10602_v55 = vsel %vm820_vm8, %v10601_v59, %v10598_v46  ;;  %v13588_v59 = vld [vmem:[%s19396_s5 + $0x4d0] sm:$0xff]  ;;  %v13589_v46 = vld [vmem:[%s19396_s5 + $0x4d8] sm:$0xff] }
0x8291   :  { %15295 = vmatmul.mubr.msk.f32.vlgmr.msra.gmra.mrb[58].mxu0 %vm60_vm2, %v10602_v55  ;;  %v15971_v55 = vpack.c.bf16 %v13589_v46, %v13588_v59 }
0x8292   :  { %15340 = vmatprep.mubr.msk.f32.mxu0 %vm16470_vm1, %v16471_v11  ;;  %15957 = vmatpush3.bf16.msra.mxu0 %v15956_v49 }
0x8293   :  { %15958 = vmatprep.subr.bf16.mxu0 %v16469_v7 }
0x8296   :  { %15960 = vmatpush3.bf16.msra.mxu0 %v15959_v53 }
0x8297   :  { %15961 = vmatprep.subr.bf16.mxu0 %v16469_v7 }
0x829a   :  { %15963 = vmatpush3.bf16.msra.mxu0 %v15962_v44 }
0x829b   :  { %15964 = vmatprep.subr.bf16.mxu0 %v16469_v7 }
0x829e   :  { %15966 = vmatpush3.bf16.msra.mxu0 %v15965_v47 }
0x829f   :  { %15967 = vmatprep.subr.bf16.mxu0 %v16469_v7 }
0x82a2   :  { %15969 = vmatpush3.bf16.msra.mxu0 %v15968_v18 }
0x82a3   :  { %15970 = vmatprep.subr.bf16.mxu0 %v16469_v7 }
0x82a6   :  { %15972 = vmatpush3.bf16.msra.mxu0 %v15971_v55 }
0x82a7   :  { %15973 = vmatprep.subr.bf16.mxu0 %v16469_v7 }
0x8364   :  { %v10688_v54 = vpop.f32.mrb[58].mxu0 }
0x8365   :  { %v10692_v28 = vadd.f32 %v10688_v54, %v18650_v36  ;;  %v15296_v16 = vpop.f32.mrb[59].mxu0  ;;  %v13591_v54 = vld [vmem:[%s19396_s5 + $0x4e8] sm:$0xff] }
0x8366   :  { %v13592_v16 = vld [vmem:[%s19396_s5 + $0x4f0] sm:$0xff] }
0x8367   :  { %v18792_v24 = vadd.f32 %v10696_v14, %v10692_v28  ;;  %v13590_v14 = vld [vmem:[%s19396_s5 + $0x4e0] sm:$0xff] }
0x8368   :  { %v15974_v28 = vpack.c.bf16 %v13591_v54, %v13590_v14 }
0x8369   :  { %v10698_v17 = vsel %vm31_vm0, %v18792_v24, 0.0 }
0x836a   :  { %10699 = vadd.xlane.f32.xlu1 %v10698_v17  ;;  %15975 = vmatpush3.bf16.msra.mxu0 %v15974_v28  ;;  %v13593_v17 = vld [vmem:[%s19396_s5 + $0x4f8] sm:$0xff] }
0x836b   :  { %15976 = vmatprep.subr.bf16.mxu0 %v16469_v7 }
0x83f7   :  { %v10700_v3 = vpop.xlane.xlu1 %10699 }
0x83f8   :  { %v10701_v38 = vmul.f32 0.03125, %v10700_v3  ;;  %v15977_v3 = vpack.c.bf16 %v13593_v17, %v13592_v16 }
0x83fa   :  { %v10702_v27 = vsub.f32 %v18792_v24, %v10701_v38  ;;  %15978 = vmatpush3.bf16.msra.mxu0 %v15977_v3  ;;  %v10729_v38 = vrot.slane %v18685_v19, %v16782_v57  ;;  %v18891_v19 = vld [vmem:[%s19393_s3 + $0x140] sm:$0xff] }
0x83fb   :  { %15384 = vmatprep.subr.mxu0 %v16471_v11 }
0x83fc   :  { %v10703_v31 = vmul.f32 %v10702_v27, %v10702_v27 }
0x83fe   :  { %v10704_v20 = vsel %vm31_vm0, %v10703_v31, 0.0 }
0x83ff   :  { %10705 = vadd.xlane.f32.xlu0 %v10704_v20 }
0x848c   :  { %v10706_v56 = vpop.xlane.xlu0 %10705 }
0x848d   :  { %v10707_v26 = vmul.f32 0.03125, %v10706_v56 }
0x848f   :  { %v10708_v62 = vadd.f32 1e-06, %v10707_v26 }
0x8491   :  { %16417 = vrsqrt.f32 %v10708_v62  ;;  %v18903_v62 = vld [vmem:[%s19393_s3 + $0x150] sm:$0xff] }
0x849b   :  { %v16418_v15 = vpop.eup %16417 }
0x849c   :  { %v10710_v60 = vmul.f32 %v16418_v15, %v10702_v27 }
0x849e   :  { %v10715_v41 = vmul.f32 %v10714_v22, %v10710_v60  ;;  %v18908_v22 = vld [vmem:[%s19393_s3 + $0x158] sm:$0xff] }
0x849f   :  { %v15983_v15 = vpack.c.bf16 %v18908_v22, %v18903_v62 }
0x84a0   :  { %v10720_v8 = vadd.f32 %v10719_v37, %v10715_v41 }
0x84a2   :  { %15306 = vmatmul.mubr.msk.f32.vlgmr.msra.gmra.mrb[176].mxu1 %vm60_vm2, %v10720_v8  ;;  %v18917_v8 = vld [vmem:[%s19394_s2 + $0x50] sm:$0xff] }
0x84a3   :  { %15351 = vmatprep.mubr.msk.f32.mxu1 %vm16470_vm1, %v16471_v11  ;;  %v10924_v9 = vrot.slane %v18917_v8, %v16573_v21  ;;  %v10929_v48 = vrot.slane %v18917_v8, %v16581_v23  ;;  %v10934_v59 = vrot.slane %v18917_v8, %v16591_v30 }
0x8575   :  { %v10799_v27 = vpop.f32.mrb[176].mxu1 }
0x8576   :  { %v10800_v31 = vadd.f32 %v10799_v27, %v10729_v38  ;;  %v15307_v20 = vpop.f32.mrb[177].mxu1 }
0x8578   :  { %v10804_v63 = vmul.f32 0.70710677, %v10800_v31  ;;  %v10803_v4 = vmul.f32 0.5, %v10800_v31 }
0x857a   :  { %16419 = verf.f32 %v10804_v63 }
0x8584   :  { %v16420_v1 = vpop.eup %16419 }
0x8585   :  { %v10806_v5 = vadd.f32 1.0, %v16420_v1 }
0x8587   :  { %v10807_v13 = vmul.f32 %v10806_v5, %v10803_v4 }
0x8589   :  { %15341 = vmatmul.mubr.f32.vlgmr.msra.gmra.mrb[60].mxu0 %v10807_v13 }
0x858a   :  { %15386 = vmatprep.mubr.msk.f32.mxu0 %vm16470_vm1, %v16471_v11 }
0x865c   :  { %v10891_v12 = vpop.f32.mrb[60].mxu0 }
0x865d   :  { %v10895_v34 = vadd.f32 %v10891_v12, %v18792_v24  ;;  %v15342_v25 = vpop.f32.mrb[61].mxu0  ;;  %v18896_v24 = vld [vmem:[%s19393_s3 + $0x148] sm:$0xff] }
0x865e   :  { %v15980_v26 = vpack.c.bf16 %v18896_v24, %v18891_v19 }
0x865f   :  { %v18882_v49 = vadd.f32 %v10899_v45, %v10895_v34 }
0x8660   :  { %15981 = vmatpush3.bf16.msra.mxu1 %v15980_v26 }
0x8661   :  { %v10908_v50 = vsel %vm31_vm0, %v18882_v49, 0.0  ;;  %15982 = vmatprep.subr.bf16.mxu1 %v16469_v7 }
0x8662   :  { %10909 = vadd.xlane.f32.xlu0 %v10908_v50 }
0x8664   :  { %15984 = vmatpush3.bf16.msra.mxu1 %v15983_v15 }
0x8665   :  { %15354 = vmatprep.subr.mxu1 %v16471_v11 }
0x86ef   :  { %v10910_v53 = vpop.xlane.xlu0 %10909 }
0x86f0   :  { %v10911_v32 = vmul.f32 0.03125, %v10910_v53 }
0x86f2   :  { %v10912_v35 = vsub.f32 %v18882_v49, %v10911_v32 }
0x86f4   :  { %v10913_v44 = vmul.f32 %v10912_v35, %v10912_v35 }
0x86f6   :  { %v10914_v56 = vsel %vm31_vm0, %v10913_v44, 0.0 }
0x86f7   :  { %10915 = vadd.xlane.f32.xlu1 %v10914_v56 }
0x8784   :  { %v10916_v60 = vpop.xlane.xlu1 %10915 }
0x8785   :  { %v10917_v37 = vmul.f32 0.03125, %v10916_v60 }
0x8787   :  { %v10918_v41 = vadd.f32 1e-06, %v10917_v37 }
0x8789   :  { %16421 = vrsqrt.f32 %v10918_v41 }
0x8793   :  { %v16422_v42 = vpop.eup %16421 }
0x8794   :  { %v10920_v47 = vmul.f32 %v16422_v42, %v10912_v35 }
0x8796   :  { %v10925_v51 = vmul.f32 %v10924_v9, %v10920_v47 }
0x8798   :  { %v10930_v18 = vadd.f32 %v10929_v48, %v10925_v51 }
0x879a   :  { %15352 = vmatmul.mubr.msk.f32.vlgmr.msra.gmra.mrb[178].mxu1 %vm60_vm2, %v10930_v18 }
0x879b   :  { %15356 = vmatprep.mubr.msk.f32.mxu1 %vm16470_vm1, %v16471_v11 }
0x886d   :  { %v11004_v46 = vpop.f32.mrb[178].mxu1 }
0x886e   :  { %v18928_v55 = vadd.f32 %v11004_v46, %v10934_v59  ;;  %v15353_v14 = vpop.f32.mrb[179].mxu1 }
0x8870   :  { %11009 = vrot.lane.b32.xlu0 %v18928_v55, %s16473_s13 }
0x8874   :  { %11176 = vrot.lane.b32.xlu0 %v18928_v55, %s16474_s14 }
0x8878   :  { %11174 = vrot.lane.b32.xlu0 %v18928_v55, %s16472_s12 }
0x88e2   :  { %v11010_v54 = vpop.permute.xlu0 %11009 }
0x88e3   :  { %15355 = vmatpush3.xpose.msk.msra.mxu1 %vm137_vm3, %v11010_v54 }
0x88e4   :  { %15359 = vmatprep.subr.mxu1 %v16471_v11 }
0x88e6   :  { %15357 = vmatmul.mubr.msk.f32.vlgmr.msra.gmra.mrb[180].mxu1 %vm137_vm3, %v18928_v55  ;;  %v11177_v13 = vpop.permute.xlu0 %11176 }
0x88e7   :  { %15361 = vmatprep.mubr.msk.f32.mxu1 %vm16470_vm1, %v16471_v11 }
0x88ea   :  { %v11175_v12 = vpop.permute.xlu0 %11174 }
0x89b9   :  { %v11081_v28 = vpop.f32.mrb[180].mxu1 }
0x89ba   :  { %v11085_v16 = vmul.f32 0.35355338, %v11081_v28  ;;  %v15358_v17 = vpop.f32.mrb[181].mxu1 }
0x89bc   :  { %v11086_v3 = vsel %vm213_vm4, %v11085_v16, -inf }
0x89bd   :  { %11087 = vmax.xlane.f32.xlu1 %v11086_v3 }
0x8a4a   :  { %v11088_v38 = vpop.xlane.xlu1 %11087 }
0x8a4b   :  { %v11089_v27 = vsub.f32 %v11085_v16, %v11088_v38 }
0x8a4d   :  { %v11090_v31 = vmul.f32 1.442695, %v11089_v27 }
0x8a4f   :  { %16423 = vpow2.f32 %v11090_v31 }
0x8a59   :  { %v16424_v20 = vpop.eup %16423 }
0x8a5a   :  { %v11092_v63 = vsel %vm213_vm4, %v16424_v20, 0.0 }
0x8a5b   :  { %11093 = vadd.xlane.f32.xlu1 %v11092_v63 }
0x8a6c   :  { %11097 = vrot.lane.b32.xlu1 %v18928_v55, %s16479_s19 }
0x8ae8   :  { %v11094_v1 = vpop.xlane.xlu1 %11093 }
0x8ae9   :  { %16425 = vrcp.f32 %v11094_v1 }
0x8aec   :  { %v11098_v4 = vpop.permute.xlu1 %11097 }
0x8aed   :  { %15360 = vmatpush3.msk.msra.mxu1 %vm231_vm5, %v11098_v4 }
0x8aee   :  { %15364 = vmatprep.subr.mxu1 %v16471_v11 }
0x8af3   :  { %v16426_v5 = vpop.eup %16425 }
0x8af4   :  { %v11096_v45 = vmul.f32 %v16426_v5, %v16424_v20 }
0x8af6   :  { %15362 = vmatmul.mubr.msk.f32.vlgmr.msra.gmra.mrb[182].mxu1 %vm227_vm6, %v11096_v45 }
0x8af7   :  { %15365 = vmatpush3.xpose.msk.msra.mxu1 %vm137_vm3, %v11177_v13  ;;  %15366 = vmatprep.mubr.msk.f32.mxu1 %vm16470_vm1, %v16471_v11 }
0x8af8   :  { %15369 = vmatprep.subr.mxu1 %v16471_v11 }
0x8afa   :  { %15367 = vmatmul.mubr.msk.f32.vlgmr.msra.gmra.mrb[184].mxu1 %vm137_vm3, %v11175_v12 }
0x8afb   :  { %15371 = vmatprep.mubr.msk.f32.mxu1 %vm16470_vm1, %v16471_v11 }
0x8bc9   :  { %v18956_v34 = vpop.f32.mrb[182].mxu1 }
0x8bca   :  { %v15363_v25 = vpop.f32.mrb[183].mxu1 }
0x8bcd   :  { %v11248_v50 = vpop.f32.mrb[184].mxu1 }
0x8bce   :  { %v11252_v53 = vmul.f32 0.35355338, %v11248_v50  ;;  %v15368_v32 = vpop.f32.mrb[185].mxu1 }
0x8bcf   :  { %v16186_v32 = vpack.i.bf16 %v18908_v22, %v18903_v62 }
0x8bd0   :  { %v11253_v35 = vsel %vm213_vm4, %v11252_v53, -inf }
0x8bd1   :  { %11254 = vmax.xlane.f32.xlu1 %v11253_v35 }
0x8be2   :  { %11343 = vrot.lane.b32.xlu1 %v18928_v55, %s16475_s15 }
0x8be6   :  { %11341 = vrot.lane.b32.xlu1 %v18928_v55, %s16476_s16 }
0x8bea   :  { %11508 = vrot.lane.b32.xlu1 %v18928_v55, %s16478_s18 }
0x8c5e   :  { %v11255_v44 = vpop.xlane.xlu1 %11254 }
0x8c5f   :  { %v11256_v56 = vsub.f32 %v11252_v53, %v11255_v44  ;;  %v16181_v53 = vpack.i.bf16 %v18896_v24, %v18891_v19 }
0x8c61   :  { %v11257_v26 = vmul.f32 1.442695, %v11256_v56 }
0x8c62   :  { %v11344_v37 = vpop.permute.xlu1 %11343 }
0x8c63   :  { %16427 = vpow2.f32 %v11257_v26 }
0x8c66   :  { %v11342_v42 = vpop.permute.xlu1 %11341 }
0x8c6a   :  { %v11509_v51 = vpop.permute.xlu1 %11508 }
0x8c6d   :  { %v16428_v15 = vpop.eup %16427 }
0x8c6e   :  { %v11259_v60 = vsel %vm213_vm4, %v16428_v15, 0.0 }
0x8c6f   :  { %11260 = vadd.xlane.f32.xlu0 %v11259_v60 }
0x8c85   :  { %11264 = vrot.lane.b32.xlu0 %v18928_v55, %s16482_s22 }
0x8c89   :  { %11510 = vrot.lane.b32.xlu0 %v18928_v55, %s16477_s17 }
0x8cfc   :  { %v11261_v41 = vpop.xlane.xlu0 %11260 }
0x8cfd   :  { %16429 = vrcp.f32 %v11261_v41 }
0x8d00   :  { %v11265_v9 = vpop.permute.xlu0 %11264 }
0x8d01   :  { %15370 = vmatpush3.msk.msra.mxu1 %vm231_vm5, %v11265_v9 }
0x8d02   :  { %15374 = vmatprep.subr.mxu1 %v16471_v11 }
0x8d04   :  { %v11511_v47 = vpop.permute.xlu0 %11510 }
0x8d05   :  { %15385 = vmatpush3.xpose.msk.msra.mxu0 %vm137_vm3, %v11511_v47 }
0x8d06   :  { %15985 = vmatprep.subr.bf16.mxu0 %v16469_v7 }
0x8d07   :  { %v16430_v48 = vpop.eup %16429 }
0x8d08   :  { %v11263_v18 = vmul.f32 %v16430_v48, %v16428_v15  ;;  %15387 = vmatmul.mubr.msk.f32.vlgmr.msra.gmra.mrb[62].mxu0 %vm137_vm3, %v11509_v51 }
0x8d09   :  { %15402 = vmatprep.mubr.msk.f32.mxu0 %vm16470_vm1, %v16471_v11 }
0x8d0a   :  { %15372 = vmatmul.mubr.msk.f32.vlgmr.msra.gmra.mrb[186].mxu1 %vm227_vm6, %v11263_v18 }
0x8d0b   :  { %15375 = vmatpush3.xpose.msk.msra.mxu1 %vm137_vm3, %v11344_v37  ;;  %15376 = vmatprep.mubr.msk.f32.mxu1 %vm16470_vm1, %v16471_v11 }
0x8d0c   :  { %15379 = vmatprep.subr.mxu1 %v16471_v11 }
0x8d0e   :  { %15377 = vmatmul.mubr.msk.f32.vlgmr.msra.gmra.mrb[188].mxu1 %vm137_vm3, %v11342_v42 }
0x8d0f   :  { %15381 = vmatprep.mubr.msk.f32.mxu1 %vm16470_vm1, %v16471_v11 }
0x8ddb   :  { %v11582_v59 = vpop.f32.mrb[62].mxu0 }
0x8ddc   :  { %v11586_v46 = vmul.f32 0.35355338, %v11582_v59  ;;  %v15388_v14 = vpop.f32.mrb[63].mxu0 }
0x8ddd   :  { %v11337_v54 = vpop.f32.mrb[186].mxu1 }
0x8dde   :  { %v15373_v28 = vpop.f32.mrb[187].mxu1  ;;  %v11587_v16 = vsel %vm213_vm4, %v11586_v46, -inf }
0x8ddf   :  { %11588 = vmax.xlane.f32.xlu1 %v11587_v16 }
0x8de1   :  { %v11415_v17 = vpop.f32.mrb[188].mxu1 }
0x8de2   :  { %v11419_v3 = vmul.f32 0.35355338, %v11415_v17  ;;  %v15378_v38 = vpop.f32.mrb[189].mxu1  ;;  %v11783_v17 = vrot.slane %v18917_v8, %v16687_v61 }
0x8de4   :  { %v11420_v27 = vsel %vm213_vm4, %v11419_v3, -inf }
0x8de5   :  { %11421 = vmax.xlane.f32.xlu0 %v11420_v27 }
0x8df0   :  { %11431 = vrot.lane.b32.xlu1 %v18928_v55, %s16480_s20 }
0x8df4   :  { %16182 = vrot.lane.b32.xlu1 %v16181_v53, %s16483_s23 }
0x8df8   :  { %16187 = vrot.lane.b32.xlu1 %v16186_v32, %s16483_s23  ;;  %v13622_v32 = vld [vmem:[%s19396_s5 + $0x500] sm:$0xff] }
0x8e6c   :  { %v11589_v31 = vpop.xlane.xlu1 %11588 }
0x8e6d   :  { %v11590_v20 = vsub.f32 %v11586_v46, %v11589_v31 }
0x8e6f   :  { %v11591_v63 = vmul.f32 1.442695, %v11590_v20 }
0x8e70   :  { %v11432_v1 = vpop.permute.xlu1 %11431 }
0x8e71   :  { %16431 = vpow2.f32 %v11591_v63  ;;  %15380 = vmatpush3.msk.msra.mxu1 %vm231_vm5, %v11432_v1 }
0x8e72   :  { %v11422_v4 = vpop.xlane.xlu0 %11421  ;;  %15389 = vmatprep.subr.mxu1 %v16471_v11 }
0x8e73   :  { %v11423_v5 = vsub.f32 %v11419_v3, %v11422_v4 }
0x8e74   :  { %v16183_v24 = vpop.permute.xlu1 %16182 }
0x8e75   :  { %v11424_v13 = vmul.f32 1.442695, %v11423_v5  ;;  %v16185_v62 = vunpack.i.h.bf16 %v16183_v24  ;;  %v16184_v22 = vunpack.i.l.bf16 %v16183_v24 }
0x8e77   :  { %16433 = vpow2.f32 %v11424_v13  ;;  %v15986_v60 = vpack.c.bf16 %v16185_v62, %v16184_v22  ;;  %v13617_v13 = vld [vmem:[%s19395_s4 + $0x140] sm:$0xff] }
0x8e78   :  { %v16188_v37 = vpop.permute.xlu1 %16187 }
0x8e79   :  { %v16190_v41 = vunpack.i.h.bf16 %v16188_v37  ;;  %v16189_v9 = vunpack.i.l.bf16 %v16188_v37  ;;  %15987 = vmatpush3.bf16.msra.mxu0 %v15986_v60  ;;  %v11801_v37 = vrot.slane %v18917_v8, %v16734_v39 }
0x8e7a   :  { %15988 = vmatprep.subr.bf16.mxu0 %v16469_v7 }
0x8e7b   :  { %v16432_v45 = vpop.eup %16431  ;;  %v15989_v42 = vpack.c.bf16 %v16190_v41, %v16189_v9 }
0x8e7c   :  { %v11593_v12 = vsel %vm213_vm4, %v16432_v45, 0.0 }
0x8e7d   :  { %11594 = vadd.xlane.f32.xlu0 %v11593_v12  ;;  %15990 = vmatpush3.bf16.msra.mxu0 %v15989_v42  ;;  %v11806_v42 = vrot.slane %v18917_v8, %v16737_v40 }
0x8e7e   :  { %15997 = vmatprep.subr.bf16.mxu0 %v16469_v7 }
0x8e81   :  { %v16434_v25 = vpop.eup %16433 }
0x8e82   :  { %v11426_v50 = vsel %vm213_vm4, %v16434_v25, 0.0 }
0x8e83   :  { %11427 = vadd.xlane.f32.xlu0 %v11426_v50  ;;  %v13620_v50 = vld [vmem:[%s19395_s4 + $0x158] sm:$0xff] }
0x8e99   :  { %11598 = vrot.lane.b32.xlu0 %v18928_v55, %s16481_s21 }
0x8e9d   :  { %11676 = vrot.lane.b32.xlu0 %v11337_v54, %s16484_s24 }
0x8f0a   :  { %v11595_v35 = vpop.xlane.xlu0 %11594 }
0x8f10   :  { %v11428_v44 = vpop.xlane.xlu0 %11427 }
0x8f11   :  { %16435 = vrcp.f32 %v11428_v44  ;;  %v13624_v44 = vld [vmem:[%s19396_s5 + $0x510] sm:$0xff] }
0x8f12   :  { %16437 = vrcp.f32 %v11595_v35  ;;  %v13623_v35 = vld [vmem:[%s19396_s5 + $0x508] sm:$0xff] }
0x8f14   :  { %v11599_v55 = vpop.permute.xlu0 %11598 }
0x8f18   :  { %v11677_v59 = vpop.permute.xlu0 %11676 }
0x8f19   :  { %v11687_v14 = vsel %vm137_vm3, %v18956_v34, %v11677_v59 }
0x8f1b   :  { %v16436_v56 = vpop.eup %16435 }
0x8f1c   :  { %v11430_v26 = vmul.f32 %v16436_v56, %v16434_v25  ;;  %v16438_v15 = vpop.eup %16437  ;;  %v13619_v25 = vld [vmem:[%s19395_s4 + $0x150] sm:$0xff]  ;;  %v15998_v56 = vpack.c.bf16 %v13623_v35, %v13622_v32  ;;  %v11986_v32 = vrot.slane %v18917_v8, %v16789_v6 }
0x8f1d   :  { %v11597_v19 = vmul.f32 %v16438_v15, %v16432_v45  ;;  %v13618_v45 = vld [vmem:[%s19395_s4 + $0x148] sm:$0xff]  ;;  %v15995_v53 = vpack.c.bf16 %v13620_v50, %v13619_v25 }
0x8f1e   :  { %15382 = vmatmul.mubr.msk.f32.vlgmr.msra.gmra.mrb[190].mxu1 %vm227_vm6, %v11430_v26  ;;  %v15992_v12 = vpack.c.bf16 %v13618_v45, %v13617_v13  ;;  %v13625_v26 = vld [vmem:[%s19396_s5 + $0x518] sm:$0xff] }
0x8f1f   :  { %15390 = vmatpush3.msk.msra.mxu1 %vm231_vm5, %v11599_v55  ;;  %15391 = vmatprep.mubr.msk.f32.mxu1 %vm16470_vm1, %v16471_v11  ;;  %v16001_v15 = vpack.c.bf16 %v13625_v26, %v13624_v44  ;;  %v13626_v55 = vld [vmem:[%s19396_s5 + $0x520] sm:$0xff] }
0x8f20   :  { %15991 = vmatprep.subr.bf16.mxu1 %v16469_v7 }
0x8f22   :  { %15392 = vmatmul.mubr.msk.f32.vlgmr.msra.gmra.mrb[192].mxu1 %vm227_vm6, %v11597_v19  ;;  %v13627_v19 = vld [vmem:[%s19396_s5 + $0x528] sm:$0xff] }
0x8f23   :  { %15413 = vmatprep.mubr.msk.f32.mxu1 %vm16470_vm1, %v16471_v11  ;;  %15993 = vmatpush3.bf16.msra.mxu1 %v15992_v12  ;;  %v16004_v24 = vpack.c.bf16 %v13627_v19, %v13626_v55 }
0x8f24   :  { %15994 = vmatprep.subr.bf16.mxu1 %v16469_v7 }
0x8f27   :  { %15996 = vmatpush3.bf16.msra.mxu1 %v15995_v53 }
0x8f28   :  { %16021 = vmatprep.subr.bf16.mxu1 %v16469_v7 }
0x8ff1   :  { %v11504_v47 = vpop.f32.mrb[190].mxu1 }
0x8ff2   :  { %11680 = vrot.lane.b32.xlu1 %v11504_v47, %s16485_s25  ;;  %v15383_v48 = vpop.f32.mrb[191].mxu1 }
0x8ff5   :  { %v11671_v51 = vpop.f32.mrb[192].mxu1 }
0x8ff6   :  { %11684 = vrot.lane.b32.xlu0 %v11671_v51, %s16486_s26  ;;  %v15393_v18 = vpop.f32.mrb[193].mxu1  ;;  %v13628_v51 = vld [vmem:[%s19396_s5 + $0x530] sm:$0xff] }
0x8ff7   :  { %v13629_v18 = vld [vmem:[%s19396_s5 + $0x538] sm:$0xff] }
0x8ff8   :  { %v16007_v59 = vpack.c.bf16 %v13629_v18, %v13628_v51  ;;  %v19149_v51 = vld [vmem:[%s19394_s2 + $0x58] sm:$0xff] }
0x8ff9   :  { %v12011_v18 = vrot.slane %v19149_v51, %v16573_v21 }
0x9064   :  { %v11681_v46 = vpop.permute.xlu1 %11680 }
0x9065   :  { %v11688_v54 = vsel %vm818_vm7, %v11687_v14, %v11681_v46  ;;  %v13630_v46 = vld [vmem:[%s19396_s5 + $0x540] sm:$0xff]  ;;  %v13631_v14 = vld [vmem:[%s19396_s5 + $0x548] sm:$0xff] }
0x9068   :  { %v11685_v28 = vpop.permute.xlu0 %11684 }
0x9069   :  { %v11689_v16 = vsel %vm820_vm8, %v11688_v54, %v11685_v28  ;;  %v16010_v54 = vpack.c.bf16 %v13631_v14, %v13630_v46  ;;  %v13632_v28 = vld [vmem:[%s19396_s5 + $0x550] sm:$0xff]  ;;  %v12016_v14 = vrot.slane %v19149_v51, %v16581_v23 }
0x906a   :  { %15403 = vmatmul.mubr.msk.f32.vlgmr.msra.gmra.mrb[64].mxu0 %vm60_vm2, %v11689_v16  ;;  %v13633_v16 = vld [vmem:[%s19396_s5 + $0x558] sm:$0xff] }
0x906b   :  { %15448 = vmatprep.mubr.msk.f32.mxu0 %vm16470_vm1, %v16471_v11  ;;  %15999 = vmatpush3.bf16.msra.mxu0 %v15998_v56 }
0x906c   :  { %16000 = vmatprep.subr.bf16.mxu0 %v16469_v7 }
0x906f   :  { %16002 = vmatpush3.bf16.msra.mxu0 %v16001_v15 }
0x9070   :  { %16003 = vmatprep.subr.bf16.mxu0 %v16469_v7 }
0x9073   :  { %16005 = vmatpush3.bf16.msra.mxu0 %v16004_v24 }
0x9074   :  { %16006 = vmatprep.subr.bf16.mxu0 %v16469_v7 }
0x9077   :  { %16008 = vmatpush3.bf16.msra.mxu0 %v16007_v59 }
0x9078   :  { %16009 = vmatprep.subr.bf16.mxu0 %v16469_v7 }
0x907b   :  { %16011 = vmatpush3.bf16.msra.mxu0 %v16010_v54 }
0x907c   :  { %16012 = vmatprep.subr.bf16.mxu0 %v16469_v7 }
0x913d   :  { %v11775_v3 = vpop.f32.mrb[64].mxu0 }
0x913e   :  { %v11779_v38 = vadd.f32 %v11775_v3, %v18882_v49  ;;  %v15404_v27 = vpop.f32.mrb[65].mxu0  ;;  %v13634_v3 = vld [vmem:[%s19396_s5 + $0x560] sm:$0xff] }
0x9140   :  { %v19024_v31 = vadd.f32 %v11783_v17, %v11779_v38  ;;  %v16013_v17 = vpack.c.bf16 %v13633_v16, %v13632_v28  ;;  %v13635_v38 = vld [vmem:[%s19396_s5 + $0x568] sm:$0xff]  ;;  %v12021_v16 = vrot.slane %v19149_v51, %v16591_v30 }
0x9141   :  { %v16016_v27 = vpack.c.bf16 %v13635_v38, %v13634_v3 }
0x9142   :  { %v11785_v34 = vsel %vm31_vm0, %v19024_v31, 0.0  ;;  %16014 = vmatpush3.bf16.msra.mxu0 %v16013_v17 }
0x9143   :  { %11786 = vadd.xlane.f32.xlu1 %v11785_v34  ;;  %16015 = vmatprep.subr.bf16.mxu0 %v16469_v7  ;;  %v13636_v34 = vld [vmem:[%s19396_s5 + $0x570] sm:$0xff] }
0x9146   :  { %16017 = vmatpush3.bf16.msra.mxu0 %v16016_v27 }
0x9147   :  { %16018 = vmatprep.subr.bf16.mxu0 %v16469_v7 }
0x91d0   :  { %v11787_v20 = vpop.xlane.xlu1 %11786 }
0x91d1   :  { %v11788_v63 = vmul.f32 0.03125, %v11787_v20  ;;  %v13637_v20 = vld [vmem:[%s19396_s5 + $0x578] sm:$0xff] }
0x91d3   :  { %v11789_v1 = vsub.f32 %v19024_v31, %v11788_v63  ;;  %v16019_v63 = vpack.c.bf16 %v13637_v20, %v13636_v34 }
0x91d5   :  { %v11790_v4 = vmul.f32 %v11789_v1, %v11789_v1  ;;  %16020 = vmatpush3.bf16.msra.mxu0 %v16019_v63 }
0x91d6   :  { %15492 = vmatprep.subr.mxu0 %v16471_v11 }
0x91d7   :  { %v11791_v5 = vsel %vm31_vm0, %v11790_v4, 0.0 }
0x91d8   :  { %11792 = vadd.xlane.f32.xlu0 %v11791_v5 }
0x9265   :  { %v11793_v62 = vpop.xlane.xlu0 %11792 }
0x9266   :  { %v11794_v22 = vmul.f32 0.03125, %v11793_v62 }
0x9268   :  { %v11795_v60 = vadd.f32 1e-06, %v11794_v22 }
0x926a   :  { %16439 = vrsqrt.f32 %v11795_v60 }
0x9274   :  { %v16440_v41 = vpop.eup %16439 }
0x9275   :  { %v11797_v9 = vmul.f32 %v16440_v41, %v11789_v1  ;;  %v11816_v1 = vrot.slane %v18917_v8, %v16782_v57  ;;  %v19123_v8 = vld [vmem:[%s19393_s3 + $0x160] sm:$0xff]  ;;  %v19140_v41 = vld [vmem:[%s19393_s3 + $0x178] sm:$0xff] }
0x9277   :  { %v11802_v47 = vmul.f32 %v11801_v37, %v11797_v9  ;;  %v19135_v37 = vld [vmem:[%s19393_s3 + $0x170] sm:$0xff] }
0x9278   :  { %v16025_v9 = vpack.c.bf16 %v19140_v41, %v19135_v37 }
0x9279   :  { %v11807_v48 = vadd.f32 %v11806_v42, %v11802_v47 }
0x927b   :  { %15414 = vmatmul.mubr.msk.f32.vlgmr.msra.gmra.mrb[194].mxu1 %vm60_vm2, %v11807_v48 }
0x927c   :  { %15459 = vmatprep.mubr.msk.f32.mxu1 %vm16470_vm1, %v16471_v11 }
0x934e   :  { %v11886_v4 = vpop.f32.mrb[194].mxu1 }
0x934f   :  { %v11887_v5 = vadd.f32 %v11886_v4, %v11816_v1  ;;  %v15415_v13 = vpop.f32.mrb[195].mxu1 }
0x9351   :  { %v11891_v45 = vmul.f32 0.70710677, %v11887_v5  ;;  %v11890_v25 = vmul.f32 0.5, %v11887_v5 }
0x9353   :  { %16441 = verf.f32 %v11891_v45 }
0x935d   :  { %v16442_v12 = vpop.eup %16441 }
0x935e   :  { %v11893_v50 = vadd.f32 1.0, %v16442_v12 }
0x9360   :  { %v11894_v53 = vmul.f32 %v11893_v50, %v11890_v25 }
0x9362   :  { %15449 = vmatmul.mubr.f32.vlgmr.msra.gmra.mrb[66].mxu0 %v11894_v53 }
0x9363   :  { %15494 = vmatprep.mubr.msk.f32.mxu0 %vm16470_vm1, %v16471_v11 }
0x9435   :  { %v11978_v35 = vpop.f32.mrb[66].mxu0 }
0x9436   :  { %v11982_v44 = vadd.f32 %v11978_v35, %v19024_v31  ;;  %v15450_v56 = vpop.f32.mrb[67].mxu0  ;;  %v19128_v31 = vld [vmem:[%s19393_s3 + $0x168] sm:$0xff] }
0x9437   :  { %v16022_v60 = vpack.c.bf16 %v19128_v31, %v19123_v8 }
0x9438   :  { %v19114_v26 = vadd.f32 %v11986_v32, %v11982_v44 }
0x9439   :  { %16023 = vmatpush3.bf16.msra.mxu1 %v16022_v60 }
0x943a   :  { %v11995_v15 = vsel %vm31_vm0, %v19114_v26, 0.0  ;;  %16024 = vmatprep.subr.bf16.mxu1 %v16469_v7 }
0x943b   :  { %11996 = vadd.xlane.f32.xlu0 %v11995_v15 }
0x943d   :  { %16026 = vmatpush3.bf16.msra.mxu1 %v16025_v9 }
0x943e   :  { %15462 = vmatprep.subr.mxu1 %v16471_v11 }
0x94c8   :  { %v11997_v55 = vpop.xlane.xlu0 %11996 }
0x94c9   :  { %v11998_v19 = vmul.f32 0.03125, %v11997_v55 }
0x94cb   :  { %v11999_v24 = vsub.f32 %v19114_v26, %v11998_v19 }
0x94cd   :  { %v12000_v62 = vmul.f32 %v11999_v24, %v11999_v24 }
0x94cf   :  { %v12001_v22 = vsel %vm31_vm0, %v12000_v62, 0.0 }
0x94d0   :  { %12002 = vadd.xlane.f32.xlu1 %v12001_v22 }
0x955d   :  { %v12003_v42 = vpop.xlane.xlu1 %12002 }
0x955e   :  { %v12004_v47 = vmul.f32 0.03125, %v12003_v42 }
0x9560   :  { %v12005_v48 = vadd.f32 1e-06, %v12004_v47 }
0x9562   :  { %16443 = vrsqrt.f32 %v12005_v48 }
0x956c   :  { %v16444_v59 = vpop.eup %16443 }
0x956d   :  { %v12007_v46 = vmul.f32 %v16444_v59, %v11999_v24 }
0x956f   :  { %v12012_v54 = vmul.f32 %v12011_v18, %v12007_v46 }
0x9571   :  { %v12017_v28 = vadd.f32 %v12016_v14, %v12012_v54 }
0x9573   :  { %15460 = vmatmul.mubr.msk.f32.vlgmr.msra.gmra.mrb[196].mxu1 %vm60_vm2, %v12017_v28 }
0x9574   :  { %15464 = vmatprep.mubr.msk.f32.mxu1 %vm16470_vm1, %v16471_v11 }
0x9646   :  { %v12091_v17 = vpop.f32.mrb[196].mxu1 }
0x9647   :  { %v19160_v3 = vadd.f32 %v12091_v17, %v12021_v16  ;;  %v15461_v38 = vpop.f32.mrb[197].mxu1 }
0x9649   :  { %12096 = vrot.lane.b32.xlu0 %v19160_v3, %s16473_s13 }
0x964d   :  { %12263 = vrot.lane.b32.xlu0 %v19160_v3, %s16474_s14 }
0x9651   :  { %12261 = vrot.lane.b32.xlu0 %v19160_v3, %s16472_s12 }
0x96bb   :  { %v12097_v21 = vpop.permute.xlu0 %12096 }
0x96bc   :  { %15463 = vmatpush3.xpose.msk.msra.mxu1 %vm137_vm3, %v12097_v21 }
0x96bd   :  { %15467 = vmatprep.subr.mxu1 %v16471_v11 }
0x96bf   :  { %15465 = vmatmul.mubr.msk.f32.vlgmr.msra.gmra.mrb[198].mxu1 %vm137_vm3, %v19160_v3  ;;  %v12264_v25 = vpop.permute.xlu0 %12263 }
0x96c0   :  { %15469 = vmatprep.mubr.msk.f32.mxu1 %vm16470_vm1, %v16471_v11 }
0x96c3   :  { %v12262_v53 = vpop.permute.xlu0 %12261 }
0x9792   :  { %v12168_v23 = vpop.f32.mrb[198].mxu1 }
0x9793   :  { %v12172_v30 = vmul.f32 0.35355338, %v12168_v23  ;;  %v15466_v27 = vpop.f32.mrb[199].mxu1 }
0x9795   :  { %v12173_v34 = vsel %vm213_vm4, %v12172_v30, -inf }
0x9796   :  { %12174 = vmax.xlane.f32.xlu1 %v12173_v34 }
0x9823   :  { %v12175_v20 = vpop.xlane.xlu1 %12174 }
0x9824   :  { %v12176_v63 = vsub.f32 %v12172_v30, %v12175_v20 }
0x9826   :  { %v12177_v1 = vmul.f32 1.442695, %v12176_v63 }
0x9828   :  { %16445 = vpow2.f32 %v12177_v1 }
0x9832   :  { %v16446_v4 = vpop.eup %16445 }
0x9833   :  { %v12179_v5 = vsel %vm213_vm4, %v16446_v4, 0.0 }
0x9834   :  { %12180 = vadd.xlane.f32.xlu1 %v12179_v5 }
0x9845   :  { %12184 = vrot.lane.b32.xlu1 %v19160_v3, %s16479_s19 }
0x98c1   :  { %v12181_v13 = vpop.xlane.xlu1 %12180 }
0x98c2   :  { %16447 = vrcp.f32 %v12181_v13 }
0x98c5   :  { %v12185_v45 = vpop.permute.xlu1 %12184 }
0x98c6   :  { %15468 = vmatpush3.msk.msra.mxu1 %vm231_vm5, %v12185_v45 }
0x98c7   :  { %15472 = vmatprep.subr.mxu1 %v16471_v11 }
0x98cc   :  { %v16448_v12 = vpop.eup %16447 }
0x98cd   :  { %v12183_v50 = vmul.f32 %v16448_v12, %v16446_v4 }
0x98cf   :  { %13164 = vst.msk [vmem:[%s19397_s7] sm:$0x1f] %vm213_vm4, %v12183_v50  ;;  %15470 = vmatmul.mubr.msk.f32.vlgmr.msra.gmra.mrb[200].mxu1 %vm227_vm6, %v12183_v50 }
0x98d0   :  { %15473 = vmatpush3.xpose.msk.msra.mxu1 %vm137_vm3, %v12264_v25  ;;  %15474 = vmatprep.mubr.msk.f32.mxu1 %vm16470_vm1, %v16471_v11 }
0x98d1   :  { %15477 = vmatprep.subr.mxu1 %v16471_v11 }
0x98d3   :  { %15475 = vmatmul.mubr.msk.f32.vlgmr.msra.gmra.mrb[202].mxu1 %vm137_vm3, %v12262_v53 }
0x98d4   :  { %15479 = vmatprep.mubr.msk.f32.mxu1 %vm16470_vm1, %v16471_v11 }
0x99a2   :  { %v19192_v32 = vpop.f32.mrb[200].mxu1 }
0x99a3   :  { %v15471_v35 = vpop.f32.mrb[201].mxu1 }
0x99a4   :  { %v16191_v35 = vpack.i.bf16 %v19128_v31, %v19123_v8 }
0x99a6   :  { %v12335_v44 = vpop.f32.mrb[202].mxu1 }
0x99a7   :  { %v12339_v56 = vmul.f32 0.35355338, %v12335_v44  ;;  %v15476_v15 = vpop.f32.mrb[203].mxu1  ;;  %v16196_v44 = vpack.i.bf16 %v19140_v41, %v19135_v37 }
0x99a9   :  { %v12340_v55 = vsel %vm213_vm4, %v12339_v56, -inf }
0x99aa   :  { %12341 = vmax.xlane.f32.xlu1 %v12340_v55 }
0x99bb   :  { %12430 = vrot.lane.b32.xlu1 %v19160_v3, %s16475_s15 }
0x99bf   :  { %12428 = vrot.lane.b32.xlu1 %v19160_v3, %s16476_s16 }
0x99c3   :  { %12595 = vrot.lane.b32.xlu1 %v19160_v3, %s16478_s18 }
0x9a37   :  { %v12342_v19 = vpop.xlane.xlu1 %12341 }
0x9a38   :  { %v12343_v24 = vsub.f32 %v12339_v56, %v12342_v19 }
0x9a3a   :  { %v12344_v62 = vmul.f32 1.442695, %v12343_v24 }
0x9a3b   :  { %v12431_v9 = vpop.permute.xlu1 %12430 }
0x9a3c   :  { %16449 = vpow2.f32 %v12344_v62 }
0x9a3f   :  { %v12429_v48 = vpop.permute.xlu1 %12428 }
0x9a43   :  { %v12596_v46 = vpop.permute.xlu1 %12595 }
0x9a46   :  { %v16450_v22 = vpop.eup %16449 }
0x9a47   :  { %v12346_v60 = vsel %vm213_vm4, %v16450_v22, 0.0 }
0x9a48   :  { %12347 = vadd.xlane.f32.xlu0 %v12346_v60 }
0x9a5e   :  { %12351 = vrot.lane.b32.xlu0 %v19160_v3, %s16482_s22 }
0x9a62   :  { %12597 = vrot.lane.b32.xlu0 %v19160_v3, %s16477_s17 }
0x9ad5   :  { %v12348_v42 = vpop.xlane.xlu0 %12347 }
0x9ad6   :  { %16451 = vrcp.f32 %v12348_v42 }
0x9ad9   :  { %v12352_v47 = vpop.permute.xlu0 %12351 }
0x9ada   :  { %15478 = vmatpush3.msk.msra.mxu1 %vm231_vm5, %v12352_v47 }
0x9adb   :  { %15482 = vmatprep.subr.mxu1 %v16471_v11 }
0x9add   :  { %v12598_v18 = vpop.permute.xlu0 %12597 }
0x9ade   :  { %15493 = vmatpush3.xpose.msk.msra.mxu0 %vm137_vm3, %v12598_v18 }
0x9adf   :  { %16027 = vmatprep.subr.bf16.mxu0 %v16469_v7 }
0x9ae0   :  { %v16452_v59 = vpop.eup %16451 }
0x9ae1   :  { %v12350_v14 = vmul.f32 %v16452_v59, %v16450_v22  ;;  %15495 = vmatmul.mubr.msk.f32.vlgmr.msra.gmra.mrb[68].mxu0 %vm137_vm3, %v12596_v46 }
0x9ae2   :  { %15510 = vmatprep.mubr.msk.f32.mxu0 %vm16470_vm1, %v16471_v11 }
0x9ae3   :  { %13684 = vst.msk [vmem:[%s19397_s7 + $0x8] sm:$0x1f] %vm213_vm4, %v12350_v14  ;;  %15480 = vmatmul.mubr.msk.f32.vlgmr.msra.gmra.mrb[204].mxu1 %vm227_vm6, %v12350_v14 }
0x9ae4   :  { %15483 = vmatpush3.xpose.msk.msra.mxu1 %vm137_vm3, %v12431_v9  ;;  %15484 = vmatprep.mubr.msk.f32.mxu1 %vm16470_vm1, %v16471_v11 }
0x9ae5   :  { %15487 = vmatprep.subr.mxu1 %v16471_v11 }
0x9ae7   :  { %15485 = vmatmul.mubr.msk.f32.vlgmr.msra.gmra.mrb[206].mxu1 %vm137_vm3, %v12429_v48 }
0x9ae8   :  { %15489 = vmatprep.mubr.msk.f32.mxu1 %vm16470_vm1, %v16471_v11 }
0x9bb4   :  { %v12669_v54 = vpop.f32.mrb[68].mxu0 }
0x9bb5   :  { %v12673_v28 = vmul.f32 0.35355338, %v12669_v54  ;;  %v15496_v16 = vpop.f32.mrb[69].mxu0 }
0x9bb6   :  { %v12424_v17 = vpop.f32.mrb[204].mxu1 }
0x9bb7   :  { %v15481_v38 = vpop.f32.mrb[205].mxu1  ;;  %v12674_v21 = vsel %vm213_vm4, %v12673_v28, -inf }
0x9bb8   :  { %12675 = vmax.xlane.f32.xlu1 %v12674_v21  ;;  %v12870_v38 = vrot.slane %v19149_v51, %v16687_v61  ;;  %v13085_v61 = vrot.slane %v17722_v2, 4 }
0x9bba   :  { %v12502_v23 = vpop.f32.mrb[206].mxu1 }
0x9bbb   :  { %v12506_v30 = vmul.f32 0.35355338, %v12502_v23  ;;  %v15486_v27 = vpop.f32.mrb[207].mxu1 }
0x9bbd   :  { %v12507_v34 = vsel %vm213_vm4, %v12506_v30, -inf }
0x9bbe   :  { %12508 = vmax.xlane.f32.xlu0 %v12507_v34  ;;  %v13076_v34 = vrot.slane %v17026_v43, 7  ;;  %v13091_v43 = vrot.slane %v18186_v58, 2  ;;  %v13661_v58 = vld [vmem:[%s19395_s4 + $0x160] sm:$0xff] }
0x9bc9   :  { %12518 = vrot.lane.b32.xlu1 %v19160_v3, %s16480_s20 }
0x9bcd   :  { %16192 = vrot.lane.b32.xlu1 %v16191_v35, %s16483_s23 }
0x9bd1   :  { %16197 = vrot.lane.b32.xlu1 %v16196_v44, %s16483_s23  ;;  %v13663_v44 = vld [vmem:[%s19395_s4 + $0x170] sm:$0xff] }
0x9c45   :  { %v12676_v20 = vpop.xlane.xlu1 %12675 }
0x9c46   :  { %v12677_v63 = vsub.f32 %v12673_v28, %v12676_v20  ;;  %v13079_v20 = vrot.slane %v17258_v29, 6 }
0x9c48   :  { %v12678_v1 = vmul.f32 1.442695, %v12677_v63 }
0x9c49   :  { %v12519_v4 = vpop.permute.xlu1 %12518 }
0x9c4a   :  { %16453 = vpow2.f32 %v12678_v1  ;;  %15488 = vmatpush3.msk.msra.mxu1 %vm231_vm5, %v12519_v4  ;;  %v13106_v4 = vsel %vm13105_vm9, %v16794_v0, %v13076_v34  ;;  %v13677_v34 = vld [vmem:[%s19396_s5 + $0x5d8] sm:$0xff] }
0x9c4b   :  { %v12509_v5 = vpop.xlane.xlu0 %12508  ;;  %15497 = vmatprep.subr.mxu1 %v16471_v11  ;;  %v13108_v29 = vsel %vm13107_vm10, %v13106_v4, %v13079_v20  ;;  %v13681_v4 = vld [vmem:[%s19396_s5 + $0x5f8] sm:$0xff] }
0x9c4c   :  { %v12510_v13 = vsub.f32 %v12506_v30, %v12509_v5  ;;  %v13088_v5 = vrot.slane %v17954_v10, 3 }
0x9c4d   :  { %v16193_v37 = vpop.permute.xlu1 %16192 }
0x9c4e   :  { %v12511_v45 = vmul.f32 1.442695, %v12510_v13  ;;  %v16195_v41 = vunpack.i.h.bf16 %v16193_v37  ;;  %v16194_v24 = vunpack.i.l.bf16 %v16193_v37 }
0x9c50   :  { %16455 = vpow2.f32 %v12511_v45  ;;  %v16028_v62 = vpack.c.bf16 %v16195_v41, %v16194_v24 }
0x9c51   :  { %v16198_v22 = vpop.permute.xlu1 %16197 }
0x9c52   :  { %v16200_v60 = vunpack.i.h.bf16 %v16198_v22  ;;  %v16199_v9 = vunpack.i.l.bf16 %v16198_v22  ;;  %16029 = vmatpush3.bf16.msra.mxu0 %v16028_v62  ;;  %v12888_v62 = vrot.slane %v19149_v51, %v16734_v39  ;;  %v13668_v39 = vld [vmem:[%s19396_s5 + $0x590] sm:$0xff] }
0x9c53   :  { %16030 = vmatprep.subr.bf16.mxu0 %v16469_v7 }
0x9c54   :  { %v16454_v12 = vpop.eup %16453  ;;  %v16031_v42 = vpack.c.bf16 %v16200_v60, %v16199_v9  ;;  %v12893_v9 = vrot.slane %v19149_v51, %v16737_v40  ;;  %v13669_v40 = vld [vmem:[%s19396_s5 + $0x598] sm:$0xff] }
0x9c55   :  { %v12680_v25 = vsel %vm213_vm4, %v16454_v12, 0.0 }
0x9c56   :  { %12681 = vadd.xlane.f32.xlu0 %v12680_v25  ;;  %16032 = vmatpush3.bf16.msra.mxu0 %v16031_v42 }
0x9c57   :  { %16039 = vmatprep.subr.bf16.mxu0 %v16469_v7 }
0x9c5a   :  { %v16456_v50 = vpop.eup %16455 }
0x9c5b   :  { %v12513_v53 = vsel %vm213_vm4, %v16456_v50, 0.0 }
0x9c5c   :  { %12514 = vadd.xlane.f32.xlu0 %v12513_v53 }
0x9c72   :  { %12685 = vrot.lane.b32.xlu0 %v19160_v3, %s16481_s21 }
0x9c76   :  { %12763 = vrot.lane.b32.xlu0 %v12424_v17, %s16484_s24 }
0x9ce3   :  { %v12682_v56 = vpop.xlane.xlu0 %12681 }
0x9ce4   :  { %16457 = vrcp.f32 %v12682_v56  ;;  %v13664_v56 = vld [vmem:[%s19395_s4 + $0x178] sm:$0xff] }
0x9ce9   :  { %v12515_v15 = vpop.xlane.xlu0 %12514 }
0x9cea   :  { %16459 = vrcp.f32 %v12515_v15  ;;  %v16037_v15 = vpack.c.bf16 %v13664_v56, %v13663_v44 }
0x9ced   :  { %v12686_v31 = vpop.permute.xlu0 %12685 }
0x9cee   :  { %v16458_v55 = vpop.eup %16457 }
0x9cef   :  { %v12684_v19 = vmul.f32 %v16458_v55, %v16454_v12 }
0x9cf1   :  { %13686 = vst.msk [vmem:[%s19397_s7 + $0x18] sm:$0x1f] %vm213_vm4, %v12684_v19  ;;  %v12764_v46 = vpop.permute.xlu0 %12763 }
0x9cf2   :  { %v12774_v54 = vsel %vm137_vm3, %v19192_v32, %v12764_v46  ;;  %v16043_v46 = vpack.c.bf16 %v13669_v40, %v13668_v39 }
0x9cf4   :  { %v16460_v3 = vpop.eup %16459 }
0x9cf5   :  { %v12517_v8 = vmul.f32 %v16460_v3, %v16456_v50 }
0x9cf7   :  { %13685 = vst.msk [vmem:[%s19397_s7 + $0x10] sm:$0x1f] %vm213_vm4, %v12517_v8  ;;  %15490 = vmatmul.mubr.msk.f32.vlgmr.msra.gmra.mrb[208].mxu1 %vm227_vm6, %v12517_v8 }
0x9cf8   :  { %15498 = vmatpush3.msk.msra.mxu1 %vm231_vm5, %v12686_v31  ;;  %15499 = vmatprep.mubr.msk.f32.mxu1 %vm16470_vm1, %v16471_v11 }
0x9cf9   :  { %16033 = vmatprep.subr.bf16.mxu1 %v16469_v7 }
0x9cfb   :  { %15500 = vmatmul.mubr.msk.f32.vlgmr.msra.gmra.mrb[210].mxu1 %vm227_vm6, %v12684_v19 }
0x9cfc   :  { %15521 = vmatprep.mubr.msk.f32.mxu1 %vm16470_vm1, %v16471_v11 }
0x9dca   :  { %v12591_v47 = vpop.f32.mrb[208].mxu1 }
0x9dcb   :  { %12767 = vrot.lane.b32.xlu1 %v12591_v47, %s16485_s25  ;;  %v15491_v48 = vpop.f32.mrb[209].mxu1 }
0x9dcc   :  { %v13666_v48 = vld [vmem:[%s19396_s5 + $0x580] sm:$0xff] }
0x9dce   :  { %v12758_v18 = vpop.f32.mrb[210].mxu1 }
0x9dcf   :  { %12771 = vrot.lane.b32.xlu0 %v12758_v18, %s16486_s26  ;;  %v15501_v59 = vpop.f32.mrb[211].mxu1  ;;  %v13667_v18 = vld [vmem:[%s19396_s5 + $0x588] sm:$0xff] }
0x9dd0   :  { %v16040_v59 = vpack.c.bf16 %v13667_v18, %v13666_v48 }
0x9e3d   :  { %v12768_v14 = vpop.permute.xlu1 %12767 }
0x9e3e   :  { %v12775_v28 = vsel %vm818_vm7, %v12774_v54, %v12768_v14  ;;  %v13670_v14 = vld [vmem:[%s19396_s5 + $0x5a0] sm:$0xff]  ;;  %v13671_v54 = vld [vmem:[%s19396_s5 + $0x5a8] sm:$0xff] }
0x9e41   :  { %v12772_v16 = vpop.permute.xlu0 %12771 }
0x9e42   :  { %v12776_v17 = vsel %vm820_vm8, %v12775_v28, %v12772_v16  ;;  %v16046_v28 = vpack.c.bf16 %v13671_v54, %v13670_v14  ;;  %v13672_v16 = vld [vmem:[%s19396_s5 + $0x5b0] sm:$0xff] }
0x9e43   :  { %15511 = vmatmul.mubr.msk.f32.vlgmr.msra.gmra.mrb[70].mxu0 %vm60_vm2, %v12776_v17  ;;  %v13673_v17 = vld [vmem:[%s19396_s5 + $0x5b8] sm:$0xff] }
0x9e44   :  { %15556 = vmatprep.mubr.msk.f32.mxu0 %vm16470_vm1, %v16471_v11  ;;  %v13082_v11 = vrot.slane %v17490_v33, 5  ;;  %v13094_v33 = vrot.slane %v18418_v52, 1  ;;  %v13662_v52 = vld [vmem:[%s19395_s4 + $0x168] sm:$0xff]  ;;  %16041 = vmatpush3.bf16.msra.mxu0 %v16040_v59 }
0x9e45   :  { %v16034_v35 = vpack.c.bf16 %v13662_v52, %v13661_v58  ;;  %16042 = vmatprep.subr.bf16.mxu0 %v16469_v7 }
0x9e46   :  { %v13110_v45 = vsel %vm13109_vm11, %v13108_v29, %v13082_v11  ;;  %v13678_v11 = vld [vmem:[%s19396_s5 + $0x5e0] sm:$0xff] }
0x9e47   :  { %v13112_v12 = vsel %vm13111_vm12, %v13110_v45, %v13085_v61  ;;  %16035 = vmatpush3.bf16.msra.mxu1 %v16034_v35  ;;  %v13682_v45 = vld [vmem:[%s19398_s1] ss:$0 sm:$0xff] }
0x9e48   :  { %v13113_v25 = vsel %vm231_vm5, %v13112_v12, %v13088_v5  ;;  %16036 = vmatprep.subr.bf16.mxu1 %v16469_v7  ;;  %16044 = vmatpush3.bf16.msra.mxu0 %v16043_v46 }
0x9e49   :  { %v13115_v10 = vsel %vm13114_vm13, %v13113_v25, %v13091_v43  ;;  %16045 = vmatprep.subr.bf16.mxu0 %v16469_v7 }
0x9e4a   :  { %v13117_v50 = vsel %vm13116_vm14, %v13115_v10, %v13094_v33 }
0x9e4b   :  { %v13123_v53 = vsel %vm60_vm2, %v13117_v50, 0.0  ;;  %16038 = vmatpush3.bf16.msra.mxu1 %v16037_v15  ;;  %v13073_v15 = vrot.slane %v19149_v51, %v16789_v6 }
0x9e4c   :  { %16047 = vmatpush3.bf16.msra.mxu0 %v16046_v28 }
0x9e4d   :  { %16048 = vmatprep.subr.bf16.mxu0 %v16469_v7 }
0x9f16   :  { %v12862_v21 = vpop.f32.mrb[70].mxu0 }
0x9f17   :  { %v12866_v23 = vadd.f32 %v12862_v21, %v19114_v26  ;;  %v15512_v30 = vpop.f32.mrb[71].mxu0  ;;  %v13674_v21 = vld [vmem:[%s19396_s5 + $0x5c0] sm:$0xff] }
0x9f19   :  { %v19272_v27 = vadd.f32 %v12870_v38, %v12866_v23  ;;  %v16049_v38 = vpack.c.bf16 %v13673_v17, %v13672_v16  ;;  %v13675_v23 = vld [vmem:[%s19396_s5 + $0x5c8] sm:$0xff] }
0x9f1a   :  { %v16052_v30 = vpack.c.bf16 %v13675_v23, %v13674_v21 }
0x9f1b   :  { %v12872_v32 = vsel %vm31_vm0, %v19272_v27, 0.0  ;;  %16050 = vmatpush3.bf16.msra.mxu0 %v16049_v38 }
0x9f1c   :  { %12873 = vadd.xlane.f32.xlu1 %v12872_v32  ;;  %16051 = vmatprep.subr.bf16.mxu0 %v16469_v7  ;;  %v13676_v32 = vld [vmem:[%s19396_s5 + $0x5d0] sm:$0xff] }
0x9f1d   :  { %v16055_v20 = vpack.c.bf16 %v13677_v34, %v13676_v32 }
0x9f1f   :  { %16053 = vmatpush3.bf16.msra.mxu0 %v16052_v30 }
0x9f20   :  { %16054 = vmatprep.subr.bf16.mxu0 %v16469_v7 }
0x9f23   :  { %16056 = vmatpush3.bf16.msra.mxu0 %v16055_v20 }
0x9f24   :  { %16057 = vmatprep.subr.bf16.mxu0 %v16469_v7 }
0x9fa9   :  { %v12874_v63 = vpop.xlane.xlu1 %12873 }
0x9faa   :  { %v12875_v1 = vmul.f32 0.03125, %v12874_v63  ;;  %v13679_v63 = vld [vmem:[%s19396_s5 + $0x5e8] sm:$0xff] }
0x9fab   :  { %v16058_v61 = vpack.c.bf16 %v13679_v63, %v13678_v11 }
0x9fac   :  { %v12876_v13 = vsub.f32 %v19272_v27, %v12875_v1  ;;  %v13680_v1 = vld [vmem:[%s19396_s5 + $0x5f0] sm:$0xff] }
0x9fad   :  { %16059 = vmatpush3.bf16.msra.mxu0 %v16058_v61  ;;  %v16061_v5 = vpack.c.bf16 %v13681_v4, %v13680_v1 }
0x9fae   :  { %v12877_v2 = vmul.f32 %v12876_v13, %v12876_v13  ;;  %16060 = vmatprep.subr.bf16.mxu0 %v16469_v7 }
0x9fb0   :  { %v12878_v0 = vsel %vm31_vm0, %v12877_v2, 0.0  ;;  %v13683_v2 = vld [vmem:[%s19398_s1 + $0x1] ss:$0 sm:$0xff] }
0x9fb1   :  { %12879 = vadd.xlane.f32.xlu0 %v12878_v0  ;;  %16062 = vmatpush3.bf16.msra.mxu0 %v16061_v5  ;;  %v12903_v0 = vrot.slane %v19149_v51, %v16782_v57  ;;  %v13100_v57 = vrot.slane %v19114_v26, 6 }
0x9fb5   :  { %13124 = vadd.xlane.f32.xlu0 %v13123_v53 }
0xa03e   :  { %v12880_v55 = vpop.xlane.xlu0 %12879 }
0xa03f   :  { %v12881_v19 = vmul.f32 0.03125, %v12880_v55 }
0xa041   :  { %v12882_v3 = vadd.f32 1e-06, %v12881_v19  ;;  %v13097_v19 = vrot.slane %v18882_v49, 7 }
0xa042   :  { %v13125_v8 = vpop.xlane.xlu0 %13124 }
0xa043   :  { %16461 = vrsqrt.f32 %v12882_v3  ;;  %v13130_v31 = vmul.f32 0.03125, %v13125_v8 }
0xa045   :  { %v13132_v37 = vsub.f32 %v13117_v50, %v13130_v31 }
0xa047   :  { %v13134_v41 = vmul.f32 %v13132_v37, %v13132_v37 }
0xa049   :  { %v13136_v24 = vsel %vm60_vm2, %v13134_v41, 0.0  ;;  %v13118_v41 = vsel %vm13105_vm9, %v18650_v36, %v13097_v19 }
0xa04a   :  { %13137 = vadd.xlane.f32.xlu0 %v13136_v24  ;;  %v13119_v24 = vsel %vm13107_vm10, %v13118_v41, %v13100_v57 }
0xa04d   :  { %v16462_v22 = vpop.eup %16461 }
0xa04e   :  { %v12884_v60 = vmul.f32 %v16462_v22, %v12876_v13 }
0xa050   :  { %v12889_v42 = vmul.f32 %v12888_v62, %v12884_v60 }
0xa052   :  { %v12894_v47 = vadd.f32 %v12893_v9, %v12889_v42 }
0xa054   :  { %15522 = vmatmul.mubr.msk.f32.vlgmr.msra.gmra.mrb[212].mxu1 %vm60_vm2, %v12894_v47 }
0xa0d7   :  { %v13138_v13 = vpop.xlane.xlu0 %13137 }
0xa0d8   :  { %v13142_v43 = vmul.f32 0.03125, %v13138_v13 }
0xa0da   :  { %v13144_v29 = vadd.f32 1e-06, %v13142_v43 }
0xa0dc   :  { %16463 = vrsqrt.f32 %v13144_v29 }
0xa0e6   :  { %v16464_v33 = vpop.eup %16463 }
0xa0e7   :  { %v13148_v7 = vmul.f32 %v16464_v33, %v13132_v37 }
0xa0e9   :  { %v13154_v12 = vmul.f32 %v13682_v45, %v13148_v7 }
0xa0eb   :  { %v13160_v25 = vadd.f32 %v13683_v2, %v13154_v12 }
0xa0ed   :  { %13162 = vst.msk [vmem:[%s19399_s6] sm:$0xff] %vm60_vm2, %v13160_v25 }
0xa127   :  { %v12973_v10 = vpop.f32.mrb[212].mxu1 }
0xa128   :  { %v12974_v50 = vadd.f32 %v12973_v10, %v12903_v0  ;;  %v15523_v53 = vpop.f32.mrb[213].mxu1 }
0xa12a   :  { %v12978_v58 = vmul.f32 0.70710677, %v12974_v50  ;;  %v12977_v35 = vmul.f32 0.5, %v12974_v50 }
0xa12c   :  { %16465 = verf.f32 %v12978_v58 }
0xa136   :  { %v16466_v52 = vpop.eup %16465 }
0xa137   :  { %v12980_v44 = vadd.f32 1.0, %v16466_v52 }
0xa139   :  { %v12981_v56 = vmul.f32 %v12980_v44, %v12977_v35 }
0xa13b   :  { %15557 = vmatmul.mubr.f32.vlgmr.msra.gmra.mrb[72].mxu0 %v12981_v56 }
0xa20e   :  { %v13065_v55 = vpop.f32.mrb[72].mxu0 }
0xa20f   :  { %v13069_v3 = vadd.f32 %v13065_v55, %v19272_v27  ;;  %v15558_v8 = vpop.f32.mrb[73].mxu0 }
0xa211   :  { %v13074_v31 = vadd.f32 %v13073_v15, %v13069_v3 }
0xa213   :  { %v13103_v37 = vrot.slane %v13074_v31, 5 }
0xa215   :  { %v13120_v62 = vsel %vm13109_vm11, %v13119_v24, %v13103_v37 }
0xa216   :  { %v13127_v6 = vsel %vm13126_vm15, %v13120_v62, 0.0 }
0xa217   :  { %13128 = vadd.xlane.f32.xlu1 %v13127_v6 }
0xa2a4   :  { %v13129_v51 = vpop.xlane.xlu1 %13128 }
0xa2a5   :  { %v13131_v49 = vmul.f32 0.03125, %v13129_v51 }
0xa2a7   :  { %v13133_v22 = vsub.f32 %v13120_v62, %v13131_v49 }
0xa2a9   :  { %v13135_v27 = vmul.f32 %v13133_v22, %v13133_v22 }
0xa2ab   :  { %v13139_v60 = vsel %vm13126_vm15, %v13135_v27, 0.0 }
0xa2ac   :  { %13140 = vadd.xlane.f32.xlu1 %v13139_v60 }
0xa339   :  { %v13141_v26 = vpop.xlane.xlu1 %13140 }
0xa33a   :  { %v13143_v9 = vmul.f32 0.03125, %v13141_v26 }
0xa33c   :  { %v13145_v42 = vadd.f32 1e-06, %v13143_v9 }
0xa33e   :  { %16467 = vrsqrt.f32 %v13145_v42 }
0xa348   :  { %v16468_v36 = vpop.eup %16467 }
0xa349   :  { %v13149_v47 = vmul.f32 %v16468_v36, %v13133_v22 }
0xa34b   :  { %v13155_v48 = vmul.f32 %v13682_v45, %v13149_v47 }
0xa34d   :  { %v13161_v18 = vadd.f32 %v13683_v2, %v13155_v48 }
0xa34f   :  { %13163 = vst.msk [vmem:[%s19399_s6 + $0x8] sm:$0xf] %vm13126_vm15, %v13161_v18 }

</bundles_post_ra>
